<compile_context>
chip_gen: v7x
topology: tpu7x:2x2x1
jax: 0.10.0
libtpu: 0.0.40
codegen_flags: <defaults>
</compile_context>

<pallas_src>
import math

import jax
import jax.numpy as jnp
from jax.experimental import pallas as pl
from jax.experimental.pallas import tpu as pltpu

# ----------------------------- small config ---------------------------------
B, S = 8, 16                # B*S = 128 rows -> fills the MXU M dim on v5e
NUM_BATCH_BLOCKS = 2        # parallel grid axis -> both v7x TensorCores busy
BB = B // NUM_BATCH_BLOCKS  # sequences per grid block
HIDDEN = 128                # stands in for 768 of xlm-roberta-base
N_LAYERS = 2
N_HEADS = 4
HEAD_DIM = HIDDEN // N_HEADS
INTERMEDIATE = 256
VOCAB = 64
MAX_POS = 32
HEAD_D1 = 256
HEAD_D2 = 64
HEAD_D2_PAD = 128           # lane-dense padding of the 64-wide head hidden
N_CLASSES = 8               # TODO(synk): len(encode_reverse) == 0 in the source; using 8 classes here.
OUT_PAD = 128               # lane-dense padded output width (sliced to N_CLASSES in wrapper)
LN_EPS = 1e-5
BN_EPS = 1e-5


# ----------------------------- fused model kernel ----------------------------
def _model_kernel(emb_ref, mask_ref, embln_ref,
                  wqkv_ref, bqkv_ref, wo_ref, bo_ref, ln1_ref,
                  wi_ref, bi_ref, wf_ref, bf_ref, ln2_ref,
                  wp_ref, bp_ref,
                  hw1_ref, hb1_ref, s1_ref, t1_ref,
                  hw2_ref, hb2_ref, s2_ref, t2_ref,
                  hw3_ref, hb3_ref,
                  out_ref,
                  qkv_ref):
    f32 = jnp.float32
    bf16 = jnp.bfloat16

    def layer_norm(x, gb):                       # gb: (2, H) -> row0=gamma, row1=beta
        mu = jnp.mean(x, axis=-1, keepdims=True)
        var = jnp.mean(jnp.square(x - mu), axis=-1, keepdims=True)
        return (x - mu) * jax.lax.rsqrt(var + LN_EPS) * gb[0:1, :] + gb[1:2, :]

    def mish(z):                                 # z * tanh(softplus(z)), safe softplus
        sp = jnp.maximum(z, 0.0) + jnp.log(1.0 + jnp.exp(-jnp.abs(z)))
        return z * jnp.tanh(sp)

    def dot_nt(a, b):                            # a @ b.T without an XLU transpose
        return jax.lax.dot_general(a, b, (((1,), (1,)), ((), ())),
                                   preferred_element_type=f32)

    # Additive masks (0 / -1e9), loaded once, hoisted out of the layer loop.
    masks = [mask_ref[b] for b in range(BB)]     # each (1, S) f32

    # Embedding LayerNorm.
    h = layer_norm(emb_ref[...], embln_ref[...])  # (BB*S, H) f32

    for l in range(N_LAYERS):
        # ---- fused QKV projection (bf16 MXU, f32 acc); attention scale is
        # pre-folded into the Q columns. Result parked in a bf16 VMEM scratch
        # so per-head slices come from the ref (bounded vreg live ranges). ----
        qkv_ref[...] = (jnp.dot(h.astype(bf16), wqkv_ref[l],
                                preferred_element_type=f32)
                        + bqkv_ref[l]).astype(bf16)

        # ---- attention: per (batch, head); context assembled lane-dense in vregs ----
        ctx_blocks = []
        for b in range(BB):
            r0 = b * S
            mb = masks[b]
            head_ctx = []
            for hh in range(N_HEADS):
                c0 = hh * HEAD_DIM
                qh = qkv_ref[r0:r0 + S, c0:c0 + HEAD_DIM]
                kh = qkv_ref[r0:r0 + S, HIDDEN + c0:HIDDEN + c0 + HEAD_DIM]
                vh = qkv_ref[r0:r0 + S, 2 * HIDDEN + c0:2 * HIDDEN + c0 + HEAD_DIM]
                sc = dot_nt(qh, kh) + mb                       # (S, S) f32
                sc = sc - jnp.max(sc, axis=-1, keepdims=True)
                p = jnp.exp(sc)
                p = p * pl.reciprocal(jnp.sum(p, axis=-1, keepdims=True), approx=True)
                head_ctx.append(jnp.dot(p.astype(bf16), vh,
                                        preferred_element_type=f32))
            # one lane-dense (S, HIDDEN) block per sequence
            ctx_blocks.append(jnp.concatenate(head_ctx, axis=-1).astype(bf16))
        ctx = jnp.concatenate(ctx_blocks, axis=0)              # (BB*S, H) bf16

        attn_out = jnp.dot(ctx, wo_ref[l], preferred_element_type=f32) + bo_ref[l]
        h = layer_norm(h + attn_out, ln1_ref[l])

        # ---- feed-forward ----
        ff = jnp.dot(h.astype(bf16), wi_ref[l], preferred_element_type=f32) + bi_ref[l]
        ff = jax.nn.gelu(ff, approximate=True)   # TODO(synk): HF uses exact erf GELU
        ff = jnp.dot(ff.astype(bf16), wf_ref[l], preferred_element_type=f32) + bf_ref[l]
        h = layer_norm(h + ff, ln2_ref[l])

    # ---- pooler: tanh(W_pool @ h[:, 0] + b); CLS rows gathered straight from vregs ----
    cls = jnp.concatenate([h[b * S:b * S + 1, :] for b in range(BB)], axis=0)
    pooled = jnp.tanh(jnp.dot(cls.astype(bf16), wp_ref[...],
                              preferred_element_type=f32) + bp_ref[...])

    # ---- multilabel head: Linear->Mish->BN(eval)->[Dropout=id]->Linear->Mish->BN->Linear ----
    z = jnp.dot(pooled.astype(bf16), hw1_ref[...], preferred_element_type=f32) + hb1_ref[...]
    z = mish(z) * s1_ref[...] + t1_ref[...]
    z = jnp.dot(z.astype(bf16), hw2_ref[...], preferred_element_type=f32) + hb2_ref[...]
    z = mish(z) * s2_ref[...] + t2_ref[...]
    out_ref[0] = (jnp.dot(z.astype(bf16), hw3_ref[...], preferred_element_type=f32)
                  + hb3_ref[...])                              # lane-dense (BB, 128)


# ----------------------------- parameters ------------------------------------
def init_params(key):
    keys = iter(jax.random.split(key, 16))

    def dense(*shape):
        return 0.02 * jax.random.normal(next(keys), shape, jnp.float32)

    ln_init = jnp.stack([jnp.ones((HIDDEN,), jnp.float32),
                         jnp.zeros((HIDDEN,), jnp.float32)])          # (2, H)
    ln_init_l = jnp.tile(ln_init[None], (N_LAYERS, 1, 1))             # (L, 2, H)

    return dict(
        word_emb=dense(VOCAB, HIDDEN),
        pos_emb=dense(MAX_POS, HIDDEN),
        type_emb=dense(1, HIDDEN),
        emb_ln=ln_init,
        # per-layer weights stacked on a leading layer axis; QKV concatenated.
        wqkv=dense(N_LAYERS, HIDDEN, 3 * HIDDEN),
        bqkv=jnp.zeros((N_LAYERS, 1, 3 * HIDDEN), jnp.float32),
        wo=dense(N_LAYERS, HIDDEN, HIDDEN),
        bo=jnp.zeros((N_LAYERS, 1, HIDDEN), jnp.float32),
        ln1=ln_init_l,
        wi=dense(N_LAYERS, HIDDEN, INTERMEDIATE),
        bi=jnp.zeros((N_LAYERS, 1, INTERMEDIATE), jnp.float32),
        wf=dense(N_LAYERS, INTERMEDIATE, HIDDEN),
        bf=jnp.zeros((N_LAYERS, 1, HIDDEN), jnp.float32),
        ln2=ln_init_l,
        w_pool=dense(HIDDEN, HIDDEN),
        b_pool=jnp.zeros((HIDDEN,), jnp.float32),
        # multilabel_layers
        hw1=dense(HIDDEN, HEAD_D1), hb1=jnp.zeros((HEAD_D1,), jnp.float32),
        bn1_g=jnp.ones((HEAD_D1,), jnp.float32), bn1_b=jnp.zeros((HEAD_D1,), jnp.float32),
        bn1_rm=jnp.zeros((HEAD_D1,), jnp.float32), bn1_rv=jnp.ones((HEAD_D1,), jnp.float32),
        hw2=dense(HEAD_D1, HEAD_D2), hb2=jnp.zeros((HEAD_D2,), jnp.float32),
        bn2_g=jnp.ones((HEAD_D2,), jnp.float32), bn2_b=jnp.zeros((HEAD_D2,), jnp.float32),
        bn2_rm=jnp.zeros((HEAD_D2,), jnp.float32), bn2_rv=jnp.ones((HEAD_D2,), jnp.float32),
        hw3=dense(HEAD_D2, N_CLASSES), hb3=jnp.zeros((N_CLASSES,), jnp.float32),
    )


# ----------------------------- forward ----------------------------------------
def my_bert_forward(params, input_ids, attention_mask):
    bsz, seq = input_ids.shape
    f32, bf16 = jnp.float32, jnp.bfloat16

    # Embedding gather + sum in plain JAX glue (single XLA op); LN is in-kernel.
    emb = (params["word_emb"][input_ids]
           + params["pos_emb"][:seq][None, :, :]
           + params["type_emb"][0][None, None, :])
    emb = emb.reshape(bsz * seq, HIDDEN).astype(f32)

    add_mask = ((1.0 - attention_mask.astype(f32)) * -1e9).reshape(bsz, 1, seq)

    # Fold the 1/sqrt(head_dim) attention scale into the Q columns of wqkv/bqkv.
    scale = 1.0 / math.sqrt(HEAD_DIM)
    qscale = jnp.concatenate([jnp.full((HIDDEN,), scale, f32),
                              jnp.ones((2 * HIDDEN,), f32)])
    wqkv = (params["wqkv"] * qscale[None, None, :]).astype(bf16)
    bqkv = params["bqkv"] * qscale[None, None, :]

    # Fold BatchNorm1d running stats (eval mode) into scale/shift.
    s1 = params["bn1_g"] * jax.lax.rsqrt(params["bn1_rv"] + BN_EPS)
    t1 = params["bn1_b"] - params["bn1_rm"] * s1
    s2 = params["bn2_g"] * jax.lax.rsqrt(params["bn2_rv"] + BN_EPS)
    t2 = params["bn2_b"] - params["bn2_rm"] * s2

    # Zero-pad the narrow head-MLP dims to lane-dense widths (64->128, 8->128).
    d2pad = HEAD_D2_PAD - HEAD_D2
    hw2 = jnp.pad(params["hw2"], ((0, 0), (0, d2pad))).astype(bf16)
    hb2 = jnp.pad(params["hb2"], (0, d2pad))
    s2p = jnp.pad(s2, (0, d2pad), constant_values=1.0)
    t2p = jnp.pad(t2, (0, d2pad))
    hw3 = jnp.pad(params["hw3"], ((0, d2pad), (0, OUT_PAD - N_CLASSES))).astype(bf16)
    hb3 = jnp.pad(params["hb3"], (0, OUT_PAD - N_CLASSES))

    args = (
        emb, add_mask, params["emb_ln"],
        wqkv, bqkv,
        params["wo"].astype(bf16), params["bo"], params["ln1"],
        params["wi"].astype(bf16), params["bi"],
        params["wf"].astype(bf16), params["bf"], params["ln2"],
        params["w_pool"].astype(bf16), params["b_pool"].reshape(1, HIDDEN),
        params["hw1"].astype(bf16), params["hb1"].reshape(1, -1),
        s1.reshape(1, -1), t1.reshape(1, -1),
        hw2, hb2.reshape(1, -1), s2p.reshape(1, -1), t2p.reshape(1, -1),
        hw3, hb3.reshape(1, -1),
    )

    def full_spec(a):          # whole array resident, same block every grid step
        return pl.BlockSpec(a.shape, lambda i, n=a.ndim: (0,) * n)

    in_specs = []
    for idx, a in enumerate(args):
        if idx == 0:           # embeddings: batch-blocked rows
            in_specs.append(pl.BlockSpec((BB * S, HIDDEN), lambda i: (i, 0)))
        elif idx == 1:         # additive attention mask: batch-blocked
            in_specs.append(pl.BlockSpec((BB, 1, S), lambda i: (i, 0, 0)))
        else:                  # weights / biases: fully resident
            in_specs.append(full_spec(a))

    # TODO(synk): output_hidden_states / output_attentions branches not exposed;
    # default path (return downs_topics) is implemented.
    out = pl.pallas_call(
        _model_kernel,
        grid=(NUM_BATCH_BLOCKS,),
        out_shape=jax.ShapeDtypeStruct((NUM_BATCH_BLOCKS, BB, OUT_PAD), f32),
        in_specs=in_specs,
        out_specs=pl.BlockSpec((1, BB, OUT_PAD), lambda i: (i, 0, 0)),
        scratch_shapes=[
            pltpu.VMEM((BB * S, 3 * HIDDEN), bf16),   # per-layer fused QKV parking
        ],
        compiler_params=pltpu.CompilerParams(
            dimension_semantics=("parallel",)),        # megacore on v7x
    )(*args)

    return out.reshape(bsz, OUT_PAD)[:, :N_CLASSES]


# ----------------------------- main -------------------------------------------
if __name__ == "__main__":
    key = jax.random.PRNGKey(0)
    pkey, ikey = jax.random.split(key)
    params = init_params(pkey)

    input_ids = jax.random.randint(ikey, (B, S), 0, VOCAB, dtype=jnp.int32)
    attention_mask = jnp.ones((B, S), jnp.int32).at[1, S - 4:].set(0)  # some padding

    logits = jax.jit(my_bert_forward)(params, input_ids, attention_mask)
    jax.block_until_ready(logits)
    assert logits.shape == (B, N_CLASSES) and logits.dtype == jnp.float32
    print("KERNEL_OK")
</pallas_src>

<mosaic_0001>
module attributes {stable_mosaic.version = 11 : i64} {
  func.func @_model_kernel(%arg0: i32, %arg1: memref<64x128xf32, #tpu.memory_space<vmem>>, %arg2: memref<4x1x16xf32, #tpu.memory_space<vmem>>, %arg3: memref<2x128xf32, #tpu.memory_space<vmem>>, %arg4: memref<2x128x384xbf16, #tpu.memory_space<vmem>>, %arg5: memref<2x1x384xf32, #tpu.memory_space<vmem>>, %arg6: memref<2x128x128xbf16, #tpu.memory_space<vmem>>, %arg7: memref<2x1x128xf32, #tpu.memory_space<vmem>>, %arg8: memref<2x2x128xf32, #tpu.memory_space<vmem>>, %arg9: memref<2x128x256xbf16, #tpu.memory_space<vmem>>, %arg10: memref<2x1x256xf32, #tpu.memory_space<vmem>>, %arg11: memref<2x256x128xbf16, #tpu.memory_space<vmem>>, %arg12: memref<2x1x128xf32, #tpu.memory_space<vmem>>, %arg13: memref<2x2x128xf32, #tpu.memory_space<vmem>>, %arg14: memref<128x128xbf16, #tpu.memory_space<vmem>>, %arg15: memref<1x128xf32, #tpu.memory_space<vmem>>, %arg16: memref<128x256xbf16, #tpu.memory_space<vmem>>, %arg17: memref<1x256xf32, #tpu.memory_space<vmem>>, %arg18: memref<1x256xf32, #tpu.memory_space<vmem>>, %arg19: memref<1x256xf32, #tpu.memory_space<vmem>>, %arg20: memref<256x128xbf16, #tpu.memory_space<vmem>>, %arg21: memref<1x128xf32, #tpu.memory_space<vmem>>, %arg22: memref<1x128xf32, #tpu.memory_space<vmem>>, %arg23: memref<1x128xf32, #tpu.memory_space<vmem>>, %arg24: memref<128x128xbf16, #tpu.memory_space<vmem>>, %arg25: memref<1x128xf32, #tpu.memory_space<vmem>>, %arg26: memref<1x4x128xf32, #tpu.memory_space<vmem>>, %arg27: memref<64x384xbf16, #tpu.memory_space<vmem>>) attributes {dimension_semantics = [#tpu.dimension_semantics<parallel>], iteration_bounds = array<i64: 2>, scalar_prefetch = 0 : i64, scratch_operands = 1 : i64, tpu.core_type = #tpu.core_type<tc>, window_params = [{transform_indices = @transform_0, window_bounds = array<i64: 64, 128>}, {transform_indices = @transform_1, window_bounds = array<i64: 4, 1, 16>}, {pipeline_mode = #tpu.pipeline_mode<synchronous>, transform_indices = @transform_2, window_bounds = array<i64: 2, 128>}, {pipeline_mode = #tpu.pipeline_mode<synchronous>, transform_indices = @transform_3, window_bounds = array<i64: 2, 128, 384>}, {pipeline_mode = #tpu.pipeline_mode<synchronous>, transform_indices = @transform_4, window_bounds = array<i64: 2, 1, 384>}, {pipeline_mode = #tpu.pipeline_mode<synchronous>, transform_indices = @transform_5, window_bounds = array<i64: 2, 128, 128>}, {pipeline_mode = #tpu.pipeline_mode<synchronous>, transform_indices = @transform_6, window_bounds = array<i64: 2, 1, 128>}, {pipeline_mode = #tpu.pipeline_mode<synchronous>, transform_indices = @transform_7, window_bounds = array<i64: 2, 2, 128>}, {pipeline_mode = #tpu.pipeline_mode<synchronous>, transform_indices = @transform_8, window_bounds = array<i64: 2, 128, 256>}, {pipeline_mode = #tpu.pipeline_mode<synchronous>, transform_indices = @transform_9, window_bounds = array<i64: 2, 1, 256>}, {pipeline_mode = #tpu.pipeline_mode<synchronous>, transform_indices = @transform_10, window_bounds = array<i64: 2, 256, 128>}, {pipeline_mode = #tpu.pipeline_mode<synchronous>, transform_indices = @transform_11, window_bounds = array<i64: 2, 1, 128>}, {pipeline_mode = #tpu.pipeline_mode<synchronous>, transform_indices = @transform_12, window_bounds = array<i64: 2, 2, 128>}, {pipeline_mode = #tpu.pipeline_mode<synchronous>, transform_indices = @transform_13, window_bounds = array<i64: 128, 128>}, {pipeline_mode = #tpu.pipeline_mode<synchronous>, transform_indices = @transform_14, window_bounds = array<i64: 1, 128>}, {pipeline_mode = #tpu.pipeline_mode<synchronous>, transform_indices = @transform_15, window_bounds = array<i64: 128, 256>}, {pipeline_mode = #tpu.pipeline_mode<synchronous>, transform_indices = @transform_16, window_bounds = array<i64: 1, 256>}, {pipeline_mode = #tpu.pipeline_mode<synchronous>, transform_indices = @transform_17, window_bounds = array<i64: 1, 256>}, {pipeline_mode = #tpu.pipeline_mode<synchronous>, transform_indices = @transform_18, window_bounds = array<i64: 1, 256>}, {pipeline_mode = #tpu.pipeline_mode<synchronous>, transform_indices = @transform_19, window_bounds = array<i64: 256, 128>}, {pipeline_mode = #tpu.pipeline_mode<synchronous>, transform_indices = @transform_20, window_bounds = array<i64: 1, 128>}, {pipeline_mode = #tpu.pipeline_mode<synchronous>, transform_indices = @transform_21, window_bounds = array<i64: 1, 128>}, {pipeline_mode = #tpu.pipeline_mode<synchronous>, transform_indices = @transform_22, window_bounds = array<i64: 1, 128>}, {pipeline_mode = #tpu.pipeline_mode<synchronous>, transform_indices = @transform_23, window_bounds = array<i64: 128, 128>}, {pipeline_mode = #tpu.pipeline_mode<synchronous>, transform_indices = @transform_24, window_bounds = array<i64: 1, 128>}, {transform_indices = @transform_25, window_bounds = array<i64: 1, 4, 128>}]} {
    %c0 = arith.constant 0 : index
    %c0_0 = arith.constant 0 : index
    %c0_1 = arith.constant 0 : index
    %0 = vector.load %arg2[%c0, %c0_0, %c0_1] : memref<4x1x16xf32, #tpu.memory_space<vmem>>, vector<1x1x16xf32>
    %1 = vector.shape_cast %0 : vector<1x1x16xf32> to vector<1x16xf32>
    %c1 = arith.constant 1 : index
    %c0_2 = arith.constant 0 : index
    %c0_3 = arith.constant 0 : index
    %2 = vector.load %arg2[%c1, %c0_2, %c0_3] : memref<4x1x16xf32, #tpu.memory_space<vmem>>, vector<1x1x16xf32>
    %3 = vector.shape_cast %2 : vector<1x1x16xf32> to vector<1x16xf32>
    %c2 = arith.constant 2 : index
    %c0_4 = arith.constant 0 : index
    %c0_5 = arith.constant 0 : index
    %4 = vector.load %arg2[%c2, %c0_4, %c0_5] : memref<4x1x16xf32, #tpu.memory_space<vmem>>, vector<1x1x16xf32>
    %5 = vector.shape_cast %4 : vector<1x1x16xf32> to vector<1x16xf32>
    %c3 = arith.constant 3 : index
    %c0_6 = arith.constant 0 : index
    %c0_7 = arith.constant 0 : index
    %6 = vector.load %arg2[%c3, %c0_6, %c0_7] : memref<4x1x16xf32, #tpu.memory_space<vmem>>, vector<1x1x16xf32>
    %7 = vector.shape_cast %6 : vector<1x1x16xf32> to vector<1x16xf32>
    %c0_8 = arith.constant 0 : index
    %c0_9 = arith.constant 0 : index
    %8 = vector.load %arg1[%c0_8, %c0_9] : memref<64x128xf32, #tpu.memory_space<vmem>>, vector<64x128xf32>
    %c0_10 = arith.constant 0 : index
    %c0_11 = arith.constant 0 : index
    %9 = vector.load %arg3[%c0_10, %c0_11] : memref<2x128xf32, #tpu.memory_space<vmem>>, vector<2x128xf32>
    %cst = arith.constant dense<0.000000e+00> : vector<64xf32>
    %10 = vector.multi_reduction <add>, %8, %cst [1] : vector<64x128xf32> to vector<64xf32>
    %11 = vector.shape_cast %10 : vector<64xf32> to vector<64x1xf32>
    %cst_12 = arith.constant 1.280000e+02 : f32
    %12 = vector.broadcast %cst_12 : f32 to vector<64x1xf32>
    %13 = arith.divf %11, %12 : vector<64x1xf32>
    %14 = vector.broadcast %13 : vector<64x1xf32> to vector<64x128xf32>
    %15 = arith.subf %8, %14 : vector<64x128xf32>
    %16 = arith.mulf %15, %15 : vector<64x128xf32>
    %cst_13 = arith.constant dense<0.000000e+00> : vector<64xf32>
    %17 = vector.multi_reduction <add>, %16, %cst_13 [1] : vector<64x128xf32> to vector<64xf32>
    %18 = vector.shape_cast %17 : vector<64xf32> to vector<64x1xf32>
    %cst_14 = arith.constant 1.280000e+02 : f32
    %19 = vector.broadcast %cst_14 : f32 to vector<64x1xf32>
    %20 = arith.divf %18, %19 : vector<64x1xf32>
    %21 = vector.broadcast %13 : vector<64x1xf32> to vector<64x128xf32>
    %22 = arith.subf %8, %21 : vector<64x128xf32>
    %cst_15 = arith.constant 9.99999974E-6 : f32
    %23 = vector.broadcast %cst_15 : f32 to vector<64x1xf32>
    %24 = arith.addf %20, %23 : vector<64x1xf32>
    %25 = math.rsqrt %24 : vector<64x1xf32>
    %26 = vector.broadcast %25 : vector<64x1xf32> to vector<64x128xf32>
    %27 = arith.mulf %22, %26 : vector<64x128xf32>
    %28 = vector.extract_strided_slice %9 {offsets = [0, 0], sizes = [1, 128], strides = [1, 1]} : vector<2x128xf32> to vector<1x128xf32>
    %29 = vector.broadcast %28 : vector<1x128xf32> to vector<64x128xf32>
    %30 = arith.mulf %27, %29 : vector<64x128xf32>
    %31 = vector.extract_strided_slice %9 {offsets = [1, 0], sizes = [1, 128], strides = [1, 1]} : vector<2x128xf32> to vector<1x128xf32>
    %32 = vector.broadcast %31 : vector<1x128xf32> to vector<64x128xf32>
    %33 = arith.addf %30, %32 : vector<64x128xf32>
    %34 = arith.truncf %33 : vector<64x128xf32> to vector<64x128xbf16>
    %c0_16 = arith.constant 0 : index
    %c0_17 = arith.constant 0 : index
    %c0_18 = arith.constant 0 : index
    %35 = vector.load %arg4[%c0_16, %c0_17, %c0_18] : memref<2x128x384xbf16, #tpu.memory_space<vmem>>, vector<1x128x384xbf16>
    %36 = vector.shape_cast %35 : vector<1x128x384xbf16> to vector<128x384xbf16>
    %cst_19 = arith.constant dense<0.000000e+00> : vector<64x384xf32>
    %37 = tpu.matmul %34, %36, %cst_19 {dimension_numbers = #tpu.dot_dimension_numbers<[1], [0], [0], [1], [0, 0, 1, 1], [], []>} : vector<64x128xbf16>, vector<128x384xbf16>, vector<64x384xf32> -> vector<64x384xf32>
    %c0_20 = arith.constant 0 : index
    %c0_21 = arith.constant 0 : index
    %c0_22 = arith.constant 0 : index
    %38 = vector.load %arg5[%c0_20, %c0_21, %c0_22] : memref<2x1x384xf32, #tpu.memory_space<vmem>>, vector<1x1x384xf32>
    %39 = vector.shape_cast %38 : vector<1x1x384xf32> to vector<1x384xf32>
    %40 = vector.broadcast %39 : vector<1x384xf32> to vector<64x384xf32>
    %41 = arith.addf %37, %40 : vector<64x384xf32>
    %42 = arith.truncf %41 : vector<64x384xf32> to vector<64x384xbf16>
    %c0_23 = arith.constant 0 : index
    %c0_24 = arith.constant 0 : index
    %43 = vector.load %arg27[%c0_23, %c0_24] : memref<64x384xbf16, #tpu.memory_space<vmem>>, vector<64x384xbf16>
    tpu.vector_store %arg27[%c0_23, %c0_24], %42 {strides = array<i32>} : memref<64x384xbf16, #tpu.memory_space<vmem>>, vector<64x384xbf16>,
    %c0_25 = arith.constant 0 : index
    %c0_26 = arith.constant 0 : index
    %44 = vector.load %arg27[%c0_25, %c0_26] : memref<64x384xbf16, #tpu.memory_space<vmem>>, vector<16x32xbf16>
    %c0_27 = arith.constant 0 : index
    %c128 = arith.constant 128 : index
    %45 = vector.load %arg27[%c0_27, %c128] : memref<64x384xbf16, #tpu.memory_space<vmem>>, vector<16x32xbf16>
    %c0_28 = arith.constant 0 : index
    %c256 = arith.constant 256 : index
    %46 = vector.load %arg27[%c0_28, %c256] : memref<64x384xbf16, #tpu.memory_space<vmem>>, vector<16x32xbf16>
    %cst_29 = arith.constant dense<0.000000e+00> : vector<16x16xf32>
    %47 = tpu.matmul %44, %45, %cst_29 {dimension_numbers = #tpu.dot_dimension_numbers<[1], [1], [0], [0], [0, 0, 1, 0], [], []>} : vector<16x32xbf16>, vector<16x32xbf16>, vector<16x16xf32> -> vector<16x16xf32>
    %48 = vector.broadcast %1 : vector<1x16xf32> to vector<16x16xf32>
    %49 = arith.addf %47, %48 : vector<16x16xf32>
    %cst_30 = arith.constant dense<0xFF800000> : vector<16xf32>
    %50 = vector.multi_reduction <maximumf>, %49, %cst_30 [1] : vector<16x16xf32> to vector<16xf32>
    %51 = vector.shape_cast %50 : vector<16xf32> to vector<16x1xf32>
    %52 = vector.broadcast %51 : vector<16x1xf32> to vector<16x16xf32>
    %53 = arith.subf %49, %52 : vector<16x16xf32>
    %54 = math.exp %53 : vector<16x16xf32>
    %cst_31 = arith.constant dense<0.000000e+00> : vector<16xf32>
    %55 = vector.multi_reduction <add>, %54, %cst_31 [1] : vector<16x16xf32> to vector<16xf32>
    %56 = vector.shape_cast %55 : vector<16xf32> to vector<16x1xf32>
    %57 = tpu.reciprocal %56 {approx = true} : vector<16x1xf32> -> vector<16x1xf32>
    %58 = vector.broadcast %57 : vector<16x1xf32> to vector<16x16xf32>
    %59 = arith.mulf %54, %58 : vector<16x16xf32>
    %60 = arith.truncf %59 : vector<16x16xf32> to vector<16x16xbf16>
    %cst_32 = arith.constant dense<0.000000e+00> : vector<16x32xf32>
    %61 = tpu.matmul %60, %46, %cst_32 {dimension_numbers = #tpu.dot_dimension_numbers<[1], [0], [0], [1], [0, 0, 1, 1], [], []>} : vector<16x16xbf16>, vector<16x32xbf16>, vector<16x32xf32> -> vector<16x32xf32>
    %c0_33 = arith.constant 0 : index
    %c32 = arith.constant 32 : index
    %62 = vector.load %arg27[%c0_33, %c32] : memref<64x384xbf16, #tpu.memory_space<vmem>>, vector<16x32xbf16>
    %c0_34 = arith.constant 0 : index
    %c160 = arith.constant 160 : index
    %63 = vector.load %arg27[%c0_34, %c160] : memref<64x384xbf16, #tpu.memory_space<vmem>>, vector<16x32xbf16>
    %c0_35 = arith.constant 0 : index
    %c288 = arith.constant 288 : index
    %64 = vector.load %arg27[%c0_35, %c288] : memref<64x384xbf16, #tpu.memory_space<vmem>>, vector<16x32xbf16>
    %cst_36 = arith.constant dense<0.000000e+00> : vector<16x16xf32>
    %65 = tpu.matmul %62, %63, %cst_36 {dimension_numbers = #tpu.dot_dimension_numbers<[1], [1], [0], [0], [0, 0, 1, 0], [], []>} : vector<16x32xbf16>, vector<16x32xbf16>, vector<16x16xf32> -> vector<16x16xf32>
    %66 = vector.broadcast %1 : vector<1x16xf32> to vector<16x16xf32>
    %67 = arith.addf %65, %66 : vector<16x16xf32>
    %cst_37 = arith.constant dense<0xFF800000> : vector<16xf32>
    %68 = vector.multi_reduction <maximumf>, %67, %cst_37 [1] : vector<16x16xf32> to vector<16xf32>
    %69 = vector.shape_cast %68 : vector<16xf32> to vector<16x1xf32>
    %70 = vector.broadcast %69 : vector<16x1xf32> to vector<16x16xf32>
    %71 = arith.subf %67, %70 : vector<16x16xf32>
    %72 = math.exp %71 : vector<16x16xf32>
    %cst_38 = arith.constant dense<0.000000e+00> : vector<16xf32>
    %73 = vector.multi_reduction <add>, %72, %cst_38 [1] : vector<16x16xf32> to vector<16xf32>
    %74 = vector.shape_cast %73 : vector<16xf32> to vector<16x1xf32>
    %75 = tpu.reciprocal %74 {approx = true} : vector<16x1xf32> -> vector<16x1xf32>
    %76 = vector.broadcast %75 : vector<16x1xf32> to vector<16x16xf32>
    %77 = arith.mulf %72, %76 : vector<16x16xf32>
    %78 = arith.truncf %77 : vector<16x16xf32> to vector<16x16xbf16>
    %cst_39 = arith.constant dense<0.000000e+00> : vector<16x32xf32>
    %79 = tpu.matmul %78, %64, %cst_39 {dimension_numbers = #tpu.dot_dimension_numbers<[1], [0], [0], [1], [0, 0, 1, 1], [], []>} : vector<16x16xbf16>, vector<16x32xbf16>, vector<16x32xf32> -> vector<16x32xf32>
    %c0_40 = arith.constant 0 : index
    %c64 = arith.constant 64 : index
    %80 = vector.load %arg27[%c0_40, %c64] : memref<64x384xbf16, #tpu.memory_space<vmem>>, vector<16x32xbf16>
    %c0_41 = arith.constant 0 : index
    %c192 = arith.constant 192 : index
    %81 = vector.load %arg27[%c0_41, %c192] : memref<64x384xbf16, #tpu.memory_space<vmem>>, vector<16x32xbf16>
    %c0_42 = arith.constant 0 : index
    %c320 = arith.constant 320 : index
    %82 = vector.load %arg27[%c0_42, %c320] : memref<64x384xbf16, #tpu.memory_space<vmem>>, vector<16x32xbf16>
    %cst_43 = arith.constant dense<0.000000e+00> : vector<16x16xf32>
    %83 = tpu.matmul %80, %81, %cst_43 {dimension_numbers = #tpu.dot_dimension_numbers<[1], [1], [0], [0], [0, 0, 1, 0], [], []>} : vector<16x32xbf16>, vector<16x32xbf16>, vector<16x16xf32> -> vector<16x16xf32>
    %84 = vector.broadcast %1 : vector<1x16xf32> to vector<16x16xf32>
    %85 = arith.addf %83, %84 : vector<16x16xf32>
    %cst_44 = arith.constant dense<0xFF800000> : vector<16xf32>
    %86 = vector.multi_reduction <maximumf>, %85, %cst_44 [1] : vector<16x16xf32> to vector<16xf32>
    %87 = vector.shape_cast %86 : vector<16xf32> to vector<16x1xf32>
    %88 = vector.broadcast %87 : vector<16x1xf32> to vector<16x16xf32>
    %89 = arith.subf %85, %88 : vector<16x16xf32>
    %90 = math.exp %89 : vector<16x16xf32>
    %cst_45 = arith.constant dense<0.000000e+00> : vector<16xf32>
    %91 = vector.multi_reduction <add>, %90, %cst_45 [1] : vector<16x16xf32> to vector<16xf32>
    %92 = vector.shape_cast %91 : vector<16xf32> to vector<16x1xf32>
    %93 = tpu.reciprocal %92 {approx = true} : vector<16x1xf32> -> vector<16x1xf32>
    %94 = vector.broadcast %93 : vector<16x1xf32> to vector<16x16xf32>
    %95 = arith.mulf %90, %94 : vector<16x16xf32>
    %96 = arith.truncf %95 : vector<16x16xf32> to vector<16x16xbf16>
    %cst_46 = arith.constant dense<0.000000e+00> : vector<16x32xf32>
    %97 = tpu.matmul %96, %82, %cst_46 {dimension_numbers = #tpu.dot_dimension_numbers<[1], [0], [0], [1], [0, 0, 1, 1], [], []>} : vector<16x16xbf16>, vector<16x32xbf16>, vector<16x32xf32> -> vector<16x32xf32>
    %c0_47 = arith.constant 0 : index
    %c96 = arith.constant 96 : index
    %98 = vector.load %arg27[%c0_47, %c96] : memref<64x384xbf16, #tpu.memory_space<vmem>>, vector<16x32xbf16>
    %c0_48 = arith.constant 0 : index
    %c224 = arith.constant 224 : index
    %99 = vector.load %arg27[%c0_48, %c224] : memref<64x384xbf16, #tpu.memory_space<vmem>>, vector<16x32xbf16>
    %c0_49 = arith.constant 0 : index
    %c352 = arith.constant 352 : index
    %100 = vector.load %arg27[%c0_49, %c352] : memref<64x384xbf16, #tpu.memory_space<vmem>>, vector<16x32xbf16>
    %cst_50 = arith.constant dense<0.000000e+00> : vector<16x16xf32>
    %101 = tpu.matmul %98, %99, %cst_50 {dimension_numbers = #tpu.dot_dimension_numbers<[1], [1], [0], [0], [0, 0, 1, 0], [], []>} : vector<16x32xbf16>, vector<16x32xbf16>, vector<16x16xf32> -> vector<16x16xf32>
    %102 = vector.broadcast %1 : vector<1x16xf32> to vector<16x16xf32>
    %103 = arith.addf %101, %102 : vector<16x16xf32>
    %cst_51 = arith.constant dense<0xFF800000> : vector<16xf32>
    %104 = vector.multi_reduction <maximumf>, %103, %cst_51 [1] : vector<16x16xf32> to vector<16xf32>
    %105 = vector.shape_cast %104 : vector<16xf32> to vector<16x1xf32>
    %106 = vector.broadcast %105 : vector<16x1xf32> to vector<16x16xf32>
    %107 = arith.subf %103, %106 : vector<16x16xf32>
    %108 = math.exp %107 : vector<16x16xf32>
    %cst_52 = arith.constant dense<0.000000e+00> : vector<16xf32>
    %109 = vector.multi_reduction <add>, %108, %cst_52 [1] : vector<16x16xf32> to vector<16xf32>
    %110 = vector.shape_cast %109 : vector<16xf32> to vector<16x1xf32>
    %111 = tpu.reciprocal %110 {approx = true} : vector<16x1xf32> -> vector<16x1xf32>
    %112 = vector.broadcast %111 : vector<16x1xf32> to vector<16x16xf32>
    %113 = arith.mulf %108, %112 : vector<16x16xf32>
    %114 = arith.truncf %113 : vector<16x16xf32> to vector<16x16xbf16>
    %cst_53 = arith.constant dense<0.000000e+00> : vector<16x32xf32>
    %115 = tpu.matmul %114, %100, %cst_53 {dimension_numbers = #tpu.dot_dimension_numbers<[1], [0], [0], [1], [0, 0, 1, 1], [], []>} : vector<16x16xbf16>, vector<16x32xbf16>, vector<16x32xf32> -> vector<16x32xf32>
    %116 = tpu.concatenate %61, %79, %97, %115 in 1 : vector<16x32xf32>, vector<16x32xf32>, vector<16x32xf32>, vector<16x32xf32> -> vector<16x128xf32>
    %117 = arith.truncf %116 : vector<16x128xf32> to vector<16x128xbf16>
    %c16 = arith.constant 16 : index
    %c0_54 = arith.constant 0 : index
    %118 = vector.load %arg27[%c16, %c0_54] : memref<64x384xbf16, #tpu.memory_space<vmem>>, vector<16x32xbf16>
    %c16_55 = arith.constant 16 : index
    %c128_56 = arith.constant 128 : index
    %119 = vector.load %arg27[%c16_55, %c128_56] : memref<64x384xbf16, #tpu.memory_space<vmem>>, vector<16x32xbf16>
    %c16_57 = arith.constant 16 : index
    %c256_58 = arith.constant 256 : index
    %120 = vector.load %arg27[%c16_57, %c256_58] : memref<64x384xbf16, #tpu.memory_space<vmem>>, vector<16x32xbf16>
    %cst_59 = arith.constant dense<0.000000e+00> : vector<16x16xf32>
    %121 = tpu.matmul %118, %119, %cst_59 {dimension_numbers = #tpu.dot_dimension_numbers<[1], [1], [0], [0], [0, 0, 1, 0], [], []>} : vector<16x32xbf16>, vector<16x32xbf16>, vector<16x16xf32> -> vector<16x16xf32>
    %122 = vector.broadcast %3 : vector<1x16xf32> to vector<16x16xf32>
    %123 = arith.addf %121, %122 : vector<16x16xf32>
    %cst_60 = arith.constant dense<0xFF800000> : vector<16xf32>
    %124 = vector.multi_reduction <maximumf>, %123, %cst_60 [1] : vector<16x16xf32> to vector<16xf32>
    %125 = vector.shape_cast %124 : vector<16xf32> to vector<16x1xf32>
    %126 = vector.broadcast %125 : vector<16x1xf32> to vector<16x16xf32>
    %127 = arith.subf %123, %126 : vector<16x16xf32>
    %128 = math.exp %127 : vector<16x16xf32>
    %cst_61 = arith.constant dense<0.000000e+00> : vector<16xf32>
    %129 = vector.multi_reduction <add>, %128, %cst_61 [1] : vector<16x16xf32> to vector<16xf32>
    %130 = vector.shape_cast %129 : vector<16xf32> to vector<16x1xf32>
    %131 = tpu.reciprocal %130 {approx = true} : vector<16x1xf32> -> vector<16x1xf32>
    %132 = vector.broadcast %131 : vector<16x1xf32> to vector<16x16xf32>
    %133 = arith.mulf %128, %132 : vector<16x16xf32>
    %134 = arith.truncf %133 : vector<16x16xf32> to vector<16x16xbf16>
    %cst_62 = arith.constant dense<0.000000e+00> : vector<16x32xf32>
    %135 = tpu.matmul %134, %120, %cst_62 {dimension_numbers = #tpu.dot_dimension_numbers<[1], [0], [0], [1], [0, 0, 1, 1], [], []>} : vector<16x16xbf16>, vector<16x32xbf16>, vector<16x32xf32> -> vector<16x32xf32>
    %c16_63 = arith.constant 16 : index
    %c32_64 = arith.constant 32 : index
    %136 = vector.load %arg27[%c16_63, %c32_64] : memref<64x384xbf16, #tpu.memory_space<vmem>>, vector<16x32xbf16>
    %c16_65 = arith.constant 16 : index
    %c160_66 = arith.constant 160 : index
    %137 = vector.load %arg27[%c16_65, %c160_66] : memref<64x384xbf16, #tpu.memory_space<vmem>>, vector<16x32xbf16>
    %c16_67 = arith.constant 16 : index
    %c288_68 = arith.constant 288 : index
    %138 = vector.load %arg27[%c16_67, %c288_68] : memref<64x384xbf16, #tpu.memory_space<vmem>>, vector<16x32xbf16>
    %cst_69 = arith.constant dense<0.000000e+00> : vector<16x16xf32>
    %139 = tpu.matmul %136, %137, %cst_69 {dimension_numbers = #tpu.dot_dimension_numbers<[1], [1], [0], [0], [0, 0, 1, 0], [], []>} : vector<16x32xbf16>, vector<16x32xbf16>, vector<16x16xf32> -> vector<16x16xf32>
    %140 = vector.broadcast %3 : vector<1x16xf32> to vector<16x16xf32>
    %141 = arith.addf %139, %140 : vector<16x16xf32>
    %cst_70 = arith.constant dense<0xFF800000> : vector<16xf32>
    %142 = vector.multi_reduction <maximumf>, %141, %cst_70 [1] : vector<16x16xf32> to vector<16xf32>
    %143 = vector.shape_cast %142 : vector<16xf32> to vector<16x1xf32>
    %144 = vector.broadcast %143 : vector<16x1xf32> to vector<16x16xf32>
    %145 = arith.subf %141, %144 : vector<16x16xf32>
    %146 = math.exp %145 : vector<16x16xf32>
    %cst_71 = arith.constant dense<0.000000e+00> : vector<16xf32>
    %147 = vector.multi_reduction <add>, %146, %cst_71 [1] : vector<16x16xf32> to vector<16xf32>
    %148 = vector.shape_cast %147 : vector<16xf32> to vector<16x1xf32>
    %149 = tpu.reciprocal %148 {approx = true} : vector<16x1xf32> -> vector<16x1xf32>
    %150 = vector.broadcast %149 : vector<16x1xf32> to vector<16x16xf32>
    %151 = arith.mulf %146, %150 : vector<16x16xf32>
    %152 = arith.truncf %151 : vector<16x16xf32> to vector<16x16xbf16>
    %cst_72 = arith.constant dense<0.000000e+00> : vector<16x32xf32>
    %153 = tpu.matmul %152, %138, %cst_72 {dimension_numbers = #tpu.dot_dimension_numbers<[1], [0], [0], [1], [0, 0, 1, 1], [], []>} : vector<16x16xbf16>, vector<16x32xbf16>, vector<16x32xf32> -> vector<16x32xf32>
    %c16_73 = arith.constant 16 : index
    %c64_74 = arith.constant 64 : index
    %154 = vector.load %arg27[%c16_73, %c64_74] : memref<64x384xbf16, #tpu.memory_space<vmem>>, vector<16x32xbf16>
    %c16_75 = arith.constant 16 : index
    %c192_76 = arith.constant 192 : index
    %155 = vector.load %arg27[%c16_75, %c192_76] : memref<64x384xbf16, #tpu.memory_space<vmem>>, vector<16x32xbf16>
    %c16_77 = arith.constant 16 : index
    %c320_78 = arith.constant 320 : index
    %156 = vector.load %arg27[%c16_77, %c320_78] : memref<64x384xbf16, #tpu.memory_space<vmem>>, vector<16x32xbf16>
    %cst_79 = arith.constant dense<0.000000e+00> : vector<16x16xf32>
    %157 = tpu.matmul %154, %155, %cst_79 {dimension_numbers = #tpu.dot_dimension_numbers<[1], [1], [0], [0], [0, 0, 1, 0], [], []>} : vector<16x32xbf16>, vector<16x32xbf16>, vector<16x16xf32> -> vector<16x16xf32>
    %158 = vector.broadcast %3 : vector<1x16xf32> to vector<16x16xf32>
    %159 = arith.addf %157, %158 : vector<16x16xf32>
    %cst_80 = arith.constant dense<0xFF800000> : vector<16xf32>
    %160 = vector.multi_reduction <maximumf>, %159, %cst_80 [1] : vector<16x16xf32> to vector<16xf32>
    %161 = vector.shape_cast %160 : vector<16xf32> to vector<16x1xf32>
    %162 = vector.broadcast %161 : vector<16x1xf32> to vector<16x16xf32>
    %163 = arith.subf %159, %162 : vector<16x16xf32>
    %164 = math.exp %163 : vector<16x16xf32>
    %cst_81 = arith.constant dense<0.000000e+00> : vector<16xf32>
    %165 = vector.multi_reduction <add>, %164, %cst_81 [1] : vector<16x16xf32> to vector<16xf32>
    %166 = vector.shape_cast %165 : vector<16xf32> to vector<16x1xf32>
    %167 = tpu.reciprocal %166 {approx = true} : vector<16x1xf32> -> vector<16x1xf32>
    %168 = vector.broadcast %167 : vector<16x1xf32> to vector<16x16xf32>
    %169 = arith.mulf %164, %168 : vector<16x16xf32>
    %170 = arith.truncf %169 : vector<16x16xf32> to vector<16x16xbf16>
    %cst_82 = arith.constant dense<0.000000e+00> : vector<16x32xf32>
    %171 = tpu.matmul %170, %156, %cst_82 {dimension_numbers = #tpu.dot_dimension_numbers<[1], [0], [0], [1], [0, 0, 1, 1], [], []>} : vector<16x16xbf16>, vector<16x32xbf16>, vector<16x32xf32> -> vector<16x32xf32>
    %c16_83 = arith.constant 16 : index
    %c96_84 = arith.constant 96 : index
    %172 = vector.load %arg27[%c16_83, %c96_84] : memref<64x384xbf16, #tpu.memory_space<vmem>>, vector<16x32xbf16>
    %c16_85 = arith.constant 16 : index
    %c224_86 = arith.constant 224 : index
    %173 = vector.load %arg27[%c16_85, %c224_86] : memref<64x384xbf16, #tpu.memory_space<vmem>>, vector<16x32xbf16>
    %c16_87 = arith.constant 16 : index
    %c352_88 = arith.constant 352 : index
    %174 = vector.load %arg27[%c16_87, %c352_88] : memref<64x384xbf16, #tpu.memory_space<vmem>>, vector<16x32xbf16>
    %cst_89 = arith.constant dense<0.000000e+00> : vector<16x16xf32>
    %175 = tpu.matmul %172, %173, %cst_89 {dimension_numbers = #tpu.dot_dimension_numbers<[1], [1], [0], [0], [0, 0, 1, 0], [], []>} : vector<16x32xbf16>, vector<16x32xbf16>, vector<16x16xf32> -> vector<16x16xf32>
    %176 = vector.broadcast %3 : vector<1x16xf32> to vector<16x16xf32>
    %177 = arith.addf %175, %176 : vector<16x16xf32>
    %cst_90 = arith.constant dense<0xFF800000> : vector<16xf32>
    %178 = vector.multi_reduction <maximumf>, %177, %cst_90 [1] : vector<16x16xf32> to vector<16xf32>
    %179 = vector.shape_cast %178 : vector<16xf32> to vector<16x1xf32>
    %180 = vector.broadcast %179 : vector<16x1xf32> to vector<16x16xf32>
    %181 = arith.subf %177, %180 : vector<16x16xf32>
    %182 = math.exp %181 : vector<16x16xf32>
    %cst_91 = arith.constant dense<0.000000e+00> : vector<16xf32>
    %183 = vector.multi_reduction <add>, %182, %cst_91 [1] : vector<16x16xf32> to vector<16xf32>
    %184 = vector.shape_cast %183 : vector<16xf32> to vector<16x1xf32>
    %185 = tpu.reciprocal %184 {approx = true} : vector<16x1xf32> -> vector<16x1xf32>
    %186 = vector.broadcast %185 : vector<16x1xf32> to vector<16x16xf32>
    %187 = arith.mulf %182, %186 : vector<16x16xf32>
    %188 = arith.truncf %187 : vector<16x16xf32> to vector<16x16xbf16>
    %cst_92 = arith.constant dense<0.000000e+00> : vector<16x32xf32>
    %189 = tpu.matmul %188, %174, %cst_92 {dimension_numbers = #tpu.dot_dimension_numbers<[1], [0], [0], [1], [0, 0, 1, 1], [], []>} : vector<16x16xbf16>, vector<16x32xbf16>, vector<16x32xf32> -> vector<16x32xf32>
    %190 = tpu.concatenate %135, %153, %171, %189 in 1 : vector<16x32xf32>, vector<16x32xf32>, vector<16x32xf32>, vector<16x32xf32> -> vector<16x128xf32>
    %191 = arith.truncf %190 : vector<16x128xf32> to vector<16x128xbf16>
    %c32_93 = arith.constant 32 : index
    %c0_94 = arith.constant 0 : index
    %192 = vector.load %arg27[%c32_93, %c0_94] : memref<64x384xbf16, #tpu.memory_space<vmem>>, vector<16x32xbf16>
    %c32_95 = arith.constant 32 : index
    %c128_96 = arith.constant 128 : index
    %193 = vector.load %arg27[%c32_95, %c128_96] : memref<64x384xbf16, #tpu.memory_space<vmem>>, vector<16x32xbf16>
    %c32_97 = arith.constant 32 : index
    %c256_98 = arith.constant 256 : index
    %194 = vector.load %arg27[%c32_97, %c256_98] : memref<64x384xbf16, #tpu.memory_space<vmem>>, vector<16x32xbf16>
    %cst_99 = arith.constant dense<0.000000e+00> : vector<16x16xf32>
    %195 = tpu.matmul %192, %193, %cst_99 {dimension_numbers = #tpu.dot_dimension_numbers<[1], [1], [0], [0], [0, 0, 1, 0], [], []>} : vector<16x32xbf16>, vector<16x32xbf16>, vector<16x16xf32> -> vector<16x16xf32>
    %196 = vector.broadcast %5 : vector<1x16xf32> to vector<16x16xf32>
    %197 = arith.addf %195, %196 : vector<16x16xf32>
    %cst_100 = arith.constant dense<0xFF800000> : vector<16xf32>
    %198 = vector.multi_reduction <maximumf>, %197, %cst_100 [1] : vector<16x16xf32> to vector<16xf32>
    %199 = vector.shape_cast %198 : vector<16xf32> to vector<16x1xf32>
    %200 = vector.broadcast %199 : vector<16x1xf32> to vector<16x16xf32>
    %201 = arith.subf %197, %200 : vector<16x16xf32>
    %202 = math.exp %201 : vector<16x16xf32>
    %cst_101 = arith.constant dense<0.000000e+00> : vector<16xf32>
    %203 = vector.multi_reduction <add>, %202, %cst_101 [1] : vector<16x16xf32> to vector<16xf32>
    %204 = vector.shape_cast %203 : vector<16xf32> to vector<16x1xf32>
    %205 = tpu.reciprocal %204 {approx = true} : vector<16x1xf32> -> vector<16x1xf32>
    %206 = vector.broadcast %205 : vector<16x1xf32> to vector<16x16xf32>
    %207 = arith.mulf %202, %206 : vector<16x16xf32>
    %208 = arith.truncf %207 : vector<16x16xf32> to vector<16x16xbf16>
    %cst_102 = arith.constant dense<0.000000e+00> : vector<16x32xf32>
    %209 = tpu.matmul %208, %194, %cst_102 {dimension_numbers = #tpu.dot_dimension_numbers<[1], [0], [0], [1], [0, 0, 1, 1], [], []>} : vector<16x16xbf16>, vector<16x32xbf16>, vector<16x32xf32> -> vector<16x32xf32>
    %c32_103 = arith.constant 32 : index
    %c32_104 = arith.constant 32 : index
    %210 = vector.load %arg27[%c32_103, %c32_104] : memref<64x384xbf16, #tpu.memory_space<vmem>>, vector<16x32xbf16>
    %c32_105 = arith.constant 32 : index
    %c160_106 = arith.constant 160 : index
    %211 = vector.load %arg27[%c32_105, %c160_106] : memref<64x384xbf16, #tpu.memory_space<vmem>>, vector<16x32xbf16>
    %c32_107 = arith.constant 32 : index
    %c288_108 = arith.constant 288 : index
    %212 = vector.load %arg27[%c32_107, %c288_108] : memref<64x384xbf16, #tpu.memory_space<vmem>>, vector<16x32xbf16>
    %cst_109 = arith.constant dense<0.000000e+00> : vector<16x16xf32>
    %213 = tpu.matmul %210, %211, %cst_109 {dimension_numbers = #tpu.dot_dimension_numbers<[1], [1], [0], [0], [0, 0, 1, 0], [], []>} : vector<16x32xbf16>, vector<16x32xbf16>, vector<16x16xf32> -> vector<16x16xf32>
    %214 = vector.broadcast %5 : vector<1x16xf32> to vector<16x16xf32>
    %215 = arith.addf %213, %214 : vector<16x16xf32>
    %cst_110 = arith.constant dense<0xFF800000> : vector<16xf32>
    %216 = vector.multi_reduction <maximumf>, %215, %cst_110 [1] : vector<16x16xf32> to vector<16xf32>
    %217 = vector.shape_cast %216 : vector<16xf32> to vector<16x1xf32>
    %218 = vector.broadcast %217 : vector<16x1xf32> to vector<16x16xf32>
    %219 = arith.subf %215, %218 : vector<16x16xf32>
    %220 = math.exp %219 : vector<16x16xf32>
    %cst_111 = arith.constant dense<0.000000e+00> : vector<16xf32>
    %221 = vector.multi_reduction <add>, %220, %cst_111 [1] : vector<16x16xf32> to vector<16xf32>
    %222 = vector.shape_cast %221 : vector<16xf32> to vector<16x1xf32>
    %223 = tpu.reciprocal %222 {approx = true} : vector<16x1xf32> -> vector<16x1xf32>
    %224 = vector.broadcast %223 : vector<16x1xf32> to vector<16x16xf32>
    %225 = arith.mulf %220, %224 : vector<16x16xf32>
    %226 = arith.truncf %225 : vector<16x16xf32> to vector<16x16xbf16>
    %cst_112 = arith.constant dense<0.000000e+00> : vector<16x32xf32>
    %227 = tpu.matmul %226, %212, %cst_112 {dimension_numbers = #tpu.dot_dimension_numbers<[1], [0], [0], [1], [0, 0, 1, 1], [], []>} : vector<16x16xbf16>, vector<16x32xbf16>, vector<16x32xf32> -> vector<16x32xf32>
    %c32_113 = arith.constant 32 : index
    %c64_114 = arith.constant 64 : index
    %228 = vector.load %arg27[%c32_113, %c64_114] : memref<64x384xbf16, #tpu.memory_space<vmem>>, vector<16x32xbf16>
    %c32_115 = arith.constant 32 : index
    %c192_116 = arith.constant 192 : index
    %229 = vector.load %arg27[%c32_115, %c192_116] : memref<64x384xbf16, #tpu.memory_space<vmem>>, vector<16x32xbf16>
    %c32_117 = arith.constant 32 : index
    %c320_118 = arith.constant 320 : index
    %230 = vector.load %arg27[%c32_117, %c320_118] : memref<64x384xbf16, #tpu.memory_space<vmem>>, vector<16x32xbf16>
    %cst_119 = arith.constant dense<0.000000e+00> : vector<16x16xf32>
    %231 = tpu.matmul %228, %229, %cst_119 {dimension_numbers = #tpu.dot_dimension_numbers<[1], [1], [0], [0], [0, 0, 1, 0], [], []>} : vector<16x32xbf16>, vector<16x32xbf16>, vector<16x16xf32> -> vector<16x16xf32>
    %232 = vector.broadcast %5 : vector<1x16xf32> to vector<16x16xf32>
    %233 = arith.addf %231, %232 : vector<16x16xf32>
    %cst_120 = arith.constant dense<0xFF800000> : vector<16xf32>
    %234 = vector.multi_reduction <maximumf>, %233, %cst_120 [1] : vector<16x16xf32> to vector<16xf32>
    %235 = vector.shape_cast %234 : vector<16xf32> to vector<16x1xf32>
    %236 = vector.broadcast %235 : vector<16x1xf32> to vector<16x16xf32>
    %237 = arith.subf %233, %236 : vector<16x16xf32>
    %238 = math.exp %237 : vector<16x16xf32>
    %cst_121 = arith.constant dense<0.000000e+00> : vector<16xf32>
    %239 = vector.multi_reduction <add>, %238, %cst_121 [1] : vector<16x16xf32> to vector<16xf32>
    %240 = vector.shape_cast %239 : vector<16xf32> to vector<16x1xf32>
    %241 = tpu.reciprocal %240 {approx = true} : vector<16x1xf32> -> vector<16x1xf32>
    %242 = vector.broadcast %241 : vector<16x1xf32> to vector<16x16xf32>
    %243 = arith.mulf %238, %242 : vector<16x16xf32>
    %244 = arith.truncf %243 : vector<16x16xf32> to vector<16x16xbf16>
    %cst_122 = arith.constant dense<0.000000e+00> : vector<16x32xf32>
    %245 = tpu.matmul %244, %230, %cst_122 {dimension_numbers = #tpu.dot_dimension_numbers<[1], [0], [0], [1], [0, 0, 1, 1], [], []>} : vector<16x16xbf16>, vector<16x32xbf16>, vector<16x32xf32> -> vector<16x32xf32>
    %c32_123 = arith.constant 32 : index
    %c96_124 = arith.constant 96 : index
    %246 = vector.load %arg27[%c32_123, %c96_124] : memref<64x384xbf16, #tpu.memory_space<vmem>>, vector<16x32xbf16>
    %c32_125 = arith.constant 32 : index
    %c224_126 = arith.constant 224 : index
    %247 = vector.load %arg27[%c32_125, %c224_126] : memref<64x384xbf16, #tpu.memory_space<vmem>>, vector<16x32xbf16>
    %c32_127 = arith.constant 32 : index
    %c352_128 = arith.constant 352 : index
    %248 = vector.load %arg27[%c32_127, %c352_128] : memref<64x384xbf16, #tpu.memory_space<vmem>>, vector<16x32xbf16>
    %cst_129 = arith.constant dense<0.000000e+00> : vector<16x16xf32>
    %249 = tpu.matmul %246, %247, %cst_129 {dimension_numbers = #tpu.dot_dimension_numbers<[1], [1], [0], [0], [0, 0, 1, 0], [], []>} : vector<16x32xbf16>, vector<16x32xbf16>, vector<16x16xf32> -> vector<16x16xf32>
    %250 = vector.broadcast %5 : vector<1x16xf32> to vector<16x16xf32>
    %251 = arith.addf %249, %250 : vector<16x16xf32>
    %cst_130 = arith.constant dense<0xFF800000> : vector<16xf32>
    %252 = vector.multi_reduction <maximumf>, %251, %cst_130 [1] : vector<16x16xf32> to vector<16xf32>
    %253 = vector.shape_cast %252 : vector<16xf32> to vector<16x1xf32>
    %254 = vector.broadcast %253 : vector<16x1xf32> to vector<16x16xf32>
    %255 = arith.subf %251, %254 : vector<16x16xf32>
    %256 = math.exp %255 : vector<16x16xf32>
    %cst_131 = arith.constant dense<0.000000e+00> : vector<16xf32>
    %257 = vector.multi_reduction <add>, %256, %cst_131 [1] : vector<16x16xf32> to vector<16xf32>
    %258 = vector.shape_cast %257 : vector<16xf32> to vector<16x1xf32>
    %259 = tpu.reciprocal %258 {approx = true} : vector<16x1xf32> -> vector<16x1xf32>
    %260 = vector.broadcast %259 : vector<16x1xf32> to vector<16x16xf32>
    %261 = arith.mulf %256, %260 : vector<16x16xf32>
    %262 = arith.truncf %261 : vector<16x16xf32> to vector<16x16xbf16>
    %cst_132 = arith.constant dense<0.000000e+00> : vector<16x32xf32>
    %263 = tpu.matmul %262, %248, %cst_132 {dimension_numbers = #tpu.dot_dimension_numbers<[1], [0], [0], [1], [0, 0, 1, 1], [], []>} : vector<16x16xbf16>, vector<16x32xbf16>, vector<16x32xf32> -> vector<16x32xf32>
    %264 = tpu.concatenate %209, %227, %245, %263 in 1 : vector<16x32xf32>, vector<16x32xf32>, vector<16x32xf32>, vector<16x32xf32> -> vector<16x128xf32>
    %265 = arith.truncf %264 : vector<16x128xf32> to vector<16x128xbf16>
    %c48 = arith.constant 48 : index
    %c0_133 = arith.constant 0 : index
    %266 = vector.load %arg27[%c48, %c0_133] : memref<64x384xbf16, #tpu.memory_space<vmem>>, vector<16x32xbf16>
    %c48_134 = arith.constant 48 : index
    %c128_135 = arith.constant 128 : index
    %267 = vector.load %arg27[%c48_134, %c128_135] : memref<64x384xbf16, #tpu.memory_space<vmem>>, vector<16x32xbf16>
    %c48_136 = arith.constant 48 : index
    %c256_137 = arith.constant 256 : index
    %268 = vector.load %arg27[%c48_136, %c256_137] : memref<64x384xbf16, #tpu.memory_space<vmem>>, vector<16x32xbf16>
    %cst_138 = arith.constant dense<0.000000e+00> : vector<16x16xf32>
    %269 = tpu.matmul %266, %267, %cst_138 {dimension_numbers = #tpu.dot_dimension_numbers<[1], [1], [0], [0], [0, 0, 1, 0], [], []>} : vector<16x32xbf16>, vector<16x32xbf16>, vector<16x16xf32> -> vector<16x16xf32>
    %270 = vector.broadcast %7 : vector<1x16xf32> to vector<16x16xf32>
    %271 = arith.addf %269, %270 : vector<16x16xf32>
    %cst_139 = arith.constant dense<0xFF800000> : vector<16xf32>
    %272 = vector.multi_reduction <maximumf>, %271, %cst_139 [1] : vector<16x16xf32> to vector<16xf32>
    %273 = vector.shape_cast %272 : vector<16xf32> to vector<16x1xf32>
    %274 = vector.broadcast %273 : vector<16x1xf32> to vector<16x16xf32>
    %275 = arith.subf %271, %274 : vector<16x16xf32>
    %276 = math.exp %275 : vector<16x16xf32>
    %cst_140 = arith.constant dense<0.000000e+00> : vector<16xf32>
    %277 = vector.multi_reduction <add>, %276, %cst_140 [1] : vector<16x16xf32> to vector<16xf32>
    %278 = vector.shape_cast %277 : vector<16xf32> to vector<16x1xf32>
    %279 = tpu.reciprocal %278 {approx = true} : vector<16x1xf32> -> vector<16x1xf32>
    %280 = vector.broadcast %279 : vector<16x1xf32> to vector<16x16xf32>
    %281 = arith.mulf %276, %280 : vector<16x16xf32>
    %282 = arith.truncf %281 : vector<16x16xf32> to vector<16x16xbf16>
    %cst_141 = arith.constant dense<0.000000e+00> : vector<16x32xf32>
    %283 = tpu.matmul %282, %268, %cst_141 {dimension_numbers = #tpu.dot_dimension_numbers<[1], [0], [0], [1], [0, 0, 1, 1], [], []>} : vector<16x16xbf16>, vector<16x32xbf16>, vector<16x32xf32> -> vector<16x32xf32>
    %c48_142 = arith.constant 48 : index
    %c32_143 = arith.constant 32 : index
    %284 = vector.load %arg27[%c48_142, %c32_143] : memref<64x384xbf16, #tpu.memory_space<vmem>>, vector<16x32xbf16>
    %c48_144 = arith.constant 48 : index
    %c160_145 = arith.constant 160 : index
    %285 = vector.load %arg27[%c48_144, %c160_145] : memref<64x384xbf16, #tpu.memory_space<vmem>>, vector<16x32xbf16>
    %c48_146 = arith.constant 48 : index
    %c288_147 = arith.constant 288 : index
    %286 = vector.load %arg27[%c48_146, %c288_147] : memref<64x384xbf16, #tpu.memory_space<vmem>>, vector<16x32xbf16>
    %cst_148 = arith.constant dense<0.000000e+00> : vector<16x16xf32>
    %287 = tpu.matmul %284, %285, %cst_148 {dimension_numbers = #tpu.dot_dimension_numbers<[1], [1], [0], [0], [0, 0, 1, 0], [], []>} : vector<16x32xbf16>, vector<16x32xbf16>, vector<16x16xf32> -> vector<16x16xf32>
    %288 = vector.broadcast %7 : vector<1x16xf32> to vector<16x16xf32>
    %289 = arith.addf %287, %288 : vector<16x16xf32>
    %cst_149 = arith.constant dense<0xFF800000> : vector<16xf32>
    %290 = vector.multi_reduction <maximumf>, %289, %cst_149 [1] : vector<16x16xf32> to vector<16xf32>
    %291 = vector.shape_cast %290 : vector<16xf32> to vector<16x1xf32>
    %292 = vector.broadcast %291 : vector<16x1xf32> to vector<16x16xf32>
    %293 = arith.subf %289, %292 : vector<16x16xf32>
    %294 = math.exp %293 : vector<16x16xf32>
    %cst_150 = arith.constant dense<0.000000e+00> : vector<16xf32>
    %295 = vector.multi_reduction <add>, %294, %cst_150 [1] : vector<16x16xf32> to vector<16xf32>
    %296 = vector.shape_cast %295 : vector<16xf32> to vector<16x1xf32>
    %297 = tpu.reciprocal %296 {approx = true} : vector<16x1xf32> -> vector<16x1xf32>
    %298 = vector.broadcast %297 : vector<16x1xf32> to vector<16x16xf32>
    %299 = arith.mulf %294, %298 : vector<16x16xf32>
    %300 = arith.truncf %299 : vector<16x16xf32> to vector<16x16xbf16>
    %cst_151 = arith.constant dense<0.000000e+00> : vector<16x32xf32>
    %301 = tpu.matmul %300, %286, %cst_151 {dimension_numbers = #tpu.dot_dimension_numbers<[1], [0], [0], [1], [0, 0, 1, 1], [], []>} : vector<16x16xbf16>, vector<16x32xbf16>, vector<16x32xf32> -> vector<16x32xf32>
    %c48_152 = arith.constant 48 : index
    %c64_153 = arith.constant 64 : index
    %302 = vector.load %arg27[%c48_152, %c64_153] : memref<64x384xbf16, #tpu.memory_space<vmem>>, vector<16x32xbf16>
    %c48_154 = arith.constant 48 : index
    %c192_155 = arith.constant 192 : index
    %303 = vector.load %arg27[%c48_154, %c192_155] : memref<64x384xbf16, #tpu.memory_space<vmem>>, vector<16x32xbf16>
    %c48_156 = arith.constant 48 : index
    %c320_157 = arith.constant 320 : index
    %304 = vector.load %arg27[%c48_156, %c320_157] : memref<64x384xbf16, #tpu.memory_space<vmem>>, vector<16x32xbf16>
    %cst_158 = arith.constant dense<0.000000e+00> : vector<16x16xf32>
    %305 = tpu.matmul %302, %303, %cst_158 {dimension_numbers = #tpu.dot_dimension_numbers<[1], [1], [0], [0], [0, 0, 1, 0], [], []>} : vector<16x32xbf16>, vector<16x32xbf16>, vector<16x16xf32> -> vector<16x16xf32>
    %306 = vector.broadcast %7 : vector<1x16xf32> to vector<16x16xf32>
    %307 = arith.addf %305, %306 : vector<16x16xf32>
    %cst_159 = arith.constant dense<0xFF800000> : vector<16xf32>
    %308 = vector.multi_reduction <maximumf>, %307, %cst_159 [1] : vector<16x16xf32> to vector<16xf32>
    %309 = vector.shape_cast %308 : vector<16xf32> to vector<16x1xf32>
    %310 = vector.broadcast %309 : vector<16x1xf32> to vector<16x16xf32>
    %311 = arith.subf %307, %310 : vector<16x16xf32>
    %312 = math.exp %311 : vector<16x16xf32>
    %cst_160 = arith.constant dense<0.000000e+00> : vector<16xf32>
    %313 = vector.multi_reduction <add>, %312, %cst_160 [1] : vector<16x16xf32> to vector<16xf32>
    %314 = vector.shape_cast %313 : vector<16xf32> to vector<16x1xf32>
    %315 = tpu.reciprocal %314 {approx = true} : vector<16x1xf32> -> vector<16x1xf32>
    %316 = vector.broadcast %315 : vector<16x1xf32> to vector<16x16xf32>
    %317 = arith.mulf %312, %316 : vector<16x16xf32>
    %318 = arith.truncf %317 : vector<16x16xf32> to vector<16x16xbf16>
    %cst_161 = arith.constant dense<0.000000e+00> : vector<16x32xf32>
    %319 = tpu.matmul %318, %304, %cst_161 {dimension_numbers = #tpu.dot_dimension_numbers<[1], [0], [0], [1], [0, 0, 1, 1], [], []>} : vector<16x16xbf16>, vector<16x32xbf16>, vector<16x32xf32> -> vector<16x32xf32>
    %c48_162 = arith.constant 48 : index
    %c96_163 = arith.constant 96 : index
    %320 = vector.load %arg27[%c48_162, %c96_163] : memref<64x384xbf16, #tpu.memory_space<vmem>>, vector<16x32xbf16>
    %c48_164 = arith.constant 48 : index
    %c224_165 = arith.constant 224 : index
    %321 = vector.load %arg27[%c48_164, %c224_165] : memref<64x384xbf16, #tpu.memory_space<vmem>>, vector<16x32xbf16>
    %c48_166 = arith.constant 48 : index
    %c352_167 = arith.constant 352 : index
    %322 = vector.load %arg27[%c48_166, %c352_167] : memref<64x384xbf16, #tpu.memory_space<vmem>>, vector<16x32xbf16>
    %cst_168 = arith.constant dense<0.000000e+00> : vector<16x16xf32>
    %323 = tpu.matmul %320, %321, %cst_168 {dimension_numbers = #tpu.dot_dimension_numbers<[1], [1], [0], [0], [0, 0, 1, 0], [], []>} : vector<16x32xbf16>, vector<16x32xbf16>, vector<16x16xf32> -> vector<16x16xf32>
    %324 = vector.broadcast %7 : vector<1x16xf32> to vector<16x16xf32>
    %325 = arith.addf %323, %324 : vector<16x16xf32>
    %cst_169 = arith.constant dense<0xFF800000> : vector<16xf32>
    %326 = vector.multi_reduction <maximumf>, %325, %cst_169 [1] : vector<16x16xf32> to vector<16xf32>
    %327 = vector.shape_cast %326 : vector<16xf32> to vector<16x1xf32>
    %328 = vector.broadcast %327 : vector<16x1xf32> to vector<16x16xf32>
    %329 = arith.subf %325, %328 : vector<16x16xf32>
    %330 = math.exp %329 : vector<16x16xf32>
    %cst_170 = arith.constant dense<0.000000e+00> : vector<16xf32>
    %331 = vector.multi_reduction <add>, %330, %cst_170 [1] : vector<16x16xf32> to vector<16xf32>
    %332 = vector.shape_cast %331 : vector<16xf32> to vector<16x1xf32>
    %333 = tpu.reciprocal %332 {approx = true} : vector<16x1xf32> -> vector<16x1xf32>
    %334 = vector.broadcast %333 : vector<16x1xf32> to vector<16x16xf32>
    %335 = arith.mulf %330, %334 : vector<16x16xf32>
    %336 = arith.truncf %335 : vector<16x16xf32> to vector<16x16xbf16>
    %cst_171 = arith.constant dense<0.000000e+00> : vector<16x32xf32>
    %337 = tpu.matmul %336, %322, %cst_171 {dimension_numbers = #tpu.dot_dimension_numbers<[1], [0], [0], [1], [0, 0, 1, 1], [], []>} : vector<16x16xbf16>, vector<16x32xbf16>, vector<16x32xf32> -> vector<16x32xf32>
    %338 = tpu.concatenate %283, %301, %319, %337 in 1 : vector<16x32xf32>, vector<16x32xf32>, vector<16x32xf32>, vector<16x32xf32> -> vector<16x128xf32>
    %339 = arith.truncf %338 : vector<16x128xf32> to vector<16x128xbf16>
    %340 = tpu.concatenate %117, %191, %265, %339 in 0 : vector<16x128xbf16>, vector<16x128xbf16>, vector<16x128xbf16>, vector<16x128xbf16> -> vector<64x128xbf16>
    %c0_172 = arith.constant 0 : index
    %c0_173 = arith.constant 0 : index
    %c0_174 = arith.constant 0 : index
    %341 = vector.load %arg6[%c0_172, %c0_173, %c0_174] : memref<2x128x128xbf16, #tpu.memory_space<vmem>>, vector<1x128x128xbf16>
    %342 = vector.shape_cast %341 : vector<1x128x128xbf16> to vector<128x128xbf16>
    %cst_175 = arith.constant dense<0.000000e+00> : vector<64x128xf32>
    %343 = tpu.matmul %340, %342, %cst_175 {dimension_numbers = #tpu.dot_dimension_numbers<[1], [0], [0], [1], [0, 0, 1, 1], [], []>} : vector<64x128xbf16>, vector<128x128xbf16>, vector<64x128xf32> -> vector<64x128xf32>
    %c0_176 = arith.constant 0 : index
    %c0_177 = arith.constant 0 : index
    %c0_178 = arith.constant 0 : index
    %344 = vector.load %arg7[%c0_176, %c0_177, %c0_178] : memref<2x1x128xf32, #tpu.memory_space<vmem>>, vector<1x1x128xf32>
    %345 = vector.shape_cast %344 : vector<1x1x128xf32> to vector<1x128xf32>
    %346 = vector.broadcast %345 : vector<1x128xf32> to vector<64x128xf32>
    %347 = arith.addf %343, %346 : vector<64x128xf32>
    %348 = arith.addf %33, %347 : vector<64x128xf32>
    %c0_179 = arith.constant 0 : index
    %c0_180 = arith.constant 0 : index
    %c0_181 = arith.constant 0 : index
    %349 = vector.load %arg8[%c0_179, %c0_180, %c0_181] : memref<2x2x128xf32, #tpu.memory_space<vmem>>, vector<1x2x128xf32>
    %350 = vector.shape_cast %349 : vector<1x2x128xf32> to vector<2x128xf32>
    %cst_182 = arith.constant dense<0.000000e+00> : vector<64xf32>
    %351 = vector.multi_reduction <add>, %348, %cst_182 [1] : vector<64x128xf32> to vector<64xf32>
    %352 = vector.shape_cast %351 : vector<64xf32> to vector<64x1xf32>
    %cst_183 = arith.constant 1.280000e+02 : f32
    %353 = vector.broadcast %cst_183 : f32 to vector<64x1xf32>
    %354 = arith.divf %352, %353 : vector<64x1xf32>
    %355 = vector.broadcast %354 : vector<64x1xf32> to vector<64x128xf32>
    %356 = arith.subf %348, %355 : vector<64x128xf32>
    %357 = arith.mulf %356, %356 : vector<64x128xf32>
    %cst_184 = arith.constant dense<0.000000e+00> : vector<64xf32>
    %358 = vector.multi_reduction <add>, %357, %cst_184 [1] : vector<64x128xf32> to vector<64xf32>
    %359 = vector.shape_cast %358 : vector<64xf32> to vector<64x1xf32>
    %cst_185 = arith.constant 1.280000e+02 : f32
    %360 = vector.broadcast %cst_185 : f32 to vector<64x1xf32>
    %361 = arith.divf %359, %360 : vector<64x1xf32>
    %362 = vector.broadcast %354 : vector<64x1xf32> to vector<64x128xf32>
    %363 = arith.subf %348, %362 : vector<64x128xf32>
    %cst_186 = arith.constant 9.99999974E-6 : f32
    %364 = vector.broadcast %cst_186 : f32 to vector<64x1xf32>
    %365 = arith.addf %361, %364 : vector<64x1xf32>
    %366 = math.rsqrt %365 : vector<64x1xf32>
    %367 = vector.broadcast %366 : vector<64x1xf32> to vector<64x128xf32>
    %368 = arith.mulf %363, %367 : vector<64x128xf32>
    %369 = vector.extract_strided_slice %350 {offsets = [0, 0], sizes = [1, 128], strides = [1, 1]} : vector<2x128xf32> to vector<1x128xf32>
    %370 = vector.broadcast %369 : vector<1x128xf32> to vector<64x128xf32>
    %371 = arith.mulf %368, %370 : vector<64x128xf32>
    %372 = vector.extract_strided_slice %350 {offsets = [1, 0], sizes = [1, 128], strides = [1, 1]} : vector<2x128xf32> to vector<1x128xf32>
    %373 = vector.broadcast %372 : vector<1x128xf32> to vector<64x128xf32>
    %374 = arith.addf %371, %373 : vector<64x128xf32>
    %375 = arith.truncf %374 : vector<64x128xf32> to vector<64x128xbf16>
    %c0_187 = arith.constant 0 : index
    %c0_188 = arith.constant 0 : index
    %c0_189 = arith.constant 0 : index
    %376 = vector.load %arg9[%c0_187, %c0_188, %c0_189] : memref<2x128x256xbf16, #tpu.memory_space<vmem>>, vector<1x128x256xbf16>
    %377 = vector.shape_cast %376 : vector<1x128x256xbf16> to vector<128x256xbf16>
    %cst_190 = arith.constant dense<0.000000e+00> : vector<64x256xf32>
    %378 = tpu.matmul %375, %377, %cst_190 {dimension_numbers = #tpu.dot_dimension_numbers<[1], [0], [0], [1], [0, 0, 1, 1], [], []>} : vector<64x128xbf16>, vector<128x256xbf16>, vector<64x256xf32> -> vector<64x256xf32>
    %c0_191 = arith.constant 0 : index
    %c0_192 = arith.constant 0 : index
    %c0_193 = arith.constant 0 : index
    %379 = vector.load %arg10[%c0_191, %c0_192, %c0_193] : memref<2x1x256xf32, #tpu.memory_space<vmem>>, vector<1x1x256xf32>
    %380 = vector.shape_cast %379 : vector<1x1x256xf32> to vector<1x256xf32>
    %381 = vector.broadcast %380 : vector<1x256xf32> to vector<64x256xf32>
    %382 = arith.addf %378, %381 : vector<64x256xf32>
    %383 = arith.mulf %382, %382 : vector<64x256xf32>
    %384 = arith.mulf %382, %383 : vector<64x256xf32>
    %cst_194 = arith.constant 4.471500e-02 : f32
    %385 = vector.broadcast %cst_194 : f32 to vector<64x256xf32>
    %386 = arith.mulf %385, %384 : vector<64x256xf32>
    %387 = arith.addf %382, %386 : vector<64x256xf32>
    %cst_195 = arith.constant 0.797884583 : f32
    %388 = vector.broadcast %cst_195 : f32 to vector<64x256xf32>
    %389 = arith.mulf %388, %387 : vector<64x256xf32>
    %390 = math.tanh %389 : vector<64x256xf32>
    %cst_196 = arith.constant 1.000000e+00 : f32
    %391 = vector.broadcast %cst_196 : f32 to vector<64x256xf32>
    %392 = arith.addf %391, %390 : vector<64x256xf32>
    %cst_197 = arith.constant 5.000000e-01 : f32
    %393 = vector.broadcast %cst_197 : f32 to vector<64x256xf32>
    %394 = arith.mulf %393, %392 : vector<64x256xf32>
    %395 = arith.mulf %382, %394 : vector<64x256xf32>
    %396 = arith.truncf %395 : vector<64x256xf32> to vector<64x256xbf16>
    %c0_198 = arith.constant 0 : index
    %c0_199 = arith.constant 0 : index
    %c0_200 = arith.constant 0 : index
    %397 = vector.load %arg11[%c0_198, %c0_199, %c0_200] : memref<2x256x128xbf16, #tpu.memory_space<vmem>>, vector<1x256x128xbf16>
    %398 = vector.shape_cast %397 : vector<1x256x128xbf16> to vector<256x128xbf16>
    %cst_201 = arith.constant dense<0.000000e+00> : vector<64x128xf32>
    %399 = tpu.matmul %396, %398, %cst_201 {dimension_numbers = #tpu.dot_dimension_numbers<[1], [0], [0], [1], [0, 0, 1, 1], [], []>} : vector<64x256xbf16>, vector<256x128xbf16>, vector<64x128xf32> -> vector<64x128xf32>
    %c0_202 = arith.constant 0 : index
    %c0_203 = arith.constant 0 : index
    %c0_204 = arith.constant 0 : index
    %400 = vector.load %arg12[%c0_202, %c0_203, %c0_204] : memref<2x1x128xf32, #tpu.memory_space<vmem>>, vector<1x1x128xf32>
    %401 = vector.shape_cast %400 : vector<1x1x128xf32> to vector<1x128xf32>
    %402 = vector.broadcast %401 : vector<1x128xf32> to vector<64x128xf32>
    %403 = arith.addf %399, %402 : vector<64x128xf32>
    %404 = arith.addf %374, %403 : vector<64x128xf32>
    %c0_205 = arith.constant 0 : index
    %c0_206 = arith.constant 0 : index
    %c0_207 = arith.constant 0 : index
    %405 = vector.load %arg13[%c0_205, %c0_206, %c0_207] : memref<2x2x128xf32, #tpu.memory_space<vmem>>, vector<1x2x128xf32>
    %406 = vector.shape_cast %405 : vector<1x2x128xf32> to vector<2x128xf32>
    %cst_208 = arith.constant dense<0.000000e+00> : vector<64xf32>
    %407 = vector.multi_reduction <add>, %404, %cst_208 [1] : vector<64x128xf32> to vector<64xf32>
    %408 = vector.shape_cast %407 : vector<64xf32> to vector<64x1xf32>
    %cst_209 = arith.constant 1.280000e+02 : f32
    %409 = vector.broadcast %cst_209 : f32 to vector<64x1xf32>
    %410 = arith.divf %408, %409 : vector<64x1xf32>
    %411 = vector.broadcast %410 : vector<64x1xf32> to vector<64x128xf32>
    %412 = arith.subf %404, %411 : vector<64x128xf32>
    %413 = arith.mulf %412, %412 : vector<64x128xf32>
    %cst_210 = arith.constant dense<0.000000e+00> : vector<64xf32>
    %414 = vector.multi_reduction <add>, %413, %cst_210 [1] : vector<64x128xf32> to vector<64xf32>
    %415 = vector.shape_cast %414 : vector<64xf32> to vector<64x1xf32>
    %cst_211 = arith.constant 1.280000e+02 : f32
    %416 = vector.broadcast %cst_211 : f32 to vector<64x1xf32>
    %417 = arith.divf %415, %416 : vector<64x1xf32>
    %418 = vector.broadcast %410 : vector<64x1xf32> to vector<64x128xf32>
    %419 = arith.subf %404, %418 : vector<64x128xf32>
    %cst_212 = arith.constant 9.99999974E-6 : f32
    %420 = vector.broadcast %cst_212 : f32 to vector<64x1xf32>
    %421 = arith.addf %417, %420 : vector<64x1xf32>
    %422 = math.rsqrt %421 : vector<64x1xf32>
    %423 = vector.broadcast %422 : vector<64x1xf32> to vector<64x128xf32>
    %424 = arith.mulf %419, %423 : vector<64x128xf32>
    %425 = vector.extract_strided_slice %406 {offsets = [0, 0], sizes = [1, 128], strides = [1, 1]} : vector<2x128xf32> to vector<1x128xf32>
    %426 = vector.broadcast %425 : vector<1x128xf32> to vector<64x128xf32>
    %427 = arith.mulf %424, %426 : vector<64x128xf32>
    %428 = vector.extract_strided_slice %406 {offsets = [1, 0], sizes = [1, 128], strides = [1, 1]} : vector<2x128xf32> to vector<1x128xf32>
    %429 = vector.broadcast %428 : vector<1x128xf32> to vector<64x128xf32>
    %430 = arith.addf %427, %429 : vector<64x128xf32>
    %431 = arith.truncf %430 : vector<64x128xf32> to vector<64x128xbf16>
    %c1_213 = arith.constant 1 : index
    %c0_214 = arith.constant 0 : index
    %c0_215 = arith.constant 0 : index
    %432 = vector.load %arg4[%c1_213, %c0_214, %c0_215] : memref<2x128x384xbf16, #tpu.memory_space<vmem>>, vector<1x128x384xbf16>
    %433 = vector.shape_cast %432 : vector<1x128x384xbf16> to vector<128x384xbf16>
    %cst_216 = arith.constant dense<0.000000e+00> : vector<64x384xf32>
    %434 = tpu.matmul %431, %433, %cst_216 {dimension_numbers = #tpu.dot_dimension_numbers<[1], [0], [0], [1], [0, 0, 1, 1], [], []>} : vector<64x128xbf16>, vector<128x384xbf16>, vector<64x384xf32> -> vector<64x384xf32>
    %c1_217 = arith.constant 1 : index
    %c0_218 = arith.constant 0 : index
    %c0_219 = arith.constant 0 : index
    %435 = vector.load %arg5[%c1_217, %c0_218, %c0_219] : memref<2x1x384xf32, #tpu.memory_space<vmem>>, vector<1x1x384xf32>
    %436 = vector.shape_cast %435 : vector<1x1x384xf32> to vector<1x384xf32>
    %437 = vector.broadcast %436 : vector<1x384xf32> to vector<64x384xf32>
    %438 = arith.addf %434, %437 : vector<64x384xf32>
    %439 = arith.truncf %438 : vector<64x384xf32> to vector<64x384xbf16>
    %c0_220 = arith.constant 0 : index
    %c0_221 = arith.constant 0 : index
    %440 = vector.load %arg27[%c0_220, %c0_221] : memref<64x384xbf16, #tpu.memory_space<vmem>>, vector<64x384xbf16>
    tpu.vector_store %arg27[%c0_220, %c0_221], %439 {strides = array<i32>} : memref<64x384xbf16, #tpu.memory_space<vmem>>, vector<64x384xbf16>,
    %c0_222 = arith.constant 0 : index
    %c0_223 = arith.constant 0 : index
    %441 = vector.load %arg27[%c0_222, %c0_223] : memref<64x384xbf16, #tpu.memory_space<vmem>>, vector<16x32xbf16>
    %c0_224 = arith.constant 0 : index
    %c128_225 = arith.constant 128 : index
    %442 = vector.load %arg27[%c0_224, %c128_225] : memref<64x384xbf16, #tpu.memory_space<vmem>>, vector<16x32xbf16>
    %c0_226 = arith.constant 0 : index
    %c256_227 = arith.constant 256 : index
    %443 = vector.load %arg27[%c0_226, %c256_227] : memref<64x384xbf16, #tpu.memory_space<vmem>>, vector<16x32xbf16>
    %cst_228 = arith.constant dense<0.000000e+00> : vector<16x16xf32>
    %444 = tpu.matmul %441, %442, %cst_228 {dimension_numbers = #tpu.dot_dimension_numbers<[1], [1], [0], [0], [0, 0, 1, 0], [], []>} : vector<16x32xbf16>, vector<16x32xbf16>, vector<16x16xf32> -> vector<16x16xf32>
    %445 = vector.broadcast %1 : vector<1x16xf32> to vector<16x16xf32>
    %446 = arith.addf %444, %445 : vector<16x16xf32>
    %cst_229 = arith.constant dense<0xFF800000> : vector<16xf32>
    %447 = vector.multi_reduction <maximumf>, %446, %cst_229 [1] : vector<16x16xf32> to vector<16xf32>
    %448 = vector.shape_cast %447 : vector<16xf32> to vector<16x1xf32>
    %449 = vector.broadcast %448 : vector<16x1xf32> to vector<16x16xf32>
    %450 = arith.subf %446, %449 : vector<16x16xf32>
    %451 = math.exp %450 : vector<16x16xf32>
    %cst_230 = arith.constant dense<0.000000e+00> : vector<16xf32>
    %452 = vector.multi_reduction <add>, %451, %cst_230 [1] : vector<16x16xf32> to vector<16xf32>
    %453 = vector.shape_cast %452 : vector<16xf32> to vector<16x1xf32>
    %454 = tpu.reciprocal %453 {approx = true} : vector<16x1xf32> -> vector<16x1xf32>
    %455 = vector.broadcast %454 : vector<16x1xf32> to vector<16x16xf32>
    %456 = arith.mulf %451, %455 : vector<16x16xf32>
    %457 = arith.truncf %456 : vector<16x16xf32> to vector<16x16xbf16>
    %cst_231 = arith.constant dense<0.000000e+00> : vector<16x32xf32>
    %458 = tpu.matmul %457, %443, %cst_231 {dimension_numbers = #tpu.dot_dimension_numbers<[1], [0], [0], [1], [0, 0, 1, 1], [], []>} : vector<16x16xbf16>, vector<16x32xbf16>, vector<16x32xf32> -> vector<16x32xf32>
    %c0_232 = arith.constant 0 : index
    %c32_233 = arith.constant 32 : index
    %459 = vector.load %arg27[%c0_232, %c32_233] : memref<64x384xbf16, #tpu.memory_space<vmem>>, vector<16x32xbf16>
    %c0_234 = arith.constant 0 : index
    %c160_235 = arith.constant 160 : index
    %460 = vector.load %arg27[%c0_234, %c160_235] : memref<64x384xbf16, #tpu.memory_space<vmem>>, vector<16x32xbf16>
    %c0_236 = arith.constant 0 : index
    %c288_237 = arith.constant 288 : index
    %461 = vector.load %arg27[%c0_236, %c288_237] : memref<64x384xbf16, #tpu.memory_space<vmem>>, vector<16x32xbf16>
    %cst_238 = arith.constant dense<0.000000e+00> : vector<16x16xf32>
    %462 = tpu.matmul %459, %460, %cst_238 {dimension_numbers = #tpu.dot_dimension_numbers<[1], [1], [0], [0], [0, 0, 1, 0], [], []>} : vector<16x32xbf16>, vector<16x32xbf16>, vector<16x16xf32> -> vector<16x16xf32>
    %463 = vector.broadcast %1 : vector<1x16xf32> to vector<16x16xf32>
    %464 = arith.addf %462, %463 : vector<16x16xf32>
    %cst_239 = arith.constant dense<0xFF800000> : vector<16xf32>
    %465 = vector.multi_reduction <maximumf>, %464, %cst_239 [1] : vector<16x16xf32> to vector<16xf32>
    %466 = vector.shape_cast %465 : vector<16xf32> to vector<16x1xf32>
    %467 = vector.broadcast %466 : vector<16x1xf32> to vector<16x16xf32>
    %468 = arith.subf %464, %467 : vector<16x16xf32>
    %469 = math.exp %468 : vector<16x16xf32>
    %cst_240 = arith.constant dense<0.000000e+00> : vector<16xf32>
    %470 = vector.multi_reduction <add>, %469, %cst_240 [1] : vector<16x16xf32> to vector<16xf32>
    %471 = vector.shape_cast %470 : vector<16xf32> to vector<16x1xf32>
    %472 = tpu.reciprocal %471 {approx = true} : vector<16x1xf32> -> vector<16x1xf32>
    %473 = vector.broadcast %472 : vector<16x1xf32> to vector<16x16xf32>
    %474 = arith.mulf %469, %473 : vector<16x16xf32>
    %475 = arith.truncf %474 : vector<16x16xf32> to vector<16x16xbf16>
    %cst_241 = arith.constant dense<0.000000e+00> : vector<16x32xf32>
    %476 = tpu.matmul %475, %461, %cst_241 {dimension_numbers = #tpu.dot_dimension_numbers<[1], [0], [0], [1], [0, 0, 1, 1], [], []>} : vector<16x16xbf16>, vector<16x32xbf16>, vector<16x32xf32> -> vector<16x32xf32>
    %c0_242 = arith.constant 0 : index
    %c64_243 = arith.constant 64 : index
    %477 = vector.load %arg27[%c0_242, %c64_243] : memref<64x384xbf16, #tpu.memory_space<vmem>>, vector<16x32xbf16>
    %c0_244 = arith.constant 0 : index
    %c192_245 = arith.constant 192 : index
    %478 = vector.load %arg27[%c0_244, %c192_245] : memref<64x384xbf16, #tpu.memory_space<vmem>>, vector<16x32xbf16>
    %c0_246 = arith.constant 0 : index
    %c320_247 = arith.constant 320 : index
    %479 = vector.load %arg27[%c0_246, %c320_247] : memref<64x384xbf16, #tpu.memory_space<vmem>>, vector<16x32xbf16>
    %cst_248 = arith.constant dense<0.000000e+00> : vector<16x16xf32>
    %480 = tpu.matmul %477, %478, %cst_248 {dimension_numbers = #tpu.dot_dimension_numbers<[1], [1], [0], [0], [0, 0, 1, 0], [], []>} : vector<16x32xbf16>, vector<16x32xbf16>, vector<16x16xf32> -> vector<16x16xf32>
    %481 = vector.broadcast %1 : vector<1x16xf32> to vector<16x16xf32>
    %482 = arith.addf %480, %481 : vector<16x16xf32>
    %cst_249 = arith.constant dense<0xFF800000> : vector<16xf32>
    %483 = vector.multi_reduction <maximumf>, %482, %cst_249 [1] : vector<16x16xf32> to vector<16xf32>
    %484 = vector.shape_cast %483 : vector<16xf32> to vector<16x1xf32>
    %485 = vector.broadcast %484 : vector<16x1xf32> to vector<16x16xf32>
    %486 = arith.subf %482, %485 : vector<16x16xf32>
    %487 = math.exp %486 : vector<16x16xf32>
    %cst_250 = arith.constant dense<0.000000e+00> : vector<16xf32>
    %488 = vector.multi_reduction <add>, %487, %cst_250 [1] : vector<16x16xf32> to vector<16xf32>
    %489 = vector.shape_cast %488 : vector<16xf32> to vector<16x1xf32>
    %490 = tpu.reciprocal %489 {approx = true} : vector<16x1xf32> -> vector<16x1xf32>
    %491 = vector.broadcast %490 : vector<16x1xf32> to vector<16x16xf32>
    %492 = arith.mulf %487, %491 : vector<16x16xf32>
    %493 = arith.truncf %492 : vector<16x16xf32> to vector<16x16xbf16>
    %cst_251 = arith.constant dense<0.000000e+00> : vector<16x32xf32>
    %494 = tpu.matmul %493, %479, %cst_251 {dimension_numbers = #tpu.dot_dimension_numbers<[1], [0], [0], [1], [0, 0, 1, 1], [], []>} : vector<16x16xbf16>, vector<16x32xbf16>, vector<16x32xf32> -> vector<16x32xf32>
    %c0_252 = arith.constant 0 : index
    %c96_253 = arith.constant 96 : index
    %495 = vector.load %arg27[%c0_252, %c96_253] : memref<64x384xbf16, #tpu.memory_space<vmem>>, vector<16x32xbf16>
    %c0_254 = arith.constant 0 : index
    %c224_255 = arith.constant 224 : index
    %496 = vector.load %arg27[%c0_254, %c224_255] : memref<64x384xbf16, #tpu.memory_space<vmem>>, vector<16x32xbf16>
    %c0_256 = arith.constant 0 : index
    %c352_257 = arith.constant 352 : index
    %497 = vector.load %arg27[%c0_256, %c352_257] : memref<64x384xbf16, #tpu.memory_space<vmem>>, vector<16x32xbf16>
    %cst_258 = arith.constant dense<0.000000e+00> : vector<16x16xf32>
    %498 = tpu.matmul %495, %496, %cst_258 {dimension_numbers = #tpu.dot_dimension_numbers<[1], [1], [0], [0], [0, 0, 1, 0], [], []>} : vector<16x32xbf16>, vector<16x32xbf16>, vector<16x16xf32> -> vector<16x16xf32>
    %499 = vector.broadcast %1 : vector<1x16xf32> to vector<16x16xf32>
    %500 = arith.addf %498, %499 : vector<16x16xf32>
    %cst_259 = arith.constant dense<0xFF800000> : vector<16xf32>
    %501 = vector.multi_reduction <maximumf>, %500, %cst_259 [1] : vector<16x16xf32> to vector<16xf32>
    %502 = vector.shape_cast %501 : vector<16xf32> to vector<16x1xf32>
    %503 = vector.broadcast %502 : vector<16x1xf32> to vector<16x16xf32>
    %504 = arith.subf %500, %503 : vector<16x16xf32>
    %505 = math.exp %504 : vector<16x16xf32>
    %cst_260 = arith.constant dense<0.000000e+00> : vector<16xf32>
    %506 = vector.multi_reduction <add>, %505, %cst_260 [1] : vector<16x16xf32> to vector<16xf32>
    %507 = vector.shape_cast %506 : vector<16xf32> to vector<16x1xf32>
    %508 = tpu.reciprocal %507 {approx = true} : vector<16x1xf32> -> vector<16x1xf32>
    %509 = vector.broadcast %508 : vector<16x1xf32> to vector<16x16xf32>
    %510 = arith.mulf %505, %509 : vector<16x16xf32>
    %511 = arith.truncf %510 : vector<16x16xf32> to vector<16x16xbf16>
    %cst_261 = arith.constant dense<0.000000e+00> : vector<16x32xf32>
    %512 = tpu.matmul %511, %497, %cst_261 {dimension_numbers = #tpu.dot_dimension_numbers<[1], [0], [0], [1], [0, 0, 1, 1], [], []>} : vector<16x16xbf16>, vector<16x32xbf16>, vector<16x32xf32> -> vector<16x32xf32>
    %513 = tpu.concatenate %458, %476, %494, %512 in 1 : vector<16x32xf32>, vector<16x32xf32>, vector<16x32xf32>, vector<16x32xf32> -> vector<16x128xf32>
    %514 = arith.truncf %513 : vector<16x128xf32> to vector<16x128xbf16>
    %c16_262 = arith.constant 16 : index
    %c0_263 = arith.constant 0 : index
    %515 = vector.load %arg27[%c16_262, %c0_263] : memref<64x384xbf16, #tpu.memory_space<vmem>>, vector<16x32xbf16>
    %c16_264 = arith.constant 16 : index
    %c128_265 = arith.constant 128 : index
    %516 = vector.load %arg27[%c16_264, %c128_265] : memref<64x384xbf16, #tpu.memory_space<vmem>>, vector<16x32xbf16>
    %c16_266 = arith.constant 16 : index
    %c256_267 = arith.constant 256 : index
    %517 = vector.load %arg27[%c16_266, %c256_267] : memref<64x384xbf16, #tpu.memory_space<vmem>>, vector<16x32xbf16>
    %cst_268 = arith.constant dense<0.000000e+00> : vector<16x16xf32>
    %518 = tpu.matmul %515, %516, %cst_268 {dimension_numbers = #tpu.dot_dimension_numbers<[1], [1], [0], [0], [0, 0, 1, 0], [], []>} : vector<16x32xbf16>, vector<16x32xbf16>, vector<16x16xf32> -> vector<16x16xf32>
    %519 = vector.broadcast %3 : vector<1x16xf32> to vector<16x16xf32>
    %520 = arith.addf %518, %519 : vector<16x16xf32>
    %cst_269 = arith.constant dense<0xFF800000> : vector<16xf32>
    %521 = vector.multi_reduction <maximumf>, %520, %cst_269 [1] : vector<16x16xf32> to vector<16xf32>
    %522 = vector.shape_cast %521 : vector<16xf32> to vector<16x1xf32>
    %523 = vector.broadcast %522 : vector<16x1xf32> to vector<16x16xf32>
    %524 = arith.subf %520, %523 : vector<16x16xf32>
    %525 = math.exp %524 : vector<16x16xf32>
    %cst_270 = arith.constant dense<0.000000e+00> : vector<16xf32>
    %526 = vector.multi_reduction <add>, %525, %cst_270 [1] : vector<16x16xf32> to vector<16xf32>
    %527 = vector.shape_cast %526 : vector<16xf32> to vector<16x1xf32>
    %528 = tpu.reciprocal %527 {approx = true} : vector<16x1xf32> -> vector<16x1xf32>
    %529 = vector.broadcast %528 : vector<16x1xf32> to vector<16x16xf32>
    %530 = arith.mulf %525, %529 : vector<16x16xf32>
    %531 = arith.truncf %530 : vector<16x16xf32> to vector<16x16xbf16>
    %cst_271 = arith.constant dense<0.000000e+00> : vector<16x32xf32>
    %532 = tpu.matmul %531, %517, %cst_271 {dimension_numbers = #tpu.dot_dimension_numbers<[1], [0], [0], [1], [0, 0, 1, 1], [], []>} : vector<16x16xbf16>, vector<16x32xbf16>, vector<16x32xf32> -> vector<16x32xf32>
    %c16_272 = arith.constant 16 : index
    %c32_273 = arith.constant 32 : index
    %533 = vector.load %arg27[%c16_272, %c32_273] : memref<64x384xbf16, #tpu.memory_space<vmem>>, vector<16x32xbf16>
    %c16_274 = arith.constant 16 : index
    %c160_275 = arith.constant 160 : index
    %534 = vector.load %arg27[%c16_274, %c160_275] : memref<64x384xbf16, #tpu.memory_space<vmem>>, vector<16x32xbf16>
    %c16_276 = arith.constant 16 : index
    %c288_277 = arith.constant 288 : index
    %535 = vector.load %arg27[%c16_276, %c288_277] : memref<64x384xbf16, #tpu.memory_space<vmem>>, vector<16x32xbf16>
    %cst_278 = arith.constant dense<0.000000e+00> : vector<16x16xf32>
    %536 = tpu.matmul %533, %534, %cst_278 {dimension_numbers = #tpu.dot_dimension_numbers<[1], [1], [0], [0], [0, 0, 1, 0], [], []>} : vector<16x32xbf16>, vector<16x32xbf16>, vector<16x16xf32> -> vector<16x16xf32>
    %537 = vector.broadcast %3 : vector<1x16xf32> to vector<16x16xf32>
    %538 = arith.addf %536, %537 : vector<16x16xf32>
    %cst_279 = arith.constant dense<0xFF800000> : vector<16xf32>
    %539 = vector.multi_reduction <maximumf>, %538, %cst_279 [1] : vector<16x16xf32> to vector<16xf32>
    %540 = vector.shape_cast %539 : vector<16xf32> to vector<16x1xf32>
    %541 = vector.broadcast %540 : vector<16x1xf32> to vector<16x16xf32>
    %542 = arith.subf %538, %541 : vector<16x16xf32>
    %543 = math.exp %542 : vector<16x16xf32>
    %cst_280 = arith.constant dense<0.000000e+00> : vector<16xf32>
    %544 = vector.multi_reduction <add>, %543, %cst_280 [1] : vector<16x16xf32> to vector<16xf32>
    %545 = vector.shape_cast %544 : vector<16xf32> to vector<16x1xf32>
    %546 = tpu.reciprocal %545 {approx = true} : vector<16x1xf32> -> vector<16x1xf32>
    %547 = vector.broadcast %546 : vector<16x1xf32> to vector<16x16xf32>
    %548 = arith.mulf %543, %547 : vector<16x16xf32>
    %549 = arith.truncf %548 : vector<16x16xf32> to vector<16x16xbf16>
    %cst_281 = arith.constant dense<0.000000e+00> : vector<16x32xf32>
    %550 = tpu.matmul %549, %535, %cst_281 {dimension_numbers = #tpu.dot_dimension_numbers<[1], [0], [0], [1], [0, 0, 1, 1], [], []>} : vector<16x16xbf16>, vector<16x32xbf16>, vector<16x32xf32> -> vector<16x32xf32>
    %c16_282 = arith.constant 16 : index
    %c64_283 = arith.constant 64 : index
    %551 = vector.load %arg27[%c16_282, %c64_283] : memref<64x384xbf16, #tpu.memory_space<vmem>>, vector<16x32xbf16>
    %c16_284 = arith.constant 16 : index
    %c192_285 = arith.constant 192 : index
    %552 = vector.load %arg27[%c16_284, %c192_285] : memref<64x384xbf16, #tpu.memory_space<vmem>>, vector<16x32xbf16>
    %c16_286 = arith.constant 16 : index
    %c320_287 = arith.constant 320 : index
    %553 = vector.load %arg27[%c16_286, %c320_287] : memref<64x384xbf16, #tpu.memory_space<vmem>>, vector<16x32xbf16>
    %cst_288 = arith.constant dense<0.000000e+00> : vector<16x16xf32>
    %554 = tpu.matmul %551, %552, %cst_288 {dimension_numbers = #tpu.dot_dimension_numbers<[1], [1], [0], [0], [0, 0, 1, 0], [], []>} : vector<16x32xbf16>, vector<16x32xbf16>, vector<16x16xf32> -> vector<16x16xf32>
    %555 = vector.broadcast %3 : vector<1x16xf32> to vector<16x16xf32>
    %556 = arith.addf %554, %555 : vector<16x16xf32>
    %cst_289 = arith.constant dense<0xFF800000> : vector<16xf32>
    %557 = vector.multi_reduction <maximumf>, %556, %cst_289 [1] : vector<16x16xf32> to vector<16xf32>
    %558 = vector.shape_cast %557 : vector<16xf32> to vector<16x1xf32>
    %559 = vector.broadcast %558 : vector<16x1xf32> to vector<16x16xf32>
    %560 = arith.subf %556, %559 : vector<16x16xf32>
    %561 = math.exp %560 : vector<16x16xf32>
    %cst_290 = arith.constant dense<0.000000e+00> : vector<16xf32>
    %562 = vector.multi_reduction <add>, %561, %cst_290 [1] : vector<16x16xf32> to vector<16xf32>
    %563 = vector.shape_cast %562 : vector<16xf32> to vector<16x1xf32>
    %564 = tpu.reciprocal %563 {approx = true} : vector<16x1xf32> -> vector<16x1xf32>
    %565 = vector.broadcast %564 : vector<16x1xf32> to vector<16x16xf32>
    %566 = arith.mulf %561, %565 : vector<16x16xf32>
    %567 = arith.truncf %566 : vector<16x16xf32> to vector<16x16xbf16>
    %cst_291 = arith.constant dense<0.000000e+00> : vector<16x32xf32>
    %568 = tpu.matmul %567, %553, %cst_291 {dimension_numbers = #tpu.dot_dimension_numbers<[1], [0], [0], [1], [0, 0, 1, 1], [], []>} : vector<16x16xbf16>, vector<16x32xbf16>, vector<16x32xf32> -> vector<16x32xf32>
    %c16_292 = arith.constant 16 : index
    %c96_293 = arith.constant 96 : index
    %569 = vector.load %arg27[%c16_292, %c96_293] : memref<64x384xbf16, #tpu.memory_space<vmem>>, vector<16x32xbf16>
    %c16_294 = arith.constant 16 : index
    %c224_295 = arith.constant 224 : index
    %570 = vector.load %arg27[%c16_294, %c224_295] : memref<64x384xbf16, #tpu.memory_space<vmem>>, vector<16x32xbf16>
    %c16_296 = arith.constant 16 : index
    %c352_297 = arith.constant 352 : index
    %571 = vector.load %arg27[%c16_296, %c352_297] : memref<64x384xbf16, #tpu.memory_space<vmem>>, vector<16x32xbf16>
    %cst_298 = arith.constant dense<0.000000e+00> : vector<16x16xf32>
    %572 = tpu.matmul %569, %570, %cst_298 {dimension_numbers = #tpu.dot_dimension_numbers<[1], [1], [0], [0], [0, 0, 1, 0], [], []>} : vector<16x32xbf16>, vector<16x32xbf16>, vector<16x16xf32> -> vector<16x16xf32>
    %573 = vector.broadcast %3 : vector<1x16xf32> to vector<16x16xf32>
    %574 = arith.addf %572, %573 : vector<16x16xf32>
    %cst_299 = arith.constant dense<0xFF800000> : vector<16xf32>
    %575 = vector.multi_reduction <maximumf>, %574, %cst_299 [1] : vector<16x16xf32> to vector<16xf32>
    %576 = vector.shape_cast %575 : vector<16xf32> to vector<16x1xf32>
    %577 = vector.broadcast %576 : vector<16x1xf32> to vector<16x16xf32>
    %578 = arith.subf %574, %577 : vector<16x16xf32>
    %579 = math.exp %578 : vector<16x16xf32>
    %cst_300 = arith.constant dense<0.000000e+00> : vector<16xf32>
    %580 = vector.multi_reduction <add>, %579, %cst_300 [1] : vector<16x16xf32> to vector<16xf32>
    %581 = vector.shape_cast %580 : vector<16xf32> to vector<16x1xf32>
    %582 = tpu.reciprocal %581 {approx = true} : vector<16x1xf32> -> vector<16x1xf32>
    %583 = vector.broadcast %582 : vector<16x1xf32> to vector<16x16xf32>
    %584 = arith.mulf %579, %583 : vector<16x16xf32>
    %585 = arith.truncf %584 : vector<16x16xf32> to vector<16x16xbf16>
    %cst_301 = arith.constant dense<0.000000e+00> : vector<16x32xf32>
    %586 = tpu.matmul %585, %571, %cst_301 {dimension_numbers = #tpu.dot_dimension_numbers<[1], [0], [0], [1], [0, 0, 1, 1], [], []>} : vector<16x16xbf16>, vector<16x32xbf16>, vector<16x32xf32> -> vector<16x32xf32>
    %587 = tpu.concatenate %532, %550, %568, %586 in 1 : vector<16x32xf32>, vector<16x32xf32>, vector<16x32xf32>, vector<16x32xf32> -> vector<16x128xf32>
    %588 = arith.truncf %587 : vector<16x128xf32> to vector<16x128xbf16>
    %c32_302 = arith.constant 32 : index
    %c0_303 = arith.constant 0 : index
    %589 = vector.load %arg27[%c32_302, %c0_303] : memref<64x384xbf16, #tpu.memory_space<vmem>>, vector<16x32xbf16>
    %c32_304 = arith.constant 32 : index
    %c128_305 = arith.constant 128 : index
    %590 = vector.load %arg27[%c32_304, %c128_305] : memref<64x384xbf16, #tpu.memory_space<vmem>>, vector<16x32xbf16>
    %c32_306 = arith.constant 32 : index
    %c256_307 = arith.constant 256 : index
    %591 = vector.load %arg27[%c32_306, %c256_307] : memref<64x384xbf16, #tpu.memory_space<vmem>>, vector<16x32xbf16>
    %cst_308 = arith.constant dense<0.000000e+00> : vector<16x16xf32>
    %592 = tpu.matmul %589, %590, %cst_308 {dimension_numbers = #tpu.dot_dimension_numbers<[1], [1], [0], [0], [0, 0, 1, 0], [], []>} : vector<16x32xbf16>, vector<16x32xbf16>, vector<16x16xf32> -> vector<16x16xf32>
    %593 = vector.broadcast %5 : vector<1x16xf32> to vector<16x16xf32>
    %594 = arith.addf %592, %593 : vector<16x16xf32>
    %cst_309 = arith.constant dense<0xFF800000> : vector<16xf32>
    %595 = vector.multi_reduction <maximumf>, %594, %cst_309 [1] : vector<16x16xf32> to vector<16xf32>
    %596 = vector.shape_cast %595 : vector<16xf32> to vector<16x1xf32>
    %597 = vector.broadcast %596 : vector<16x1xf32> to vector<16x16xf32>
    %598 = arith.subf %594, %597 : vector<16x16xf32>
    %599 = math.exp %598 : vector<16x16xf32>
    %cst_310 = arith.constant dense<0.000000e+00> : vector<16xf32>
    %600 = vector.multi_reduction <add>, %599, %cst_310 [1] : vector<16x16xf32> to vector<16xf32>
    %601 = vector.shape_cast %600 : vector<16xf32> to vector<16x1xf32>
    %602 = tpu.reciprocal %601 {approx = true} : vector<16x1xf32> -> vector<16x1xf32>
    %603 = vector.broadcast %602 : vector<16x1xf32> to vector<16x16xf32>
    %604 = arith.mulf %599, %603 : vector<16x16xf32>
    %605 = arith.truncf %604 : vector<16x16xf32> to vector<16x16xbf16>
    %cst_311 = arith.constant dense<0.000000e+00> : vector<16x32xf32>
    %606 = tpu.matmul %605, %591, %cst_311 {dimension_numbers = #tpu.dot_dimension_numbers<[1], [0], [0], [1], [0, 0, 1, 1], [], []>} : vector<16x16xbf16>, vector<16x32xbf16>, vector<16x32xf32> -> vector<16x32xf32>
    %c32_312 = arith.constant 32 : index
    %c32_313 = arith.constant 32 : index
    %607 = vector.load %arg27[%c32_312, %c32_313] : memref<64x384xbf16, #tpu.memory_space<vmem>>, vector<16x32xbf16>
    %c32_314 = arith.constant 32 : index
    %c160_315 = arith.constant 160 : index
    %608 = vector.load %arg27[%c32_314, %c160_315] : memref<64x384xbf16, #tpu.memory_space<vmem>>, vector<16x32xbf16>
    %c32_316 = arith.constant 32 : index
    %c288_317 = arith.constant 288 : index
    %609 = vector.load %arg27[%c32_316, %c288_317] : memref<64x384xbf16, #tpu.memory_space<vmem>>, vector<16x32xbf16>
    %cst_318 = arith.constant dense<0.000000e+00> : vector<16x16xf32>
    %610 = tpu.matmul %607, %608, %cst_318 {dimension_numbers = #tpu.dot_dimension_numbers<[1], [1], [0], [0], [0, 0, 1, 0], [], []>} : vector<16x32xbf16>, vector<16x32xbf16>, vector<16x16xf32> -> vector<16x16xf32>
    %611 = vector.broadcast %5 : vector<1x16xf32> to vector<16x16xf32>
    %612 = arith.addf %610, %611 : vector<16x16xf32>
    %cst_319 = arith.constant dense<0xFF800000> : vector<16xf32>
    %613 = vector.multi_reduction <maximumf>, %612, %cst_319 [1] : vector<16x16xf32> to vector<16xf32>
    %614 = vector.shape_cast %613 : vector<16xf32> to vector<16x1xf32>
    %615 = vector.broadcast %614 : vector<16x1xf32> to vector<16x16xf32>
    %616 = arith.subf %612, %615 : vector<16x16xf32>
    %617 = math.exp %616 : vector<16x16xf32>
    %cst_320 = arith.constant dense<0.000000e+00> : vector<16xf32>
    %618 = vector.multi_reduction <add>, %617, %cst_320 [1] : vector<16x16xf32> to vector<16xf32>
    %619 = vector.shape_cast %618 : vector<16xf32> to vector<16x1xf32>
    %620 = tpu.reciprocal %619 {approx = true} : vector<16x1xf32> -> vector<16x1xf32>
    %621 = vector.broadcast %620 : vector<16x1xf32> to vector<16x16xf32>
    %622 = arith.mulf %617, %621 : vector<16x16xf32>
    %623 = arith.truncf %622 : vector<16x16xf32> to vector<16x16xbf16>
    %cst_321 = arith.constant dense<0.000000e+00> : vector<16x32xf32>
    %624 = tpu.matmul %623, %609, %cst_321 {dimension_numbers = #tpu.dot_dimension_numbers<[1], [0], [0], [1], [0, 0, 1, 1], [], []>} : vector<16x16xbf16>, vector<16x32xbf16>, vector<16x32xf32> -> vector<16x32xf32>
    %c32_322 = arith.constant 32 : index
    %c64_323 = arith.constant 64 : index
    %625 = vector.load %arg27[%c32_322, %c64_323] : memref<64x384xbf16, #tpu.memory_space<vmem>>, vector<16x32xbf16>
    %c32_324 = arith.constant 32 : index
    %c192_325 = arith.constant 192 : index
    %626 = vector.load %arg27[%c32_324, %c192_325] : memref<64x384xbf16, #tpu.memory_space<vmem>>, vector<16x32xbf16>
    %c32_326 = arith.constant 32 : index
    %c320_327 = arith.constant 320 : index
    %627 = vector.load %arg27[%c32_326, %c320_327] : memref<64x384xbf16, #tpu.memory_space<vmem>>, vector<16x32xbf16>
    %cst_328 = arith.constant dense<0.000000e+00> : vector<16x16xf32>
    %628 = tpu.matmul %625, %626, %cst_328 {dimension_numbers = #tpu.dot_dimension_numbers<[1], [1], [0], [0], [0, 0, 1, 0], [], []>} : vector<16x32xbf16>, vector<16x32xbf16>, vector<16x16xf32> -> vector<16x16xf32>
    %629 = vector.broadcast %5 : vector<1x16xf32> to vector<16x16xf32>
    %630 = arith.addf %628, %629 : vector<16x16xf32>
    %cst_329 = arith.constant dense<0xFF800000> : vector<16xf32>
    %631 = vector.multi_reduction <maximumf>, %630, %cst_329 [1] : vector<16x16xf32> to vector<16xf32>
    %632 = vector.shape_cast %631 : vector<16xf32> to vector<16x1xf32>
    %633 = vector.broadcast %632 : vector<16x1xf32> to vector<16x16xf32>
    %634 = arith.subf %630, %633 : vector<16x16xf32>
    %635 = math.exp %634 : vector<16x16xf32>
    %cst_330 = arith.constant dense<0.000000e+00> : vector<16xf32>
    %636 = vector.multi_reduction <add>, %635, %cst_330 [1] : vector<16x16xf32> to vector<16xf32>
    %637 = vector.shape_cast %636 : vector<16xf32> to vector<16x1xf32>
    %638 = tpu.reciprocal %637 {approx = true} : vector<16x1xf32> -> vector<16x1xf32>
    %639 = vector.broadcast %638 : vector<16x1xf32> to vector<16x16xf32>
    %640 = arith.mulf %635, %639 : vector<16x16xf32>
    %641 = arith.truncf %640 : vector<16x16xf32> to vector<16x16xbf16>
    %cst_331 = arith.constant dense<0.000000e+00> : vector<16x32xf32>
    %642 = tpu.matmul %641, %627, %cst_331 {dimension_numbers = #tpu.dot_dimension_numbers<[1], [0], [0], [1], [0, 0, 1, 1], [], []>} : vector<16x16xbf16>, vector<16x32xbf16>, vector<16x32xf32> -> vector<16x32xf32>
    %c32_332 = arith.constant 32 : index
    %c96_333 = arith.constant 96 : index
    %643 = vector.load %arg27[%c32_332, %c96_333] : memref<64x384xbf16, #tpu.memory_space<vmem>>, vector<16x32xbf16>
    %c32_334 = arith.constant 32 : index
    %c224_335 = arith.constant 224 : index
    %644 = vector.load %arg27[%c32_334, %c224_335] : memref<64x384xbf16, #tpu.memory_space<vmem>>, vector<16x32xbf16>
    %c32_336 = arith.constant 32 : index
    %c352_337 = arith.constant 352 : index
    %645 = vector.load %arg27[%c32_336, %c352_337] : memref<64x384xbf16, #tpu.memory_space<vmem>>, vector<16x32xbf16>
    %cst_338 = arith.constant dense<0.000000e+00> : vector<16x16xf32>
    %646 = tpu.matmul %643, %644, %cst_338 {dimension_numbers = #tpu.dot_dimension_numbers<[1], [1], [0], [0], [0, 0, 1, 0], [], []>} : vector<16x32xbf16>, vector<16x32xbf16>, vector<16x16xf32> -> vector<16x16xf32>
    %647 = vector.broadcast %5 : vector<1x16xf32> to vector<16x16xf32>
    %648 = arith.addf %646, %647 : vector<16x16xf32>
    %cst_339 = arith.constant dense<0xFF800000> : vector<16xf32>
    %649 = vector.multi_reduction <maximumf>, %648, %cst_339 [1] : vector<16x16xf32> to vector<16xf32>
    %650 = vector.shape_cast %649 : vector<16xf32> to vector<16x1xf32>
    %651 = vector.broadcast %650 : vector<16x1xf32> to vector<16x16xf32>
    %652 = arith.subf %648, %651 : vector<16x16xf32>
    %653 = math.exp %652 : vector<16x16xf32>
    %cst_340 = arith.constant dense<0.000000e+00> : vector<16xf32>
    %654 = vector.multi_reduction <add>, %653, %cst_340 [1] : vector<16x16xf32> to vector<16xf32>
    %655 = vector.shape_cast %654 : vector<16xf32> to vector<16x1xf32>
    %656 = tpu.reciprocal %655 {approx = true} : vector<16x1xf32> -> vector<16x1xf32>
    %657 = vector.broadcast %656 : vector<16x1xf32> to vector<16x16xf32>
    %658 = arith.mulf %653, %657 : vector<16x16xf32>
    %659 = arith.truncf %658 : vector<16x16xf32> to vector<16x16xbf16>
    %cst_341 = arith.constant dense<0.000000e+00> : vector<16x32xf32>
    %660 = tpu.matmul %659, %645, %cst_341 {dimension_numbers = #tpu.dot_dimension_numbers<[1], [0], [0], [1], [0, 0, 1, 1], [], []>} : vector<16x16xbf16>, vector<16x32xbf16>, vector<16x32xf32> -> vector<16x32xf32>
    %661 = tpu.concatenate %606, %624, %642, %660 in 1 : vector<16x32xf32>, vector<16x32xf32>, vector<16x32xf32>, vector<16x32xf32> -> vector<16x128xf32>
    %662 = arith.truncf %661 : vector<16x128xf32> to vector<16x128xbf16>
    %c48_342 = arith.constant 48 : index
    %c0_343 = arith.constant 0 : index
    %663 = vector.load %arg27[%c48_342, %c0_343] : memref<64x384xbf16, #tpu.memory_space<vmem>>, vector<16x32xbf16>
    %c48_344 = arith.constant 48 : index
    %c128_345 = arith.constant 128 : index
    %664 = vector.load %arg27[%c48_344, %c128_345] : memref<64x384xbf16, #tpu.memory_space<vmem>>, vector<16x32xbf16>
    %c48_346 = arith.constant 48 : index
    %c256_347 = arith.constant 256 : index
    %665 = vector.load %arg27[%c48_346, %c256_347] : memref<64x384xbf16, #tpu.memory_space<vmem>>, vector<16x32xbf16>
    %cst_348 = arith.constant dense<0.000000e+00> : vector<16x16xf32>
    %666 = tpu.matmul %663, %664, %cst_348 {dimension_numbers = #tpu.dot_dimension_numbers<[1], [1], [0], [0], [0, 0, 1, 0], [], []>} : vector<16x32xbf16>, vector<16x32xbf16>, vector<16x16xf32> -> vector<16x16xf32>
    %667 = vector.broadcast %7 : vector<1x16xf32> to vector<16x16xf32>
    %668 = arith.addf %666, %667 : vector<16x16xf32>
    %cst_349 = arith.constant dense<0xFF800000> : vector<16xf32>
    %669 = vector.multi_reduction <maximumf>, %668, %cst_349 [1] : vector<16x16xf32> to vector<16xf32>
    %670 = vector.shape_cast %669 : vector<16xf32> to vector<16x1xf32>
    %671 = vector.broadcast %670 : vector<16x1xf32> to vector<16x16xf32>
    %672 = arith.subf %668, %671 : vector<16x16xf32>
    %673 = math.exp %672 : vector<16x16xf32>
    %cst_350 = arith.constant dense<0.000000e+00> : vector<16xf32>
    %674 = vector.multi_reduction <add>, %673, %cst_350 [1] : vector<16x16xf32> to vector<16xf32>
    %675 = vector.shape_cast %674 : vector<16xf32> to vector<16x1xf32>
    %676 = tpu.reciprocal %675 {approx = true} : vector<16x1xf32> -> vector<16x1xf32>
    %677 = vector.broadcast %676 : vector<16x1xf32> to vector<16x16xf32>
    %678 = arith.mulf %673, %677 : vector<16x16xf32>
    %679 = arith.truncf %678 : vector<16x16xf32> to vector<16x16xbf16>
    %cst_351 = arith.constant dense<0.000000e+00> : vector<16x32xf32>
    %680 = tpu.matmul %679, %665, %cst_351 {dimension_numbers = #tpu.dot_dimension_numbers<[1], [0], [0], [1], [0, 0, 1, 1], [], []>} : vector<16x16xbf16>, vector<16x32xbf16>, vector<16x32xf32> -> vector<16x32xf32>
    %c48_352 = arith.constant 48 : index
    %c32_353 = arith.constant 32 : index
    %681 = vector.load %arg27[%c48_352, %c32_353] : memref<64x384xbf16, #tpu.memory_space<vmem>>, vector<16x32xbf16>
    %c48_354 = arith.constant 48 : index
    %c160_355 = arith.constant 160 : index
    %682 = vector.load %arg27[%c48_354, %c160_355] : memref<64x384xbf16, #tpu.memory_space<vmem>>, vector<16x32xbf16>
    %c48_356 = arith.constant 48 : index
    %c288_357 = arith.constant 288 : index
    %683 = vector.load %arg27[%c48_356, %c288_357] : memref<64x384xbf16, #tpu.memory_space<vmem>>, vector<16x32xbf16>
    %cst_358 = arith.constant dense<0.000000e+00> : vector<16x16xf32>
    %684 = tpu.matmul %681, %682, %cst_358 {dimension_numbers = #tpu.dot_dimension_numbers<[1], [1], [0], [0], [0, 0, 1, 0], [], []>} : vector<16x32xbf16>, vector<16x32xbf16>, vector<16x16xf32> -> vector<16x16xf32>
    %685 = vector.broadcast %7 : vector<1x16xf32> to vector<16x16xf32>
    %686 = arith.addf %684, %685 : vector<16x16xf32>
    %cst_359 = arith.constant dense<0xFF800000> : vector<16xf32>
    %687 = vector.multi_reduction <maximumf>, %686, %cst_359 [1] : vector<16x16xf32> to vector<16xf32>
    %688 = vector.shape_cast %687 : vector<16xf32> to vector<16x1xf32>
    %689 = vector.broadcast %688 : vector<16x1xf32> to vector<16x16xf32>
    %690 = arith.subf %686, %689 : vector<16x16xf32>
    %691 = math.exp %690 : vector<16x16xf32>
    %cst_360 = arith.constant dense<0.000000e+00> : vector<16xf32>
    %692 = vector.multi_reduction <add>, %691, %cst_360 [1] : vector<16x16xf32> to vector<16xf32>
    %693 = vector.shape_cast %692 : vector<16xf32> to vector<16x1xf32>
    %694 = tpu.reciprocal %693 {approx = true} : vector<16x1xf32> -> vector<16x1xf32>
    %695 = vector.broadcast %694 : vector<16x1xf32> to vector<16x16xf32>
    %696 = arith.mulf %691, %695 : vector<16x16xf32>
    %697 = arith.truncf %696 : vector<16x16xf32> to vector<16x16xbf16>
    %cst_361 = arith.constant dense<0.000000e+00> : vector<16x32xf32>
    %698 = tpu.matmul %697, %683, %cst_361 {dimension_numbers = #tpu.dot_dimension_numbers<[1], [0], [0], [1], [0, 0, 1, 1], [], []>} : vector<16x16xbf16>, vector<16x32xbf16>, vector<16x32xf32> -> vector<16x32xf32>
    %c48_362 = arith.constant 48 : index
    %c64_363 = arith.constant 64 : index
    %699 = vector.load %arg27[%c48_362, %c64_363] : memref<64x384xbf16, #tpu.memory_space<vmem>>, vector<16x32xbf16>
    %c48_364 = arith.constant 48 : index
    %c192_365 = arith.constant 192 : index
    %700 = vector.load %arg27[%c48_364, %c192_365] : memref<64x384xbf16, #tpu.memory_space<vmem>>, vector<16x32xbf16>
    %c48_366 = arith.constant 48 : index
    %c320_367 = arith.constant 320 : index
    %701 = vector.load %arg27[%c48_366, %c320_367] : memref<64x384xbf16, #tpu.memory_space<vmem>>, vector<16x32xbf16>
    %cst_368 = arith.constant dense<0.000000e+00> : vector<16x16xf32>
    %702 = tpu.matmul %699, %700, %cst_368 {dimension_numbers = #tpu.dot_dimension_numbers<[1], [1], [0], [0], [0, 0, 1, 0], [], []>} : vector<16x32xbf16>, vector<16x32xbf16>, vector<16x16xf32> -> vector<16x16xf32>
    %703 = vector.broadcast %7 : vector<1x16xf32> to vector<16x16xf32>
    %704 = arith.addf %702, %703 : vector<16x16xf32>
    %cst_369 = arith.constant dense<0xFF800000> : vector<16xf32>
    %705 = vector.multi_reduction <maximumf>, %704, %cst_369 [1] : vector<16x16xf32> to vector<16xf32>
    %706 = vector.shape_cast %705 : vector<16xf32> to vector<16x1xf32>
    %707 = vector.broadcast %706 : vector<16x1xf32> to vector<16x16xf32>
    %708 = arith.subf %704, %707 : vector<16x16xf32>
    %709 = math.exp %708 : vector<16x16xf32>
    %cst_370 = arith.constant dense<0.000000e+00> : vector<16xf32>
    %710 = vector.multi_reduction <add>, %709, %cst_370 [1] : vector<16x16xf32> to vector<16xf32>
    %711 = vector.shape_cast %710 : vector<16xf32> to vector<16x1xf32>
    %712 = tpu.reciprocal %711 {approx = true} : vector<16x1xf32> -> vector<16x1xf32>
    %713 = vector.broadcast %712 : vector<16x1xf32> to vector<16x16xf32>
    %714 = arith.mulf %709, %713 : vector<16x16xf32>
    %715 = arith.truncf %714 : vector<16x16xf32> to vector<16x16xbf16>
    %cst_371 = arith.constant dense<0.000000e+00> : vector<16x32xf32>
    %716 = tpu.matmul %715, %701, %cst_371 {dimension_numbers = #tpu.dot_dimension_numbers<[1], [0], [0], [1], [0, 0, 1, 1], [], []>} : vector<16x16xbf16>, vector<16x32xbf16>, vector<16x32xf32> -> vector<16x32xf32>
    %c48_372 = arith.constant 48 : index
    %c96_373 = arith.constant 96 : index
    %717 = vector.load %arg27[%c48_372, %c96_373] : memref<64x384xbf16, #tpu.memory_space<vmem>>, vector<16x32xbf16>
    %c48_374 = arith.constant 48 : index
    %c224_375 = arith.constant 224 : index
    %718 = vector.load %arg27[%c48_374, %c224_375] : memref<64x384xbf16, #tpu.memory_space<vmem>>, vector<16x32xbf16>
    %c48_376 = arith.constant 48 : index
    %c352_377 = arith.constant 352 : index
    %719 = vector.load %arg27[%c48_376, %c352_377] : memref<64x384xbf16, #tpu.memory_space<vmem>>, vector<16x32xbf16>
    %cst_378 = arith.constant dense<0.000000e+00> : vector<16x16xf32>
    %720 = tpu.matmul %717, %718, %cst_378 {dimension_numbers = #tpu.dot_dimension_numbers<[1], [1], [0], [0], [0, 0, 1, 0], [], []>} : vector<16x32xbf16>, vector<16x32xbf16>, vector<16x16xf32> -> vector<16x16xf32>
    %721 = vector.broadcast %7 : vector<1x16xf32> to vector<16x16xf32>
    %722 = arith.addf %720, %721 : vector<16x16xf32>
    %cst_379 = arith.constant dense<0xFF800000> : vector<16xf32>
    %723 = vector.multi_reduction <maximumf>, %722, %cst_379 [1] : vector<16x16xf32> to vector<16xf32>
    %724 = vector.shape_cast %723 : vector<16xf32> to vector<16x1xf32>
    %725 = vector.broadcast %724 : vector<16x1xf32> to vector<16x16xf32>
    %726 = arith.subf %722, %725 : vector<16x16xf32>
    %727 = math.exp %726 : vector<16x16xf32>
    %cst_380 = arith.constant dense<0.000000e+00> : vector<16xf32>
    %728 = vector.multi_reduction <add>, %727, %cst_380 [1] : vector<16x16xf32> to vector<16xf32>
    %729 = vector.shape_cast %728 : vector<16xf32> to vector<16x1xf32>
    %730 = tpu.reciprocal %729 {approx = true} : vector<16x1xf32> -> vector<16x1xf32>
    %731 = vector.broadcast %730 : vector<16x1xf32> to vector<16x16xf32>
    %732 = arith.mulf %727, %731 : vector<16x16xf32>
    %733 = arith.truncf %732 : vector<16x16xf32> to vector<16x16xbf16>
    %cst_381 = arith.constant dense<0.000000e+00> : vector<16x32xf32>
    %734 = tpu.matmul %733, %719, %cst_381 {dimension_numbers = #tpu.dot_dimension_numbers<[1], [0], [0], [1], [0, 0, 1, 1], [], []>} : vector<16x16xbf16>, vector<16x32xbf16>, vector<16x32xf32> -> vector<16x32xf32>
    %735 = tpu.concatenate %680, %698, %716, %734 in 1 : vector<16x32xf32>, vector<16x32xf32>, vector<16x32xf32>, vector<16x32xf32> -> vector<16x128xf32>
    %736 = arith.truncf %735 : vector<16x128xf32> to vector<16x128xbf16>
    %737 = tpu.concatenate %514, %588, %662, %736 in 0 : vector<16x128xbf16>, vector<16x128xbf16>, vector<16x128xbf16>, vector<16x128xbf16> -> vector<64x128xbf16>
    %c1_382 = arith.constant 1 : index
    %c0_383 = arith.constant 0 : index
    %c0_384 = arith.constant 0 : index
    %738 = vector.load %arg6[%c1_382, %c0_383, %c0_384] : memref<2x128x128xbf16, #tpu.memory_space<vmem>>, vector<1x128x128xbf16>
    %739 = vector.shape_cast %738 : vector<1x128x128xbf16> to vector<128x128xbf16>
    %cst_385 = arith.constant dense<0.000000e+00> : vector<64x128xf32>
    %740 = tpu.matmul %737, %739, %cst_385 {dimension_numbers = #tpu.dot_dimension_numbers<[1], [0], [0], [1], [0, 0, 1, 1], [], []>} : vector<64x128xbf16>, vector<128x128xbf16>, vector<64x128xf32> -> vector<64x128xf32>
    %c1_386 = arith.constant 1 : index
    %c0_387 = arith.constant 0 : index
    %c0_388 = arith.constant 0 : index
    %741 = vector.load %arg7[%c1_386, %c0_387, %c0_388] : memref<2x1x128xf32, #tpu.memory_space<vmem>>, vector<1x1x128xf32>
    %742 = vector.shape_cast %741 : vector<1x1x128xf32> to vector<1x128xf32>
    %743 = vector.broadcast %742 : vector<1x128xf32> to vector<64x128xf32>
    %744 = arith.addf %740, %743 : vector<64x128xf32>
    %745 = arith.addf %430, %744 : vector<64x128xf32>
    %c1_389 = arith.constant 1 : index
    %c0_390 = arith.constant 0 : index
    %c0_391 = arith.constant 0 : index
    %746 = vector.load %arg8[%c1_389, %c0_390, %c0_391] : memref<2x2x128xf32, #tpu.memory_space<vmem>>, vector<1x2x128xf32>
    %747 = vector.shape_cast %746 : vector<1x2x128xf32> to vector<2x128xf32>
    %cst_392 = arith.constant dense<0.000000e+00> : vector<64xf32>
    %748 = vector.multi_reduction <add>, %745, %cst_392 [1] : vector<64x128xf32> to vector<64xf32>
    %749 = vector.shape_cast %748 : vector<64xf32> to vector<64x1xf32>
    %cst_393 = arith.constant 1.280000e+02 : f32
    %750 = vector.broadcast %cst_393 : f32 to vector<64x1xf32>
    %751 = arith.divf %749, %750 : vector<64x1xf32>
    %752 = vector.broadcast %751 : vector<64x1xf32> to vector<64x128xf32>
    %753 = arith.subf %745, %752 : vector<64x128xf32>
    %754 = arith.mulf %753, %753 : vector<64x128xf32>
    %cst_394 = arith.constant dense<0.000000e+00> : vector<64xf32>
    %755 = vector.multi_reduction <add>, %754, %cst_394 [1] : vector<64x128xf32> to vector<64xf32>
    %756 = vector.shape_cast %755 : vector<64xf32> to vector<64x1xf32>
    %cst_395 = arith.constant 1.280000e+02 : f32
    %757 = vector.broadcast %cst_395 : f32 to vector<64x1xf32>
    %758 = arith.divf %756, %757 : vector<64x1xf32>
    %759 = vector.broadcast %751 : vector<64x1xf32> to vector<64x128xf32>
    %760 = arith.subf %745, %759 : vector<64x128xf32>
    %cst_396 = arith.constant 9.99999974E-6 : f32
    %761 = vector.broadcast %cst_396 : f32 to vector<64x1xf32>
    %762 = arith.addf %758, %761 : vector<64x1xf32>
    %763 = math.rsqrt %762 : vector<64x1xf32>
    %764 = vector.broadcast %763 : vector<64x1xf32> to vector<64x128xf32>
    %765 = arith.mulf %760, %764 : vector<64x128xf32>
    %766 = vector.extract_strided_slice %747 {offsets = [0, 0], sizes = [1, 128], strides = [1, 1]} : vector<2x128xf32> to vector<1x128xf32>
    %767 = vector.broadcast %766 : vector<1x128xf32> to vector<64x128xf32>
    %768 = arith.mulf %765, %767 : vector<64x128xf32>
    %769 = vector.extract_strided_slice %747 {offsets = [1, 0], sizes = [1, 128], strides = [1, 1]} : vector<2x128xf32> to vector<1x128xf32>
    %770 = vector.broadcast %769 : vector<1x128xf32> to vector<64x128xf32>
    %771 = arith.addf %768, %770 : vector<64x128xf32>
    %772 = arith.truncf %771 : vector<64x128xf32> to vector<64x128xbf16>
    %c1_397 = arith.constant 1 : index
    %c0_398 = arith.constant 0 : index
    %c0_399 = arith.constant 0 : index
    %773 = vector.load %arg9[%c1_397, %c0_398, %c0_399] : memref<2x128x256xbf16, #tpu.memory_space<vmem>>, vector<1x128x256xbf16>
    %774 = vector.shape_cast %773 : vector<1x128x256xbf16> to vector<128x256xbf16>
    %cst_400 = arith.constant dense<0.000000e+00> : vector<64x256xf32>
    %775 = tpu.matmul %772, %774, %cst_400 {dimension_numbers = #tpu.dot_dimension_numbers<[1], [0], [0], [1], [0, 0, 1, 1], [], []>} : vector<64x128xbf16>, vector<128x256xbf16>, vector<64x256xf32> -> vector<64x256xf32>
    %c1_401 = arith.constant 1 : index
    %c0_402 = arith.constant 0 : index
    %c0_403 = arith.constant 0 : index
    %776 = vector.load %arg10[%c1_401, %c0_402, %c0_403] : memref<2x1x256xf32, #tpu.memory_space<vmem>>, vector<1x1x256xf32>
    %777 = vector.shape_cast %776 : vector<1x1x256xf32> to vector<1x256xf32>
    %778 = vector.broadcast %777 : vector<1x256xf32> to vector<64x256xf32>
    %779 = arith.addf %775, %778 : vector<64x256xf32>
    %780 = arith.mulf %779, %779 : vector<64x256xf32>
    %781 = arith.mulf %779, %780 : vector<64x256xf32>
    %cst_404 = arith.constant 4.471500e-02 : f32
    %782 = vector.broadcast %cst_404 : f32 to vector<64x256xf32>
    %783 = arith.mulf %782, %781 : vector<64x256xf32>
    %784 = arith.addf %779, %783 : vector<64x256xf32>
    %cst_405 = arith.constant 0.797884583 : f32
    %785 = vector.broadcast %cst_405 : f32 to vector<64x256xf32>
    %786 = arith.mulf %785, %784 : vector<64x256xf32>
    %787 = math.tanh %786 : vector<64x256xf32>
    %cst_406 = arith.constant 1.000000e+00 : f32
    %788 = vector.broadcast %cst_406 : f32 to vector<64x256xf32>
    %789 = arith.addf %788, %787 : vector<64x256xf32>
    %cst_407 = arith.constant 5.000000e-01 : f32
    %790 = vector.broadcast %cst_407 : f32 to vector<64x256xf32>
    %791 = arith.mulf %790, %789 : vector<64x256xf32>
    %792 = arith.mulf %779, %791 : vector<64x256xf32>
    %793 = arith.truncf %792 : vector<64x256xf32> to vector<64x256xbf16>
    %c1_408 = arith.constant 1 : index
    %c0_409 = arith.constant 0 : index
    %c0_410 = arith.constant 0 : index
    %794 = vector.load %arg11[%c1_408, %c0_409, %c0_410] : memref<2x256x128xbf16, #tpu.memory_space<vmem>>, vector<1x256x128xbf16>
    %795 = vector.shape_cast %794 : vector<1x256x128xbf16> to vector<256x128xbf16>
    %cst_411 = arith.constant dense<0.000000e+00> : vector<64x128xf32>
    %796 = tpu.matmul %793, %795, %cst_411 {dimension_numbers = #tpu.dot_dimension_numbers<[1], [0], [0], [1], [0, 0, 1, 1], [], []>} : vector<64x256xbf16>, vector<256x128xbf16>, vector<64x128xf32> -> vector<64x128xf32>
    %c1_412 = arith.constant 1 : index
    %c0_413 = arith.constant 0 : index
    %c0_414 = arith.constant 0 : index
    %797 = vector.load %arg12[%c1_412, %c0_413, %c0_414] : memref<2x1x128xf32, #tpu.memory_space<vmem>>, vector<1x1x128xf32>
    %798 = vector.shape_cast %797 : vector<1x1x128xf32> to vector<1x128xf32>
    %799 = vector.broadcast %798 : vector<1x128xf32> to vector<64x128xf32>
    %800 = arith.addf %796, %799 : vector<64x128xf32>
    %801 = arith.addf %771, %800 : vector<64x128xf32>
    %c1_415 = arith.constant 1 : index
    %c0_416 = arith.constant 0 : index
    %c0_417 = arith.constant 0 : index
    %802 = vector.load %arg13[%c1_415, %c0_416, %c0_417] : memref<2x2x128xf32, #tpu.memory_space<vmem>>, vector<1x2x128xf32>
    %803 = vector.shape_cast %802 : vector<1x2x128xf32> to vector<2x128xf32>
    %cst_418 = arith.constant dense<0.000000e+00> : vector<64xf32>
    %804 = vector.multi_reduction <add>, %801, %cst_418 [1] : vector<64x128xf32> to vector<64xf32>
    %805 = vector.shape_cast %804 : vector<64xf32> to vector<64x1xf32>
    %cst_419 = arith.constant 1.280000e+02 : f32
    %806 = vector.broadcast %cst_419 : f32 to vector<64x1xf32>
    %807 = arith.divf %805, %806 : vector<64x1xf32>
    %808 = vector.broadcast %807 : vector<64x1xf32> to vector<64x128xf32>
    %809 = arith.subf %801, %808 : vector<64x128xf32>
    %810 = arith.mulf %809, %809 : vector<64x128xf32>
    %cst_420 = arith.constant dense<0.000000e+00> : vector<64xf32>
    %811 = vector.multi_reduction <add>, %810, %cst_420 [1] : vector<64x128xf32> to vector<64xf32>
    %812 = vector.shape_cast %811 : vector<64xf32> to vector<64x1xf32>
    %cst_421 = arith.constant 1.280000e+02 : f32
    %813 = vector.broadcast %cst_421 : f32 to vector<64x1xf32>
    %814 = arith.divf %812, %813 : vector<64x1xf32>
    %815 = vector.broadcast %807 : vector<64x1xf32> to vector<64x128xf32>
    %816 = arith.subf %801, %815 : vector<64x128xf32>
    %cst_422 = arith.constant 9.99999974E-6 : f32
    %817 = vector.broadcast %cst_422 : f32 to vector<64x1xf32>
    %818 = arith.addf %814, %817 : vector<64x1xf32>
    %819 = math.rsqrt %818 : vector<64x1xf32>
    %820 = vector.broadcast %819 : vector<64x1xf32> to vector<64x128xf32>
    %821 = arith.mulf %816, %820 : vector<64x128xf32>
    %822 = vector.extract_strided_slice %803 {offsets = [0, 0], sizes = [1, 128], strides = [1, 1]} : vector<2x128xf32> to vector<1x128xf32>
    %823 = vector.broadcast %822 : vector<1x128xf32> to vector<64x128xf32>
    %824 = arith.mulf %821, %823 : vector<64x128xf32>
    %825 = vector.extract_strided_slice %803 {offsets = [1, 0], sizes = [1, 128], strides = [1, 1]} : vector<2x128xf32> to vector<1x128xf32>
    %826 = vector.broadcast %825 : vector<1x128xf32> to vector<64x128xf32>
    %827 = arith.addf %824, %826 : vector<64x128xf32>
    %828 = vector.extract_strided_slice %827 {offsets = [0, 0], sizes = [1, 128], strides = [1, 1]} : vector<64x128xf32> to vector<1x128xf32>
    %829 = vector.extract_strided_slice %827 {offsets = [16, 0], sizes = [1, 128], strides = [1, 1]} : vector<64x128xf32> to vector<1x128xf32>
    %830 = vector.extract_strided_slice %827 {offsets = [32, 0], sizes = [1, 128], strides = [1, 1]} : vector<64x128xf32> to vector<1x128xf32>
    %831 = vector.extract_strided_slice %827 {offsets = [48, 0], sizes = [1, 128], strides = [1, 1]} : vector<64x128xf32> to vector<1x128xf32>
    %832 = tpu.concatenate %828, %829, %830, %831 in 0 : vector<1x128xf32>, vector<1x128xf32>, vector<1x128xf32>, vector<1x128xf32> -> vector<4x128xf32>
    %833 = arith.truncf %832 : vector<4x128xf32> to vector<4x128xbf16>
    %c0_423 = arith.constant 0 : index
    %c0_424 = arith.constant 0 : index
    %834 = vector.load %arg14[%c0_423, %c0_424] : memref<128x128xbf16, #tpu.memory_space<vmem>>, vector<128x128xbf16>
    %cst_425 = arith.constant dense<0.000000e+00> : vector<4x128xf32>
    %835 = tpu.matmul %833, %834, %cst_425 {dimension_numbers = #tpu.dot_dimension_numbers<[1], [0], [0], [1], [0, 0, 1, 1], [], []>} : vector<4x128xbf16>, vector<128x128xbf16>, vector<4x128xf32> -> vector<4x128xf32>
    %c0_426 = arith.constant 0 : index
    %c0_427 = arith.constant 0 : index
    %836 = vector.load %arg15[%c0_426, %c0_427] : memref<1x128xf32, #tpu.memory_space<vmem>>, vector<1x128xf32>
    %837 = vector.broadcast %836 : vector<1x128xf32> to vector<4x128xf32>
    %838 = arith.addf %835, %837 : vector<4x128xf32>
    %839 = math.tanh %838 : vector<4x128xf32>
    %840 = arith.truncf %839 : vector<4x128xf32> to vector<4x128xbf16>
    %c0_428 = arith.constant 0 : index
    %c0_429 = arith.constant 0 : index
    %841 = vector.load %arg16[%c0_428, %c0_429] : memref<128x256xbf16, #tpu.memory_space<vmem>>, vector<128x256xbf16>
    %cst_430 = arith.constant dense<0.000000e+00> : vector<4x256xf32>
    %842 = tpu.matmul %840, %841, %cst_430 {dimension_numbers = #tpu.dot_dimension_numbers<[1], [0], [0], [1], [0, 0, 1, 1], [], []>} : vector<4x128xbf16>, vector<128x256xbf16>, vector<4x256xf32> -> vector<4x256xf32>
    %c0_431 = arith.constant 0 : index
    %c0_432 = arith.constant 0 : index
    %843 = vector.load %arg17[%c0_431, %c0_432] : memref<1x256xf32, #tpu.memory_space<vmem>>, vector<1x256xf32>
    %844 = vector.broadcast %843 : vector<1x256xf32> to vector<4x256xf32>
    %845 = arith.addf %842, %844 : vector<4x256xf32>
    %cst_433 = arith.constant 0.000000e+00 : f32
    %846 = vector.broadcast %cst_433 : f32 to vector<4x256xf32>
    %847 = arith.maximumf %845, %846 : vector<4x256xf32>
    %848 = math.absf %845 : vector<4x256xf32>
    %cst_434 = arith.constant 0.000000e+00 : f32
    %849 = vector.broadcast %cst_434 : f32 to vector<4x256xf32>
    %850 = arith.subf %849, %848 : vector<4x256xf32>
    %851 = math.exp %850 : vector<4x256xf32>
    %cst_435 = arith.constant 1.000000e+00 : f32
    %852 = vector.broadcast %cst_435 : f32 to vector<4x256xf32>
    %853 = arith.addf %852, %851 : vector<4x256xf32>
    %854 = math.log %853 : vector<4x256xf32>
    %855 = arith.addf %847, %854 : vector<4x256xf32>
    %856 = math.tanh %855 : vector<4x256xf32>
    %857 = arith.mulf %845, %856 : vector<4x256xf32>
    %c0_436 = arith.constant 0 : index
    %c0_437 = arith.constant 0 : index
    %858 = vector.load %arg18[%c0_436, %c0_437] : memref<1x256xf32, #tpu.memory_space<vmem>>, vector<1x256xf32>
    %859 = vector.broadcast %858 : vector<1x256xf32> to vector<4x256xf32>
    %860 = arith.mulf %857, %859 : vector<4x256xf32>
    %c0_438 = arith.constant 0 : index
    %c0_439 = arith.constant 0 : index
    %861 = vector.load %arg19[%c0_438, %c0_439] : memref<1x256xf32, #tpu.memory_space<vmem>>, vector<1x256xf32>
    %862 = vector.broadcast %861 : vector<1x256xf32> to vector<4x256xf32>
    %863 = arith.addf %860, %862 : vector<4x256xf32>
    %864 = arith.truncf %863 : vector<4x256xf32> to vector<4x256xbf16>
    %c0_440 = arith.constant 0 : index
    %c0_441 = arith.constant 0 : index
    %865 = vector.load %arg20[%c0_440, %c0_441] : memref<256x128xbf16, #tpu.memory_space<vmem>>, vector<256x128xbf16>
    %cst_442 = arith.constant dense<0.000000e+00> : vector<4x128xf32>
    %866 = tpu.matmul %864, %865, %cst_442 {dimension_numbers = #tpu.dot_dimension_numbers<[1], [0], [0], [1], [0, 0, 1, 1], [], []>} : vector<4x256xbf16>, vector<256x128xbf16>, vector<4x128xf32> -> vector<4x128xf32>
    %c0_443 = arith.constant 0 : index
    %c0_444 = arith.constant 0 : index
    %867 = vector.load %arg21[%c0_443, %c0_444] : memref<1x128xf32, #tpu.memory_space<vmem>>, vector<1x128xf32>
    %868 = vector.broadcast %867 : vector<1x128xf32> to vector<4x128xf32>
    %869 = arith.addf %866, %868 : vector<4x128xf32>
    %cst_445 = arith.constant 0.000000e+00 : f32
    %870 = vector.broadcast %cst_445 : f32 to vector<4x128xf32>
    %871 = arith.maximumf %869, %870 : vector<4x128xf32>
    %872 = math.absf %869 : vector<4x128xf32>
    %cst_446 = arith.constant 0.000000e+00 : f32
    %873 = vector.broadcast %cst_446 : f32 to vector<4x128xf32>
    %874 = arith.subf %873, %872 : vector<4x128xf32>
    %875 = math.exp %874 : vector<4x128xf32>
    %cst_447 = arith.constant 1.000000e+00 : f32
    %876 = vector.broadcast %cst_447 : f32 to vector<4x128xf32>
    %877 = arith.addf %876, %875 : vector<4x128xf32>
    %878 = math.log %877 : vector<4x128xf32>
    %879 = arith.addf %871, %878 : vector<4x128xf32>
    %880 = math.tanh %879 : vector<4x128xf32>
    %881 = arith.mulf %869, %880 : vector<4x128xf32>
    %c0_448 = arith.constant 0 : index
    %c0_449 = arith.constant 0 : index
    %882 = vector.load %arg22[%c0_448, %c0_449] : memref<1x128xf32, #tpu.memory_space<vmem>>, vector<1x128xf32>
    %883 = vector.broadcast %882 : vector<1x128xf32> to vector<4x128xf32>
    %884 = arith.mulf %881, %883 : vector<4x128xf32>
    %c0_450 = arith.constant 0 : index
    %c0_451 = arith.constant 0 : index
    %885 = vector.load %arg23[%c0_450, %c0_451] : memref<1x128xf32, #tpu.memory_space<vmem>>, vector<1x128xf32>
    %886 = vector.broadcast %885 : vector<1x128xf32> to vector<4x128xf32>
    %887 = arith.addf %884, %886 : vector<4x128xf32>
    %888 = arith.truncf %887 : vector<4x128xf32> to vector<4x128xbf16>
    %c0_452 = arith.constant 0 : index
    %c0_453 = arith.constant 0 : index
    %889 = vector.load %arg24[%c0_452, %c0_453] : memref<128x128xbf16, #tpu.memory_space<vmem>>, vector<128x128xbf16>
    %cst_454 = arith.constant dense<0.000000e+00> : vector<4x128xf32>
    %890 = tpu.matmul %888, %889, %cst_454 {dimension_numbers = #tpu.dot_dimension_numbers<[1], [0], [0], [1], [0, 0, 1, 1], [], []>} : vector<4x128xbf16>, vector<128x128xbf16>, vector<4x128xf32> -> vector<4x128xf32>
    %c0_455 = arith.constant 0 : index
    %c0_456 = arith.constant 0 : index
    %891 = vector.load %arg25[%c0_455, %c0_456] : memref<1x128xf32, #tpu.memory_space<vmem>>, vector<1x128xf32>
    %892 = vector.broadcast %891 : vector<1x128xf32> to vector<4x128xf32>
    %893 = arith.addf %890, %892 : vector<4x128xf32>
    %c0_457 = arith.constant 0 : index
    %c0_458 = arith.constant 0 : index
    %c0_459 = arith.constant 0 : index
    %894 = vector.load %arg26[%c0_457, %c0_458, %c0_459] : memref<1x4x128xf32, #tpu.memory_space<vmem>>, vector<1x4x128xf32>
    %895 = vector.shape_cast %894 : vector<1x4x128xf32> to vector<4x128xf32>
    %896 = vector.shape_cast %893 : vector<4x128xf32> to vector<1x4x128xf32>
    tpu.vector_store %arg26[%c0_457, %c0_458, %c0_459], %896 {strides = array<i32>} : memref<1x4x128xf32, #tpu.memory_space<vmem>>, vector<1x4x128xf32>,
    return
  }
  func.func @transform_0(%arg0: i32) -> (i32, i32) {
    %c0_i32 = arith.constant 0 : i32
    %c0_i32_0 = arith.constant 0 : i32
    return %arg0, %c0_i32 : i32, i32
  }
  func.func @transform_1(%arg0: i32) -> (i32, i32, i32) {
    %c0_i32 = arith.constant 0 : i32
    %c0_i32_0 = arith.constant 0 : i32
    %c0_i32_1 = arith.constant 0 : i32
    return %arg0, %c0_i32, %c0_i32_0 : i32, i32, i32
  }
  func.func @transform_2(%arg0: i32) -> (i32, i32) {
    %c0_i32 = arith.constant 0 : i32
    %c0_i32_0 = arith.constant 0 : i32
    %c0_i32_1 = arith.constant 0 : i32
    return %c0_i32, %c0_i32_0 : i32, i32
  }
  func.func @transform_3(%arg0: i32) -> (i32, i32, i32) {
    %c0_i32 = arith.constant 0 : i32
    %c0_i32_0 = arith.constant 0 : i32
    %c0_i32_1 = arith.constant 0 : i32
    %c0_i32_2 = arith.constant 0 : i32
    return %c0_i32, %c0_i32_0, %c0_i32_1 : i32, i32, i32
  }
  func.func @transform_4(%arg0: i32) -> (i32, i32, i32) {
    %c0_i32 = arith.constant 0 : i32
    %c0_i32_0 = arith.constant 0 : i32
    %c0_i32_1 = arith.constant 0 : i32
    %c0_i32_2 = arith.constant 0 : i32
    return %c0_i32, %c0_i32_0, %c0_i32_1 : i32, i32, i32
  }
  func.func @transform_5(%arg0: i32) -> (i32, i32, i32) {
    %c0_i32 = arith.constant 0 : i32
    %c0_i32_0 = arith.constant 0 : i32
    %c0_i32_1 = arith.constant 0 : i32
    %c0_i32_2 = arith.constant 0 : i32
    return %c0_i32, %c0_i32_0, %c0_i32_1 : i32, i32, i32
  }
  func.func @transform_6(%arg0: i32) -> (i32, i32, i32) {
    %c0_i32 = arith.constant 0 : i32
    %c0_i32_0 = arith.constant 0 : i32
    %c0_i32_1 = arith.constant 0 : i32
    %c0_i32_2 = arith.constant 0 : i32
    return %c0_i32, %c0_i32_0, %c0_i32_1 : i32, i32, i32
  }
  func.func @transform_7(%arg0: i32) -> (i32, i32, i32) {
    %c0_i32 = arith.constant 0 : i32
    %c0_i32_0 = arith.constant 0 : i32
    %c0_i32_1 = arith.constant 0 : i32
    %c0_i32_2 = arith.constant 0 : i32
    return %c0_i32, %c0_i32_0, %c0_i32_1 : i32, i32, i32
  }
  func.func @transform_8(%arg0: i32) -> (i32, i32, i32) {
    %c0_i32 = arith.constant 0 : i32
    %c0_i32_0 = arith.constant 0 : i32
    %c0_i32_1 = arith.constant 0 : i32
    %c0_i32_2 = arith.constant 0 : i32
    return %c0_i32, %c0_i32_0, %c0_i32_1 : i32, i32, i32
  }
  func.func @transform_9(%arg0: i32) -> (i32, i32, i32) {
    %c0_i32 = arith.constant 0 : i32
    %c0_i32_0 = arith.constant 0 : i32
    %c0_i32_1 = arith.constant 0 : i32
    %c0_i32_2 = arith.constant 0 : i32
    return %c0_i32, %c0_i32_0, %c0_i32_1 : i32, i32, i32
  }
  func.func @transform_10(%arg0: i32) -> (i32, i32, i32) {
    %c0_i32 = arith.constant 0 : i32
    %c0_i32_0 = arith.constant 0 : i32
    %c0_i32_1 = arith.constant 0 : i32
    %c0_i32_2 = arith.constant 0 : i32
    return %c0_i32, %c0_i32_0, %c0_i32_1 : i32, i32, i32
  }
  func.func @transform_11(%arg0: i32) -> (i32, i32, i32) {
    %c0_i32 = arith.constant 0 : i32
    %c0_i32_0 = arith.constant 0 : i32
    %c0_i32_1 = arith.constant 0 : i32
    %c0_i32_2 = arith.constant 0 : i32
    return %c0_i32, %c0_i32_0, %c0_i32_1 : i32, i32, i32
  }
  func.func @transform_12(%arg0: i32) -> (i32, i32, i32) {
    %c0_i32 = arith.constant 0 : i32
    %c0_i32_0 = arith.constant 0 : i32
    %c0_i32_1 = arith.constant 0 : i32
    %c0_i32_2 = arith.constant 0 : i32
    return %c0_i32, %c0_i32_0, %c0_i32_1 : i32, i32, i32
  }
  func.func @transform_13(%arg0: i32) -> (i32, i32) {
    %c0_i32 = arith.constant 0 : i32
    %c0_i32_0 = arith.constant 0 : i32
    %c0_i32_1 = arith.constant 0 : i32
    return %c0_i32, %c0_i32_0 : i32, i32
  }
  func.func @transform_14(%arg0: i32) -> (i32, i32) {
    %c0_i32 = arith.constant 0 : i32
    %c0_i32_0 = arith.constant 0 : i32
    %c0_i32_1 = arith.constant 0 : i32
    return %c0_i32, %c0_i32_0 : i32, i32
  }
  func.func @transform_15(%arg0: i32) -> (i32, i32) {
    %c0_i32 = arith.constant 0 : i32
    %c0_i32_0 = arith.constant 0 : i32
    %c0_i32_1 = arith.constant 0 : i32
    return %c0_i32, %c0_i32_0 : i32, i32
  }
  func.func @transform_16(%arg0: i32) -> (i32, i32) {
    %c0_i32 = arith.constant 0 : i32
    %c0_i32_0 = arith.constant 0 : i32
    %c0_i32_1 = arith.constant 0 : i32
    return %c0_i32, %c0_i32_0 : i32, i32
  }
  func.func @transform_17(%arg0: i32) -> (i32, i32) {
    %c0_i32 = arith.constant 0 : i32
    %c0_i32_0 = arith.constant 0 : i32
    %c0_i32_1 = arith.constant 0 : i32
    return %c0_i32, %c0_i32_0 : i32, i32
  }
  func.func @transform_18(%arg0: i32) -> (i32, i32) {
    %c0_i32 = arith.constant 0 : i32
    %c0_i32_0 = arith.constant 0 : i32
    %c0_i32_1 = arith.constant 0 : i32
    return %c0_i32, %c0_i32_0 : i32, i32
  }
  func.func @transform_19(%arg0: i32) -> (i32, i32) {
    %c0_i32 = arith.constant 0 : i32
    %c0_i32_0 = arith.constant 0 : i32
    %c0_i32_1 = arith.constant 0 : i32
    return %c0_i32, %c0_i32_0 : i32, i32
  }
  func.func @transform_20(%arg0: i32) -> (i32, i32) {
    %c0_i32 = arith.constant 0 : i32
    %c0_i32_0 = arith.constant 0 : i32
    %c0_i32_1 = arith.constant 0 : i32
    return %c0_i32, %c0_i32_0 : i32, i32
  }
  func.func @transform_21(%arg0: i32) -> (i32, i32) {
    %c0_i32 = arith.constant 0 : i32
    %c0_i32_0 = arith.constant 0 : i32
    %c0_i32_1 = arith.constant 0 : i32
    return %c0_i32, %c0_i32_0 : i32, i32
  }
  func.func @transform_22(%arg0: i32) -> (i32, i32) {
    %c0_i32 = arith.constant 0 : i32
    %c0_i32_0 = arith.constant 0 : i32
    %c0_i32_1 = arith.constant 0 : i32
    return %c0_i32, %c0_i32_0 : i32, i32
  }
  func.func @transform_23(%arg0: i32) -> (i32, i32) {
    %c0_i32 = arith.constant 0 : i32
    %c0_i32_0 = arith.constant 0 : i32
    %c0_i32_1 = arith.constant 0 : i32
    return %c0_i32, %c0_i32_0 : i32, i32
  }
  func.func @transform_24(%arg0: i32) -> (i32, i32) {
    %c0_i32 = arith.constant 0 : i32
    %c0_i32_0 = arith.constant 0 : i32
    %c0_i32_1 = arith.constant 0 : i32
    return %c0_i32, %c0_i32_0 : i32, i32
  }
  func.func @transform_25(%arg0: i32) -> (i32, i32, i32) {
    %c0_i32 = arith.constant 0 : i32
    %c0_i32_0 = arith.constant 0 : i32
    %c0_i32_1 = arith.constant 0 : i32
    return %arg0, %c0_i32, %c0_i32_0 : i32, i32, i32
  }
}

</mosaic_0001>

<bundles_post_ra>
// kernel: my_bert_forward.1
= control target key start
LH: loop header
LB: loop body
LE: loop exit
PB: predicated region body
PF: predicated region fallthrough
CT: control target
= control target key end

     0   :  { %s13172_s0 = inlined_call_operand.vmem [shape: f32[128,128], index: 0, kind: input, shape index: {}]   ;;  %s13173_s1 = inlined_call_operand.vmem [shape: f32[8,1,16], index: 1, kind: input, shape index: {}]   ;;  %s13174_s2 = inlined_call_operand.vmem [shape: f32[2,128], index: 2, kind: input, shape index: {}]   ;;  %s13175_s3 = inlined_call_operand.vmem [shape: bf16[2,128,384], index: 3, kind: input, shape index: {}]   ;;  %s13176_s4 = inlined_call_operand.vmem [shape: f32[2,1,384], index: 4, kind: input, shape index: {}]   ;;  %s13177_s5 = inlined_call_operand.vmem [shape: bf16[2,128,128], index: 5, kind: input, shape index: {}]   ;;  %s13178_s6 = inlined_call_operand.vmem [shape: f32[2,1,128], index: 6, kind: input, shape index: {}]   ;;  %s13179_s7 = inlined_call_operand.vmem [shape: f32[2,2,128], index: 7, kind: input, shape index: {}]   ;;  %s13180_s8 = inlined_call_operand.vmem [shape: bf16[2,128,256], index: 8, kind: input, shape index: {}]   ;;  %s13181_s9 = inlined_call_operand.vmem [shape: f32[2,1,256], index: 9, kind: input, shape index: {}]   ;;  %s13182_s10 = inlined_call_operand.vmem [shape: bf16[2,256,128], index: 10, kind: input, shape index: {}]   ;;  %s13183_s11 = inlined_call_operand.vmem [shape: f32[2,1,128], index: 11, kind: input, shape index: {}]   ;;  %s13184_s12 = inlined_call_operand.vmem [shape: f32[2,2,128], index: 12, kind: input, shape index: {}]   ;;  %s13185_s13 = inlined_call_operand.vmem [shape: bf16[128,128], index: 13, kind: input, shape index: {}]   ;;  %s13186_s14 = inlined_call_operand.vmem [shape: f32[1,128], index: 14, kind: input, shape index: {}]   ;;  %s13187_s15 = inlined_call_operand.vmem [shape: bf16[128,256], index: 15, kind: input, shape index: {}]   ;;  %s13188_s16 = inlined_call_operand.vmem [shape: f32[1,256], index: 16, kind: input, shape index: {}]   ;;  %s13189_s17 = inlined_call_operand.vmem [shape: f32[1,256], index: 17, kind: input, shape index: {}]   ;;  %s13190_s18 = inlined_call_operand.vmem [shape: f32[1,256], index: 18, kind: input, shape index: {}]   ;;  %s13191_s19 = inlined_call_operand.vmem [shape: bf16[256,128], index: 19, kind: input, shape index: {}]   ;;  %s13192_s20 = inlined_call_operand.vmem [shape: f32[1,128], index: 20, kind: input, shape index: {}]   ;;  %s13193_s21 = inlined_call_operand.vmem [shape: f32[1,128], index: 21, kind: input, shape index: {}]   ;;  %s13194_s22 = inlined_call_operand.vmem [shape: f32[1,128], index: 22, kind: input, shape index: {}]   ;;  %s13195_s23 = inlined_call_operand.vmem [shape: bf16[128,128], index: 23, kind: input, shape index: {}]   ;;  %s13196_s24 = inlined_call_operand.vmem [shape: f32[1,128], index: 24, kind: input, shape index: {}]   ;;  %s13197_s25 = inlined_call_operand.hbm [shape: f32[2,4,128], index: 25, kind: output, shape index: {}]  }
   0x1   :  { %13241 = sst [smem:[#allocation21_spill]] %s13172_s0 }
   0x2   :  { %13242 = sst [smem:[#allocation22_spill]] %s13173_s1 }
   0x3   :  { %13243 = sst [smem:[#allocation23_spill]] %s13174_s2 }
   0x4   :  { %13244 = sst [smem:[#allocation24_spill]] %s13175_s3 }
   0x5   :  { %13245 = sst [smem:[#allocation25_spill]] %s13176_s4 }
   0x6   :  { %13246 = sst [smem:[#allocation26_spill]] %s13177_s5 }
   0x7   :  { %13247 = sst [smem:[#allocation27_spill]] %s13178_s6 }
   0x8   :  { %13248 = sst [smem:[#allocation28_spill]] %s13179_s7 }
   0x9   :  { %13249 = sst [smem:[#allocation29_spill]] %s13180_s8 }
   0xa   :  { %13250 = sst [smem:[#allocation30_spill]] %s13181_s9 }
   0xb   :  { %13251 = sst [smem:[#allocation31_spill]] %s13192_s20 }
   0xc   :  { %13252 = sst [smem:[#allocation32_spill]] %s13193_s21 }
   0xd   :  { %13253 = sst [smem:[#allocation33_spill]] %s13194_s22 }
   0xe   :  { %13254 = sst [smem:[#allocation34_spill]] %s13195_s23 }
   0xf   :  { %13255 = sst [smem:[#allocation35_spill]] %s13196_s24 }
  0x10   :  { %13256 = sst [smem:[#allocation36_spill]] %s13197_s25 }
  0x11   :  { %30 = vsyncpa [#allocation4], 0 }
  0x12   :  { %32 = vsyncpa [#allocation4 + $0x1], 0  ;;  %s10431_s29 = smov 0   ;;  %s10433_s2 = smov 0  }
  0x13   :  { %s10435_s6 = smov 0   ;;  %s10437_s30 = smov 0  }
  0x14 LB: > { %13257 = sst [smem:[#allocation6_spill]] %s10280_s29  ;;  %s10452_s7 = sadd.s32 4294967295, %s10292_s30   ;;  %s10292_s30 = sphi %s10437_s30, %s13313_s30   ;;  %s10288_s6 = sphi %s10435_s6, %s13316_s6   ;;  %s10284_s2 = sphi %s10433_s2, %s13315_s2   ;;  %s10280_s29 = sphi %s10431_s29, %s13314_s29  }
  0x15   : > { %13258 = sst [smem:[#allocation7_spill]] %s10284_s2  ;;  %s8247_s3 = sadd.s32 4294967294, %s10292_s30  }
  0x16   : > { %13259 = sst [smem:[#allocation8_spill]] %s10288_s6  ;;  %s10456_s26 = sadd.s32 1, %s10292_s30  }
  0x17   : > { %13260 = sst [smem:[#allocation9_spill]] %s10292_s30  ;;  %s580_s1 = sadd.s32 1, %s10288_s6 }
  0x18   : > { %13261 = sst [smem:[#allocation10_spill]] %s10452_s7  ;;  %s577_s8 = ssub.s32 %s10292_s30, %s10456_s26 }
  0x19   : > { %13262 = sst [smem:[#allocation11_spill]] %s10456_s26  ;;  %p590_p0 = scmp.ne.s32.totalorder %s10288_s6, %s10284_s2 }
  0x1a   : > { %p578_p1 = scmp.eq.s32.totalorder %s577_s8, 0  ;;  %p591_p2 = scmp.eq.s32.totalorder %s10452_s7, 1 }
  0x1b   : > { %p596_p3 = scmp.ne.s32.totalorder %s10284_s2, %s10280_s29  ;;  %p597_p4 = scmp.eq.s32.totalorder %s8247_s3, 1 }
  0x1c   : > { %s10467_s27 = scalar_select %p578_p1, %s10288_s6, %s580_s1  }
  0x1d   : > { %p10469_p5 = por %p591_p2, %p590_p0  ;;  %p10473_p6 = por %p597_p4, %p596_p3 }
  0x1e   : > { %13263 = sst [smem:[#allocation12_spill]] %s10467_s27  ;;  %p8250_p7 = scmp.ge.s32.totalorder %s10292_s30, 1 }
  0x1f   : > { %s13264_s4 = scalar_select %p10469_p5, 1, 0 }
  0x20   : > { %s13266_s28 = scalar_select %p10473_p6, 1, 0 }
  0x21   : > { %13265 = sst [smem:[#allocation13_spill]] %s13264_s4  ;;  %p701_p8 = scmp.lt.s32.totalorder %s10292_s30, 3 }
  0x22   : > { %13267 = sst [smem:[#allocation14_spill]] %s13266_s28 }
  0x23   : > { %p702_p9 = pnand %p8250_p7, %p701_p8 }
  0x25   : > { %705 = sbr.rel (%p702_p9) target bundleno = 6728 (0x1a48), region = 120 }
  0x2c   : > { %s8252_s9 = sshll.u32 %s10452_s7, 3  ;;  %s13268_s1 = sld [smem:[#allocation21_spill]]  ;;  %v13211_v54 = vmov 0   ;;  %v890_v62 = vlaneseq  ;;  %vm10296_vm0 = vmmov 0   ;;  %vm1266_vm1 = vcmask 261120  }
  0x2d   : > { %p774_p10 = scmp.lt.s32.totalorder %s8252_s9, 15  ;;  %s13269_s0 = sld [smem:[#allocation24_spill]]  ;;  %1127 = vmatprep.mubr.bf16.mxu0 %v13211_v54  ;;  %vm1314_vm2 = vcmask 130048   ;;  %vm1774_vm3 = vcmask 523264   ;;  %vm1777_vm4 = vcmask 785408   ;;  %vm7529_vm5 = vcmask 1040384  }
  0x2e   : > { %s13272_s26 = sld [smem:[#allocation23_spill]]  ;;  %s13224_s28 = smov 96   ;;  %vm7531_vm6 = vcmask 1041408   ;;  %vm7533_vm7 = vcmask 1042432  }
  0x2f   : > { %s13318_s9 = smov (!%p774_p10, %s8252_s9), 15  ;;  %s13220_s6 = smov 64  }
  0x30   : > { %s8253_s5 = sshll.u32 %s13318_s9, 3  ;;  %s13222_s27 = smov 32  }
  0x31   : > { %s13278_s9 = sld [smem:[#allocation26_spill]]  ;;  %s13279_s30 = smov 32  }
  0x32   : > { %s10483_s8 = scalar_lea.vmem %s13268_s1, %s8253_s5  ;;  %s13274_s1 = sld [smem:[#allocation25_spill]] }
  0x33   : > { %v792_v0 = vld [vmem:[%s10483_s8] sm:$0xff]  ;;  %v794_v1 = vld [vmem:[%s10483_s8 + $0x10] sm:$0xff]  ;;  %v793_v2 = vld [vmem:[%s10483_s8 + $0x8] sm:$0xff]  ;;  %s13281_s5 = smov 96   ;;  %s13285_s21 = sld [smem:[#allocation28_spill]] }
  0x34   : > { %801 = vadd.xlane.f32.xlu0 %v792_v0  ;;  %805 = vadd.xlane.f32.xlu1 %v794_v1  ;;  %v795_v3 = vld [vmem:[%s10483_s8 + $0x18] sm:$0xff]  ;;  %v796_v4 = vld [vmem:[%s10483_s8 + $0x20] sm:$0xff]  ;;  %v797_v5 = vld [vmem:[%s10483_s8 + $0x28] sm:$0xff]  ;;  %s13288_s24 = sld [smem:[#allocation30_spill]]  ;;  %s13299_s29 = sld [smem:[#allocation34_spill]] }
  0x35   : > { %v9598_v6 = vld [vmem:[%s13269_s0 + $0x4] ss:$12 sps:$4 sm:$0xff]   ;;  %v9600_v7 = vld [vmem:[%s13269_s0] ss:$12 sps:$4 sm:$0xff]   ;;  %v9601_v8 = vld [vmem:[%s13269_s0 + $0x1c] ss:$12 sps:$4 sm:$0xff]  }
  0x36   : > { %1095 = vmatprep.subr.bf16.mxu0 %v9598_v6  ;;  %v10509_v21 = vld [vmem:[%s10483_s8 + $0x30] sm:$0xff]  ;;  %v10521_v30 = vld [vmem:[%s10483_s8 + $0x38] sm:$0xff]  ;;  %v9610_v40 = vld [vmem:[%s13269_s0 + $0x20] ss:$12 sps:$4 sm:$0xff]   ;;  %s8254_s8 = sshll.u32 %s10452_s7, 2  ;;  %s13303_s23 = sld [smem:[#allocation10_spill]] }
  0x37   : > { %1096 = vmatpush1.bf16.msra.mxu0 %v9600_v7  ;;  %v9603_v35 = vld [vmem:[%s13269_s0 + $0x18] ss:$12 sps:$4 sm:$0xff]   ;;  %v9604_v36 = vld [vmem:[%s13269_s0 + $0x34] ss:$12 sps:$4 sm:$0xff]   ;;  %v9607_v38 = vld [vmem:[%s13269_s0 + $0x30] ss:$12 sps:$4 sm:$0xff]  }
  0x38   : > { %803 = vadd.xlane.f32.xlu0 %v793_v2  ;;  %807 = vadd.xlane.f32.xlu1 %v795_v3  ;;  %v9606_v37 = vld [vmem:[%s13269_s0 + $0x8] ss:$12 sps:$4 sm:$0xff]   ;;  %v9608_v39 = vld [vmem:[%s13269_s0 + $0x4c] ss:$12 sps:$4 sm:$0xff]   ;;  %v9612_v42 = vld [vmem:[%s13269_s0 + $0x64] ss:$12 sps:$4 sm:$0xff]  }
  0x39   : > { %1097 = vmatprep.subr.bf16.mxu0 %v9601_v8  ;;  %8913 = vmatprep.subr.bf16.mxu1 %v9606_v37  ;;  %v9611_v41 = vld [vmem:[%s13269_s0 + $0x48] ss:$12 sps:$4 sm:$0xff]   ;;  %v9614_v43 = vld [vmem:[%s13269_s0 + $0x38] ss:$12 sps:$4 sm:$0xff]   ;;  %v9615_v44 = vld [vmem:[%s13269_s0 + $0x60] ss:$12 sps:$4 sm:$0xff]  }
  0x3a   : > { %8914 = vmatpush3.bf16.msra.mxu1 %v9606_v37  ;;  %v9616_v45 = vld [vmem:[%s13269_s0 + $0x7c] ss:$12 sps:$4 sm:$0xff]   ;;  %v9619_v47 = vld [vmem:[%s13269_s0 + $0x78] ss:$12 sps:$4 sm:$0xff]   ;;  %v9620_v48 = vld [vmem:[%s13269_s0 + $0x94] ss:$12 sps:$4 sm:$0xff]   ;;  %s13300_s7 = smov %s13299_s29 }
  0x3b   : > { %1098 = vmatpush1.bf16.msra.mxu0 %v9603_v35  ;;  %8915 = vmatprep.subr.bf16.mxu1 %v9610_v40  ;;  %v9618_v46 = vld [vmem:[%s13269_s0 + $0x50] ss:$12 sps:$4 sm:$0xff]   ;;  %v9622_v49 = vld [vmem:[%s13269_s0 + $0x68] ss:$12 sps:$4 sm:$0xff]   ;;  %v9624_v51 = vld [vmem:[%s13269_s0 + $0xac] ss:$12 sps:$4 sm:$0xff]  }
  0x3c   : > { %809 = vadd.xlane.f32.xlu0 %v796_v4  ;;  %811 = vadd.xlane.f32.xlu1 %v797_v5  ;;  %v9623_v50 = vld [vmem:[%s13269_s0 + $0x90] ss:$12 sps:$4 sm:$0xff]   ;;  %v9626_v52 = vld [vmem:[%s13269_s0 + $0x80] ss:$12 sps:$4 sm:$0xff]   ;;  %v9627_v53 = vld [vmem:[%s13269_s0 + $0xa8] ss:$12 sps:$4 sm:$0xff]  }
  0x3d   : > { %1099 = vmatprep.subr.bf16.mxu0 %v9604_v36  ;;  %v9628_v55 = vld [vmem:[%s13269_s0 + $0x98] ss:$12 sps:$4 sm:$0xff]   ;;  %v9629_v56 = vld [vmem:[%s13269_s0 + $0xb0] ss:$12 sps:$4 sm:$0xff]   ;;  %p780_p11 = scmp.lt.s32.totalorder %s8254_s8, 7  ;;  %s13304_s4 = sld [smem:[#allocation32_spill]] }
  0x3e   : > { %8916 = vmatpush3.bf16.msra.mxu1 %v9610_v40 }
  0x3f   : > { %1100 = vmatpush1.bf16.msra.mxu0 %v9607_v38  ;;  %8917 = vmatprep.subr.bf16.mxu1 %v9614_v43  ;;  %s13320_s8 = smov (!%p780_p11, %s8254_s8), 7 }
  0x40   : > { %1101 = vmatprep.subr.bf16.mxu0 %v9608_v39 }
  0x42   : > { %8918 = vmatpush3.bf16.msra.mxu1 %v9614_v43 }
  0x43   : > { %1102 = vmatpush1.bf16.msra.mxu0 %v9611_v41  ;;  %8919 = vmatprep.subr.bf16.mxu1 %v9618_v46 }
  0x44   : > { %1103 = vmatprep.subr.bf16.mxu0 %v9612_v42 }
  0x46   : > { %8920 = vmatpush3.bf16.msra.mxu1 %v9618_v46 }
  0x47   : > { %1104 = vmatpush1.bf16.msra.mxu0 %v9615_v44  ;;  %8921 = vmatprep.subr.bf16.mxu1 %v9622_v49 }
  0x48   : > { %1105 = vmatprep.subr.bf16.mxu0 %v9616_v45 }
  0x4a   : > { %8922 = vmatpush3.bf16.msra.mxu1 %v9622_v49 }
  0x4b   : > { %1106 = vmatpush1.bf16.msra.mxu0 %v9619_v47  ;;  %8923 = vmatprep.subr.bf16.mxu1 %v9626_v52 }
  0x4c   : > { %1107 = vmatprep.subr.bf16.mxu0 %v9620_v48 }
  0x4e   : > { %8924 = vmatpush3.bf16.msra.mxu1 %v9626_v52 }
  0x4f   : > { %1108 = vmatpush1.bf16.msra.mxu0 %v9623_v50  ;;  %8925 = vmatprep.subr.bf16.mxu1 %v9628_v55 }
  0x50   : > { %1109 = vmatprep.subr.bf16.mxu0 %v9624_v51 }
  0x52   : > { %8926 = vmatpush3.bf16.msra.mxu1 %v9628_v55 }
  0x53   : > { %1110 = vmatpush1.bf16.msra.mxu0 %v9627_v53  ;;  %8927 = vmatprep.subr.bf16.mxu1 %v9629_v56 }
  0x56   : > { %8928 = vmatpush3.bf16.msra.mxu1 %v9629_v56 }
  0xc1   : > { %v802_v9 = vpop.xlane.xlu0 %801  ;;  %v806_v10 = vpop.xlane.xlu1 %805 }
  0xc2   : > { %v818_v11 = vmul.f32 0.0078125, %v802_v9  ;;  %v820_v13 = vmul.f32 0.0078125, %v806_v10 }
  0xc4   : > { %v10500_v12 = vsub.f32 %v792_v0, %v818_v11  ;;  %v10506_v20 = vsub.f32 %v794_v1, %v820_v13 }
  0xc5   : > { %v804_v14 = vpop.xlane.xlu0 %803  ;;  %v808_v15 = vpop.xlane.xlu1 %807 }
  0xc6   : > { %v819_v16 = vmul.f32 0.0078125, %v804_v14  ;;  %v834_v17 = vmul.f32 %v10500_v12, %v10500_v12  ;;  %v821_v19 = vmul.f32 0.0078125, %v808_v15  ;;  %v836_v26 = vmul.f32 %v10506_v20, %v10506_v20 }
  0xc8   : > { %842 = vadd.xlane.f32.xlu0 %v834_v17  ;;  %v10504_v18 = vsub.f32 %v793_v2, %v819_v16  ;;  %v10516_v28 = vsub.f32 %v795_v3, %v821_v19  ;;  %v800_v19 = vld [vmem:[%s13272_s26] sm:$0x3]  ;;  %s13275_s26 = sld [smem:[#allocation22_spill]] }
  0xc9   : > { %v810_v22 = vpop.xlane.xlu0 %809  ;;  %v812_v23 = vpop.xlane.xlu1 %811 }
  0xca   : > { %v835_v24 = vmul.f32 %v10504_v18, %v10504_v18  ;;  %v822_v25 = vmul.f32 0.0078125, %v810_v22  ;;  %v823_v27 = vmul.f32 0.0078125, %v812_v23  ;;  %v837_v31 = vmul.f32 %v10516_v28, %v10516_v28 }
  0xcc   : > { %813 = vadd.xlane.f32.xlu0 %v10509_v21  ;;  %844 = vadd.xlane.f32.xlu1 %v835_v24  ;;  %v10518_v29 = vsub.f32 %v796_v4, %v822_v25  ;;  %v10528_v33 = vsub.f32 %v797_v5, %v823_v27  ;;  %v10599_v5 = vshrl.u32 %v890_v62, 7 }
  0xce   : > { %v838_v32 = vmul.f32 %v10518_v29, %v10518_v29  ;;  %v839_v34 = vmul.f32 %v10528_v33, %v10528_v33  ;;  %13270 = vst [vmem:[#allocation15_spill] sm:$0xff] %v10599_v5  ;;  %v10607_v14 = vsub.s32 0, %v10599_v5  ;;  %v10617_v27 = vsub.s32 1, %v10599_v5  ;;  %s10837_s3 = scalar_lea.vmem %s13275_s26, %s13320_s8  ;;  %s13280_s8 = smov 64  }
  0xcf   : > { %s13282_s26 = sld [smem:[#allocation27_spill]] }
  0xd0   : > { %846 = vadd.xlane.f32.xlu0 %v836_v26  ;;  %815 = vadd.xlane.f32.xlu1 %v10521_v30  ;;  %13271 = vst [vmem:[#allocation16_spill] sm:$0xff] %v10607_v14  ;;  %v893_v26 = vrot.slane %v800_v19, %v10607_v14  ;;  %13273 = vst [vmem:[#allocation17_spill] sm:$0xff] %v10617_v27  ;;  %v905_v36 = vrot.slane %v800_v19, %v10617_v27  ;;  %v13210_v19 = vsub.s32 2, %v10599_v5 }
  0xd4   : > { %848 = vadd.xlane.f32.xlu1 %v837_v31  ;;  %850 = vadd.xlane.f32.xlu0 %v838_v32 }
  0xd8   : > { %852 = vadd.xlane.f32.xlu1 %v839_v34 }
 0x155   : > { %v843_v57 = vpop.xlane.xlu0 %842 }
 0x156   : > { %v858_v58 = vmul.f32 0.0078125, %v843_v57 }
 0x158   : > { %v866_v59 = vadd.f32 1e-05, %v858_v58 }
 0x159   : > { %v845_v60 = vpop.xlane.xlu1 %844  ;;  %v814_v61 = vpop.xlane.xlu0 %813 }
 0x15a   : > { %9814 = vrsqrt.f32 %v866_v59  ;;  %v859_v63 = vmul.f32 0.0078125, %v845_v60  ;;  %v824_v0 = vmul.f32 0.0078125, %v814_v61 }
 0x15c   : > { %v867_v1 = vadd.f32 1e-05, %v859_v63  ;;  %v10597_v2 = vsub.f32 %v10509_v21, %v824_v0 }
 0x15d   : > { %v816_v3 = vpop.xlane.xlu1 %815  ;;  %v847_v4 = vpop.xlane.xlu0 %846 }
 0x15e   : > { %9816 = vrsqrt.f32 %v867_v1  ;;  %v825_v6 = vmul.f32 0.0078125, %v816_v3  ;;  %v860_v7 = vmul.f32 0.0078125, %v847_v4  ;;  %v840_v8 = vmul.f32 %v10597_v2, %v10597_v2 }
 0x160   : > { %v868_v9 = vadd.f32 1e-05, %v860_v7  ;;  %854 = vadd.xlane.f32.xlu0 %v840_v8  ;;  %v10604_v10 = vsub.f32 %v10521_v30, %v825_v6 }
 0x161   : > { %v849_v11 = vpop.xlane.xlu1 %848  ;;  %v851_v13 = vpop.xlane.xlu0 %850 }
 0x162   : > { %9818 = vrsqrt.f32 %v868_v9  ;;  %v861_v15 = vmul.f32 0.0078125, %v849_v11  ;;  %v862_v16 = vmul.f32 0.0078125, %v851_v13  ;;  %v841_v17 = vmul.f32 %v10604_v10, %v10604_v10 }
 0x164   : > { %v9815_v21 = vpop.eup %9814  ;;  %v869_v22 = vadd.f32 1e-05, %v861_v15  ;;  %v870_v23 = vadd.f32 1e-05, %v862_v16  ;;  %856 = vadd.xlane.f32.xlu1 %v841_v17 }
 0x165   : > { %v853_v24 = vpop.xlane.xlu1 %852  ;;  %v882_v25 = vmul.f32 %v9815_v21, %v10500_v12 }
 0x166   : > { %9820 = vrsqrt.f32 %v869_v22  ;;  %v863_v30 = vmul.f32 0.0078125, %v853_v24 }
 0x167   : > { %9822 = vrsqrt.f32 %v870_v23  ;;  %v894_v35 = vmul.f32 %v893_v26, %v882_v25 }
 0x168   : > { %v9817_v31 = vpop.eup %9816  ;;  %v871_v32 = vadd.f32 1e-05, %v863_v30 }
 0x169   : > { %v883_v34 = vmul.f32 %v9817_v31, %v10504_v18  ;;  %v10621_v39 = vadd.f32 %v905_v36, %v894_v35 }
 0x16a   : > { %9824 = vrsqrt.f32 %v871_v32 }
 0x16b   : > { %v895_v37 = vmul.f32 %v893_v26, %v883_v34 }
 0x16c   : > { %v9819_v38 = vpop.eup %9818 }
 0x16d   : > { %v10623_v12 = vadd.f32 %v905_v36, %v895_v37  ;;  %v884_v40 = vmul.f32 %v9819_v38, %v10506_v20 }
 0x16f   : > { %v914_v41 = vpack.c.bf16 %v10623_v12, %v10621_v39  ;;  %v896_v44 = vmul.f32 %v893_v26, %v884_v40 }
 0x170   : > { %v9821_v42 = vpop.eup %9820 }
 0x171   : > { %v9823_v43 = vpop.eup %9822  ;;  %1128 = vmatmul.mubr.bf16.vlgmr.msra.gmra.mrb[0].mxu0 %v914_v41  ;;  %8929 = vmatprep.mubr.bf16.mxu1 %v914_v41  ;;  %v885_v18 = vmul.f32 %v9821_v42, %v10516_v28  ;;  %v10631_v48 = vadd.f32 %v905_v36, %v896_v44 }
 0x172   : > { %1137 = vmatprep.mubr.bf16.mxu0 %v13211_v54  ;;  %v886_v45 = vmul.f32 %v9823_v43, %v10518_v29 }
 0x173   : > { %v897_v46 = vmul.f32 %v893_v26, %v885_v18 }
 0x174   : > { %v9825_v47 = vpop.eup %9824  ;;  %v898_v50 = vmul.f32 %v893_v26, %v886_v45 }
 0x175   : > { %v10633_v49 = vadd.f32 %v905_v36, %v897_v46  ;;  %v887_v20 = vmul.f32 %v9825_v47, %v10528_v33  ;;  %v13213_v33 = vmov 0.0  }
 0x176   : > { %v10638_v28 = vadd.f32 %v905_v36, %v898_v50  ;;  %8937 = vmatprep.subr.bf16.mxu1 %v13213_v33  ;;  %8949 = vmatprep.subr.bf16.mxu0 %v13213_v33 }
 0x177   : > { %v915_v51 = vpack.c.bf16 %v10633_v49, %v10631_v48  ;;  %v899_v52 = vmul.f32 %v893_v26, %v887_v20 }
 0x179   : > { %1138 = vmatmul.mubr.bf16.gmra.mrb[4].mxu0 %v915_v51  ;;  %8930 = vmatmul.mubr.bf16.vlgmr.msra.gmra.mrb[0].mxu1 %v915_v51  ;;  %v10640_v53 = vadd.f32 %v905_v36, %v899_v52 }
 0x17a   : > { %1147 = vmatprep.mubr.bf16.mxu0 %v13211_v54 }
 0x17b   : > { %v916_v29 = vpack.c.bf16 %v10640_v53, %v10638_v28 }
 0x17d   : > { %8933 = vmatprep.mubr.bf16.mxu1 %v916_v29 }
 0x181   : > { %1148 = vmatmul.mubr.bf16.gmra.mrb[8].mxu0 %v916_v29 }
 0x182   : > { %1157 = vmatprep.mubr.bf16.mxu0 %v13211_v54 }
 0x1ed   : > { %v855_v55 = vpop.xlane.xlu0 %854 }
 0x1ee   : > { %v864_v56 = vmul.f32 0.0078125, %v855_v55 }
 0x1f0   : > { %v872_v57 = vadd.f32 1e-05, %v864_v56 }
 0x1f1   : > { %v857_v58 = vpop.xlane.xlu1 %856 }
 0x1f2   : > { %9826 = vrsqrt.f32 %v872_v57  ;;  %v865_v59 = vmul.f32 0.0078125, %v857_v58 }
 0x1f4   : > { %v873_v60 = vadd.f32 1e-05, %v865_v59 }
 0x1f6   : > { %9828 = vrsqrt.f32 %v873_v60 }
 0x1fc   : > { %v9827_v61 = vpop.eup %9826 }
 0x1fd   : > { %v888_v62 = vmul.f32 %v9827_v61, %v10597_v2  ;;  %v950_v2 = vld [vmem:[%s13274_s1] sm:$0x7] }
 0x1fe   : > { %v10664_v8 = vrot.slane %v950_v2, %v10607_v14  ;;  %v10677_v25 = vrot.slane %v950_v2, %v13210_v19 }
 0x1ff   : > { %v900_v1 = vmul.f32 %v893_v26, %v888_v62 }
 0x200   : > { %v9829_v63 = vpop.eup %9828 }
 0x201   : > { %v889_v0 = vmul.f32 %v9829_v63, %v10604_v10  ;;  %v10650_v4 = vadd.f32 %v905_v36, %v900_v1  ;;  %v10667_v10 = vrot.slane %v950_v2, %v10617_v27 }
 0x203   : > { %v901_v3 = vmul.f32 %v893_v26, %v889_v0 }
 0x205   : > { %v10652_v6 = vadd.f32 %v905_v36, %v901_v3 }
 0x207   : > { %v917_v7 = vpack.c.bf16 %v10652_v6, %v10650_v4 }
 0x209   : > { %1158 = vmatmul.mubr.bf16.gmra.mrb[12].mxu0 %v917_v7  ;;  %8934 = vmatmul.mubr.bf16.gmra.mrb[4].mxu1 %v917_v7 }
 0x20a   : > { %8939 = vmatprep.mubr.msk.bf16.mxu1 %vm10296_vm0, %v13213_v33  ;;  %8951 = vmatprep.mubr.msk.bf16.mxu0 %vm10296_vm0, %v13213_v33 }
 0x244   : > { %v1129_v9 = vpop.f32.mrb[0].mxu0 }
 0x245   : > { %v1131_v11 = vpop.f32.mrb[1].mxu0  ;;  %v1130_v15 = vadd.f32 %v1129_v9, %v10664_v8 }
 0x246   : > { %v1133_v13 = vpop.f32.mrb[2].mxu0  ;;  %v1132_v21 = vadd.f32 %v1131_v11, %v10667_v10 }
 0x247   : > { %v1134_v16 = vadd.f32 %v1133_v13, %v10664_v8  ;;  %v1135_v17 = vpop.f32.mrb[3].mxu0 }
 0x248   : > { %v1136_v22 = vadd.f32 %v1135_v17, %v10667_v10 }
 0x249   : > { %v1233_v23 = vpack.c.bf16 %v1134_v16, %v1130_v15 }
 0x24a   : > { %v1234_v24 = vpack.c.bf16 %v1136_v22, %v1132_v21 }
 0x24b   : > { %1383 = vrot.lane.b32.xlu1 %v1233_v23, %s13224_s28 }
 0x24c   : > { %1386 = vrot.lane.b32.xlu0 %v1234_v24, %s13224_s28  ;;  %v1139_v26 = vpop.f32.mrb[4].mxu0  ;;  %v8931_v30 = vpop.f32.mrb[0].mxu1  ;;  %v1271_v31 = vsel %vm1266_vm1, %v1234_v24, 0 }
 0x24d   : > { %v1141_v32 = vpop.f32.mrb[5].mxu0  ;;  %v1202_v34 = vpop.f32.mrb[1].mxu1  ;;  %8938 = vmatpush3.bf16.xpose.msra.mxu1 %v1271_v31  ;;  %v1140_v37 = vadd.f32 %v1139_v26, %v10664_v8  ;;  %v1211_v38 = vadd.f32 %v8931_v30, %v10677_v25 }
 0x24e   : > { %v1143_v35 = vpop.f32.mrb[6].mxu0  ;;  %v8932_v36 = vpop.f32.mrb[2].mxu1  ;;  %8943 = vmatprep.subr.bf16.mxu1 %v13213_v33  ;;  %v1142_v18 = vadd.f32 %v1141_v32, %v10667_v10  ;;  %v1203_v44 = vadd.f32 %v1202_v34, %v10677_v25 }
 0x24f   : > { %v1144_v40 = vadd.f32 %v1143_v35, %v10664_v8  ;;  %v1214_v41 = vadd.f32 %v8932_v36, %v10677_v25  ;;  %1508 = vrot.lane.b32.xlu1 %v1234_v24, %s13220_s6  ;;  %v1145_v42 = vpop.f32.mrb[7].mxu0  ;;  %v1205_v43 = vpop.f32.mrb[3].mxu1 }
 0x250   : > { %v1146_v45 = vadd.f32 %v1145_v42, %v10667_v10  ;;  %v1206_v46 = vadd.f32 %v1205_v43, %v10677_v25  ;;  %1629 = vrot.lane.b32.xlu0 %v1234_v24, %s13222_s27 }
 0x251   : > { %v10692_v47 = vpack.c.bf16 %v1144_v40, %v1140_v37  ;;  %v10694_v20 = vpack.c.bf16 %v1214_v41, %v1211_v38 }
 0x252   : > { %v1237_v50 = vpack.c.bf16 %v1146_v45, %v1142_v18  ;;  %v10696_v51 = vpack.c.bf16 %v1206_v46, %v1203_v44 }
 0x253   : > { %1506 = vrot.lane.b32.xlu1 %v1233_v23, %s13220_s6 }
 0x254   : > { %1908 = vrot.lane.b32.xlu0 %v1237_v50, %s13224_s28  ;;  %v1149_v52 = vpop.f32.mrb[8].mxu0  ;;  %8940 = vmatmul.mubr.msk.bf16.vlgmr.msra.gmra.mrb[8].mxu1 %vm1266_vm1, %v1233_v23  ;;  %v1794_v15 = vsel %vm1266_vm1, %v1237_v50, 0 }
 0x255   : > { %v1151_v29 = vpop.f32.mrb[9].mxu0  ;;  %8944 = vmatpush3.bf16.msra.mxu1 %v10696_v51  ;;  %8945 = vmatprep.mubr.msk.bf16.mxu1 %vm10296_vm0, %v13213_v33  ;;  %v1150_v56 = vadd.f32 %v1149_v52, %v10664_v8 }
 0x256   : > { %v1153_v55 = vpop.f32.mrb[10].mxu0  ;;  %8955 = vmatprep.subr.bf16.mxu1 %v13213_v33  ;;  %v1152_v59 = vadd.f32 %v1151_v29, %v10667_v10 }
 0x257   : > { %v1154_v57 = vadd.f32 %v1153_v55, %v10664_v8  ;;  %1627 = vrot.lane.b32.xlu1 %v1233_v23, %s13222_s27  ;;  %v1155_v58 = vpop.f32.mrb[11].mxu0 }
 0x258   : > { %v1156_v60 = vadd.f32 %v1155_v58, %v10667_v10  ;;  %2030 = vrot.lane.b32.xlu0 %v1237_v50, %s13220_s6 }
 0x259   : > { %v10711_v61 = vpack.c.bf16 %v1154_v57, %v1150_v56 }
 0x25a   : > { %v10713_v62 = vpack.c.bf16 %v1156_v60, %v1152_v59 }
 0x25b   : > { %1905 = vrot.lane.b32.xlu1 %v10692_v47, %s13224_s28 }
 0x25c   : > { %2151 = vrot.lane.b32.xlu0 %v1237_v50, %s13222_s27  ;;  %v2314_v29 = vsel %vm1266_vm1, %v10713_v62, 0 }
 0x25f   : > { %2028 = vrot.lane.b32.xlu1 %v10692_v47, %s13220_s6 }
 0x260   : > { %2428 = vrot.lane.b32.xlu0 %v10713_v62, %s13224_s28 }
 0x263   : > { %2149 = vrot.lane.b32.xlu1 %v10692_v47, %s13222_s27 }
 0x264   : > { %2550 = vrot.lane.b32.xlu0 %v10713_v62, %s13220_s6 }
 0x267   : > { %2425 = vrot.lane.b32.xlu1 %v10711_v61, %s13224_s28 }
 0x268   : > { %2671 = vrot.lane.b32.xlu0 %v10713_v62, %s13222_s27 }
 0x26b   : > { %2548 = vrot.lane.b32.xlu1 %v10711_v61, %s13220_s6 }
 0x26f   : > { %2669 = vrot.lane.b32.xlu1 %v10711_v61, %s13222_s27 }
 0x2bd   : > { %v1384_v63 = vpop.permute.xlu1 %1383 }
 0x2be   : > { %v1387_v0 = vpop.permute.xlu0 %1386 }
 0x2bf   : > { %v1392_v1 = vsel %vm1266_vm1, %v1387_v0, 0  ;;  %v8282_v0 = vld [vmem:[%s10837_s3] ss:$0 sm:$0xff] }
 0x2c0   : > { %8950 = vmatpush3.bf16.xpose.msra.mxu0 %v1392_v1 }
 0x2c1   : > { %8961 = vmatprep.subr.bf16.mxu0 %v13213_v33  ;;  %v1509_v3 = vpop.permute.xlu1 %1508 }
 0x2c2   : > { %v1514_v7 = vsel %vm1266_vm1, %v1509_v3, 0  ;;  %v1630_v2 = vpop.permute.xlu0 %1629 }
 0x2c3   : > { %v1635_v11 = vsel %vm1266_vm1, %v1630_v2, 0 }
 0x2c5   : > { %v1507_v9 = vpop.permute.xlu1 %1506 }
 0x2c6   : > { %v1909_v16 = vpop.permute.xlu0 %1908 }
 0x2c7   : > { %8952 = vmatmul.mubr.msk.bf16.vlgmr.msra.gmra.mrb[16].mxu0 %vm1266_vm1, %v1384_v63  ;;  %v1914_v26 = vsel %vm1266_vm1, %v1909_v16, 0 }
 0x2c8   : > { %8962 = vmatpush3.bf16.xpose.msra.mxu0 %v1514_v7  ;;  %8963 = vmatprep.mubr.msk.bf16.mxu0 %vm10296_vm0, %v13213_v33 }
 0x2c9   : > { %8973 = vmatprep.subr.bf16.mxu0 %v13213_v33  ;;  %v1628_v13 = vpop.permute.xlu1 %1627 }
 0x2cd   : > { %v1906_v45 = vpop.permute.xlu1 %1905 }
 0x2cf   : > { %8964 = vmatmul.mubr.msk.bf16.vlgmr.msra.gmra.mrb[20].mxu0 %vm1266_vm1, %v1507_v9 }
 0x2d0   : > { %8974 = vmatpush3.bf16.xpose.msra.mxu0 %v1635_v11  ;;  %8975 = vmatprep.mubr.msk.bf16.mxu0 %vm10296_vm0, %v13213_v33 }
 0x2d1   : > { %8985 = vmatprep.subr.bf16.mxu0 %v13213_v33 }
 0x2d7   : > { %8976 = vmatmul.mubr.msk.bf16.vlgmr.msra.gmra.mrb[24].mxu0 %vm1266_vm1, %v1628_v13 }
 0x2d8   : > { %8986 = vmatpush3.bf16.xpose.msra.mxu0 %v1794_v15  ;;  %8987 = vmatprep.mubr.msk.bf16.mxu0 %vm10296_vm0, %v13213_v33 }
 0x2d9   : > { %8997 = vmatprep.subr.bf16.mxu0 %v13213_v33 }
 0x2dc   : > { %v1159_v17 = vpop.f32.mrb[12].mxu0  ;;  %v8935_v21 = vpop.f32.mrb[4].mxu1 }
 0x2dd   : > { %v1161_v22 = vpop.f32.mrb[13].mxu0  ;;  %v1218_v23 = vpop.f32.mrb[5].mxu1  ;;  %v1160_v30 = vadd.f32 %v1159_v17, %v10664_v8  ;;  %v1227_v31 = vadd.f32 %v8935_v21, %v10677_v25 }
 0x2de   : > { %v1163_v24 = vpop.f32.mrb[14].mxu0  ;;  %v8936_v34 = vpop.f32.mrb[6].mxu1  ;;  %v1162_v36 = vadd.f32 %v1161_v22, %v10667_v10  ;;  %v1219_v41 = vadd.f32 %v1218_v23, %v10677_v25 }
 0x2df   : > { %v1164_v32 = vadd.f32 %v1163_v24, %v10664_v8  ;;  %v1165_v35 = vpop.f32.mrb[15].mxu0  ;;  %8988 = vmatmul.mubr.msk.bf16.vlgmr.msra.gmra.mrb[28].mxu0 %vm1266_vm1, %v10692_v47  ;;  %v1230_v37 = vadd.f32 %v8936_v34, %v10677_v25  ;;  %v1221_v40 = vpop.f32.mrb[7].mxu1 }
 0x2e0   : > { %v1166_v38 = vadd.f32 %v1165_v35, %v10667_v10  ;;  %8998 = vmatpush3.bf16.xpose.msra.mxu0 %v1914_v26  ;;  %8999 = vmatprep.mubr.msk.bf16.mxu0 %vm10296_vm0, %v13213_v33  ;;  %v1222_v8 = vadd.f32 %v1221_v40, %v10677_v25  ;;  %v2031_v10 = vpop.permute.xlu0 %2030  ;;  %v2029_v47 = vpop.permute.xlu1 %2028 }
 0x2e1   : > { %v10763_v42 = vpack.c.bf16 %v1164_v32, %v1160_v30  ;;  %9009 = vmatprep.subr.bf16.mxu0 %v13213_v33  ;;  %v10767_v43 = vpack.c.bf16 %v1230_v37, %v1227_v31  ;;  %v2036_v46 = vsel %vm1266_vm1, %v2031_v10, 0 }
 0x2e2   : > { %v1243_v18 = vpack.c.bf16 %v1166_v38, %v1162_v36  ;;  %v10769_v44 = vpack.c.bf16 %v1222_v8, %v1219_v41 }
 0x2e3   : > { %2945 = vrot.lane.b32.xlu1 %v10763_v42, %s13224_s28 }
 0x2e4   : > { %2948 = vrot.lane.b32.xlu0 %v1243_v18, %s13224_s28  ;;  %v2152_v25 = vpop.permute.xlu0 %2151  ;;  %v2150_v52 = vpop.permute.xlu1 %2149  ;;  %v2834_v63 = vsel %vm1266_vm1, %v1243_v18, 0 }
 0x2e5   : > { %v2157_v50 = vsel %vm1266_vm1, %v2152_v25, 0 }
 0x2e7   : > { %3068 = vrot.lane.b32.xlu1 %v10763_v42, %s13220_s6  ;;  %9000 = vmatmul.mubr.msk.bf16.vlgmr.msra.gmra.mrb[32].mxu0 %vm1266_vm1, %v1906_v45 }
 0x2e8   : > { %3070 = vrot.lane.b32.xlu0 %v1243_v18, %s13220_s6  ;;  %9010 = vmatpush3.bf16.xpose.msra.mxu0 %v2036_v46  ;;  %v2429_v55 = vpop.permute.xlu0 %2428  ;;  %v2426_v57 = vpop.permute.xlu1 %2425 }
 0x2e9   : > { %9011 = vmatprep.mubr.msk.bf16.mxu0 %vm10296_vm0, %v13213_v33  ;;  %9021 = vmatprep.subr.bf16.mxu0 %v13213_v33 }
 0x2eb   : > { %3189 = vrot.lane.b32.xlu1 %v10763_v42, %s13222_s27 }
 0x2ec   : > { %3191 = vrot.lane.b32.xlu0 %v1243_v18, %s13222_s27  ;;  %v2551_v56 = vpop.permute.xlu0 %2550  ;;  %v2549_v60 = vpop.permute.xlu1 %2548 }
 0x2ed   : > { %v2556_v58 = vsel %vm1266_vm1, %v2551_v56, 0 }
 0x2ef   : > { %1580 = vrot.lane.b32.xlu1 %v10696_v51, %s13220_s6  ;;  %9012 = vmatmul.mubr.msk.bf16.vlgmr.msra.gmra.mrb[36].mxu0 %vm1266_vm1, %v2029_v47 }
 0x2f0   : > { %1459 = vrot.lane.b32.xlu0 %v10696_v51, %s13224_s28  ;;  %9022 = vmatpush3.bf16.xpose.msra.mxu0 %v2157_v50  ;;  %v2672_v59 = vpop.permute.xlu0 %2671  ;;  %v2670_v62 = vpop.permute.xlu1 %2669 }
 0x2f1   : > { %9023 = vmatprep.mubr.msk.bf16.mxu0 %vm10296_vm0, %v13213_v33  ;;  %9033 = vmatprep.subr.bf16.mxu0 %v13213_v33 }
 0x2f3   : > { %2102 = vrot.lane.b32.xlu1 %v10694_v20, %s13220_s6 }
 0x2f4   : > { %1701 = vrot.lane.b32.xlu0 %v10696_v51, %s13222_s27  ;;  %v2434_v51 = vsel %vm1266_vm1, %v2429_v55, 0 }
 0x2f7   : > { %9024 = vmatmul.mubr.msk.bf16.vlgmr.msra.gmra.mrb[40].mxu0 %vm1266_vm1, %v2150_v52 }
 0x2f8   : > { %1981 = vrot.lane.b32.xlu0 %v10694_v20, %s13224_s28  ;;  %9034 = vmatpush3.bf16.xpose.msra.mxu0 %v2314_v29 }
 0x2f9   : > { %9035 = vmatprep.mubr.msk.bf16.mxu0 %vm10296_vm0, %v13213_v33  ;;  %9045 = vmatprep.subr.bf16.mxu0 %v13213_v33 }
 0x2fc   : > { %2223 = vrot.lane.b32.xlu0 %v10694_v20, %s13222_s27 }
 0x2ff   : > { %9036 = vmatmul.mubr.msk.bf16.vlgmr.msra.gmra.mrb[44].mxu0 %vm1266_vm1, %v10711_v61  ;;  %v2677_v61 = vsel %vm1266_vm1, %v2672_v59, 0 }
 0x300   : > { %9046 = vmatpush3.bf16.xpose.msra.mxu0 %v2434_v51  ;;  %9047 = vmatprep.mubr.msk.bf16.mxu0 %vm10296_vm0, %v13213_v33 }
 0x301   : > { %9057 = vmatprep.subr.bf16.mxu0 %v13213_v33 }
 0x307   : > { %9048 = vmatmul.mubr.msk.bf16.vlgmr.msra.gmra.mrb[48].mxu0 %vm1266_vm1, %v2426_v57 }
 0x308   : > { %9058 = vmatpush3.bf16.xpose.msra.mxu0 %v2556_v58  ;;  %9059 = vmatprep.mubr.msk.bf16.mxu0 %vm10296_vm0, %v13213_v33 }
 0x309   : > { %9069 = vmatprep.subr.bf16.mxu0 %v13213_v33 }
 0x30f   : > { %9060 = vmatmul.mubr.msk.bf16.vlgmr.msra.gmra.mrb[52].mxu0 %vm1266_vm1, %v2549_v60 }
 0x310   : > { %9070 = vmatpush3.bf16.xpose.msra.mxu0 %v2677_v61  ;;  %9071 = vmatprep.mubr.msk.bf16.mxu0 %vm10296_vm0, %v13213_v33 }
 0x311   : > { %9081 = vmatprep.subr.bf16.mxu0 %v13213_v33 }
 0x317   : > { %9072 = vmatmul.mubr.msk.bf16.vlgmr.msra.gmra.mrb[56].mxu0 %vm1266_vm1, %v2670_v62  ;;  %v10891_v62 = vld [vmem:[%s10837_s3 + $0x1] ss:$0 sm:$0xff] }
 0x318   : > { %9082 = vmatpush3.bf16.xpose.msra.mxu0 %v2834_v63  ;;  %9083 = vmatprep.mubr.msk.bf16.mxu0 %vm10296_vm0, %v13213_v33 }
 0x319   : > { %9093 = vmatprep.subr.bf16.mxu0 %v13213_v33 }
 0x31f   : > { %9084 = vmatmul.mubr.msk.bf16.vlgmr.msra.gmra.mrb[60].mxu0 %vm1266_vm1, %v10763_v42 }
 0x320   : > { %9095 = vmatprep.mubr.msk.bf16.mxu0 %vm10296_vm0, %v13213_v33 }
 0x327   : > { %v1307_v1 = vpop.f32.mrb[8].mxu1 }
 0x328   : > { %v10840_v3 = vadd.f32 %v8282_v0, %v1307_v1  ;;  %v8941_v7 = vpop.f32.mrb[9].mxu1 }
 0x329   : > { %v1310_v2 = vpop.f32.mrb[10].mxu1 }
 0x32a   : > { %v10842_v9 = vadd.f32 %v8282_v0, %v1310_v2  ;;  %v8942_v11 = vpop.f32.mrb[11].mxu1  ;;  %v1315_v13 = vsel %vm1314_vm2, %v10840_v3, -inf }
 0x32b   : > { %1316 = vmax.xlane.f32.xlu0 %v1315_v13 }
 0x32c   : > { %v1318_v15 = vsel %vm1314_vm2, %v10842_v9, -inf }
 0x32d   : > { %1319 = vmax.xlane.f32.xlu1 %v1318_v15 }
 0x355   : > { %v2946_v22 = vpop.permute.xlu1 %2945 }
 0x356   : > { %v2949_v16 = vpop.permute.xlu0 %2948 }
 0x357   : > { %v2954_v17 = vsel %vm1266_vm1, %v2949_v16, 0 }
 0x358   : > { %9094 = vmatpush3.bf16.xpose.msra.mxu0 %v2954_v17 }
 0x359   : > { %9105 = vmatprep.subr.bf16.mxu0 %v13213_v33  ;;  %v3069_v26 = vpop.permute.xlu1 %3068 }
 0x35a   : > { %v3071_v21 = vpop.permute.xlu0 %3070 }
 0x35b   : > { %v3076_v23 = vsel %vm1266_vm1, %v3071_v21, 0 }
 0x35d   : > { %v3190_v31 = vpop.permute.xlu1 %3189 }
 0x35e   : > { %v3192_v24 = vpop.permute.xlu0 %3191 }
 0x35f   : > { %9096 = vmatmul.mubr.msk.bf16.vlgmr.msra.gmra.mrb[64].mxu0 %vm1266_vm1, %v2946_v22  ;;  %v3197_v30 = vsel %vm1266_vm1, %v3192_v24, 0 }
 0x360   : > { %9106 = vmatpush3.bf16.xpose.msra.mxu0 %v3076_v23  ;;  %9107 = vmatprep.mubr.msk.bf16.mxu0 %vm10296_vm0, %v13213_v33 }
 0x361   : > { %9117 = vmatprep.subr.bf16.mxu0 %v13213_v33 }
 0x362   : > { %v10868_v42 = vpop.permute.xlu0 %1459 }
 0x366   : > { %v10878_v52 = vpop.permute.xlu0 %1701 }
 0x367   : > { %9108 = vmatmul.mubr.msk.bf16.vlgmr.msra.gmra.mrb[68].mxu0 %vm1266_vm1, %v3069_v26 }
 0x368   : > { %9118 = vmatpush3.bf16.xpose.msra.mxu0 %v3197_v30  ;;  %9119 = vmatprep.mubr.msk.bf16.mxu0 %vm10296_vm0, %v13213_v33 }
 0x36a   : > { %v10886_v60 = vpop.permute.xlu0 %1981 }
 0x36f   : > { %9120 = vmatmul.mubr.msk.bf16.vlgmr.msra.gmra.mrb[72].mxu0 %vm1266_vm1, %v3190_v31 }
 0x39a   : > { %v1428_v32 = vpop.f32.mrb[16].mxu0 }
 0x39b   : > { %v10860_v34 = vadd.f32 %v8282_v0, %v1428_v32  ;;  %v8953_v35 = vpop.f32.mrb[17].mxu0 }
 0x39c   : > { %v1431_v36 = vpop.f32.mrb[18].mxu0 }
 0x39d   : > { %v10862_v37 = vadd.f32 %v8282_v0, %v1431_v36  ;;  %v8954_v38 = vpop.f32.mrb[19].mxu0  ;;  %v1435_v40 = vsel %vm1314_vm2, %v10860_v34, -inf }
 0x39e   : > { %1436 = vmax.xlane.f32.xlu0 %v1435_v40 }
 0x39f   : > { %v1438_v41 = vsel %vm1314_vm2, %v10862_v37, -inf }
 0x3a2   : > { %1439 = vmax.xlane.f32.xlu0 %v1438_v41  ;;  %v1550_v8 = vpop.f32.mrb[20].mxu0 }
 0x3a3   : > { %v10870_v18 = vadd.f32 %v8282_v0, %v1550_v8  ;;  %v8965_v10 = vpop.f32.mrb[21].mxu0 }
 0x3a4   : > { %v1553_v45 = vpop.f32.mrb[22].mxu0 }
 0x3a5   : > { %v10872_v46 = vadd.f32 %v8282_v0, %v1553_v45  ;;  %v8966_v25 = vpop.f32.mrb[23].mxu0  ;;  %v1557_v47 = vsel %vm1314_vm2, %v10870_v18, -inf }
 0x3a6   : > { %1558 = vmax.xlane.f32.xlu0 %v1557_v47 }
 0x3a7   : > { %v1560_v50 = vsel %vm1314_vm2, %v10872_v46, -inf }
 0x3a8   : > { %1561 = vmax.xlane.f32.xlu1 %v1560_v50 }
 0x3aa   : > { %v1671_v29 = vpop.f32.mrb[24].mxu0 }
 0x3ab   : > { %v10880_v55 = vadd.f32 %v8282_v0, %v1671_v29  ;;  %v8977_v51 = vpop.f32.mrb[25].mxu0 }
 0x3ac   : > { %v1674_v56 = vpop.f32.mrb[26].mxu0 }
 0x3ad   : > { %v10882_v57 = vadd.f32 %v8282_v0, %v1674_v56  ;;  %v8978_v58 = vpop.f32.mrb[27].mxu0  ;;  %v1678_v59 = vsel %vm1314_vm2, %v10880_v55, -inf  ;;  %v10896_v0 = vpop.permute.xlu0 %2223  ;;  %v8300_v56 = vld [vmem:[%s10837_s3 + $0x2] ss:$0 sm:$0xff] }
 0x3ae   : > { %1679 = vmax.xlane.f32.xlu0 %v1678_v59  ;;  %v10928_v58 = vpop.permute.xlu1 %1580 }
 0x3af   : > { %v1681_v61 = vsel %vm1314_vm2, %v10882_v57, -inf }
 0x3b0   : > { %1682 = vmax.xlane.f32.xlu1 %v1681_v61 }
 0x3b2   : > { %v1830_v63 = vpop.f32.mrb[28].mxu0 }
 0x3b3   : > { %v10894_v1 = vadd.f32 %v10891_v62, %v1830_v63  ;;  %v8989_v7 = vpop.f32.mrb[29].mxu0 }
 0x3b4   : > { %v1833_v2 = vpop.f32.mrb[30].mxu0 }
 0x3b5   : > { %v10899_v11 = vadd.f32 %v10891_v62, %v1833_v2  ;;  %v8990_v13 = vpop.f32.mrb[31].mxu0  ;;  %v1837_v15 = vsel %vm1314_vm2, %v10894_v1, -inf }
 0x3b6   : > { %1838 = vmax.xlane.f32.xlu0 %v1837_v15  ;;  %v10934_v15 = vpop.permute.xlu1 %2102 }
 0x3b7   : > { %v1840_v16 = vsel %vm1314_vm2, %v10899_v11, -inf }
 0x3b8   : > { %1841 = vmax.xlane.f32.xlu1 %v1840_v16  ;;  %v1317_v17 = vpop.xlane.xlu0 %1316 }
 0x3b9   : > { %v1321_v21 = vsub.f32 %v10840_v3, %v1317_v17 }
 0x3ba   : > { %v1950_v22 = vpop.f32.mrb[32].mxu0 }
 0x3bb   : > { %v1323_v23 = vmul.f32 1.442695, %v1321_v21  ;;  %v10907_v24 = vadd.f32 %v10891_v62, %v1950_v22  ;;  %v9001_v26 = vpop.f32.mrb[33].mxu0  ;;  %v1320_v22 = vpop.xlane.xlu1 %1319 }
 0x3bc   : > { %v1953_v30 = vpop.f32.mrb[34].mxu0 }
 0x3bd   : > { %9830 = vpow2.f32 %v1323_v23  ;;  %v9002_v31 = vpop.f32.mrb[35].mxu0  ;;  %v1957_v32 = vsel %vm1314_vm2, %v10907_v24, -inf }
 0x3be   : > { %1958 = vmax.xlane.f32.xlu0 %v1957_v32  ;;  %v1322_v32 = vsub.f32 %v10842_v9, %v1320_v22  ;;  %v10960_v22 = vld [vmem:[%s10837_s3 + $0x3] ss:$0 sm:$0xff] }
 0x3c2   : > { %v2072_v35 = vpop.f32.mrb[36].mxu0 }
 0x3c3   : > { %v10912_v36 = vadd.f32 %v10891_v62, %v2072_v35  ;;  %v9013_v38 = vpop.f32.mrb[37].mxu0 }
 0x3c4   : > { %v2075_v3 = vpop.f32.mrb[38].mxu0  ;;  %v1325_v38 = vmul.f32 1.442695, %v1322_v32 }
 0x3c5   : > { %v9014_v40 = vpop.f32.mrb[39].mxu0  ;;  %v2079_v41 = vsel %vm1314_vm2, %v10912_v36, -inf }
 0x3c6   : > { %2080 = vmax.xlane.f32.xlu0 %v2079_v41  ;;  %9832 = vpow2.f32 %v1325_v38 }
 0x3c7   : > { %v10916_v8 = vpop.eup %9830 }
 0x3c8   : > { %v1327_v10 = vsel %vm1314_vm2, %v10916_v8, 0.0 }
 0x3c9   : > { %2501 = vrot.lane.b32.xlu1 %v10769_v44, %s13224_s28 }
 0x3ca   : > { %v2193_v45 = vpop.f32.mrb[40].mxu0  ;;  %1328 = vadd.xlane.f32.xlu0 %v1327_v10 }
 0x3cb   : > { %v10923_v25 = vadd.f32 %v10891_v62, %v2193_v45  ;;  %v9025_v47 = vpop.f32.mrb[41].mxu0 }
 0x3cc   : > { %v2196_v50 = vpop.f32.mrb[42].mxu0 }
 0x3cd   : > { %v9026_v29 = vpop.f32.mrb[43].mxu0  ;;  %v2200_v51 = vsel %vm1314_vm2, %v10923_v25, -inf }
 0x3ce   : > { %2201 = vmax.xlane.f32.xlu0 %v2200_v51  ;;  %v10946_v29 = vadd.f32 %v10891_v62, %v1953_v30 }
 0x3d2   : > { %v2350_v59 = vpop.f32.mrb[44].mxu0 }
 0x3d3   : > { %v10930_v61 = vadd.f32 %v8300_v56, %v2350_v59  ;;  %v9037_v63 = vpop.f32.mrb[45].mxu0 }
 0x3d4   : > { %v2353_v7 = vpop.f32.mrb[46].mxu0  ;;  %v10951_v63 = vadd.f32 %v10891_v62, %v2075_v3 }
 0x3d5   : > { %v9038_v2 = vpop.f32.mrb[47].mxu0  ;;  %v2357_v13 = vsel %vm1314_vm2, %v10930_v61, -inf }
 0x3d6   : > { %2358 = vmax.xlane.f32.xlu0 %v2357_v13  ;;  %v1960_v13 = vsel %vm1314_vm2, %v10946_v29, -inf  ;;  %v2082_v30 = vsel %vm1314_vm2, %v10951_v63, -inf }
 0x3da   : > { %v2470_v16 = vpop.f32.mrb[48].mxu0 }
 0x3db   : > { %v10936_v17 = vadd.f32 %v8300_v56, %v2470_v16  ;;  %v9049_v21 = vpop.f32.mrb[49].mxu0 }
 0x3dc   : > { %v2473_v23 = vpop.f32.mrb[50].mxu0 }
 0x3dd   : > { %v9050_v26 = vpop.f32.mrb[51].mxu0  ;;  %v2477_v31 = vsel %vm1314_vm2, %v10936_v17, -inf }
 0x3de   : > { %2478 = vmax.xlane.f32.xlu0 %v2477_v31  ;;  %v10962_v26 = vpop.eup %9832 }
 0x3e2   : > { %v2592_v35 = vpop.f32.mrb[52].mxu0 }
 0x3e3   : > { %v10941_v40 = vadd.f32 %v8300_v56, %v2592_v35  ;;  %v9061_v41 = vpop.f32.mrb[53].mxu0  ;;  %v10968_v35 = vadd.f32 %v10891_v62, %v2196_v50 }
 0x3e4   : > { %v2595_v10 = vpop.f32.mrb[54].mxu0  ;;  %v1330_v41 = vsel %vm1314_vm2, %v10962_v26, 0.0 }
 0x3e5   : > { %v9062_v45 = vpop.f32.mrb[55].mxu0  ;;  %v2599_v47 = vsel %vm1314_vm2, %v10941_v40, -inf  ;;  %v10982_v50 = vadd.f32 %v8300_v56, %v2595_v10 }
 0x3e6   : > { %2600 = vmax.xlane.f32.xlu0 %v2599_v47 }
 0x3ea   : > { %v2713_v51 = vpop.f32.mrb[56].mxu0 }
 0x3eb   : > { %v10948_v59 = vadd.f32 %v8300_v56, %v2713_v51  ;;  %v9073_v9 = vpop.f32.mrb[57].mxu0  ;;  %v10974_v51 = vadd.f32 %v8300_v56, %v2353_v7  ;;  %v2602_v7 = vsel %vm1314_vm2, %v10982_v50, -inf }
 0x3ec   : > { %v2716_v2 = vpop.f32.mrb[58].mxu0  ;;  %v2203_v9 = vsel %vm1314_vm2, %v10968_v35, -inf }
 0x3ed   : > { %1961 = vmax.xlane.f32.xlu1 %v1960_v13  ;;  %v9074_v16 = vpop.f32.mrb[59].mxu0  ;;  %v2720_v21 = vsel %vm1314_vm2, %v10948_v59, -inf  ;;  %v10978_v13 = vadd.f32 %v8300_v56, %v2473_v23  ;;  %v2360_v62 = vsel %vm1314_vm2, %v10974_v51, -inf }
 0x3ee   : > { %2721 = vmax.xlane.f32.xlu0 %v2720_v21  ;;  %v10986_v21 = vadd.f32 %v8300_v56, %v2716_v2 }
 0x3ef   : > { %v2480_v16 = vsel %vm1314_vm2, %v10978_v13, -inf }
 0x3f0   : > { %v2723_v23 = vsel %vm1314_vm2, %v10986_v21, -inf }
 0x3f1   : > { %2083 = vmax.xlane.f32.xlu1 %v2082_v30 }
 0x3f2   : > { %v2870_v3 = vpop.f32.mrb[60].mxu0 }
 0x3f3   : > { %v10965_v31 = vadd.f32 %v10960_v22, %v2870_v3  ;;  %v9085_v32 = vpop.f32.mrb[61].mxu0 }
 0x3f4   : > { %v2873_v38 = vpop.f32.mrb[62].mxu0 }
 0x3f5   : > { %1331 = vadd.xlane.f32.xlu1 %v1330_v41  ;;  %v9086_v45 = vpop.f32.mrb[63].mxu0  ;;  %v2877_v47 = vsel %vm1314_vm2, %v10965_v31, -inf  ;;  %v10991_v30 = vadd.f32 %v10960_v22, %v2873_v38 }
 0x3f6   : > { %2878 = vmax.xlane.f32.xlu0 %v2877_v47 }
 0x3f7   : > { %v2880_v10 = vsel %vm1314_vm2, %v10991_v30, -inf }
 0x3f9   : > { %2204 = vmax.xlane.f32.xlu1 %v2203_v9 }
 0x3fd   : > { %2361 = vmax.xlane.f32.xlu1 %v2360_v62 }
 0x401   : > { %2481 = vmax.xlane.f32.xlu1 %v2480_v16 }
 0x405   : > { %2603 = vmax.xlane.f32.xlu1 %v2602_v7 }
 0x409   : > { %2724 = vmax.xlane.f32.xlu1 %v2723_v23 }
 0x40d   : > { %2881 = vmax.xlane.f32.xlu1 %v2880_v10 }
 0x42b   : > { %v1437_v3 = vpop.xlane.xlu0 %1436 }
 0x42c   : > { %v1441_v45 = vsub.f32 %v10860_v34, %v1437_v3 }
 0x42f   : > { %v1440_v32 = vpop.xlane.xlu0 %1439 }
 0x430   : > { %v1442_v7 = vsub.f32 %v10862_v37, %v1440_v32 }
 0x432   : > { %v2990_v41 = vpop.f32.mrb[64].mxu0  ;;  %v1445_v34 = vmul.f32 1.442695, %v1442_v7 }
 0x433   : > { %v10998_v56 = vadd.f32 %v10960_v22, %v2990_v41  ;;  %v9097_v2 = vpop.f32.mrb[65].mxu0  ;;  %v1559_v38 = vpop.xlane.xlu0 %1558  ;;  %v1443_v41 = vmul.f32 1.442695, %v1441_v45 }
 0x434   : > { %v2993_v47 = vpop.f32.mrb[66].mxu0  ;;  %v1563_v2 = vsub.f32 %v10870_v18, %v1559_v38 }
 0x435   : > { %v11002_v9 = vadd.f32 %v10960_v22, %v2993_v47  ;;  %v9098_v62 = vpop.f32.mrb[67].mxu0  ;;  %v2997_v16 = vsel %vm1314_vm2, %v10998_v56, -inf  ;;  %v1562_v23 = vpop.xlane.xlu1 %1561  ;;  %9834 = vpow2.f32 %v1443_v41 }
 0x436   : > { %2998 = vmax.xlane.f32.xlu0 %v2997_v16  ;;  %v1564_v3 = vsub.f32 %v10872_v46, %v1562_v23  ;;  %v1565_v37 = vmul.f32 1.442695, %v1563_v2  ;;  %9836 = vpow2.f32 %v1445_v34 }
 0x437   : > { %v3000_v10 = vsel %vm1314_vm2, %v11002_v9, -inf }
 0x438   : > { %3001 = vmax.xlane.f32.xlu1 %v3000_v10  ;;  %v1567_v46 = vmul.f32 1.442695, %v1564_v3  ;;  %9838 = vpow2.f32 %v1565_v37 }
 0x43a   : > { %v3112_v47 = vpop.f32.mrb[68].mxu0  ;;  %9840 = vpow2.f32 %v1567_v46 }
 0x43b   : > { %v11012_v62 = vadd.f32 %v10960_v22, %v3112_v47  ;;  %v9109_v19 = vpop.f32.mrb[69].mxu0  ;;  %v1680_v54 = vpop.xlane.xlu0 %1679 }
 0x43c   : > { %v1684_v32 = vsub.f32 %v10880_v55, %v1680_v54  ;;  %v3115_v16 = vpop.f32.mrb[70].mxu0 }
 0x43d   : > { %v11016_v33 = vadd.f32 %v10960_v22, %v3115_v16  ;;  %v1683_v45 = vpop.xlane.xlu1 %1682  ;;  %v9110_v18 = vpop.f32.mrb[71].mxu0  ;;  %v3119_v38 = vsel %vm1314_vm2, %v11012_v62, -inf }
 0x43e   : > { %v1685_v7 = vsub.f32 %v10882_v57, %v1683_v45  ;;  %3120 = vmax.xlane.f32.xlu0 %v3119_v38  ;;  %v1686_v23 = vmul.f32 1.442695, %v1684_v32 }
 0x43f   : > { %v3122_v19 = vsel %vm1314_vm2, %v11016_v33, -inf  ;;  %v11032_v32 = vpop.eup %9834 }
 0x440   : > { %3123 = vmax.xlane.f32.xlu1 %v3122_v19  ;;  %v1688_v54 = vmul.f32 1.442695, %v1685_v7  ;;  %9842 = vpow2.f32 %v1686_v23  ;;  %v1447_v46 = vsel %vm1314_vm2, %v11032_v32, 0.0 }
 0x442   : > { %v3233_v55 = vpop.f32.mrb[72].mxu0  ;;  %9844 = vpow2.f32 %v1688_v54 }
 0x443   : > { %v11024_v10 = vadd.f32 %v10960_v22, %v3233_v55  ;;  %v9121_v41 = vpop.f32.mrb[73].mxu0  ;;  %v1839_v2 = vpop.xlane.xlu0 %1838 }
 0x444   : > { %v1843_v34 = vsub.f32 %v10894_v1, %v1839_v2  ;;  %v3236_v3 = vpop.f32.mrb[74].mxu0  ;;  %v11037_v1 = vpop.eup %9836 }
 0x445   : > { %v11028_v57 = vadd.f32 %v10960_v22, %v3236_v3  ;;  %v1842_v47 = vpop.xlane.xlu1 %1841  ;;  %v9122_v16 = vpop.f32.mrb[75].mxu0  ;;  %v3240_v37 = vsel %vm1314_vm2, %v11024_v10, -inf }
 0x446   : > { %v1845_v45 = vmul.f32 1.442695, %v1843_v34  ;;  %v1844_v18 = vsub.f32 %v10899_v11, %v1842_v47  ;;  %3241 = vmax.xlane.f32.xlu0 %v3240_v37  ;;  %v11041_v7 = vpop.eup %9838  ;;  %v1450_v11 = vsel %vm1314_vm2, %v11037_v1, 0.0 }
 0x447   : > { %v3243_v38 = vsel %vm1314_vm2, %v11028_v57, -inf  ;;  %v11045_v23 = vpop.eup %9840  ;;  %v1569_v55 = vsel %vm1314_vm2, %v11041_v7, 0.0 }
 0x448   : > { %9846 = vpow2.f32 %v1845_v45  ;;  %v1847_v22 = vmul.f32 1.442695, %v1844_v18  ;;  %3244 = vmax.xlane.f32.xlu1 %v3243_v38  ;;  %v1572_v34 = vsel %vm1314_vm2, %v11045_v23, 0.0 }
 0x44a   : > { %9848 = vpow2.f32 %v1847_v22  ;;  %1448 = vadd.xlane.f32.xlu0 %v1447_v46  ;;  %v11050_v41 = vpop.eup %9842 }
 0x44b   : > { %v1959_v19 = vpop.xlane.xlu0 %1958  ;;  %v1690_v47 = vsel %vm1314_vm2, %v11050_v41, 0.0 }
 0x44c   : > { %v1963_v54 = vsub.f32 %v10907_v24, %v1959_v19  ;;  %1451 = vadd.xlane.f32.xlu1 %v1450_v11  ;;  %v11054_v3 = vpop.eup %9844 }
 0x44d   : > { %v1693_v24 = vsel %vm1314_vm2, %v11054_v3, 0.0 }
 0x44e   : > { %v1965_v2 = vmul.f32 1.442695, %v1963_v54  ;;  %1570 = vadd.xlane.f32.xlu0 %v1569_v55  ;;  %v11075_v54 = vpop.permute.xlu1 %2501 }
 0x450   : > { %9850 = vpow2.f32 %v1965_v2  ;;  %1573 = vadd.xlane.f32.xlu1 %v1572_v34 }
 0x452   : > { %v11058_v16 = vpop.eup %9846  ;;  %1691 = vadd.xlane.f32.xlu0 %v1690_v47 }
 0x453   : > { %v1849_v45 = vsel %vm1314_vm2, %v11058_v16, 0.0  ;;  %v2081_v46 = vpop.xlane.xlu0 %2080 }
 0x454   : > { %v11062_v37 = vpop.eup %9848  ;;  %1694 = vadd.xlane.f32.xlu1 %v1693_v24  ;;  %v2085_v11 = vsub.f32 %v10912_v36, %v2081_v46 }
 0x455   : > { %v1852_v18 = vsel %vm1314_vm2, %v11062_v37, 0.0 }
 0x456   : > { %1850 = vadd.xlane.f32.xlu0 %v1849_v45  ;;  %v2087_v55 = vmul.f32 1.442695, %v2085_v11 }
 0x457   : > { %v1329_v19 = vpop.xlane.xlu0 %1328 }
 0x458   : > { %1853 = vadd.xlane.f32.xlu1 %v1852_v18  ;;  %9852 = vpow2.f32 %v2087_v55 }
 0x45a   : > { %v11068_v38 = vpop.eup %9850 }
 0x45b   : > { %v1969_v22 = vsel %vm1314_vm2, %v11068_v38, 0.0  ;;  %v2202_v2 = vpop.xlane.xlu0 %2201 }
 0x45c   : > { %1970 = vadd.xlane.f32.xlu1 %v1969_v22  ;;  %v2206_v24 = vsub.f32 %v10923_v25, %v2202_v2 }
 0x45e   : > { %v2208_v5 = vmul.f32 1.442695, %v2206_v24 }
 0x463   : > { %v2359_v14 = vpop.xlane.xlu0 %2358 }
 0x464   : > { %v2363_v46 = vsub.f32 %v10930_v61, %v2359_v14 }
 0x466   : > { %v2365_v2 = vmul.f32 1.442695, %v2363_v46 }
 0x46c   : > { %2622 = vrot.lane.b32.xlu0 %v10769_v44, %s13220_s6 }
 0x47a   : > { %v1962_v34 = vpop.xlane.xlu1 %1961 }
 0x47b   : > { %v1964_v47 = vsub.f32 %v10946_v29, %v1962_v34  ;;  %v11081_v29 = vpop.eup %9852  ;;  %v2479_v34 = vpop.xlane.xlu0 %2478 }
 0x47c   : > { %v2483_v61 = vsub.f32 %v10936_v17, %v2479_v34 }
 0x47d   : > { %v1967_v45 = vmul.f32 1.442695, %v1964_v47 }
 0x47e   : > { %v2084_v18 = vpop.xlane.xlu1 %2083  ;;  %v2485_v17 = vmul.f32 1.442695, %v2483_v61 }
 0x47f   : > { %9854 = vpow2.f32 %v1967_v45  ;;  %v2086_v22 = vsub.f32 %v10951_v63, %v2084_v18  ;;  %v2601_v18 = vpop.xlane.xlu0 %2600 }
 0x480   : > { %9856 = vrcp.f32 %v1329_v19  ;;  %v2605_v34 = vsub.f32 %v10941_v40, %v2601_v18 }
 0x481   : > { %v2089_v27 = vmul.f32 1.442695, %v2086_v22 }
 0x482   : > { %v1332_v36 = vpop.xlane.xlu1 %1331 }
 0x483   : > { %9858 = vpow2.f32 %v2089_v27  ;;  %v2091_v27 = vsel %vm1314_vm2, %v11081_v29, 0.0 }
 0x484   : > { %9860 = vrcp.f32 %v1332_v36 }
 0x485   : > { %9862 = vpow2.f32 %v2208_v5 }
 0x486   : > { %v2205_v11 = vpop.xlane.xlu1 %2204 }
 0x487   : > { %v2207_v25 = vsub.f32 %v10968_v35, %v2205_v11 }
 0x489   : > { %v11084_v55 = vpop.eup %9854  ;;  %v2210_v63 = vmul.f32 1.442695, %v2207_v25 }
 0x48a   : > { %v2362_v47 = vpop.xlane.xlu1 %2361  ;;  %v1972_v19 = vsel %vm1314_vm2, %v11084_v55, 0.0  ;;  %v9857_v14 = vpop.eup %9856 }
 0x48b   : > { %9864 = vpow2.f32 %v2210_v63  ;;  %v2364_v5 = vsub.f32 %v10974_v51, %v2362_v47  ;;  %1973 = vadd.xlane.f32.xlu1 %v1972_v19  ;;  %2092 = vadd.xlane.f32.xlu0 %v2091_v27  ;;  %v1335_v11 = vmul.f32 %v9857_v14, %v10916_v8  ;;  %v2722_v47 = vpop.xlane.xlu0 %2721  ;;  %v13276_v8 = vmov 0.0  }
 0x48c   : > { %9866 = vpow2.f32 %v2365_v2 }
 0x48d   : > { %v11092_v35 = vpop.eup %9858  ;;  %v2367_v24 = vmul.f32 1.442695, %v2364_v5 }
 0x48e   : > { %v9861_v45 = vpop.eup %9860  ;;  %v2482_v22 = vpop.xlane.xlu1 %2481  ;;  %v2094_v36 = vsel %vm1314_vm2, %v11092_v35, 0.0 }
 0x48f   : > { %v11096_v46 = vpop.eup %9862  ;;  %v1336_v51 = vmul.f32 %v9861_v45, %v10962_v26  ;;  %v2484_v25 = vsub.f32 %v10978_v13, %v2482_v22  ;;  %2095 = vadd.xlane.f32.xlu1 %v2094_v36  ;;  %9868 = vpow2.f32 %v2367_v24  ;;  %v2607_v26 = vmul.f32 1.442695, %v2605_v34  ;;  %v2879_v61 = vpop.xlane.xlu0 %2878 }
 0x490   : > { %v2212_v27 = vsel %vm1314_vm2, %v11096_v46, 0.0  ;;  %v2726_v13 = vsub.f32 %v10948_v59, %v2722_v47  ;;  %v2883_v22 = vsub.f32 %v10965_v31, %v2879_v61 }
 0x491   : > { %v2487_v2 = vmul.f32 1.442695, %v2484_v25  ;;  %v1337_v63 = vpack.c.bf16 %v1336_v51, %v1335_v11 }
 0x492   : > { %v2604_v19 = vpop.xlane.xlu1 %2603  ;;  %v2728_v18 = vmul.f32 1.442695, %v2726_v13 }
 0x493   : > { %9870 = vpow2.f32 %v2487_v2  ;;  %v2606_v5 = vsub.f32 %v10982_v50, %v2604_v19  ;;  %8946 = vmatmul.mubr.msk.bf16.vlgmr.msra.gmra.mrb[12].mxu1 %vm1314_vm2, %v1337_v63  ;;  %2213 = vadd.xlane.f32.xlu1 %v2212_v27 }
 0x494   : > { %8956 = vmatpush3.bf16.msra.mxu1 %v10868_v42  ;;  %8957 = vmatprep.mubr.msk.bf16.mxu1 %vm10296_vm0, %v13276_v8  ;;  %9872 = vpow2.f32 %v2485_v17  ;;  %v2885_v17 = vmul.f32 1.442695, %v2883_v22 }
 0x495   : > { %v11109_v40 = vpop.eup %9864  ;;  %v2609_v14 = vmul.f32 1.442695, %v2606_v5  ;;  %8967 = vmatprep.subr.bf16.mxu1 %v13276_v8 }
 0x496   : > { %v2725_v24 = vpop.xlane.xlu1 %2724  ;;  %v2215_v50 = vsel %vm1314_vm2, %v11109_v40, 0.0  ;;  %v11115_v45 = vpop.eup %9866 }
 0x497   : > { %9874 = vpow2.f32 %v2609_v14  ;;  %v2727_v42 = vsub.f32 %v10986_v21, %v2725_v24  ;;  %2216 = vadd.xlane.f32.xlu1 %v2215_v50  ;;  %v2369_v11 = vsel %vm1314_vm2, %v11115_v45, 0.0 }
 0x498   : > { %9876 = vpow2.f32 %v2607_v26 }
 0x499   : > { %v2730_v36 = vmul.f32 1.442695, %v2727_v42  ;;  %v11121_v51 = vpop.eup %9868 }
 0x49a   : > { %v2882_v59 = vpop.xlane.xlu1 %2881  ;;  %v2372_v31 = vsel %vm1314_vm2, %v11121_v51, 0.0 }
 0x49b   : > { %9878 = vpow2.f32 %v2730_v36  ;;  %2370 = vadd.xlane.f32.xlu1 %v2369_v11  ;;  %v2884_v21 = vsub.f32 %v10991_v30, %v2882_v59 }
 0x49c   : > { %9880 = vpow2.f32 %v2728_v18 }
 0x49d   : > { %v11123_v25 = vpop.eup %9870  ;;  %9882 = vpow2.f32 %v2885_v17  ;;  %v2887_v47 = vmul.f32 1.442695, %v2884_v21 }
 0x49e   : > { %v2492_v34 = vsel %vm1314_vm2, %v11123_v25, 0.0  ;;  %v11130_v2 = vpop.eup %9872 }
 0x49f   : > { %2493 = vadd.xlane.f32.xlu0 %v2492_v34  ;;  %2373 = vadd.xlane.f32.xlu1 %v2372_v31  ;;  %v2489_v30 = vsel %vm1314_vm2, %v11130_v2, 0.0  ;;  %9884 = vpow2.f32 %v2887_v47 }
 0x4a1   : > { %v11132_v63 = vpop.eup %9874 }
 0x4a2   : > { %v2614_v19 = vsel %vm1314_vm2, %v11132_v63, 0.0  ;;  %v11138_v27 = vpop.eup %9876 }
 0x4a3   : > { %2615 = vadd.xlane.f32.xlu0 %v2614_v19  ;;  %2490 = vadd.xlane.f32.xlu1 %v2489_v30  ;;  %v2611_v13 = vsel %vm1314_vm2, %v11138_v27, 0.0 }
 0x4a5   : > { %v11140_v5 = vpop.eup %9878 }
 0x4a6   : > { %v2735_v26 = vsel %vm1314_vm2, %v11140_v5, 0.0  ;;  %v11146_v14 = vpop.eup %9880 }
 0x4a7   : > { %2736 = vadd.xlane.f32.xlu0 %v2735_v26  ;;  %2612 = vadd.xlane.f32.xlu1 %v2611_v13  ;;  %v2732_v61 = vsel %vm1314_vm2, %v11146_v14, 0.0  ;;  %v11150_v24 = vpop.eup %9882 }
 0x4a8   : > { %v2889_v50 = vsel %vm1314_vm2, %v11150_v24, 0.0 }
 0x4a9   : > { %v11154_v42 = vpop.eup %9884 }
 0x4aa   : > { %v2892_v18 = vsel %vm1314_vm2, %v11154_v42, 0.0 }
 0x4ab   : > { %2733 = vadd.xlane.f32.xlu1 %v2732_v61 }
 0x4af   : > { %2890 = vadd.xlane.f32.xlu1 %v2889_v50 }
 0x4b3   : > { %2893 = vadd.xlane.f32.xlu1 %v2892_v18 }
 0x4c3   : > { %v2999_v22 = vpop.xlane.xlu0 %2998 }
 0x4c4   : > { %v3003_v36 = vsub.f32 %v10998_v56, %v2999_v22 }
 0x4c5   : > { %v3002_v59 = vpop.xlane.xlu1 %3001 }
 0x4c6   : > { %v3005_v11 = vmul.f32 1.442695, %v3003_v36  ;;  %v3004_v17 = vsub.f32 %v11002_v9, %v3002_v59 }
 0x4c8   : > { %9886 = vpow2.f32 %v3005_v11  ;;  %v3007_v21 = vmul.f32 1.442695, %v3004_v17 }
 0x4ca   : > { %9888 = vpow2.f32 %v3007_v21 }
 0x4cb   : > { %v3121_v34 = vpop.xlane.xlu0 %3120 }
 0x4cc   : > { %v3125_v31 = vsub.f32 %v11012_v62, %v3121_v34 }
 0x4cd   : > { %v3124_v47 = vpop.xlane.xlu1 %3123 }
 0x4ce   : > { %v3127_v19 = vmul.f32 1.442695, %v3125_v31  ;;  %v3126_v30 = vsub.f32 %v11016_v33, %v3124_v47 }
 0x4d0   : > { %9890 = vpow2.f32 %v3127_v19  ;;  %v3129_v26 = vmul.f32 1.442695, %v3126_v30 }
 0x4d2   : > { %v11162_v13 = vpop.eup %9886  ;;  %9892 = vpow2.f32 %v3129_v26 }
 0x4d3   : > { %v11164_v56 = vpop.xlane.xlu0 %3241  ;;  %v3009_v9 = vsel %vm1314_vm2, %v11162_v13, 0.0 }
 0x4d4   : > { %v11168_v61 = vpop.eup %9888  ;;  %3010 = vadd.xlane.f32.xlu1 %v3009_v9 }
 0x4d5   : > { %v11170_v50 = vpop.xlane.xlu1 %3244  ;;  %v3012_v62 = vsel %vm1314_vm2, %v11168_v61, 0.0 }
 0x4d6   : > { %3013 = vadd.xlane.f32.xlu0 %v3012_v62 }
 0x4d7   : > { %v1449_v33 = vpop.xlane.xlu0 %1448 }
 0x4d8   : > { %9894 = vrcp.f32 %v1449_v33 }
 0x4d9   : > { %v1452_v18 = vpop.xlane.xlu1 %1451 }
 0x4da   : > { %v11174_v22 = vpop.eup %9890  ;;  %9896 = vrcp.f32 %v1452_v18 }
 0x4db   : > { %v3131_v36 = vsel %vm1314_vm2, %v11174_v22, 0.0  ;;  %v1571_v21 = vpop.xlane.xlu0 %1570 }
 0x4dc   : > { %v11178_v59 = vpop.eup %9892  ;;  %3132 = vadd.xlane.f32.xlu0 %v3131_v36 }
 0x4dd   : > { %v1574_v11 = vpop.xlane.xlu1 %1573  ;;  %v3134_v17 = vsel %vm1314_vm2, %v11178_v59, 0.0 }
 0x4de   : > { %3135 = vadd.xlane.f32.xlu1 %v3134_v17  ;;  %9898 = vrcp.f32 %v1574_v11 }
 0x4df   : > { %9900 = vrcp.f32 %v1571_v21  ;;  %v1692_v26 = vpop.xlane.xlu0 %1691 }
 0x4e1   : > { %v1695_v31 = vpop.xlane.xlu1 %1694 }
 0x4e2   : > { %v9895_v34 = vpop.eup %9894  ;;  %9902 = vrcp.f32 %v1695_v31 }
 0x4e3   : > { %v1455_v19 = vmul.f32 %v9895_v34, %v11032_v32  ;;  %9904 = vrcp.f32 %v1692_v26 }
 0x4e4   : > { %v9897_v47 = vpop.eup %9896 }
 0x4e5   : > { %v1456_v30 = vmul.f32 %v9897_v47, %v11037_v1  ;;  %v1854_v36 = vpop.xlane.xlu1 %1853  ;;  %v1851_v1 = vpop.xlane.xlu0 %1850  ;;  %v3247_v47 = vsub.f32 %v11028_v57, %v11170_v50 }
 0x4e6   : > { %9906 = vrcp.f32 %v1854_v36 }
 0x4e7   : > { %v1457_v9 = vpack.c.bf16 %v1456_v30, %v1455_v19  ;;  %9908 = vrcp.f32 %v1851_v1 }
 0x4e8   : > { %v9899_v62 = vpop.eup %9898 }
 0x4e9   : > { %8958 = vmatmul.mubr.msk.bf16.vlgmr.msra.gmra.mrb[16].mxu1 %vm1314_vm2, %v1457_v9  ;;  %v9901_v33 = vpop.eup %9900  ;;  %v1578_v18 = vmul.f32 %v9899_v62, %v11045_v23 }
 0x4ea   : > { %8968 = vmatpush3.bf16.msra.mxu1 %v10928_v58  ;;  %8969 = vmatprep.mubr.msk.bf16.mxu1 %vm10296_vm0, %v13276_v8  ;;  %v1577_v32 = vmul.f32 %v9901_v33, %v11041_v7 }
 0x4eb   : > { %8979 = vmatprep.subr.bf16.mxu1 %v13276_v8 }
 0x4ec   : > { %v1579_v11 = vpack.c.bf16 %v1578_v18, %v1577_v32  ;;  %v9903_v17 = vpop.eup %9902 }
 0x4ed   : > { %v9905_v58 = vpop.eup %9904  ;;  %v1699_v7 = vmul.f32 %v9903_v17, %v11054_v3 }
 0x4ee   : > { %v1698_v23 = vmul.f32 %v9905_v58, %v11050_v41  ;;  %v3246_v41 = vsub.f32 %v11024_v10, %v11164_v56 }
 0x4ef   : > { %2743 = vrot.lane.b32.xlu1 %v10769_v44, %s13222_s27 }
 0x4f0   : > { %v1700_v21 = vpack.c.bf16 %v1699_v7, %v1698_v23  ;;  %v9907_v34 = vpop.eup %9906  ;;  %v3248_v30 = vmul.f32 1.442695, %v3246_v41 }
 0x4f1   : > { %8970 = vmatmul.mubr.msk.bf16.vlgmr.msra.gmra.mrb[20].mxu1 %vm1314_vm2, %v1579_v11  ;;  %v9909_v31 = vpop.eup %9908 }
 0x4f2   : > { %3021 = vrot.lane.b32.xlu0 %v10767_v43, %s13224_s28  ;;  %8980 = vmatpush3.bf16.msra.mxu1 %v10878_v52  ;;  %v1858_v52 = vmul.f32 %v9907_v34, %v11062_v37  ;;  %v1857_v3 = vmul.f32 %v9909_v31, %v11058_v16  ;;  %9910 = vpow2.f32 %v3248_v30  ;;  %v1971_v37 = vpop.xlane.xlu1 %1970 }
 0x4f3   : > { %8981 = vmatprep.mubr.msk.bf16.mxu1 %vm10296_vm0, %v13276_v8  ;;  %8991 = vmatprep.subr.bf16.mxu1 %v13276_v8 }
 0x4f4   : > { %v1859_v19 = vpack.c.bf16 %v1858_v52, %v1857_v3 }
 0x4f6   : > { %3142 = vrot.lane.b32.xlu0 %v10767_v43, %s13220_s6 }
 0x4f9   : > { %8982 = vmatmul.mubr.msk.bf16.vlgmr.msra.gmra.mrb[24].mxu1 %vm1314_vm2, %v1700_v21 }
 0x4fa   : > { %8992 = vmatpush3.bf16.msra.mxu1 %v10694_v20  ;;  %8993 = vmatprep.mubr.msk.bf16.mxu1 %vm10296_vm0, %v13276_v8  ;;  %v3250_v20 = vmul.f32 1.442695, %v3247_v47 }
 0x4fb   : > { %9003 = vmatprep.subr.bf16.mxu1 %v13276_v8 }
 0x4fc   : > { %9912 = vpow2.f32 %v3250_v20  ;;  %v11220_v10 = vpop.eup %9910 }
 0x4fd   : > { %v3252_v57 = vsel %vm1314_vm2, %v11220_v10, 0.0  ;;  %9914 = vrcp.f32 %v1971_v37 }
 0x501   : > { %8994 = vmatmul.mubr.msk.bf16.vlgmr.msra.gmra.mrb[28].mxu1 %vm1314_vm2, %v1859_v19 }
 0x502   : > { %9004 = vmatpush3.bf16.msra.mxu1 %v10886_v60  ;;  %9005 = vmatprep.mubr.msk.bf16.mxu1 %vm10296_vm0, %v13276_v8  ;;  %v11228_v60 = vpop.permute.xlu0 %2622 }
 0x503   : > { %9015 = vmatprep.subr.bf16.mxu1 %v13276_v8 }
 0x506   : > { %v11222_v16 = vpop.eup %9912 }
 0x507   : > { %v3255_v56 = vsel %vm1314_vm2, %v11222_v16, 0.0  ;;  %v9915_v33 = vpop.eup %9914 }
 0x508   : > { %v1977_v36 = vmul.f32 %v9915_v33, %v11068_v38 }
 0x513   : > { %3253 = vadd.xlane.f32.xlu1 %v3252_v57 }
 0x515   : > { %3256 = vadd.xlane.f32.xlu0 %v3255_v56 }
 0x518   : > { %v1974_v50 = vpop.xlane.xlu1 %1973  ;;  %v2093_v26 = vpop.xlane.xlu0 %2092 }
 0x519   : > { %9916 = vrcp.f32 %v1974_v50 }
 0x51c   : > { %v2096_v9 = vpop.xlane.xlu1 %2095 }
 0x51d   : > { %9918 = vrcp.f32 %v2096_v9 }
 0x51e   : > { %9920 = vrcp.f32 %v2093_v26 }
 0x520   : > { %v2214_v62 = vpop.xlane.xlu1 %2213 }
 0x523   : > { %v9917_v18 = vpop.eup %9916 }
 0x524   : > { %v1978_v32 = vmul.f32 %v9917_v18, %v11084_v55  ;;  %v2217_v1 = vpop.xlane.xlu1 %2216 }
 0x525   : > { %9922 = vrcp.f32 %v2217_v1 }
 0x526   : > { %v1979_v11 = vpack.c.bf16 %v1978_v32, %v1977_v36  ;;  %9924 = vrcp.f32 %v2214_v62 }
 0x527   : > { %v9919_v17 = vpop.eup %9918 }
 0x528   : > { %v2371_v58 = vpop.xlane.xlu1 %2370  ;;  %9006 = vmatmul.mubr.msk.bf16.vlgmr.msra.gmra.mrb[32].mxu1 %vm1314_vm2, %v1979_v11  ;;  %v9921_v7 = vpop.eup %9920  ;;  %v2100_v23 = vmul.f32 %v9919_v17, %v11092_v35 }
 0x529   : > { %9016 = vmatpush3.bf16.msra.mxu1 %v10934_v15  ;;  %9017 = vmatprep.mubr.msk.bf16.mxu1 %vm10296_vm0, %v13276_v8  ;;  %v2099_v38 = vmul.f32 %v9921_v7, %v11081_v29 }
 0x52a   : > { %9027 = vmatprep.subr.bf16.mxu1 %v13276_v8 }
 0x52b   : > { %3263 = vrot.lane.b32.xlu0 %v10767_v43, %s13222_s27  ;;  %v2101_v21 = vpack.c.bf16 %v2100_v23, %v2099_v38 }
 0x52c   : > { %v2374_v55 = vpop.xlane.xlu1 %2373  ;;  %v2494_v52 = vpop.xlane.xlu0 %2493 }
 0x52d   : > { %9926 = vrcp.f32 %v2374_v55 }
 0x52e   : > { %9928 = vrcp.f32 %v2371_v58 }
 0x52f   : > { %v9923_v34 = vpop.eup %9922 }
 0x530   : > { %9018 = vmatmul.mubr.msk.bf16.vlgmr.msra.gmra.mrb[36].mxu1 %vm1314_vm2, %v2101_v21  ;;  %v9925_v15 = vpop.eup %9924  ;;  %v2221_v35 = vmul.f32 %v9923_v34, %v11109_v40  ;;  %v2491_v31 = vpop.xlane.xlu1 %2490 }
 0x531   : > { %9028 = vmatpush3.bf16.msra.mxu1 %v10896_v0  ;;  %9029 = vmatprep.mubr.msk.bf16.mxu1 %vm10296_vm0, %v13276_v8  ;;  %v2220_v29 = vmul.f32 %v9925_v15, %v11096_v46  ;;  %9930 = vrcp.f32 %v2491_v31  ;;  %v2616_v19 = vpop.xlane.xlu0 %2615 }
 0x532   : > { %9039 = vmatprep.subr.bf16.mxu1 %v13276_v8  ;;  %9932 = vrcp.f32 %v2494_v52 }
 0x533   : > { %v2222_v41 = vpack.c.bf16 %v2221_v35, %v2220_v29 }
 0x534   : > { %v2613_v40 = vpop.xlane.xlu1 %2612 }
 0x535   : > { %9934 = vrcp.f32 %v2613_v40  ;;  %v2737_v9 = vpop.xlane.xlu0 %2736 }
 0x536   : > { %9936 = vrcp.f32 %v2616_v19 }
 0x537   : > { %v9927_v3 = vpop.eup %9926 }
 0x538   : > { %9030 = vmatmul.mubr.msk.bf16.vlgmr.msra.gmra.mrb[40].mxu1 %vm1314_vm2, %v2222_v41  ;;  %v9929_v47 = vpop.eup %9928  ;;  %v2378_v0 = vmul.f32 %v9927_v3, %v11121_v51 }
 0x539   : > { %9040 = vmatpush3.bf16.msra.mxu1 %v10769_v44  ;;  %9041 = vmatprep.mubr.msk.bf16.mxu1 %vm10296_vm0, %v13276_v8  ;;  %v2377_v46 = vmul.f32 %v9929_v47, %v11115_v45 }
 0x53a   : > { %9051 = vmatprep.subr.bf16.mxu1 %v13276_v8 }
 0x53b   : > { %v2379_v30 = vpack.c.bf16 %v2378_v0, %v2377_v46  ;;  %v9931_v20 = vpop.eup %9930 }
 0x53c   : > { %v9933_v57 = vpop.eup %9932  ;;  %v2497_v44 = vmul.f32 %v9931_v20, %v11130_v2 }
 0x53d   : > { %v2498_v51 = vmul.f32 %v9933_v57, %v11123_v25  ;;  %v2734_v25 = vpop.xlane.xlu1 %2733 }
 0x53e   : > { %9938 = vrcp.f32 %v2734_v25 }
 0x53f   : > { %v2499_v45 = vpack.c.bf16 %v2498_v51, %v2497_v44  ;;  %v9935_v37 = vpop.eup %9934  ;;  %9940 = vrcp.f32 %v2737_v9 }
 0x540   : > { %9042 = vmatmul.mubr.msk.bf16.vlgmr.msra.gmra.mrb[44].mxu1 %vm1314_vm2, %v2379_v30  ;;  %v9937_v56 = vpop.eup %9936 }
 0x541   : > { %9052 = vmatpush3.bf16.msra.mxu1 %v11075_v54  ;;  %9053 = vmatprep.mubr.msk.bf16.mxu1 %vm10296_vm0, %v13276_v8  ;;  %v2619_v54 = vmul.f32 %v9935_v37, %v11138_v27  ;;  %v2620_v2 = vmul.f32 %v9937_v56, %v11132_v63  ;;  %v2891_v26 = vpop.xlane.xlu1 %2890 }
 0x542   : > { %9063 = vmatprep.subr.bf16.mxu1 %v13276_v8 }
 0x543   : > { %v2621_v50 = vpack.c.bf16 %v2620_v2, %v2619_v54 }
 0x548   : > { %9054 = vmatmul.mubr.msk.bf16.vlgmr.msra.gmra.mrb[48].mxu1 %vm1314_vm2, %v2499_v45  ;;  %v9939_v36 = vpop.eup %9938 }
 0x549   : > { %9064 = vmatpush3.bf16.msra.mxu1 %v11228_v60  ;;  %9065 = vmatprep.mubr.msk.bf16.mxu1 %vm10296_vm0, %v13276_v8  ;;  %v2894_v60 = vpop.xlane.xlu1 %2893  ;;  %v9941_v1 = vpop.eup %9940  ;;  %v2740_v11 = vmul.f32 %v9939_v36, %v11146_v14 }
 0x54a   : > { %9075 = vmatprep.subr.bf16.mxu1 %v13276_v8  ;;  %9942 = vrcp.f32 %v2894_v60  ;;  %v2741_v58 = vmul.f32 %v9941_v1, %v11140_v5  ;;  %v9631_v1 = vld [vmem:[%s13278_s9 + $0x8] sm:$0xff]  }
 0x54b   : > { %9944 = vrcp.f32 %v2891_v26 }
 0x54c   : > { %v2742_v23 = vpack.c.bf16 %v2741_v58, %v2740_v11  ;;  %v9632_v11 = vld [vmem:[%s13278_s9 + $0x10] sm:$0xff]   ;;  %v9634_v58 = vld [vmem:[%s13278_s9 + $0x20] sm:$0xff]  }
 0x550   : > { %9066 = vmatmul.mubr.msk.bf16.vlgmr.msra.gmra.mrb[52].mxu1 %vm1314_vm2, %v2621_v50 }
 0x551   : > { %9077 = vmatprep.mubr.msk.bf16.mxu1 %vm10296_vm0, %v13276_v8 }
 0x554   : > { %v9943_v38 = vpop.eup %9942 }
 0x555   : > { %v9945_v55 = vpop.eup %9944  ;;  %v2898_v14 = vmul.f32 %v9943_v38, %v11154_v42  ;;  %v9635_v38 = vld [vmem:[%s13278_s9 + $0x28] sm:$0xff]  }
 0x556   : > { %v2897_v5 = vmul.f32 %v9945_v55, %v11150_v24 }
 0x558   : > { %v2899_v34 = vpack.c.bf16 %v2898_v14, %v2897_v5  ;;  %v9636_v14 = vld [vmem:[%s13278_s9 + $0x30] sm:$0xff]  }
 0x561   : > { %v3011_v33 = vpop.xlane.xlu1 %3010 }
 0x563   : > { %v3014_v17 = vpop.xlane.xlu0 %3013 }
 0x564   : > { %9946 = vrcp.f32 %v3014_v17  ;;  %v9633_v17 = vld [vmem:[%s13278_s9 + $0x18] sm:$0xff]  }
 0x565   : > { %9948 = vrcp.f32 %v3011_v33 }
 0x566   : > { %v11272_v62 = vpop.f32.mrb[12].mxu1 }
 0x567   : > { %v8947_v27 = vpop.f32.mrb[13].mxu1 }
 0x568   : > { %v11274_v18 = vpop.f32.mrb[14].mxu1 }
 0x569   : > { %v8948_v63 = vpop.f32.mrb[15].mxu1  ;;  %v3133_v21 = vpop.xlane.xlu0 %3132 }
 0x56b   : > { %v3136_v32 = vpop.xlane.xlu1 %3135 }
 0x56c   : > { %9950 = vrcp.f32 %v3136_v32  ;;  %v9630_v32 = vld [vmem:[%s13278_s9] sm:$0xff]  }
 0x56d   : > { %9952 = vrcp.f32 %v3133_v21  ;;  %v3022_v35 = vpop.permute.xlu0 %3021  ;;  %9129 = vmatprep.subr.bf16.mxu0 %v9630_v32 }
 0x56e   : > { %v9947_v15 = vpop.eup %9946  ;;  %9130 = vmatpush3.bf16.msra.mxu0 %v9630_v32 }
 0x56f   : > { %v2744_v7 = vpop.permute.xlu1 %2743  ;;  %v9949_v31 = vpop.eup %9948  ;;  %9131 = vmatprep.subr.bf16.mxu0 %v9631_v1 }
 0x570   : > { %9076 = vmatpush3.bf16.msra.mxu1 %v2744_v7  ;;  %v3017_v42 = vmul.f32 %v9949_v31, %v11162_v13 }
 0x571   : > { %9087 = vmatprep.subr.bf16.mxu1 %v13276_v8  ;;  %v3143_v52 = vpop.permute.xlu0 %3142 }
 0x572   : > { %9132 = vmatpush3.bf16.msra.mxu0 %v9631_v1 }
 0x573   : > { %9078 = vmatmul.mubr.msk.bf16.vlgmr.msra.gmra.mrb[56].mxu1 %vm1314_vm2, %v2742_v23  ;;  %9133 = vmatprep.subr.bf16.mxu0 %v9632_v11 }
 0x574   : > { %9088 = vmatpush3.bf16.msra.mxu1 %v10767_v43  ;;  %9089 = vmatprep.mubr.msk.bf16.mxu1 %vm10296_vm0, %v13276_v8  ;;  %v3018_v43 = vmul.f32 %v9947_v15, %v11168_v61 }
 0x575   : > { %9099 = vmatprep.subr.bf16.mxu1 %v13276_v8 }
 0x576   : > { %v3019_v29 = vpack.c.bf16 %v3018_v43, %v3017_v42  ;;  %v9951_v24 = vpop.eup %9950  ;;  %9134 = vmatpush3.bf16.msra.mxu0 %v9632_v11 }
 0x577   : > { %v9953_v41 = vpop.eup %9952  ;;  %v3140_v3 = vmul.f32 %v9951_v24, %v11178_v59  ;;  %9135 = vmatprep.subr.bf16.mxu0 %v9633_v17 }
 0x578   : > { %v3139_v61 = vmul.f32 %v9953_v41, %v11174_v22  ;;  %v13277_v22 = vmov 0  }
 0x57a   : > { %v3141_v47 = vpack.c.bf16 %v3140_v3, %v3139_v61  ;;  %9136 = vmatpush3.bf16.msra.mxu0 %v9633_v17 }
 0x57b   : > { %9090 = vmatmul.mubr.msk.bf16.vlgmr.msra.gmra.mrb[60].mxu1 %vm1314_vm2, %v2899_v34  ;;  %9137 = vmatprep.subr.bf16.mxu0 %v9634_v58 }
 0x57c   : > { %9100 = vmatpush3.bf16.msra.mxu1 %v3022_v35  ;;  %9101 = vmatprep.mubr.msk.bf16.mxu1 %vm10296_vm0, %v13276_v8  ;;  %v9637_v35 = vld [vmem:[%s13278_s9 + $0x38] sm:$0xff]  }
 0x57d   : > { %9111 = vmatprep.subr.bf16.mxu1 %v13276_v8 }
 0x57e   : > { %9138 = vmatpush3.bf16.msra.mxu0 %v9634_v58 }
 0x57f   : > { %9139 = vmatprep.subr.bf16.mxu0 %v9635_v38 }
 0x582   : > { %9140 = vmatpush3.bf16.msra.mxu0 %v9635_v38 }
 0x583   : > { %9102 = vmatmul.mubr.msk.bf16.vlgmr.msra.gmra.mrb[64].mxu1 %vm1314_vm2, %v3019_v29  ;;  %9141 = vmatprep.subr.bf16.mxu0 %v9636_v14 }
 0x584   : > { %9112 = vmatpush3.bf16.msra.mxu1 %v3143_v52  ;;  %9113 = vmatprep.mubr.msk.bf16.mxu1 %vm10296_vm0, %v13276_v8 }
 0x585   : > { %9123 = vmatprep.subr.bf16.mxu1 %v13276_v8 }
 0x586   : > { %9142 = vmatpush3.bf16.msra.mxu0 %v9636_v14 }
 0x587   : > { %9143 = vmatprep.subr.bf16.mxu0 %v9637_v35 }
 0x58a   : > { %9144 = vmatpush3.bf16.msra.mxu0 %v9637_v35 }
 0x58b   : > { %9114 = vmatmul.mubr.msk.bf16.vlgmr.msra.gmra.mrb[68].mxu1 %vm1314_vm2, %v3141_v47 }
 0x58c   : > { %9125 = vmatprep.mubr.msk.bf16.mxu1 %vm10296_vm0, %v13276_v8 }
 0x5a0   : > { %v3254_v13 = vpop.xlane.xlu1 %3253 }
 0x5a1   : > { %9954 = vrcp.f32 %v3254_v13 }
 0x5a2   : > { %v3257_v0 = vpop.xlane.xlu0 %3256 }
 0x5a3   : > { %9956 = vrcp.f32 %v3257_v0 }
 0x5a6   : > { %v3264_v40 = vpop.permute.xlu0 %3263 }
 0x5a7   : > { %9124 = vmatpush3.bf16.msra.mxu1 %v3264_v40 }
 0x5ab   : > { %v9955_v46 = vpop.eup %9954 }
 0x5ac   : > { %v3260_v59 = vmul.f32 %v9955_v46, %v11220_v10 }
 0x5ad   : > { %v9957_v19 = vpop.eup %9956 }
 0x5ae   : > { %v3261_v30 = vmul.f32 %v9957_v19, %v11222_v16 }
 0x5b0   : > { %v3262_v20 = vpack.c.bf16 %v3261_v30, %v3260_v59 }
 0x5b2   : > { %9126 = vmatmul.mubr.msk.bf16.vlgmr.msra.gmra.mrb[72].mxu1 %vm1314_vm2, %v3262_v20 }
 0x5b3   : > { %3742 = vmatprep.mubr.bf16.mxu1 %v13277_v22 }
 0x5bc   : > { %v1499_v57 = vpop.f32.mrb[16].mxu1 }
 0x5bd   : > { %v8959_v44 = vpop.f32.mrb[17].mxu1 }
 0x5be   : > { %v1502_v51 = vpop.f32.mrb[18].mxu1 }
 0x5bf   : > { %v9478_v45 = vpack.i.bf16 %v1502_v51, %v1499_v57  ;;  %v8960_v37 = vpop.f32.mrb[19].mxu1 }
 0x5c1   : > { %9479 = vrot.lane.b32.xlu1 %v9478_v45, %s13222_s27 }
 0x5c4   : > { %v1620_v56 = vpop.f32.mrb[20].mxu1 }
 0x5c5   : > { %v8971_v54 = vpop.f32.mrb[21].mxu1 }
 0x5c6   : > { %v1623_v2 = vpop.f32.mrb[22].mxu1 }
 0x5c7   : > { %v9483_v50 = vpack.i.bf16 %v1623_v2, %v1620_v56  ;;  %v8972_v25 = vpop.f32.mrb[23].mxu1 }
 0x5c9   : > { %9484 = vrot.lane.b32.xlu0 %v9483_v50, %s13220_s6  ;;  %s13283_s6 = sld [smem:[#allocation29_spill]] }
 0x5cc   : > { %v1741_v10 = vpop.f32.mrb[24].mxu1 }
 0x5cd   : > { %v8983_v16 = vpop.f32.mrb[25].mxu1 }
 0x5ce   : > { %v1744_v26 = vpop.f32.mrb[26].mxu1 }
 0x5cf   : > { %v9488_v9 = vpack.i.bf16 %v1744_v26, %v1741_v10  ;;  %v8984_v60 = vpop.f32.mrb[27].mxu1  ;;  %s13284_s27 = smov %s13283_s6 }
 0x5d1   : > { %9489 = vrot.lane.b32.xlu0 %v9488_v9, %s13224_s28 }
 0x5d4   : > { %v11308_v33 = vpop.f32.mrb[28].mxu1 }
 0x5d5   : > { %v8995_v27 = vpop.f32.mrb[29].mxu1 }
 0x5d6   : > { %v11310_v63 = vpop.f32.mrb[30].mxu1 }
 0x5d7   : > { %v8996_v36 = vpop.f32.mrb[31].mxu1 }
 0x5fb   : > { %v2021_v7 = vpop.f32.mrb[32].mxu1 }
 0x5fc   : > { %v9007_v23 = vpop.f32.mrb[33].mxu1 }
 0x5fd   : > { %v2024_v55 = vpop.f32.mrb[34].mxu1 }
 0x5fe   : > { %v9493_v21 = vpack.i.bf16 %v2024_v55, %v2021_v7  ;;  %v9008_v5 = vpop.f32.mrb[35].mxu1 }
 0x600   : > { %9494 = vrot.lane.b32.xlu0 %v9493_v21, %s13279_s30 }
 0x603   : > { %v2142_v34 = vpop.f32.mrb[36].mxu1 }
 0x604   : > { %v9019_v15 = vpop.f32.mrb[37].mxu1 }
 0x605   : > { %v2145_v31 = vpop.f32.mrb[38].mxu1 }
 0x606   : > { %v9498_v43 = vpack.i.bf16 %v2145_v31, %v2142_v34  ;;  %v9020_v42 = vpop.f32.mrb[39].mxu1 }
 0x608   : > { %9499 = vrot.lane.b32.xlu0 %v9498_v43, %s13280_s8 }
 0x60b   : > { %v2263_v29 = vpop.f32.mrb[40].mxu1 }
 0x60c   : > { %v9031_v24 = vpop.f32.mrb[41].mxu1 }
 0x60d   : > { %v2266_v52 = vpop.f32.mrb[42].mxu1 }
 0x60e   : > { %v9503_v41 = vpack.i.bf16 %v2266_v52, %v2263_v29  ;;  %v9032_v3 = vpop.f32.mrb[43].mxu1 }
 0x610   : > { %9504 = vrot.lane.b32.xlu1 %v9503_v41, %s13281_s5 }
 0x613   : > { %v11339_v61 = vpop.f32.mrb[44].mxu1 }
 0x614   : > { %v9043_v47 = vpop.f32.mrb[45].mxu1 }
 0x615   : > { %v11341_v13 = vpop.f32.mrb[46].mxu1 }
 0x616   : > { %v9044_v0 = vpop.f32.mrb[47].mxu1 }
 0x61b   : > { %v2541_v40 = vpop.f32.mrb[48].mxu1 }
 0x61c   : > { %v9055_v46 = vpop.f32.mrb[49].mxu1 }
 0x61d   : > { %v2544_v19 = vpop.f32.mrb[50].mxu1 }
 0x61e   : > { %v9508_v59 = vpack.i.bf16 %v2544_v19, %v2541_v40  ;;  %v9056_v30 = vpop.f32.mrb[51].mxu1 }
 0x620   : > { %9509 = vrot.lane.b32.xlu0 %v9508_v59, %s13279_s30 }
 0x623   : > { %v2662_v20 = vpop.f32.mrb[52].mxu1 }
 0x624   : > { %v9067_v57 = vpop.f32.mrb[53].mxu1 }
 0x625   : > { %v2665_v44 = vpop.f32.mrb[54].mxu1 }
 0x626   : > { %v9513_v51 = vpack.i.bf16 %v2665_v44, %v2662_v20  ;;  %v9068_v45 = vpop.f32.mrb[55].mxu1 }
 0x628   : > { %9514 = vrot.lane.b32.xlu1 %v9513_v51, %s13280_s8 }
 0x633   : > { %v9480_v37 = vpop.permute.xlu1 %9479 }
 0x634   : > { %v9482_v54 = vunpack.i.h.bf16 %v9480_v37  ;;  %v9481_v2 = vunpack.i.l.bf16 %v9480_v37 }
 0x636   : > { %v1773_v16 = vsel %vm1266_vm1, %v11274_v18, %v9482_v54  ;;  %v1772_v26 = vsel %vm1266_vm1, %v11272_v62, %v9481_v2 }
 0x63b   : > { %v9485_v56 = vpop.permute.xlu0 %9484 }
 0x63c   : > { %v9487_v50 = vunpack.i.h.bf16 %v9485_v56  ;;  %v9486_v25 = vunpack.i.l.bf16 %v9485_v56 }
 0x63e   : > { %v1775_v36 = vsel %vm1774_vm3, %v1772_v26, %v9486_v25  ;;  %v1776_v32 = vsel %vm1774_vm3, %v1773_v16, %v9487_v50 }
 0x643   : > { %v9490_v10 = vpop.permute.xlu0 %9489 }
 0x644   : > { %v9492_v9 = vunpack.i.h.bf16 %v9490_v10  ;;  %v9491_v60 = vunpack.i.l.bf16 %v9490_v10 }
 0x646   : > { %v2783_v27 = vpop.f32.mrb[56].mxu1  ;;  %v1778_v11 = vsel %vm1777_vm4, %v1775_v36, %v9491_v60  ;;  %v1779_v17 = vsel %vm1777_vm4, %v1776_v32, %v9492_v9 }
 0x647   : > { %v9079_v1 = vpop.f32.mrb[57].mxu1  ;;  %v1780_v7 = vpack.c.bf16 %v1779_v17, %v1778_v11 }
 0x648   : > { %v2786_v58 = vpop.f32.mrb[58].mxu1 }
 0x649   : > { %v9518_v23 = vpack.i.bf16 %v2786_v58, %v2783_v27  ;;  %v9080_v38 = vpop.f32.mrb[59].mxu1  ;;  %9145 = vmatprep.mubr.bf16.mxu0 %v1780_v7 }
 0x64b   : > { %9519 = vrot.lane.b32.xlu1 %v9518_v23, %s13281_s5 }
 0x64e   : > { %v11354_v62 = vpop.f32.mrb[60].mxu1 }
 0x64f   : > { %v9091_v18 = vpop.f32.mrb[61].mxu1 }
 0x650   : > { %v2940_v55 = vpop.f32.mrb[62].mxu1 }
 0x651   : > { %v9092_v14 = vpop.f32.mrb[63].mxu1 }
 0x656   : > { %v3061_v21 = vpop.f32.mrb[64].mxu1 }
 0x657   : > { %v9103_v5 = vpop.f32.mrb[65].mxu1 }
 0x658   : > { %v3064_v34 = vpop.f32.mrb[66].mxu1 }
 0x659   : > { %v9523_v15 = vpack.i.bf16 %v3064_v34, %v3061_v21  ;;  %v9104_v35 = vpop.f32.mrb[67].mxu1 }
 0x65b   : > { %9524 = vrot.lane.b32.xlu0 %v9523_v15, %s13279_s30 }
 0x65e   : > { %v3182_v31 = vpop.f32.mrb[68].mxu1 }
 0x65f   : > { %v9115_v43 = vpop.f32.mrb[69].mxu1 }
 0x660   : > { %v3185_v42 = vpop.f32.mrb[70].mxu1 }
 0x661   : > { %v9528_v29 = vpack.i.bf16 %v3185_v42, %v3182_v31  ;;  %v9116_v24 = vpop.f32.mrb[71].mxu1 }
 0x663   : > { %9529 = vrot.lane.b32.xlu0 %v9528_v29, %s13280_s8 }
 0x672   : > { %v9495_v52 = vpop.permute.xlu0 %9494 }
 0x673   : > { %v9497_v3 = vunpack.i.h.bf16 %v9495_v52  ;;  %v9496_v47 = vunpack.i.l.bf16 %v9495_v52 }
 0x675   : > { %v2295_v19 = vsel %vm1266_vm1, %v11310_v63, %v9497_v3  ;;  %v2294_v59 = vsel %vm1266_vm1, %v11308_v33, %v9496_v47 }
 0x67a   : > { %v9500_v41 = vpop.permute.xlu0 %9499 }
 0x67b   : > { %v9502_v0 = vunpack.i.h.bf16 %v9500_v41  ;;  %v9501_v40 = vunpack.i.l.bf16 %v9500_v41  ;;  %v8318_v41 = vld [vmem:[%s13282_s26] ss:$0 sm:$0xff] }
 0x67d   : > { %v2296_v57 = vsel %vm1774_vm3, %v2294_v59, %v9501_v40  ;;  %v2297_v44 = vsel %vm1774_vm3, %v2295_v19, %v9502_v0 }
 0x682   : > { %v9505_v46 = vpop.permute.xlu1 %9504 }
 0x683   : > { %v9507_v30 = vunpack.i.h.bf16 %v9505_v46  ;;  %v9506_v20 = vunpack.i.l.bf16 %v9505_v46 }
 0x685   : > { %v2298_v51 = vsel %vm1777_vm4, %v2296_v57, %v9506_v20  ;;  %v2299_v45 = vsel %vm1777_vm4, %v2297_v44, %v9507_v30  ;;  %v3303_v37 = vpop.f32.mrb[72].mxu1 }
 0x686   : > { %v9127_v56 = vpop.f32.mrb[73].mxu1  ;;  %v2300_v54 = vpack.c.bf16 %v2299_v45, %v2298_v51 }
 0x687   : > { %v3306_v2 = vpop.f32.mrb[74].mxu1 }
 0x688   : > { %v9533_v50 = vpack.i.bf16 %v3306_v2, %v3303_v37  ;;  %v9128_v25 = vpop.f32.mrb[75].mxu1  ;;  %9146 = vmatmul.mubr.bf16.vlgmr.msra.gmra.mrb[76].mxu0 %v2300_v54 }
 0x68a   : > { %9534 = vrot.lane.b32.xlu1 %v9533_v50, %s13281_s5 }
 0x692   : > { %v9510_v33 = vpop.permute.xlu0 %9509 }
 0x693   : > { %v9512_v10 = vunpack.i.h.bf16 %v9510_v33  ;;  %v9511_v16 = vunpack.i.l.bf16 %v9510_v33  ;;  %v9638_v33 = vld [vmem:[%s13283_s6] ss:$8 sps:$4 sm:$0xff]   ;;  %s13308_s6 = sld [smem:[#allocation36_spill]] }
 0x695   : > { %v2815_v27 = vsel %vm1266_vm1, %v11341_v13, %v9512_v10  ;;  %v2814_v36 = vsel %vm1266_vm1, %v11339_v61, %v9511_v16 }
 0x699   : > { %s13309_s28 = smov %s13308_s6 }
 0x69a   : > { %v9515_v63 = vpop.permute.xlu1 %9514 }
 0x69b   : > { %v9517_v26 = vunpack.i.h.bf16 %v9515_v63  ;;  %v9516_v9 = vunpack.i.l.bf16 %v9515_v63  ;;  %v9643_v63 = vld [vmem:[%s13284_s27 + $0x14] ss:$8 sps:$4 sm:$0xff]  }
 0x69d   : > { %v2816_v11 = vsel %vm1774_vm3, %v2814_v36, %v9516_v9  ;;  %v2817_v17 = vsel %vm1774_vm3, %v2815_v27, %v9517_v26 }
 0x6bd   : > { %v9520_v60 = vpop.permute.xlu1 %9519 }
 0x6be   : > { %v9522_v32 = vunpack.i.h.bf16 %v9520_v60  ;;  %v9521_v1 = vunpack.i.l.bf16 %v9520_v60  ;;  %v9641_v60 = vld [vmem:[%s13284_s27 + $0x10] ss:$8 sps:$4 sm:$0xff]  }
 0x6c0   : > { %v2818_v58 = vsel %vm1777_vm4, %v2816_v11, %v9521_v1  ;;  %v2819_v7 = vsel %vm1777_vm4, %v2817_v17, %v9522_v32 }
 0x6c1   : > { %v2820_v23 = vpack.c.bf16 %v2819_v7, %v2818_v58 }
 0x6c3   : > { %9149 = vmatprep.mubr.bf16.mxu0 %v2820_v23 }
 0x6cd   : > { %v9525_v38 = vpop.permute.xlu0 %9524 }
 0x6ce   : > { %v9527_v14 = vunpack.i.h.bf16 %v9525_v38  ;;  %v9526_v21 = vunpack.i.l.bf16 %v9525_v38 }
 0x6d0   : > { %v3335_v61 = vsel %vm1266_vm1, %v2940_v55, %v9527_v14  ;;  %v3334_v15 = vsel %vm1266_vm1, %v11354_v62, %v9526_v21  ;;  %v9647_v14 = vld [vmem:[%s13284_s27 + $0x30] ss:$8 sps:$4 sm:$0xff]   ;;  %v9652_v21 = vld [vmem:[%s13284_s27 + $0x44] ss:$8 sps:$4 sm:$0xff]  }
 0x6d5   : > { %v9530_v18 = vpop.permute.xlu0 %9529 }
 0x6d6   : > { %v9532_v13 = vunpack.i.h.bf16 %v9530_v18  ;;  %v9531_v5 = vunpack.i.l.bf16 %v9530_v18  ;;  %v9649_v18 = vld [vmem:[%s13284_s27 + $0x34] ss:$8 sps:$4 sm:$0xff]  }
 0x6d8   : > { %v3336_v43 = vsel %vm1774_vm3, %v3334_v15, %v9531_v5  ;;  %v3337_v42 = vsel %vm1774_vm3, %v3335_v61, %v9532_v13  ;;  %v9650_v13 = vld [vmem:[%s13284_s27 + $0x40] ss:$8 sps:$4 sm:$0xff]   ;;  %v9655_v5 = vld [vmem:[%s13284_s27 + $0x54] ss:$8 sps:$4 sm:$0xff]   ;;  %v9658_v61 = vld [vmem:[%s13284_s27 + $0x64] ss:$8 sps:$4 sm:$0xff]  }
 0x6d9   : > { %v9656_v15 = vld [vmem:[%s13284_s27 + $0x60] ss:$8 sps:$4 sm:$0xff]  }
 0x6fc   : > { %v9535_v34 = vpop.permute.xlu1 %9534 }
 0x6fd   : > { %v9537_v35 = vunpack.i.h.bf16 %v9535_v34  ;;  %v9536_v31 = vunpack.i.l.bf16 %v9535_v34  ;;  %v9653_v34 = vld [vmem:[%s13284_s27 + $0x50] ss:$8 sps:$4 sm:$0xff]  }
 0x6ff   : > { %v3338_v29 = vsel %vm1777_vm4, %v3336_v43, %v9536_v31  ;;  %v3339_v24 = vsel %vm1777_vm4, %v3337_v42, %v9537_v35  ;;  %v9661_v35 = vld [vmem:[%s13284_s27 + $0x74] ss:$8 sps:$4 sm:$0xff]   ;;  %v9659_v31 = vld [vmem:[%s13284_s27 + $0x70] ss:$8 sps:$4 sm:$0xff]  }
 0x700   : > { %v3340_v52 = vpack.c.bf16 %v3339_v24, %v3338_v29 }
 0x702   : > { %9150 = vmatmul.mubr.bf16.gmra.mrb[80].mxu0 %v3340_v52 }
 0x75b   : > { %v9147_v55 = vpop.f32.mrb[76].mxu0 }
 0x75c   : > { %v3446_v3 = vpop.f32.mrb[77].mxu0  ;;  %v3455_v40 = vadd.f32 %v9147_v55, %v8318_v41 }
 0x75d   : > { %v3447_v47 = vadd.f32 %v8318_v41, %v3446_v3  ;;  %v9148_v62 = vpop.f32.mrb[78].mxu0 }
 0x75e   : > { %v3449_v0 = vpop.f32.mrb[79].mxu0  ;;  %v3479_v30 = vadd.f32 %v3455_v40, %v10631_v48  ;;  %v3458_v20 = vadd.f32 %v9148_v62, %v8318_v41 }
 0x75f   : > { %v3477_v46 = vadd.f32 %v3447_v47, %v10621_v39  ;;  %v3450_v19 = vadd.f32 %v8318_v41, %v3449_v0 }
 0x760   : > { %v3480_v57 = vadd.f32 %v3458_v20, %v10633_v49 }
 0x761   : > { %v3478_v59 = vadd.f32 %v3450_v19, %v10623_v12  ;;  %3486 = vadd.xlane.f32.xlu0 %v3477_v46 }
 0x763   : > { %3488 = vadd.xlane.f32.xlu1 %v3478_v59 }
 0x765   : > { %3490 = vadd.xlane.f32.xlu0 %v3479_v30 }
 0x769   : > { %3492 = vadd.xlane.f32.xlu0 %v3480_v57 }
 0x7d5   : > { %v9151_v44 = vpop.f32.mrb[80].mxu0 }
 0x7d6   : > { %v3462_v51 = vpop.f32.mrb[81].mxu0  ;;  %v3471_v10 = vadd.f32 %v9151_v44, %v8318_v41 }
 0x7d7   : > { %v3463_v45 = vadd.f32 %v8318_v41, %v3462_v51  ;;  %v9152_v37 = vpop.f32.mrb[82].mxu0 }
 0x7d8   : > { %v3465_v56 = vpop.f32.mrb[83].mxu0  ;;  %v3474_v27 = vadd.f32 %v9152_v37, %v8318_v41  ;;  %v3483_v1 = vadd.f32 %v3471_v10, %v10650_v4  ;;  %v9646_v4 = vld [vmem:[%s13284_s27 + $0x24] ss:$8 sps:$4 sm:$0xff]  }
 0x7d9   : > { %v11390_v54 = vadd.f32 %v3463_v45, %v10638_v28  ;;  %v3466_v39 = vadd.f32 %v8318_v41, %v3465_v56  ;;  %v9640_v28 = vld [vmem:[%s13284_s27 + $0x4] ss:$8 sps:$4 sm:$0xff]  }
 0x7da   : > { %3710 = vmatprep.subr.bf16.mxu1 %v9640_v28  ;;  %v3484_v58 = vadd.f32 %v3474_v27, %v10652_v6  ;;  %v9644_v6 = vld [vmem:[%s13284_s27 + $0x20] ss:$8 sps:$4 sm:$0xff]  }
 0x7db   : > { %v11393_v12 = vadd.f32 %v3466_v39, %v10640_v53  ;;  %3494 = vadd.xlane.f32.xlu0 %v11390_v54  ;;  %3711 = vmatpush1.bf16.msra.mxu1 %v9638_v33 }
 0x7dc   : > { %3712 = vmatprep.subr.bf16.mxu1 %v9643_v63 }
 0x7dd   : > { %3496 = vadd.xlane.f32.xlu1 %v11393_v12 }
 0x7df   : > { %3713 = vmatpush1.bf16.msra.mxu1 %v9641_v60 }
 0x7e0   : > { %3714 = vmatprep.subr.bf16.mxu1 %v9646_v4 }
 0x7e3   : > { %3715 = vmatpush1.bf16.msra.mxu1 %v9644_v6 }
 0x7e4   : > { %3716 = vmatprep.subr.bf16.mxu1 %v9649_v18 }
 0x7e7   : > { %3717 = vmatpush1.bf16.msra.mxu1 %v9647_v14  ;;  %v9664_v14 = vld [vmem:[%s13182_s10 + $0x48] sm:$0xff]  }
 0x7e8   : > { %3718 = vmatprep.subr.bf16.mxu1 %v9652_v21  ;;  %v9665_v21 = vld [vmem:[%s13182_s10 + $0x8] sm:$0xff]  }
 0x7eb   : > { %3719 = vmatpush1.bf16.msra.mxu1 %v9650_v13  ;;  %v9666_v13 = vld [vmem:[%s13182_s10 + $0x50] sm:$0xff]  }
 0x7ec   : > { %3720 = vmatprep.subr.bf16.mxu1 %v9655_v5 }
 0x7ee   : > { %v3487_v48 = vpop.xlane.xlu0 %3486 }
 0x7ef   : > { %v3502_v2 = vmul.f32 0.0078125, %v3487_v48  ;;  %3721 = vmatpush1.bf16.msra.mxu1 %v9653_v34  ;;  %v9667_v34 = vld [vmem:[%s13182_s10 + $0x10] sm:$0xff]  }
 0x7f0   : > { %v3489_v49 = vpop.xlane.xlu1 %3488  ;;  %3722 = vmatprep.subr.bf16.mxu1 %v9658_v61 }
 0x7f1   : > { %v11397_v50 = vsub.f32 %v3477_v46, %v3502_v2  ;;  %v3503_v25 = vmul.f32 0.0078125, %v3489_v49  ;;  %v3485_v2 = vld [vmem:[%s13285_s21] sm:$0x3] }
 0x7f2   : > { %v3491_v53 = vpop.xlane.xlu0 %3490 }
 0x7f3   : > { %v11408_v16 = vsub.f32 %v3478_v59, %v3503_v25  ;;  %v3504_v26 = vmul.f32 0.0078125, %v3491_v53  ;;  %v3518_v9 = vmul.f32 %v11397_v50, %v11397_v50  ;;  %3723 = vmatpush1.bf16.msra.mxu1 %v9656_v15  ;;  %v13286_v25 = vld [vmem:[#allocation16_spill] sm:$0xff] }
 0x7f4   : > { %3724 = vmatprep.subr.bf16.mxu1 %v9661_v35  ;;  %v11485_v33 = vrot.slane %v3485_v2, %v13286_v25 }
 0x7f5   : > { %3526 = vadd.xlane.f32.xlu0 %v3518_v9  ;;  %v3519_v36 = vmul.f32 %v11408_v16, %v11408_v16  ;;  %v11418_v11 = vsub.f32 %v3479_v30, %v3504_v26  ;;  %v13287_v9 = vld [vmem:[#allocation17_spill] sm:$0xff] }
 0x7f6   : > { %v3493_v32 = vpop.xlane.xlu0 %3492  ;;  %v11491_v60 = vrot.slane %v3485_v2, %v13287_v9 }
 0x7f7   : > { %v3505_v17 = vmul.f32 0.0078125, %v3493_v32  ;;  %3528 = vadd.xlane.f32.xlu1 %v3519_v36  ;;  %v3520_v23 = vmul.f32 %v11418_v11, %v11418_v11  ;;  %3725 = vmatpush1.bf16.msra.mxu1 %v9659_v31 }
 0x7f9   : > { %v11421_v7 = vsub.f32 %v3480_v57, %v3505_v17  ;;  %3498 = vadd.xlane.f32.xlu0 %v3483_v1 }
 0x7fb   : > { %3500 = vadd.xlane.f32.xlu1 %v3484_v58  ;;  %v3521_v38 = vmul.f32 %v11421_v7, %v11421_v7 }
 0x7fd   : > { %3530 = vadd.xlane.f32.xlu0 %v3520_v23 }
 0x7ff   : > { %3532 = vadd.xlane.f32.xlu1 %v3521_v38 }
 0x868   : > { %v3495_v43 = vpop.xlane.xlu0 %3494 }
 0x869   : > { %v3506_v42 = vmul.f32 0.0078125, %v3495_v43  ;;  %v9668_v43 = vld [vmem:[%s13182_s10 + $0x58] sm:$0xff]  }
 0x86a   : > { %v3497_v29 = vpop.xlane.xlu1 %3496 }
 0x86b   : > { %v11464_v24 = vsub.f32 %v11390_v54, %v3506_v42  ;;  %v3507_v52 = vmul.f32 0.0078125, %v3497_v29  ;;  %v9669_v42 = vld [vmem:[%s13182_s10 + $0x18] sm:$0xff]  }
 0x86d   : > { %v11467_v41 = vsub.f32 %v11393_v12, %v3507_v52  ;;  %v3522_v55 = vmul.f32 %v11464_v24, %v11464_v24  ;;  %v9670_v52 = vld [vmem:[%s13182_s10 + $0x60] sm:$0xff]  }
 0x86f   : > { %3534 = vadd.xlane.f32.xlu0 %v3522_v55  ;;  %v3523_v3 = vmul.f32 %v11467_v41, %v11467_v41  ;;  %v9671_v55 = vld [vmem:[%s13182_s10 + $0x20] sm:$0xff]  }
 0x871   : > { %3536 = vadd.xlane.f32.xlu1 %v3523_v3  ;;  %v9672_v3 = vld [vmem:[%s13182_s10 + $0x68] sm:$0xff]  }
 0x882   : > { %v3527_v47 = vpop.xlane.xlu0 %3526 }
 0x883   : > { %v3542_v62 = vmul.f32 0.0078125, %v3527_v47  ;;  %v9673_v47 = vld [vmem:[%s13182_s10 + $0x28] sm:$0xff]  }
 0x884   : > { %v3529_v0 = vpop.xlane.xlu1 %3528 }
 0x885   : > { %v3550_v40 = vadd.f32 1e-05, %v3542_v62  ;;  %v3543_v46 = vmul.f32 0.0078125, %v3529_v0  ;;  %v9674_v0 = vld [vmem:[%s13182_s10 + $0x70] sm:$0xff]  }
 0x886   : > { %v3499_v19 = vpop.xlane.xlu0 %3498 }
 0x887   : > { %9958 = vrsqrt.f32 %v3550_v40  ;;  %v3551_v59 = vadd.f32 1e-05, %v3543_v46  ;;  %v3508_v30 = vmul.f32 0.0078125, %v3499_v19  ;;  %v9675_v46 = vld [vmem:[%s13182_s10 + $0x30] sm:$0xff]  }
 0x888   : > { %v3501_v20 = vpop.xlane.xlu1 %3500 }
 0x889   : > { %9960 = vrsqrt.f32 %v3551_v59  ;;  %v11473_v57 = vsub.f32 %v3483_v1, %v3508_v30  ;;  %v3509_v44 = vmul.f32 0.0078125, %v3501_v20  ;;  %v9676_v20 = vld [vmem:[%s13182_s10 + $0x78] sm:$0xff]  }
 0x88a   : > { %v3531_v51 = vpop.xlane.xlu0 %3530 }
 0x88b   : > { %v11475_v45 = vsub.f32 %v3484_v58, %v3509_v44  ;;  %v3544_v37 = vmul.f32 0.0078125, %v3531_v51  ;;  %v3524_v56 = vmul.f32 %v11473_v57, %v11473_v57  ;;  %v9677_v44 = vld [vmem:[%s13182_s10 + $0x38] sm:$0xff]  }
 0x88c   : > { %v3533_v54 = vpop.xlane.xlu1 %3532 }
 0x88d   : > { %v3552_v39 = vadd.f32 1e-05, %v3544_v37  ;;  %v3545_v12 = vmul.f32 0.0078125, %v3533_v54  ;;  %3538 = vadd.xlane.f32.xlu0 %v3524_v56  ;;  %v3525_v48 = vmul.f32 %v11475_v45, %v11475_v45 }
 0x88f   : > { %9962 = vrsqrt.f32 %v3552_v39  ;;  %v3553_v49 = vadd.f32 1e-05, %v3545_v12  ;;  %3540 = vadd.xlane.f32.xlu1 %v3525_v48 }
 0x891   : > { %v9959_v28 = vpop.eup %9958  ;;  %9964 = vrsqrt.f32 %v3553_v49 }
 0x892   : > { %v3566_v53 = vmul.f32 %v9959_v28, %v11397_v50 }
 0x893   : > { %v9961_v63 = vpop.eup %9960 }
 0x894   : > { %v3567_v10 = vmul.f32 %v9961_v63, %v11408_v16  ;;  %v3578_v26 = vmul.f32 %v11485_v33, %v3566_v53 }
 0x896   : > { %v3579_v27 = vmul.f32 %v11485_v33, %v3567_v10  ;;  %v11495_v36 = vadd.f32 %v11491_v60, %v3578_v26 }
 0x898   : > { %v11498_v32 = vadd.f32 %v11491_v60, %v3579_v27 }
 0x899   : > { %v9963_v1 = vpop.eup %9962 }
 0x89a   : > { %v3598_v50 = vpack.c.bf16 %v11498_v32, %v11495_v36  ;;  %v3568_v17 = vmul.f32 %v9963_v1, %v11418_v11  ;;  %v9662_v11 = vld [vmem:[%s13182_s10 + $0x40] sm:$0xff]  }
 0x89b   : > { %v9965_v16 = vpop.eup %9964  ;;  %8705 = vmatprep.subr.bf16.mxu0 %v9662_v11 }
 0x89c   : > { %3743 = vmatmul.mubr.bf16.vlgmr.msra.gmra.mrb[76].mxu1 %v3598_v50  ;;  %v3569_v58 = vmul.f32 %v9965_v16, %v11421_v7  ;;  %v3580_v23 = vmul.f32 %v11485_v33, %v3568_v17  ;;  %v9663_v7 = vld [vmem:[%s13182_s10] sm:$0xff]  }
 0x89d   : > { %3752 = vmatprep.mubr.bf16.mxu1 %v13277_v22  ;;  %8706 = vmatpush3.bf16.msra.mxu0 %v9663_v7 }
 0x89e   : > { %v3581_v38 = vmul.f32 %v11485_v33, %v3569_v58  ;;  %v11508_v4 = vadd.f32 %v11491_v60, %v3580_v23  ;;  %8707 = vmatprep.subr.bf16.mxu0 %v9664_v14 }
 0x8a0   : > { %v11511_v6 = vadd.f32 %v11491_v60, %v3581_v38 }
 0x8a1   : > { %8708 = vmatpush3.bf16.msra.mxu0 %v9665_v21 }
 0x8a2   : > { %v3599_v18 = vpack.c.bf16 %v11511_v6, %v11508_v4  ;;  %8709 = vmatprep.subr.bf16.mxu0 %v9666_v13 }
 0x8a4   : > { %3753 = vmatmul.mubr.bf16.gmra.mrb[80].mxu1 %v3599_v18 }
 0x8a5   : > { %3762 = vmatprep.mubr.bf16.mxu1 %v13277_v22  ;;  %8710 = vmatpush3.bf16.msra.mxu0 %v9667_v34 }
 0x8a6   : > { %8711 = vmatprep.subr.bf16.mxu0 %v9668_v43 }
 0x8a9   : > { %8712 = vmatpush3.bf16.msra.mxu0 %v9669_v42 }
 0x8aa   : > { %8713 = vmatprep.subr.bf16.mxu0 %v9670_v52 }
 0x8ad   : > { %8714 = vmatpush3.bf16.msra.mxu0 %v9671_v55 }
 0x8ae   : > { %8715 = vmatprep.subr.bf16.mxu0 %v9672_v3 }
 0x8b1   : > { %8716 = vmatpush3.bf16.msra.mxu0 %v9673_v47 }
 0x8b2   : > { %8717 = vmatprep.subr.bf16.mxu0 %v9674_v0 }
 0x8b5   : > { %8718 = vmatpush3.bf16.msra.mxu0 %v9675_v46 }
 0x8b6   : > { %8719 = vmatprep.subr.bf16.mxu0 %v9676_v20 }
 0x8b9   : > { %8720 = vmatpush3.bf16.msra.mxu0 %v9677_v44 }
 0x8ba   : > { %9189 = vmatprep.subr.bf16.mxu0 %v13276_v8 }
 0x8fc   : > { %v3535_v5 = vpop.xlane.xlu0 %3534 }
 0x8fd   : > { %v3546_v61 = vmul.f32 0.0078125, %v3535_v5 }
 0x8fe   : > { %v3537_v15 = vpop.xlane.xlu1 %3536 }
 0x8ff   : > { %v3554_v35 = vadd.f32 1e-05, %v3546_v61  ;;  %v3547_v31 = vmul.f32 0.0078125, %v3537_v15 }
 0x901   : > { %9966 = vrsqrt.f32 %v3554_v35  ;;  %v3555_v29 = vadd.f32 1e-05, %v3547_v31 }
 0x903   : > { %9968 = vrsqrt.f32 %v3555_v29 }
 0x90b   : > { %v9967_v62 = vpop.eup %9966 }
 0x90c   : > { %v3570_v40 = vmul.f32 %v9967_v62, %v11464_v24 }
 0x90d   : > { %v9969_v19 = vpop.eup %9968 }
 0x90e   : > { %v3571_v59 = vmul.f32 %v9969_v19, %v11467_v41  ;;  %v3582_v30 = vmul.f32 %v11485_v33, %v3570_v40 }
 0x910   : > { %v3583_v24 = vmul.f32 %v11485_v33, %v3571_v59  ;;  %v11569_v51 = vadd.f32 %v11491_v60, %v3582_v30 }
 0x912   : > { %v11572_v37 = vadd.f32 %v11491_v60, %v3583_v24 }
 0x914   : > { %v3600_v41 = vpack.c.bf16 %v11572_v37, %v11569_v51 }
 0x916   : > { %3763 = vmatmul.mubr.bf16.gmra.mrb[84].mxu1 %v3600_v41 }
 0x917   : > { %3772 = vmatprep.mubr.bf16.mxu1 %v13277_v22 }
 0x91a   : > { %v3539_v56 = vpop.xlane.xlu0 %3538 }
 0x91b   : > { %v3548_v54 = vmul.f32 0.0078125, %v3539_v56 }
 0x91c   : > { %v3541_v39 = vpop.xlane.xlu1 %3540 }
 0x91d   : > { %v3556_v12 = vadd.f32 1e-05, %v3548_v54  ;;  %v3549_v48 = vmul.f32 0.0078125, %v3541_v39 }
 0x91f   : > { %9970 = vrsqrt.f32 %v3556_v12  ;;  %v3557_v2 = vadd.f32 1e-05, %v3549_v48 }
 0x921   : > { %9972 = vrsqrt.f32 %v3557_v2 }
 0x929   : > { %v9971_v49 = vpop.eup %9970 }
 0x92a   : > { %v3572_v28 = vmul.f32 %v9971_v49, %v11473_v57  ;;  %v3618_v57 = vld [vmem:[%s13288_s24] sm:$0x3] }
 0x92b   : > { %v9973_v53 = vpop.eup %9972 }
 0x92c   : > { %v3573_v63 = vmul.f32 %v9973_v53, %v11475_v45  ;;  %v3584_v10 = vmul.f32 %v11485_v33, %v3572_v28  ;;  %v11595_v45 = vrot.slane %v3618_v57, %v13286_v25 }
 0x92e   : > { %v3585_v26 = vmul.f32 %v11485_v33, %v3573_v63  ;;  %v11583_v27 = vadd.f32 %v11491_v60, %v3584_v10  ;;  %v11598_v33 = vrot.slane %v3618_v57, %v13287_v9 }
 0x930   : > { %v11586_v1 = vadd.f32 %v11491_v60, %v3585_v26 }
 0x932   : > { %v3601_v50 = vpack.c.bf16 %v11586_v1, %v11583_v27 }
 0x934   : > { %3773 = vmatmul.mubr.bf16.gmra.mrb[88].mxu1 %v3601_v50 }
 0x935   : > { %4471 = vmatprep.mubr.bf16.mxu1 %v13277_v22 }
 0x96f   : > { %v3744_v17 = vpop.f32.mrb[76].mxu1 }
 0x970   : > { %v11601_v60 = vadd.f32 %v3744_v17, %v11595_v45  ;;  %v3746_v16 = vpop.f32.mrb[77].mxu1 }
 0x971   : > { %v11604_v58 = vadd.f32 %v3746_v16, %v11598_v33  ;;  %v3748_v23 = vpop.f32.mrb[78].mxu1 }
 0x972   : > { %v3783_v38 = vmul.f32 %v11601_v60, %v11601_v60  ;;  %v11609_v18 = vadd.f32 %v3748_v23, %v11595_v45  ;;  %v3750_v11 = vpop.f32.mrb[79].mxu1 }
 0x973   : > { %v3784_v7 = vmul.f32 %v11604_v58, %v11604_v58  ;;  %v11614_v14 = vadd.f32 %v3750_v11, %v11598_v33 }
 0x974   : > { %v3799_v21 = vmul.f32 %v3783_v38, %v11601_v60  ;;  %v3785_v13 = vmul.f32 %v11609_v18, %v11609_v18 }
 0x975   : > { %v3800_v5 = vmul.f32 %v3784_v7, %v11604_v58  ;;  %v3786_v34 = vmul.f32 %v11614_v14, %v11614_v14 }
 0x976   : > { %v3815_v61 = vmul.f32 0.044715, %v3799_v21  ;;  %v3801_v15 = vmul.f32 %v3785_v13, %v11609_v18 }
 0x977   : > { %v3816_v35 = vmul.f32 0.044715, %v3800_v5  ;;  %v3802_v31 = vmul.f32 %v3786_v34, %v11614_v14  ;;  %v3754_v43 = vpop.f32.mrb[80].mxu1 }
 0x978   : > { %v3831_v42 = vadd.f32 %v3815_v61, %v11601_v60  ;;  %v3817_v29 = vmul.f32 0.044715, %v3801_v15  ;;  %v11626_v52 = vadd.f32 %v3754_v43, %v11595_v45  ;;  %v3756_v55 = vpop.f32.mrb[81].mxu1 }
 0x979   : > { %v3832_v3 = vadd.f32 %v3816_v35, %v11604_v58  ;;  %v3818_v47 = vmul.f32 0.044715, %v3802_v31  ;;  %v11630_v62 = vadd.f32 %v3756_v55, %v11598_v33  ;;  %v3758_v0 = vpop.f32.mrb[82].mxu1 }
 0x97a   : > { %v3847_v40 = vmul.f32 0.7978846, %v3831_v42  ;;  %v3833_v46 = vadd.f32 %v3817_v29, %v11609_v18  ;;  %v3787_v19 = vmul.f32 %v11626_v52, %v11626_v52  ;;  %v11636_v59 = vadd.f32 %v3758_v0, %v11595_v45  ;;  %v3760_v30 = vpop.f32.mrb[83].mxu1 }
 0x97b   : > { %v3848_v20 = vmul.f32 0.7978846, %v3832_v3  ;;  %v3834_v44 = vadd.f32 %v3818_v47, %v11614_v14  ;;  %v3788_v24 = vmul.f32 %v11630_v62, %v11630_v62  ;;  %v11642_v41 = vadd.f32 %v3760_v30, %v11598_v33 }
 0x97c   : > { %9974 = vtanh.f32 %v3847_v40  ;;  %v3849_v56 = vmul.f32 0.7978846, %v3833_v46  ;;  %v3803_v54 = vmul.f32 %v3787_v19, %v11626_v52  ;;  %v3789_v39 = vmul.f32 %v11636_v59, %v11636_v59 }
 0x97d   : > { %9976 = vtanh.f32 %v3848_v20  ;;  %v3850_v12 = vmul.f32 0.7978846, %v3834_v44  ;;  %v3804_v48 = vmul.f32 %v3788_v24, %v11630_v62  ;;  %v3790_v2 = vmul.f32 %v11642_v41, %v11642_v41 }
 0x97e   : > { %9978 = vtanh.f32 %v3849_v56  ;;  %v3819_v49 = vmul.f32 0.044715, %v3803_v54  ;;  %v3805_v28 = vmul.f32 %v3789_v39, %v11636_v59 }
 0x97f   : > { %9980 = vtanh.f32 %v3850_v12  ;;  %v3820_v53 = vmul.f32 0.044715, %v3804_v48  ;;  %v3806_v63 = vmul.f32 %v3790_v2, %v11642_v41 }
 0x980   : > { %v3835_v10 = vadd.f32 %v3819_v49, %v11626_v52  ;;  %v3821_v26 = vmul.f32 0.044715, %v3805_v28 }
 0x981   : > { %v3836_v50 = vadd.f32 %v3820_v53, %v11630_v62  ;;  %v3822_v57 = vmul.f32 0.044715, %v3806_v63 }
 0x982   : > { %v3851_v17 = vmul.f32 0.7978846, %v3835_v10  ;;  %v3837_v16 = vadd.f32 %v3821_v26, %v11636_v59 }
 0x983   : > { %v3852_v23 = vmul.f32 0.7978846, %v3836_v50  ;;  %v3838_v38 = vadd.f32 %v3822_v57, %v11642_v41 }
 0x984   : > { %9982 = vtanh.f32 %v3851_v17  ;;  %v3853_v11 = vmul.f32 0.7978846, %v3837_v16 }
 0x985   : > { %9984 = vtanh.f32 %v3852_v23  ;;  %v3854_v7 = vmul.f32 0.7978846, %v3838_v38 }
 0x986   : > { %v9975_v21 = vpop.eup %9974  ;;  %9986 = vtanh.f32 %v3853_v11 }
 0x987   : > { %v9977_v13 = vpop.eup %9976  ;;  %v3879_v5 = vadd.f32 1.0, %v9975_v21  ;;  %9988 = vtanh.f32 %v3854_v7 }
 0x988   : > { %v9979_v34 = vpop.eup %9978  ;;  %v3880_v61 = vadd.f32 1.0, %v9977_v13 }
 0x989   : > { %v9981_v15 = vpop.eup %9980  ;;  %v3895_v35 = vmul.f32 0.5, %v3879_v5  ;;  %v3881_v31 = vadd.f32 1.0, %v9979_v34 }
 0x98a   : > { %v3882_v43 = vadd.f32 1.0, %v9981_v15  ;;  %v3896_v42 = vmul.f32 0.5, %v3880_v61 }
 0x98b   : > { %v3897_v29 = vmul.f32 0.5, %v3881_v31  ;;  %v3911_v3 = vmul.f32 %v3895_v35, %v11601_v60 }
 0x98c   : > { %v3898_v55 = vmul.f32 0.5, %v3882_v43  ;;  %v3912_v40 = vmul.f32 %v3896_v42, %v11604_v58 }
 0x98d   : > { %v3913_v47 = vmul.f32 %v3897_v29, %v11609_v18 }
 0x98e   : > { %v9983_v0 = vpop.eup %9982  ;;  %v3914_v46 = vmul.f32 %v3898_v55, %v11614_v14 }
 0x98f   : > { %v9985_v19 = vpop.eup %9984  ;;  %v3927_v30 = vpack.c.bf16 %v3913_v47, %v3911_v3  ;;  %v3883_v20 = vadd.f32 1.0, %v9983_v0 }
 0x990   : > { %v9987_v44 = vpop.eup %9986  ;;  %v3928_v24 = vpack.c.bf16 %v3914_v46, %v3912_v40  ;;  %v3884_v56 = vadd.f32 1.0, %v9985_v19 }
 0x991   : > { %v9989_v54 = vpop.eup %9988  ;;  %v3885_v39 = vadd.f32 1.0, %v9987_v44  ;;  %v3899_v12 = vmul.f32 0.5, %v3883_v20 }
 0x992   : > { %4102 = vmatprep.mubr.bf16.mxu0 %v3928_v24  ;;  %v3886_v48 = vadd.f32 1.0, %v9989_v54  ;;  %v3900_v2 = vmul.f32 0.5, %v3884_v56 }
 0x993   : > { %4103 = vmatmul.mubr.bf16.vlgmr.msra.gmra.mrb[84].mxu0 %v3927_v30  ;;  %v3901_v60 = vmul.f32 0.5, %v3885_v39  ;;  %v3915_v49 = vmul.f32 %v3899_v12, %v11626_v52 }
 0x994   : > { %v3902_v18 = vmul.f32 0.5, %v3886_v48  ;;  %v3916_v14 = vmul.f32 %v3900_v2, %v11630_v62 }
 0x995   : > { %v3917_v58 = vmul.f32 %v3901_v60, %v11636_v59 }
 0x996   : > { %v3918_v28 = vmul.f32 %v3902_v18, %v11642_v41 }
 0x997   : > { %v3929_v53 = vpack.c.bf16 %v3917_v58, %v3915_v49 }
 0x998   : > { %v3930_v63 = vpack.c.bf16 %v3918_v28, %v3916_v14 }
 0x99a   : > { %4110 = vmatprep.mubr.bf16.mxu0 %v3930_v63 }
 0x99b   : > { %4111 = vmatmul.mubr.bf16.gmra.mrb[88].mxu0 %v3929_v53 }
 0x9e9   : > { %v3764_v10 = vpop.f32.mrb[84].mxu1 }
 0x9ea   : > { %v3765_v26 = vadd.f32 %v3764_v10, %v11595_v45  ;;  %v3766_v50 = vpop.f32.mrb[85].mxu1 }
 0x9eb   : > { %v3767_v57 = vadd.f32 %v3766_v50, %v11598_v33  ;;  %v3768_v17 = vpop.f32.mrb[86].mxu1 }
 0x9ec   : > { %v3791_v16 = vmul.f32 %v3765_v26, %v3765_v26  ;;  %v3769_v52 = vadd.f32 %v3768_v17, %v11595_v45  ;;  %v3770_v23 = vpop.f32.mrb[87].mxu1 }
 0x9ed   : > { %v3792_v59 = vmul.f32 %v3767_v57, %v3767_v57  ;;  %v3771_v62 = vadd.f32 %v3770_v23, %v11598_v33 }
 0x9ee   : > { %v3807_v38 = vmul.f32 %v3791_v16, %v3765_v26  ;;  %v3793_v41 = vmul.f32 %v3769_v52, %v3769_v52 }
 0x9ef   : > { %v3808_v11 = vmul.f32 %v3792_v59, %v3767_v57  ;;  %v3794_v7 = vmul.f32 %v3771_v62, %v3771_v62 }
 0x9f0   : > { %v3823_v21 = vmul.f32 0.044715, %v3807_v38  ;;  %v3809_v13 = vmul.f32 %v3793_v41, %v3769_v52 }
 0x9f1   : > { %v3824_v5 = vmul.f32 0.044715, %v3808_v11  ;;  %v3810_v34 = vmul.f32 %v3794_v7, %v3771_v62 }
 0x9f2   : > { %v3839_v61 = vadd.f32 %v3823_v21, %v3765_v26  ;;  %v3825_v15 = vmul.f32 0.044715, %v3809_v13 }
 0x9f3   : > { %v3840_v35 = vadd.f32 %v3824_v5, %v3767_v57  ;;  %v3826_v31 = vmul.f32 0.044715, %v3810_v34 }
 0x9f4   : > { %v3855_v43 = vmul.f32 0.7978846, %v3839_v61  ;;  %v3841_v42 = vadd.f32 %v3825_v15, %v3769_v52 }
 0x9f5   : > { %v3856_v29 = vmul.f32 0.7978846, %v3840_v35  ;;  %v3842_v55 = vadd.f32 %v3826_v31, %v3771_v62 }
 0x9f6   : > { %9990 = vtanh.f32 %v3855_v43  ;;  %v3857_v3 = vmul.f32 0.7978846, %v3841_v42 }
 0x9f7   : > { %9992 = vtanh.f32 %v3856_v29  ;;  %v3858_v47 = vmul.f32 0.7978846, %v3842_v55 }
 0x9f8   : > { %9994 = vtanh.f32 %v3857_v3 }
 0x9f9   : > { %9996 = vtanh.f32 %v3858_v47 }
 0xa00   : > { %v9991_v0 = vpop.eup %9990 }
 0xa01   : > { %v9993_v40 = vpop.eup %9992  ;;  %v3887_v46 = vadd.f32 1.0, %v9991_v0 }
 0xa02   : > { %v9995_v19 = vpop.eup %9994  ;;  %v3888_v30 = vadd.f32 1.0, %v9993_v40 }
 0xa03   : > { %v9997_v20 = vpop.eup %9996  ;;  %v3889_v44 = vadd.f32 1.0, %v9995_v19  ;;  %v3903_v24 = vmul.f32 0.5, %v3887_v46 }
 0xa04   : > { %v3890_v56 = vadd.f32 1.0, %v9997_v20  ;;  %v3904_v54 = vmul.f32 0.5, %v3888_v30 }
 0xa05   : > { %v3905_v39 = vmul.f32 0.5, %v3889_v44  ;;  %v3919_v2 = vmul.f32 %v3903_v24, %v3765_v26 }
 0xa06   : > { %v3906_v12 = vmul.f32 0.5, %v3890_v56  ;;  %v3920_v58 = vmul.f32 %v3904_v54, %v3767_v57 }
 0xa07   : > { %v3774_v48 = vpop.f32.mrb[88].mxu1  ;;  %v3921_v60 = vmul.f32 %v3905_v39, %v3769_v52 }
 0xa08   : > { %v3775_v18 = vadd.f32 %v3774_v48, %v11595_v45  ;;  %v3776_v49 = vpop.f32.mrb[89].mxu1  ;;  %v3922_v14 = vmul.f32 %v3906_v12, %v3771_v62 }
 0xa09   : > { %v3777_v28 = vadd.f32 %v3776_v49, %v11598_v33  ;;  %v3778_v53 = vpop.f32.mrb[90].mxu1  ;;  %v3931_v63 = vpack.c.bf16 %v3921_v60, %v3919_v2  ;;  %v8343_v2 = vld [vmem:[%s13183_s11] ss:$0 sm:$0xff] }
 0xa0a   : > { %v3795_v10 = vmul.f32 %v3775_v18, %v3775_v18  ;;  %v3779_v50 = vadd.f32 %v3778_v53, %v11595_v45  ;;  %v3780_v17 = vpop.f32.mrb[91].mxu1  ;;  %v3932_v16 = vpack.c.bf16 %v3922_v14, %v3920_v58 }
 0xa0b   : > { %v3796_v23 = vmul.f32 %v3777_v28, %v3777_v28  ;;  %v3781_v59 = vadd.f32 %v3780_v17, %v11598_v33 }
 0xa0c   : > { %v3811_v38 = vmul.f32 %v3795_v10, %v3775_v18  ;;  %v3797_v26 = vmul.f32 %v3779_v50, %v3779_v50  ;;  %4118 = vmatprep.mubr.bf16.mxu0 %v3932_v16 }
 0xa0d   : > { %v3812_v52 = vmul.f32 %v3796_v23, %v3777_v28  ;;  %v3798_v41 = vmul.f32 %v3781_v59, %v3781_v59  ;;  %4119 = vmatmul.mubr.bf16.gmra.mrb[92].mxu0 %v3931_v63 }
 0xa0e   : > { %v3827_v57 = vmul.f32 0.044715, %v3811_v38  ;;  %v3813_v62 = vmul.f32 %v3797_v26, %v3779_v50 }
 0xa0f   : > { %v3828_v11 = vmul.f32 0.044715, %v3812_v52  ;;  %v3814_v7 = vmul.f32 %v3798_v41, %v3781_v59 }
 0xa10   : > { %v3843_v21 = vadd.f32 %v3827_v57, %v3775_v18  ;;  %v3829_v13 = vmul.f32 0.044715, %v3813_v62 }
 0xa11   : > { %v3844_v5 = vadd.f32 %v3828_v11, %v3777_v28  ;;  %v3830_v34 = vmul.f32 0.044715, %v3814_v7 }
 0xa12   : > { %v3859_v45 = vmul.f32 0.7978846, %v3843_v21  ;;  %v3845_v61 = vadd.f32 %v3829_v13, %v3779_v50 }
 0xa13   : > { %v3860_v15 = vmul.f32 0.7978846, %v3844_v5  ;;  %v3846_v35 = vadd.f32 %v3830_v34, %v3781_v59 }
 0xa14   : > { %9998 = vtanh.f32 %v3859_v45  ;;  %v3861_v33 = vmul.f32 0.7978846, %v3845_v61 }
 0xa15   : > { %10000 = vtanh.f32 %v3860_v15  ;;  %v3862_v31 = vmul.f32 0.7978846, %v3846_v35 }
 0xa16   : > { %10002 = vtanh.f32 %v3861_v33 }
 0xa17   : > { %10004 = vtanh.f32 %v3862_v31  ;;  %v9678_v31 = vld [vmem:[%s13269_s0 + $0xc0] ss:$12 sps:$4 sm:$0xff]  }
 0xa1e   : > { %v9999_v43 = vpop.eup %9998 }
 0xa1f   : > { %v10001_v42 = vpop.eup %10000  ;;  %v3891_v29 = vadd.f32 1.0, %v9999_v43 }
 0xa20   : > { %v10003_v55 = vpop.eup %10002  ;;  %v3892_v3 = vadd.f32 1.0, %v10001_v42 }
 0xa21   : > { %v10005_v47 = vpop.eup %10004  ;;  %v3893_v0 = vadd.f32 1.0, %v10003_v55  ;;  %v3907_v40 = vmul.f32 0.5, %v3891_v29 }
 0xa22   : > { %v3894_v46 = vadd.f32 1.0, %v10005_v47  ;;  %v3908_v19 = vmul.f32 0.5, %v3892_v3 }
 0xa23   : > { %v3909_v30 = vmul.f32 0.5, %v3893_v0  ;;  %v3923_v44 = vmul.f32 %v3907_v40, %v3775_v18  ;;  %v9681_v0 = vld [vmem:[%s13269_s0 + $0xd8] ss:$12 sps:$4 sm:$0xff]  }
 0xa24   : > { %v3910_v20 = vmul.f32 0.5, %v3894_v46  ;;  %v3924_v56 = vmul.f32 %v3908_v19, %v3777_v28 }
 0xa25   : > { %v3925_v24 = vmul.f32 %v3909_v30, %v3779_v50 }
 0xa26   : > { %v3926_v54 = vmul.f32 %v3910_v20, %v3781_v59 }
 0xa27   : > { %v3933_v39 = vpack.c.bf16 %v3925_v24, %v3923_v44 }
 0xa28   : > { %v3934_v12 = vpack.c.bf16 %v3926_v54, %v3924_v56 }
 0xa2a   : > { %4126 = vmatprep.mubr.bf16.mxu0 %v3934_v12 }
 0xa2b   : > { %4127 = vmatmul.mubr.bf16.gmra.mrb[96].mxu0 %v3933_v39 }
 0xa2c   : > { %9191 = vmatprep.mubr.msk.bf16.mxu0 %vm10296_vm0, %v13276_v8 }
 0xa66   : > { %v8721_v48 = vpop.f32.mrb[84].mxu0 }
 0xa67   : > { %v8722_v60 = vpop.f32.mrb[85].mxu0 }
 0xa68   : > { %v8723_v49 = vadd.f32 %v8722_v60, %v8721_v48  ;;  %v8724_v58 = vpop.f32.mrb[86].mxu0 }
 0xa69   : > { %v8725_v14 = vpop.f32.mrb[87].mxu0 }
 0xa6a   : > { %v4105_v18 = vadd.f32 %v8723_v49, %v8343_v2  ;;  %v8726_v53 = vadd.f32 %v8725_v14, %v8724_v58  ;;  %v9684_v49 = vld [vmem:[%s13269_s0 + $0xf0] ss:$12 sps:$4 sm:$0xff]   ;;  %v9687_v58 = vld [vmem:[%s13269_s0 + $0x108] ss:$12 sps:$4 sm:$0xff]  }
 0xa6b   : > { %v9692_v14 = vld [vmem:[%s13269_s0 + $0x124] ss:$12 sps:$4 sm:$0xff]  }
 0xa6c   : > { %v4108_v28 = vadd.f32 %v8726_v53, %v8343_v2  ;;  %v4135_v63 = vadd.f32 %v4105_v18, %v11495_v36  ;;  %v9690_v18 = vld [vmem:[%s13269_s0 + $0x120] ss:$12 sps:$4 sm:$0xff]   ;;  %v9695_v53 = vld [vmem:[%s13269_s0 + $0x13c] ss:$12 sps:$4 sm:$0xff]  }
 0xa6e   : > { %4144 = vadd.xlane.f32.xlu0 %v4135_v63  ;;  %v8727_v10 = vpop.f32.mrb[88].mxu0  ;;  %v4136_v50 = vadd.f32 %v4108_v28, %v11498_v32  ;;  %v9693_v28 = vld [vmem:[%s13269_s0 + $0x138] ss:$12 sps:$4 sm:$0xff]  }
 0xa6f   : > { %v8728_v17 = vpop.f32.mrb[89].mxu0 }
 0xa70   : > { %v8729_v16 = vadd.f32 %v8728_v17, %v8727_v10  ;;  %4146 = vadd.xlane.f32.xlu1 %v4136_v50  ;;  %v8730_v23 = vpop.f32.mrb[90].mxu0  ;;  %v9696_v10 = vld [vmem:[%s13269_s0 + $0x150] ss:$12 sps:$4 sm:$0xff]   ;;  %v9699_v17 = vld [vmem:[%s13269_s0 + $0x168] ss:$12 sps:$4 sm:$0xff]  }
 0xa71   : > { %v8731_v59 = vpop.f32.mrb[91].mxu0 }
 0xa72   : > { %v4113_v38 = vadd.f32 %v8729_v16, %v8343_v2  ;;  %v8732_v26 = vadd.f32 %v8731_v59, %v8730_v23 }
 0xa74   : > { %v4116_v52 = vadd.f32 %v8732_v26, %v8343_v2  ;;  %v4137_v41 = vadd.f32 %v4113_v38, %v11508_v4 }
 0xa76   : > { %4148 = vadd.xlane.f32.xlu0 %v4137_v41  ;;  %v4138_v57 = vadd.f32 %v4116_v52, %v11511_v6 }
 0xa78   : > { %4150 = vadd.xlane.f32.xlu1 %v4138_v57 }
 0xae0   : > { %v8733_v62 = vpop.f32.mrb[92].mxu0 }
 0xae1   : > { %v8734_v36 = vpop.f32.mrb[93].mxu0 }
 0xae2   : > { %v8735_v11 = vadd.f32 %v8734_v36, %v8733_v62  ;;  %v8736_v7 = vpop.f32.mrb[94].mxu0 }
 0xae3   : > { %v8737_v21 = vpop.f32.mrb[95].mxu0 }
 0xae4   : > { %v4121_v32 = vadd.f32 %v8735_v11, %v8343_v2  ;;  %v8738_v13 = vadd.f32 %v8737_v21, %v8736_v7 }
 0xae6   : > { %v4124_v5 = vadd.f32 %v8738_v13, %v8343_v2  ;;  %v11682_v34 = vadd.f32 %v4121_v32, %v11569_v51  ;;  %v9680_v51 = vld [vmem:[%s13269_s0 + $0xc4] ss:$12 sps:$4 sm:$0xff]  }
 0xae7   : > { %4439 = vmatprep.subr.bf16.mxu1 %v9680_v51  ;;  %v4143_v51 = vld [vmem:[%s13184_s12] sm:$0x3] }
 0xae8   : > { %4152 = vadd.xlane.f32.xlu0 %v11682_v34  ;;  %v11686_v45 = vadd.f32 %v4124_v5, %v11572_v37  ;;  %v9683_v37 = vld [vmem:[%s13269_s0 + $0xdc] ss:$12 sps:$4 sm:$0xff]   ;;  %4440 = vmatpush1.bf16.msra.mxu1 %v9678_v31 }
 0xae9   : > { %4441 = vmatprep.subr.bf16.mxu1 %v9683_v37 }
 0xaea   : > { %4154 = vadd.xlane.f32.xlu1 %v11686_v45 }
 0xaec   : > { %4442 = vmatpush1.bf16.msra.mxu1 %v9681_v0 }
 0xafb   : > { %v4145_v4 = vpop.xlane.xlu0 %4144 }
 0xafc   : > { %v4160_v6 = vmul.f32 0.0078125, %v4145_v4 }
 0xafd   : > { %v4147_v61 = vpop.xlane.xlu1 %4146 }
 0xafe   : > { %v11689_v15 = vsub.f32 %v4135_v63, %v4160_v6  ;;  %v4161_v35 = vmul.f32 0.0078125, %v4147_v61  ;;  %v8739_v33 = vpop.f32.mrb[96].mxu0  ;;  %v9698_v63 = vld [vmem:[%s13269_s0 + $0x154] ss:$12 sps:$4 sm:$0xff]  }
 0xaff   : > { %v8740_v43 = vpop.f32.mrb[97].mxu0 }
 0xb00   : > { %v11700_v42 = vsub.f32 %v4136_v50, %v4161_v35  ;;  %v8741_v29 = vadd.f32 %v8740_v43, %v8739_v33  ;;  %v8742_v55 = vpop.f32.mrb[98].mxu0  ;;  %v4176_v3 = vmul.f32 %v11689_v15, %v11689_v15  ;;  %v9701_v50 = vld [vmem:[%s13269_s0 + $0x16c] ss:$12 sps:$4 sm:$0xff]  }
 0xb01   : > { %v8743_v47 = vpop.f32.mrb[99].mxu0 }
 0xb02   : > { %v4129_v40 = vadd.f32 %v8741_v29, %v8343_v2  ;;  %v8744_v46 = vadd.f32 %v8743_v47, %v8742_v55  ;;  %4184 = vadd.xlane.f32.xlu0 %v4176_v3  ;;  %v4177_v19 = vmul.f32 %v11700_v42, %v11700_v42  ;;  %v11777_v3 = vrot.slane %v4143_v51, %v13286_v25 }
 0xb03   : > { %v4149_v30 = vpop.xlane.xlu0 %4148 }
 0xb04   : > { %v4132_v20 = vadd.f32 %v8744_v46, %v8343_v2  ;;  %v4162_v44 = vmul.f32 0.0078125, %v4149_v30  ;;  %4186 = vadd.xlane.f32.xlu1 %v4177_v19  ;;  %v4141_v24 = vadd.f32 %v4129_v40, %v11583_v27  ;;  %v9686_v27 = vld [vmem:[%s13269_s0 + $0xf4] ss:$12 sps:$4 sm:$0xff]   ;;  %v11783_v30 = vrot.slane %v4143_v51, %v13287_v9 }
 0xb05   : > { %v4151_v56 = vpop.xlane.xlu1 %4150  ;;  %4443 = vmatprep.subr.bf16.mxu1 %v9686_v27 }
 0xb06   : > { %v11710_v54 = vsub.f32 %v4137_v41, %v4162_v44  ;;  %v4163_v39 = vmul.f32 0.0078125, %v4151_v56  ;;  %4156 = vadd.xlane.f32.xlu0 %v4141_v24  ;;  %v4142_v12 = vadd.f32 %v4132_v20, %v11586_v1  ;;  %4444 = vmatpush1.bf16.msra.mxu1 %v9684_v49  ;;  %v9689_v1 = vld [vmem:[%s13269_s0 + $0x10c] ss:$12 sps:$4 sm:$0xff]  }
 0xb07   : > { %4445 = vmatprep.subr.bf16.mxu1 %v9689_v1  ;;  %v9704_v1 = vld [vmem:[%s13269_s0 + $0xf8] ss:$12 sps:$4 sm:$0xff]  }
 0xb08   : > { %v11713_v48 = vsub.f32 %v4138_v57, %v4163_v39  ;;  %4158 = vadd.xlane.f32.xlu1 %v4142_v12  ;;  %v4178_v60 = vmul.f32 %v11710_v54, %v11710_v54 }
 0xb0a   : > { %4188 = vadd.xlane.f32.xlu0 %v4178_v60  ;;  %v4179_v2 = vmul.f32 %v11713_v48, %v11713_v48  ;;  %4446 = vmatpush1.bf16.msra.mxu1 %v9687_v58 }
 0xb0b   : > { %4447 = vmatprep.subr.bf16.mxu1 %v9692_v14  ;;  %v9705_v14 = vld [vmem:[%s13269_s0 + $0x110] ss:$12 sps:$4 sm:$0xff]  }
 0xb0c   : > { %4190 = vadd.xlane.f32.xlu1 %v4179_v2  ;;  %v9702_v2 = vld [vmem:[%s13269_s0 + $0xc8] ss:$12 sps:$4 sm:$0xff]  }
 0xb0e   : > { %4448 = vmatpush1.bf16.msra.mxu1 %v9690_v18  ;;  %v9706_v18 = vld [vmem:[%s13269_s0 + $0x128] ss:$12 sps:$4 sm:$0xff]  }
 0xb0f   : > { %4449 = vmatprep.subr.bf16.mxu1 %v9695_v53  ;;  %v9707_v53 = vld [vmem:[%s13269_s0 + $0x140] ss:$12 sps:$4 sm:$0xff]  }
 0xb12   : > { %4450 = vmatpush1.bf16.msra.mxu1 %v9693_v28  ;;  %v9708_v28 = vld [vmem:[%s13269_s0 + $0x158] ss:$12 sps:$4 sm:$0xff]  }
 0xb13   : > { %4451 = vmatprep.subr.bf16.mxu1 %v9698_v63  ;;  %v9709_v63 = vld [vmem:[%s13269_s0 + $0x170] ss:$12 sps:$4 sm:$0xff]  }
 0xb16   : > { %4452 = vmatpush1.bf16.msra.mxu1 %v9696_v10 }
 0xb17   : > { %4453 = vmatprep.subr.bf16.mxu1 %v9701_v50 }
 0xb1a   : > { %4454 = vmatpush1.bf16.msra.mxu1 %v9699_v17 }
 0xb1b   : > { %9153 = vmatprep.subr.bf16.mxu1 %v9702_v2 }
 0xb75   : > { %v4153_v16 = vpop.xlane.xlu0 %4152 }
 0xb76   : > { %v4164_v23 = vmul.f32 0.0078125, %v4153_v16 }
 0xb77   : > { %v4155_v59 = vpop.xlane.xlu1 %4154 }
 0xb78   : > { %v11756_v38 = vsub.f32 %v11682_v34, %v4164_v23  ;;  %v4165_v26 = vmul.f32 0.0078125, %v4155_v59 }
 0xb7a   : > { %v11759_v52 = vsub.f32 %v11686_v45, %v4165_v26  ;;  %v4180_v41 = vmul.f32 %v11756_v38, %v11756_v38 }
 0xb7c   : > { %4192 = vadd.xlane.f32.xlu0 %v4180_v41  ;;  %v4181_v57 = vmul.f32 %v11759_v52, %v11759_v52 }
 0xb7e   : > { %4194 = vadd.xlane.f32.xlu1 %v4181_v57 }
 0xb8f   : > { %v4185_v62 = vpop.xlane.xlu0 %4184 }
 0xb90   : > { %v4200_v36 = vmul.f32 0.0078125, %v4185_v62 }
 0xb91   : > { %v4187_v11 = vpop.xlane.xlu1 %4186 }
 0xb92   : > { %v4208_v7 = vadd.f32 1e-05, %v4200_v36  ;;  %v4201_v21 = vmul.f32 0.0078125, %v4187_v11 }
 0xb93   : > { %v4157_v32 = vpop.xlane.xlu0 %4156 }
 0xb94   : > { %10006 = vrsqrt.f32 %v4208_v7  ;;  %v4209_v13 = vadd.f32 1e-05, %v4201_v21  ;;  %v4166_v5 = vmul.f32 0.0078125, %v4157_v32 }
 0xb95   : > { %v4159_v34 = vpop.xlane.xlu1 %4158 }
 0xb96   : > { %10008 = vrsqrt.f32 %v4209_v13  ;;  %v11765_v45 = vsub.f32 %v4141_v24, %v4166_v5  ;;  %v4167_v4 = vmul.f32 0.0078125, %v4159_v34 }
 0xb97   : > { %v4189_v6 = vpop.xlane.xlu0 %4188 }
 0xb98   : > { %v11767_v61 = vsub.f32 %v4142_v12, %v4167_v4  ;;  %v4202_v35 = vmul.f32 0.0078125, %v4189_v6  ;;  %v4182_v33 = vmul.f32 %v11765_v45, %v11765_v45 }
 0xb99   : > { %v4191_v31 = vpop.xlane.xlu1 %4190 }
 0xb9a   : > { %v4210_v43 = vadd.f32 1e-05, %v4202_v35  ;;  %v4203_v37 = vmul.f32 0.0078125, %v4191_v31  ;;  %4196 = vadd.xlane.f32.xlu0 %v4182_v33  ;;  %v4183_v29 = vmul.f32 %v11767_v61, %v11767_v61 }
 0xb9c   : > { %10010 = vrsqrt.f32 %v4210_v43  ;;  %v4211_v55 = vadd.f32 1e-05, %v4203_v37  ;;  %4198 = vadd.xlane.f32.xlu1 %v4183_v29 }
 0xb9e   : > { %v10007_v47 = vpop.eup %10006  ;;  %10012 = vrsqrt.f32 %v4211_v55 }
 0xb9f   : > { %v4224_v0 = vmul.f32 %v10007_v47, %v11689_v15 }
 0xba0   : > { %v10009_v40 = vpop.eup %10008 }
 0xba1   : > { %v4236_v46 = vmul.f32 %v11777_v3, %v4224_v0  ;;  %v4225_v19 = vmul.f32 %v10009_v40, %v11700_v42 }
 0xba3   : > { %v4237_v20 = vmul.f32 %v11777_v3, %v4225_v19  ;;  %v11787_v44 = vadd.f32 %v11783_v30, %v4236_v46 }
 0xba5   : > { %v11790_v24 = vadd.f32 %v11783_v30, %v4237_v20 }
 0xba6   : > { %v10011_v56 = vpop.eup %10010 }
 0xba7   : > { %v11794_v15 = vpack.c.bf16 %v11790_v24, %v11787_v44  ;;  %v4226_v39 = vmul.f32 %v10011_v56, %v11710_v54 }
 0xba8   : > { %v10013_v12 = vpop.eup %10012 }
 0xba9   : > { %4472 = vmatmul.mubr.bf16.vlgmr.msra.gmra.mrb[92].mxu1 %v11794_v15  ;;  %v4227_v42 = vmul.f32 %v10013_v12, %v11713_v48  ;;  %v4238_v60 = vmul.f32 %v11777_v3, %v4226_v39  ;;  %v9703_v48 = vld [vmem:[%s13269_s0 + $0xe0] ss:$12 sps:$4 sm:$0xff]  }
 0xbaa   : > { %4481 = vmatprep.mubr.bf16.mxu1 %v13277_v22  ;;  %9154 = vmatpush3.bf16.msra.mxu1 %v9702_v2 }
 0xbab   : > { %v4239_v27 = vmul.f32 %v11777_v3, %v4227_v42  ;;  %v11806_v49 = vadd.f32 %v11783_v30, %v4238_v60  ;;  %9155 = vmatprep.subr.bf16.mxu1 %v9703_v48 }
 0xbad   : > { %v11809_v54 = vadd.f32 %v11783_v30, %v4239_v27 }
 0xbae   : > { %9156 = vmatpush3.bf16.msra.mxu1 %v9703_v48 }
 0xbaf   : > { %v4257_v58 = vpack.c.bf16 %v11809_v54, %v11806_v49  ;;  %9157 = vmatprep.subr.bf16.mxu1 %v9704_v1 }
 0xbb1   : > { %4482 = vmatmul.mubr.bf16.gmra.mrb[96].mxu1 %v4257_v58 }
 0xbb2   : > { %4491 = vmatprep.mubr.bf16.mxu1 %v13277_v22  ;;  %9158 = vmatpush3.bf16.msra.mxu1 %v9704_v1 }
 0xbb3   : > { %9159 = vmatprep.subr.bf16.mxu1 %v9705_v14 }
 0xbb6   : > { %9160 = vmatpush3.bf16.msra.mxu1 %v9705_v14 }
 0xbb7   : > { %9161 = vmatprep.subr.bf16.mxu1 %v9706_v18 }
 0xbba   : > { %9162 = vmatpush3.bf16.msra.mxu1 %v9706_v18 }
 0xbbb   : > { %9163 = vmatprep.subr.bf16.mxu1 %v9707_v53 }
 0xbbe   : > { %9164 = vmatpush3.bf16.msra.mxu1 %v9707_v53 }
 0xbbf   : > { %9165 = vmatprep.subr.bf16.mxu1 %v9708_v28 }
 0xbc2   : > { %9166 = vmatpush3.bf16.msra.mxu1 %v9708_v28 }
 0xbc3   : > { %9167 = vmatprep.subr.bf16.mxu1 %v9709_v63 }
 0xbc6   : > { %9168 = vmatpush3.bf16.msra.mxu1 %v9709_v63 }
 0xbc7   : > { %9177 = vmatprep.subr.bf16.mxu1 %v13276_v8 }
 0xc09   : > { %v4193_v10 = vpop.xlane.xlu0 %4192 }
 0xc0a   : > { %v4204_v50 = vmul.f32 0.0078125, %v4193_v10 }
 0xc0b   : > { %v4195_v17 = vpop.xlane.xlu1 %4194 }
 0xc0c   : > { %v4212_v16 = vadd.f32 1e-05, %v4204_v50  ;;  %v4205_v23 = vmul.f32 0.0078125, %v4195_v17 }
 0xc0e   : > { %10014 = vrsqrt.f32 %v4212_v16  ;;  %v4213_v59 = vadd.f32 1e-05, %v4205_v23 }
 0xc10   : > { %10016 = vrsqrt.f32 %v4213_v59 }
 0xc18   : > { %v10015_v26 = vpop.eup %10014 }
 0xc19   : > { %v4228_v41 = vmul.f32 %v10015_v26, %v11756_v38 }
 0xc1a   : > { %v10017_v57 = vpop.eup %10016 }
 0xc1b   : > { %v4229_v62 = vmul.f32 %v10017_v57, %v11759_v52  ;;  %v4240_v36 = vmul.f32 %v11777_v3, %v4228_v41 }
 0xc1d   : > { %v4241_v11 = vmul.f32 %v11777_v3, %v4229_v62  ;;  %v11841_v7 = vadd.f32 %v11783_v30, %v4240_v36 }
 0xc1f   : > { %v11844_v21 = vadd.f32 %v11783_v30, %v4241_v11 }
 0xc21   : > { %13289 = vst [vmem:[#allocation18_spill] sm:$0xff] %v11844_v21  ;;  %v4258_v32 = vpack.c.bf16 %v11844_v21, %v11841_v7 }
 0xc23   : > { %4492 = vmatmul.mubr.bf16.gmra.mrb[100].mxu1 %v4258_v32 }
 0xc24   : > { %4501 = vmatprep.mubr.bf16.mxu1 %v13277_v22 }
 0xc27   : > { %v4197_v38 = vpop.xlane.xlu0 %4196 }
 0xc28   : > { %v4206_v13 = vmul.f32 0.0078125, %v4197_v38 }
 0xc29   : > { %v4199_v5 = vpop.xlane.xlu1 %4198 }
 0xc2a   : > { %v4214_v52 = vadd.f32 1e-05, %v4206_v13  ;;  %v4207_v34 = vmul.f32 0.0078125, %v4199_v5 }
 0xc2c   : > { %10018 = vrsqrt.f32 %v4214_v52  ;;  %v4215_v4 = vadd.f32 1e-05, %v4207_v34 }
 0xc2e   : > { %10020 = vrsqrt.f32 %v4215_v4 }
 0xc36   : > { %v10019_v6 = vpop.eup %10018 }
 0xc37   : > { %v4230_v35 = vmul.f32 %v10019_v6, %v11765_v45  ;;  %v11867_v45 = vld [vmem:[%s13274_s1 + $0x3] sm:$0x7]  ;;  %s8614_s1 = sshll.u32 %s13303_s23, 6 }
 0xc38   : > { %v10021_v33 = vpop.eup %10020  ;;  %v11875_v47 = vrot.slane %v11867_v45, %v13287_v9 }
 0xc39   : > { %v4231_v31 = vmul.f32 %v10021_v33, %v11767_v61  ;;  %v4242_v51 = vmul.f32 %v11777_v3, %v4230_v35  ;;  %v11871_v61 = vrot.slane %v11867_v45, %v13286_v25 }
 0xc3b   : > { %v4243_v43 = vmul.f32 %v11777_v3, %v4231_v31  ;;  %v11854_v37 = vadd.f32 %v11783_v30, %v4242_v51 }
 0xc3d   : > { %13290 = vst [vmem:[#allocation19_spill] sm:$0xff] %v11854_v37  ;;  %v11857_v29 = vadd.f32 %v11783_v30, %v4243_v43 }
 0xc3f   : > { %13291 = vst [vmem:[#allocation20_spill] sm:$0xff] %v11857_v29  ;;  %v4259_v55 = vpack.c.bf16 %v11857_v29, %v11854_v37 }
 0xc41   : > { %4502 = vmatmul.mubr.bf16.gmra.mrb[104].mxu1 %v4259_v55 }
 0xc42   : > { %9169 = vmatprep.mubr.bf16.mxu1 %v11794_v15 }
 0xc49   : > { %9170 = vmatmul.mubr.bf16.vlgmr.msra.gmra.mrb[108].mxu1 %v4257_v58 }
 0xc4a   : > { %9173 = vmatprep.mubr.bf16.mxu1 %v4258_v32 }
 0xc51   : > { %9174 = vmatmul.mubr.bf16.gmra.mrb[112].mxu1 %v4259_v55 }
 0xc52   : > { %9179 = vmatprep.mubr.msk.bf16.mxu1 %vm10296_vm0, %v13276_v8 }
 0xc7c   : > { %v4473_v3 = vpop.f32.mrb[92].mxu1 }
 0xc7d   : > { %v4475_v0 = vpop.f32.mrb[93].mxu1  ;;  %v4474_v46 = vadd.f32 %v4473_v3, %v11871_v61 }
 0xc7e   : > { %v4477_v40 = vpop.f32.mrb[94].mxu1  ;;  %v4476_v20 = vadd.f32 %v4475_v0, %v11875_v47 }
 0xc7f   : > { %v4478_v19 = vadd.f32 %v4477_v40, %v11871_v61  ;;  %v4479_v30 = vpop.f32.mrb[95].mxu1 }
 0xc80   : > { %v4480_v56 = vadd.f32 %v4479_v30, %v11875_v47 }
 0xc81   : > { %v4577_v15 = vpack.c.bf16 %v4478_v19, %v4474_v46 }
 0xc82   : > { %v4578_v39 = vpack.c.bf16 %v4480_v56, %v4476_v20 }
 0xc83   : > { %4719 = vrot.lane.b32.xlu1 %v4577_v15, %s13281_s5 }
 0xc84   : > { %4722 = vrot.lane.b32.xlu0 %v4578_v39, %s13281_s5  ;;  %v4483_v12 = vpop.f32.mrb[96].mxu1  ;;  %v4608_v42 = vsel %vm1266_vm1, %v4578_v39, 0 }
 0xc85   : > { %v4485_v60 = vpop.f32.mrb[97].mxu1  ;;  %9178 = vmatpush3.bf16.xpose.msra.mxu1 %v4608_v42  ;;  %v4484_v27 = vadd.f32 %v4483_v12, %v11871_v61 }
 0xc86   : > { %v4487_v2 = vpop.f32.mrb[98].mxu1  ;;  %9183 = vmatprep.subr.bf16.mxu1 %v13276_v8  ;;  %v4486_v58 = vadd.f32 %v4485_v60, %v11875_v47 }
 0xc87   : > { %v4488_v48 = vadd.f32 %v4487_v2, %v11871_v61  ;;  %4844 = vrot.lane.b32.xlu1 %v4578_v39, %s13280_s8  ;;  %v4489_v1 = vpop.f32.mrb[99].mxu1 }
 0xc88   : > { %v4490_v14 = vadd.f32 %v4489_v1, %v11875_v47  ;;  %4965 = vrot.lane.b32.xlu0 %v4578_v39, %s13279_s30 }
 0xc89   : > { %v4580_v18 = vpack.c.bf16 %v4488_v48, %v4484_v27 }
 0xc8a   : > { %v4581_v53 = vpack.c.bf16 %v4490_v14, %v4486_v58 }
 0xc8b   : > { %4842 = vrot.lane.b32.xlu1 %v4577_v15, %s13280_s8 }
 0xc8c   : > { %5236 = vrot.lane.b32.xlu0 %v4581_v53, %s13281_s5  ;;  %9180 = vmatmul.mubr.msk.bf16.vlgmr.msra.gmra.mrb[116].mxu1 %vm1266_vm1, %v4577_v15  ;;  %v5122_v34 = vsel %vm1266_vm1, %v4581_v53, 0 }
 0xc8d   : > { %9185 = vmatprep.mubr.msk.bf16.mxu1 %vm10296_vm0, %v13276_v8 }
 0xc8f   : > { %4963 = vrot.lane.b32.xlu1 %v4577_v15, %s13279_s30 }
 0xc90   : > { %5358 = vrot.lane.b32.xlu0 %v4581_v53, %s13280_s8 }
 0xc93   : > { %5233 = vrot.lane.b32.xlu1 %v4580_v18, %s13281_s5 }
 0xc94   : > { %5479 = vrot.lane.b32.xlu0 %v4581_v53, %s13279_s30 }
 0xc97   : > { %5356 = vrot.lane.b32.xlu1 %v4580_v18, %s13280_s8 }
 0xc9b   : > { %5477 = vrot.lane.b32.xlu1 %v4580_v18, %s13279_s30 }
 0xcf5   : > { %v4720_v28 = vpop.permute.xlu1 %4719 }
 0xcf6   : > { %v4493_v63 = vpop.f32.mrb[100].mxu1  ;;  %v4723_v10 = vpop.permute.xlu0 %4722 }
 0xcf7   : > { %v4728_v50 = vsel %vm1266_vm1, %v4723_v10, 0  ;;  %v4495_v17 = vpop.f32.mrb[101].mxu1  ;;  %v4494_v23 = vadd.f32 %v4493_v63, %v11871_v61 }
 0xcf8   : > { %v4497_v16 = vpop.f32.mrb[102].mxu1  ;;  %9190 = vmatpush3.bf16.xpose.msra.mxu0 %v4728_v50  ;;  %v4496_v41 = vadd.f32 %v4495_v17, %v11875_v47 }
 0xcf9   : > { %v4498_v59 = vadd.f32 %v4497_v16, %v11871_v61  ;;  %v4499_v26 = vpop.f32.mrb[103].mxu1  ;;  %9201 = vmatprep.subr.bf16.mxu0 %v13276_v8  ;;  %v4845_v36 = vpop.permute.xlu1 %4844 }
 0xcfa   : > { %v4500_v57 = vadd.f32 %v4499_v26, %v11875_v47  ;;  %v4850_v32 = vsel %vm1266_vm1, %v4845_v36, 0  ;;  %v4966_v38 = vpop.permute.xlu0 %4965 }
 0xcfb   : > { %v11908_v62 = vpack.c.bf16 %v4498_v59, %v4494_v23  ;;  %v4971_v5 = vsel %vm1266_vm1, %v4966_v38, 0 }
 0xcfc   : > { %v11910_v11 = vpack.c.bf16 %v4500_v57, %v4496_v41 }
 0xcfd   : > { %5747 = vrot.lane.b32.xlu1 %v11908_v62, %s13281_s5  ;;  %v4843_v13 = vpop.permute.xlu1 %4842 }
 0xcfe   : > { %5750 = vrot.lane.b32.xlu0 %v11910_v11, %s13281_s5  ;;  %v5237_v4 = vpop.permute.xlu0 %5236  ;;  %v5636_v57 = vsel %vm1266_vm1, %v11910_v11, 0 }
 0xcff   : > { %9192 = vmatmul.mubr.msk.bf16.vlgmr.msra.gmra.mrb[100].mxu0 %vm1266_vm1, %v4720_v28  ;;  %v5242_v31 = vsel %vm1266_vm1, %v5237_v4, 0 }
 0xd00   : > { %9202 = vmatpush3.bf16.xpose.msra.mxu0 %v4850_v32  ;;  %9203 = vmatprep.mubr.msk.bf16.mxu0 %vm10296_vm0, %v13276_v8  ;;  %v12004_v32 = vld [vmem:[%s10837_s3] ss:$0 sm:$0xff] }
 0xd01   : > { %5870 = vrot.lane.b32.xlu1 %v11908_v62, %s13280_s8  ;;  %9213 = vmatprep.subr.bf16.mxu0 %v13276_v8  ;;  %v4964_v52 = vpop.permute.xlu1 %4963 }
 0xd02   : > { %5872 = vrot.lane.b32.xlu0 %v11910_v11, %s13280_s8  ;;  %v5359_v20 = vpop.permute.xlu0 %5358 }
 0xd03   : > { %v5364_v12 = vsel %vm1266_vm1, %v5359_v20, 0 }
 0xd05   : > { %5991 = vrot.lane.b32.xlu1 %v11908_v62, %s13279_s30  ;;  %v5234_v15 = vpop.permute.xlu1 %5233 }
 0xd06   : > { %5993 = vrot.lane.b32.xlu0 %v11910_v11, %s13279_s30  ;;  %v5480_v58 = vpop.permute.xlu0 %5479 }
 0xd07   : > { %9204 = vmatmul.mubr.msk.bf16.vlgmr.msra.gmra.mrb[104].mxu0 %vm1266_vm1, %v4843_v13  ;;  %v5485_v50 = vsel %vm1266_vm1, %v5480_v58, 0 }
 0xd08   : > { %9214 = vmatpush3.bf16.xpose.msra.mxu0 %v4971_v5  ;;  %9215 = vmatprep.mubr.msk.bf16.mxu0 %vm10296_vm0, %v13276_v8 }
 0xd09   : > { %9225 = vmatprep.subr.bf16.mxu0 %v13276_v8  ;;  %v5357_v28 = vpop.permute.xlu1 %5356 }
 0xd0d   : > { %v5478_v41 = vpop.permute.xlu1 %5477 }
 0xd0f   : > { %9216 = vmatmul.mubr.msk.bf16.vlgmr.msra.gmra.mrb[108].mxu0 %vm1266_vm1, %v4964_v52 }
 0xd10   : > { %9226 = vmatpush3.bf16.xpose.msra.mxu0 %v5122_v34  ;;  %9227 = vmatprep.mubr.msk.bf16.mxu0 %vm10296_vm0, %v13276_v8 }
 0xd11   : > { %9237 = vmatprep.subr.bf16.mxu0 %v13276_v8 }
 0xd14   : > { %v4503_v6 = vpop.f32.mrb[104].mxu1 }
 0xd15   : > { %v4505_v35 = vpop.f32.mrb[105].mxu1  ;;  %v4504_v51 = vadd.f32 %v4503_v6, %v11871_v61 }
 0xd16   : > { %v4507_v33 = vpop.f32.mrb[106].mxu1  ;;  %v4506_v3 = vadd.f32 %v4505_v35, %v11875_v47 }
 0xd17   : > { %v4508_v43 = vadd.f32 %v4507_v33, %v11871_v61  ;;  %v4509_v55 = vpop.f32.mrb[107].mxu1  ;;  %9228 = vmatmul.mubr.msk.bf16.vlgmr.msra.gmra.mrb[112].mxu0 %vm1266_vm1, %v4580_v18  ;;  %v13292_v61 = vld [vmem:[#allocation15_spill] sm:$0xff] }
 0xd18   : > { %v4510_v0 = vadd.f32 %v4509_v55, %v11875_v47  ;;  %9238 = vmatpush3.bf16.xpose.msra.mxu0 %v5242_v31  ;;  %9239 = vmatprep.mubr.msk.bf16.mxu0 %vm10296_vm0, %v13276_v8  ;;  %v13293_v19 = vsub.s32 2, %v13292_v61 }
 0xd19   : > { %v11947_v40 = vpack.c.bf16 %v4508_v43, %v4504_v51  ;;  %9249 = vmatprep.subr.bf16.mxu0 %v13276_v8 }
 0xd1a   : > { %v11950_v46 = vpack.c.bf16 %v4510_v0, %v4506_v3  ;;  %v4307_v30 = vrot.slane %v11867_v45, %v13293_v19 }
 0xd1b   : > { %6261 = vrot.lane.b32.xlu1 %v11947_v40, %s13281_s5 }
 0xd1c   : > { %v9171_v56 = vpop.f32.mrb[108].mxu1  ;;  %6264 = vrot.lane.b32.xlu0 %v11950_v46, %s13281_s5  ;;  %v6150_v0 = vsel %vm1266_vm1, %v11950_v46, 0 }
 0xd1d   : > { %v4546_v47 = vpop.f32.mrb[109].mxu1  ;;  %v4555_v42 = vadd.f32 %v9171_v56, %v4307_v30 }
 0xd1e   : > { %v9172_v39 = vpop.f32.mrb[110].mxu1  ;;  %v4547_v27 = vadd.f32 %v4546_v47, %v4307_v30 }
 0xd1f   : > { %v4558_v60 = vadd.f32 %v9172_v39, %v4307_v30  ;;  %v4549_v2 = vpop.f32.mrb[111].mxu1  ;;  %6384 = vrot.lane.b32.xlu1 %v11947_v40, %s13280_s8  ;;  %9240 = vmatmul.mubr.msk.bf16.vlgmr.msra.gmra.mrb[116].mxu0 %vm1266_vm1, %v5234_v15 }
 0xd20   : > { %v4550_v45 = vadd.f32 %v4549_v2, %v4307_v30  ;;  %6386 = vrot.lane.b32.xlu0 %v11950_v46, %s13280_s8  ;;  %9250 = vmatpush3.bf16.xpose.msra.mxu0 %v5364_v12 }
 0xd21   : > { %v11965_v48 = vpack.c.bf16 %v4558_v60, %v4555_v42  ;;  %9251 = vmatprep.mubr.msk.bf16.mxu0 %vm10296_vm0, %v13276_v8  ;;  %9261 = vmatprep.subr.bf16.mxu0 %v13276_v8 }
 0xd22   : > { %v4579_v1 = vpack.c.bf16 %v4550_v45, %v4547_v27 }
 0xd23   : > { %6505 = vrot.lane.b32.xlu1 %v11947_v40, %s13279_s30 }
 0xd24   : > { %v9175_v14 = vpop.f32.mrb[112].mxu1  ;;  %9184 = vmatpush3.bf16.msra.mxu1 %v4579_v1  ;;  %6507 = vrot.lane.b32.xlu0 %v11950_v46, %s13279_s30 }
 0xd25   : > { %v4571_v18 = vadd.f32 %v9175_v14, %v4307_v30  ;;  %v4562_v53 = vpop.f32.mrb[113].mxu1  ;;  %9195 = vmatprep.subr.bf16.mxu1 %v13276_v8 }
 0xd26   : > { %v4563_v63 = vadd.f32 %v4562_v53, %v4307_v30  ;;  %v9176_v10 = vpop.f32.mrb[114].mxu1 }
 0xd27   : > { %v4574_v17 = vadd.f32 %v9176_v10, %v4307_v30  ;;  %v4565_v16 = vpop.f32.mrb[115].mxu1  ;;  %5430 = vrot.lane.b32.xlu1 %v11965_v48, %s13280_s8  ;;  %9252 = vmatmul.mubr.msk.bf16.vlgmr.msra.gmra.mrb[120].mxu0 %vm1266_vm1, %v5357_v28 }
 0xd28   : > { %v4566_v23 = vadd.f32 %v4565_v16, %v4307_v30  ;;  %5309 = vrot.lane.b32.xlu0 %v11965_v48, %s13281_s5  ;;  %9262 = vmatpush3.bf16.xpose.msra.mxu0 %v5485_v50 }
 0xd29   : > { %v11981_v59 = vpack.c.bf16 %v4574_v17, %v4571_v18  ;;  %9263 = vmatprep.mubr.msk.bf16.mxu0 %vm10296_vm0, %v13276_v8  ;;  %9273 = vmatprep.subr.bf16.mxu0 %v13276_v8 }
 0xd2a   : > { %v11986_v26 = vpack.c.bf16 %v4566_v23, %v4563_v63 }
 0xd2b   : > { %4916 = vrot.lane.b32.xlu1 %v4579_v1, %s13280_s8 }
 0xd2c   : > { %5551 = vrot.lane.b32.xlu0 %v11965_v48, %s13279_s30 }
 0xd2f   : > { %9264 = vmatmul.mubr.msk.bf16.vlgmr.msra.gmra.mrb[124].mxu0 %vm1266_vm1, %v5478_v41 }
 0xd30   : > { %4795 = vrot.lane.b32.xlu0 %v4579_v1, %s13281_s5  ;;  %9274 = vmatpush3.bf16.xpose.msra.mxu0 %v5636_v57 }
 0xd31   : > { %9275 = vmatprep.mubr.msk.bf16.mxu0 %vm10296_vm0, %v13276_v8  ;;  %9285 = vmatprep.subr.bf16.mxu0 %v13276_v8 }
 0xd34   : > { %5037 = vrot.lane.b32.xlu0 %v4579_v1, %s13279_s30 }
 0xd37   : > { %9276 = vmatmul.mubr.msk.bf16.vlgmr.msra.gmra.mrb[128].mxu0 %vm1266_vm1, %v11908_v62 }
 0xd38   : > { %9287 = vmatprep.mubr.msk.bf16.mxu0 %vm10296_vm0, %v13276_v8 }
 0xd5f   : > { %v4644_v36 = vpop.f32.mrb[116].mxu1 }
 0xd60   : > { %v12007_v11 = vadd.f32 %v12004_v32, %v4644_v36  ;;  %v9181_v38 = vpop.f32.mrb[117].mxu1 }
 0xd61   : > { %v4647_v13 = vpop.f32.mrb[118].mxu1 }
 0xd62   : > { %v12010_v5 = vadd.f32 %v12004_v32, %v4647_v13  ;;  %v9182_v52 = vpop.f32.mrb[119].mxu1  ;;  %v4651_v34 = vsel %vm1314_vm2, %v12007_v11, -inf }
 0xd63   : > { %4652 = vmax.xlane.f32.xlu0 %v4651_v34 }
 0xd64   : > { %v4654_v62 = vsel %vm1314_vm2, %v12010_v5, -inf }
 0xd65   : > { %4655 = vmax.xlane.f32.xlu1 %v4654_v62 }
 0xd6f   : > { %v5748_v33 = vpop.permute.xlu1 %5747 }
 0xd70   : > { %v5751_v4 = vpop.permute.xlu0 %5750 }
 0xd71   : > { %v5756_v6 = vsel %vm1266_vm1, %v5751_v4, 0 }
 0xd72   : > { %9286 = vmatpush3.bf16.xpose.msra.mxu0 %v5756_v6  ;;  %v10227_v6 = vld [vmem:[%s10837_s3 + $0x1] ss:$0 sm:$0xff] }
 0xd73   : > { %9297 = vmatprep.subr.bf16.mxu0 %v13276_v8  ;;  %v5871_v43 = vpop.permute.xlu1 %5870 }
 0xd74   : > { %v5873_v35 = vpop.permute.xlu0 %5872 }
 0xd75   : > { %v5878_v31 = vsel %vm1266_vm1, %v5873_v35, 0 }
 0xd77   : > { %v5992_v3 = vpop.permute.xlu1 %5991 }
 0xd78   : > { %v5994_v51 = vpop.permute.xlu0 %5993 }
 0xd79   : > { %9288 = vmatmul.mubr.msk.bf16.vlgmr.msra.gmra.mrb[132].mxu0 %vm1266_vm1, %v5748_v33  ;;  %v5999_v55 = vsel %vm1266_vm1, %v5994_v51, 0 }
 0xd7a   : > { %9298 = vmatpush3.bf16.xpose.msra.mxu0 %v5878_v31  ;;  %9299 = vmatprep.mubr.msk.bf16.mxu0 %vm10296_vm0, %v13276_v8 }
 0xd7b   : > { %9309 = vmatprep.subr.bf16.mxu0 %v13276_v8 }
 0xd81   : > { %9300 = vmatmul.mubr.msk.bf16.vlgmr.msra.gmra.mrb[136].mxu0 %vm1266_vm1, %v5871_v43 }
 0xd82   : > { %9310 = vmatpush3.bf16.xpose.msra.mxu0 %v5999_v55  ;;  %9311 = vmatprep.mubr.msk.bf16.mxu0 %vm10296_vm0, %v13276_v8 }
 0xd83   : > { %9321 = vmatprep.subr.bf16.mxu0 %v13276_v8 }
 0xd89   : > { %9312 = vmatmul.mubr.msk.bf16.vlgmr.msra.gmra.mrb[140].mxu0 %vm1266_vm1, %v5992_v3 }
 0xd8a   : > { %9322 = vmatpush3.bf16.xpose.msra.mxu0 %v6150_v0  ;;  %9323 = vmatprep.mubr.msk.bf16.mxu0 %vm10296_vm0, %v13276_v8 }
 0xd8b   : > { %9333 = vmatprep.subr.bf16.mxu0 %v13276_v8 }
 0xd8d   : > { %v6262_v46 = vpop.permute.xlu1 %6261 }
 0xd8e   : > { %v6265_v61 = vpop.permute.xlu0 %6264 }
 0xd8f   : > { %v6270_v19 = vsel %vm1266_vm1, %v6265_v61, 0 }
 0xd91   : > { %9324 = vmatmul.mubr.msk.bf16.vlgmr.msra.gmra.mrb[144].mxu0 %vm1266_vm1, %v11947_v40  ;;  %v6385_v40 = vpop.permute.xlu1 %6384 }
 0xd92   : > { %9334 = vmatpush3.bf16.xpose.msra.mxu0 %v6270_v19  ;;  %9335 = vmatprep.mubr.msk.bf16.mxu0 %vm10296_vm0, %v13276_v8  ;;  %v6387_v30 = vpop.permute.xlu0 %6386 }
 0xd93   : > { %9345 = vmatprep.subr.bf16.mxu0 %v13276_v8  ;;  %v6392_v20 = vsel %vm1266_vm1, %v6387_v30, 0 }
 0xd95   : > { %v6506_v15 = vpop.permute.xlu1 %6505 }
 0xd96   : > { %v6508_v56 = vpop.permute.xlu0 %6507 }
 0xd97   : > { %v6513_v47 = vsel %vm1266_vm1, %v6508_v56, 0 }
 0xd99   : > { %9336 = vmatmul.mubr.msk.bf16.vlgmr.msra.gmra.mrb[148].mxu0 %vm1266_vm1, %v6262_v46 }
 0xd9a   : > { %9346 = vmatpush3.bf16.xpose.msra.mxu0 %v6392_v20  ;;  %9347 = vmatprep.mubr.msk.bf16.mxu0 %vm10296_vm0, %v13276_v8  ;;  %v12060_v58 = vpop.permute.xlu0 %5309 }
 0xd9b   : > { %9357 = vmatprep.subr.bf16.mxu0 %v13276_v8 }
 0xd9e   : > { %v12072_v16 = vpop.permute.xlu0 %5551 }
 0xda1   : > { %9348 = vmatmul.mubr.msk.bf16.vlgmr.msra.gmra.mrb[152].mxu0 %vm1266_vm1, %v6385_v40 }
 0xda2   : > { %9358 = vmatpush3.bf16.xpose.msra.mxu0 %v6513_v47  ;;  %9359 = vmatprep.mubr.msk.bf16.mxu0 %vm10296_vm0, %v13276_v8  ;;  %v12082_v34 = vpop.permute.xlu0 %4795 }
 0xda6   : > { %v12089_v31 = vpop.permute.xlu0 %5037 }
 0xda9   : > { %9360 = vmatmul.mubr.msk.bf16.vlgmr.msra.gmra.mrb[156].mxu0 %vm1266_vm1, %v6506_v15 }
 0xdd2   : > { %v4764_v39 = vpop.f32.mrb[100].mxu0 }
 0xdd3   : > { %v12051_v12 = vadd.f32 %v12004_v32, %v4764_v39  ;;  %v9193_v42 = vpop.f32.mrb[101].mxu0 }
 0xdd4   : > { %v4767_v60 = vpop.f32.mrb[102].mxu0 }
 0xdd5   : > { %v12054_v2 = vadd.f32 %v12004_v32, %v4767_v60  ;;  %v9194_v27 = vpop.f32.mrb[103].mxu0  ;;  %v4771_v45 = vsel %vm1314_vm2, %v12051_v12, -inf }
 0xdd6   : > { %4772 = vmax.xlane.f32.xlu0 %v4771_v45 }
 0xdd7   : > { %v4774_v1 = vsel %vm1314_vm2, %v12054_v2, -inf }
 0xdda   : > { %4775 = vmax.xlane.f32.xlu0 %v4774_v1  ;;  %v4886_v14 = vpop.f32.mrb[104].mxu0 }
 0xddb   : > { %v12063_v18 = vadd.f32 %v12004_v32, %v4886_v14  ;;  %v9205_v53 = vpop.f32.mrb[105].mxu0 }
 0xddc   : > { %v4889_v28 = vpop.f32.mrb[106].mxu0 }
 0xddd   : > { %v12066_v63 = vadd.f32 %v12004_v32, %v4889_v28  ;;  %v9206_v10 = vpop.f32.mrb[107].mxu0  ;;  %v4893_v50 = vsel %vm1314_vm2, %v12063_v18, -inf }
 0xdde   : > { %4894 = vmax.xlane.f32.xlu0 %v4893_v50 }
 0xddf   : > { %v4896_v17 = vsel %vm1314_vm2, %v12066_v63, -inf }
 0xde0   : > { %4897 = vmax.xlane.f32.xlu1 %v4896_v17 }
 0xde2   : > { %v5007_v23 = vpop.f32.mrb[108].mxu0 }
 0xde3   : > { %v12075_v41 = vadd.f32 %v12004_v32, %v5007_v23  ;;  %v9217_v57 = vpop.f32.mrb[109].mxu0  ;;  %v12116_v23 = vpop.permute.xlu1 %5430 }
 0xde4   : > { %v5010_v36 = vpop.f32.mrb[110].mxu0 }
 0xde5   : > { %v12078_v38 = vadd.f32 %v12004_v32, %v5010_v36  ;;  %v9218_v13 = vpop.f32.mrb[111].mxu0  ;;  %v5014_v52 = vsel %vm1314_vm2, %v12075_v41, -inf  ;;  %v10228_v36 = vld [vmem:[%s10837_s3 + $0x2] ss:$0 sm:$0xff] }
 0xde6   : > { %5015 = vmax.xlane.f32.xlu0 %v5014_v52 }
 0xde7   : > { %v5017_v62 = vsel %vm1314_vm2, %v12078_v38, -inf }
 0xde8   : > { %5018 = vmax.xlane.f32.xlu1 %v5017_v62 }
 0xdea   : > { %v5158_v4 = vpop.f32.mrb[112].mxu0 }
 0xdeb   : > { %v12087_v35 = vadd.f32 %v10227_v6, %v5158_v4  ;;  %v9229_v33 = vpop.f32.mrb[113].mxu0 }
 0xdec   : > { %v5161_v32 = vpop.f32.mrb[114].mxu0 }
 0xded   : > { %v12091_v51 = vadd.f32 %v10227_v6, %v5161_v32  ;;  %v9230_v43 = vpop.f32.mrb[115].mxu0  ;;  %v5165_v55 = vsel %vm1314_vm2, %v12087_v35, -inf  ;;  %v12123_v32 = vpop.permute.xlu1 %4916 }
 0xdee   : > { %5166 = vmax.xlane.f32.xlu0 %v5165_v55 }
 0xdef   : > { %v5168_v3 = vsel %vm1314_vm2, %v12091_v51, -inf }
 0xdf0   : > { %5169 = vmax.xlane.f32.xlu1 %v5168_v3  ;;  %v4653_v0 = vpop.xlane.xlu0 %4652 }
 0xdf1   : > { %v4657_v61 = vsub.f32 %v12007_v11, %v4653_v0 }
 0xdf2   : > { %v5278_v19 = vpop.f32.mrb[116].mxu0  ;;  %v4656_v43 = vpop.xlane.xlu1 %4655 }
 0xdf3   : > { %v4659_v30 = vmul.f32 1.442695, %v4657_v61  ;;  %v12098_v46 = vadd.f32 %v10227_v6, %v5278_v19  ;;  %v9241_v20 = vpop.f32.mrb[117].mxu0  ;;  %v4658_v55 = vsub.f32 %v12010_v5, %v4656_v43 }
 0xdf4   : > { %v5281_v56 = vpop.f32.mrb[118].mxu0 }
 0xdf5   : > { %10022 = vpow2.f32 %v4659_v30  ;;  %v9242_v40 = vpop.f32.mrb[119].mxu0  ;;  %v5285_v47 = vsel %vm1314_vm2, %v12098_v46, -inf  ;;  %v4661_v3 = vmul.f32 1.442695, %v4658_v55  ;;  %v12126_v0 = vadd.f32 %v10227_v6, %v5281_v56 }
 0xdf6   : > { %5286 = vmax.xlane.f32.xlu0 %v5285_v47 }
 0xdf7   : > { %10024 = vpow2.f32 %v4661_v3  ;;  %v5288_v19 = vsel %vm1314_vm2, %v12126_v0, -inf }
 0xdfa   : > { %v5400_v15 = vpop.f32.mrb[120].mxu0 }
 0xdfb   : > { %v12102_v39 = vadd.f32 %v10227_v6, %v5400_v15  ;;  %v9253_v42 = vpop.f32.mrb[121].mxu0 }
 0xdfc   : > { %v5403_v60 = vpop.f32.mrb[122].mxu0 }
 0xdfd   : > { %v9254_v27 = vpop.f32.mrb[123].mxu0  ;;  %v5407_v11 = vsel %vm1314_vm2, %v12102_v39, -inf  ;;  %v12128_v61 = vadd.f32 %v10227_v6, %v5403_v60 }
 0xdfe   : > { %5408 = vmax.xlane.f32.xlu0 %v5407_v11 }
 0xdff   : > { %v12106_v45 = vpop.eup %10022  ;;  %v5410_v30 = vsel %vm1314_vm2, %v12128_v61, -inf }
 0xe00   : > { %v4663_v1 = vsel %vm1314_vm2, %v12106_v45, 0.0 }
 0xe01   : > { %5823 = vrot.lane.b32.xlu1 %v11986_v26, %s13281_s5  ;;  %v12134_v20 = vpop.eup %10024 }
 0xe02   : > { %v5521_v14 = vpop.f32.mrb[124].mxu0  ;;  %4664 = vadd.xlane.f32.xlu0 %v4663_v1  ;;  %v4666_v5 = vsel %vm1314_vm2, %v12134_v20, 0.0 }
 0xe03   : > { %v12112_v53 = vadd.f32 %v10227_v6, %v5521_v14  ;;  %v9265_v28 = vpop.f32.mrb[125].mxu0 }
 0xe04   : > { %v5524_v10 = vpop.f32.mrb[126].mxu0 }
 0xe05   : > { %v9266_v50 = vpop.f32.mrb[127].mxu0  ;;  %v5528_v17 = vsel %vm1314_vm2, %v12112_v53, -inf  ;;  %v12136_v40 = vadd.f32 %v10227_v6, %v5524_v10 }
 0xe06   : > { %5529 = vmax.xlane.f32.xlu0 %v5528_v17 }
 0xe07   : > { %v5531_v47 = vsel %vm1314_vm2, %v12136_v40, -inf }
 0xe0a   : > { %v5672_v57 = vpop.f32.mrb[128].mxu0 }
 0xe0b   : > { %v12119_v13 = vadd.f32 %v10228_v36, %v5672_v57  ;;  %v9277_v52 = vpop.f32.mrb[129].mxu0 }
 0xe0c   : > { %v5675_v62 = vpop.f32.mrb[130].mxu0 }
 0xe0d   : > { %v9278_v4 = vpop.f32.mrb[131].mxu0  ;;  %v5679_v33 = vsel %vm1314_vm2, %v12119_v13, -inf  ;;  %v12140_v56 = vadd.f32 %v10228_v36, %v5675_v62 }
 0xe0e   : > { %5680 = vmax.xlane.f32.xlu0 %v5679_v33 }
 0xe0f   : > { %v5682_v15 = vsel %vm1314_vm2, %v12140_v56, -inf }
 0xe25   : > { %5289 = vmax.xlane.f32.xlu1 %v5288_v19 }
 0xe29   : > { %5411 = vmax.xlane.f32.xlu1 %v5410_v30 }
 0xe2d   : > { %4667 = vadd.xlane.f32.xlu1 %v4666_v5 }
 0xe31   : > { %5532 = vmax.xlane.f32.xlu1 %v5531_v47 }
 0xe35   : > { %5683 = vmax.xlane.f32.xlu1 %v5682_v15 }
 0xe4c   : > { %v5792_v42 = vpop.f32.mrb[132].mxu0 }
 0xe4d   : > { %v12146_v60 = vadd.f32 %v10228_v36, %v5792_v42  ;;  %v9289_v27 = vpop.f32.mrb[133].mxu0 }
 0xe4e   : > { %v5795_v6 = vpop.f32.mrb[134].mxu0 }
 0xe4f   : > { %v12148_v11 = vadd.f32 %v10228_v36, %v5795_v6  ;;  %v9290_v1 = vpop.f32.mrb[135].mxu0  ;;  %v5799_v14 = vsel %vm1314_vm2, %v12146_v60, -inf  ;;  %v10229_v6 = vld [vmem:[%s10837_s3 + $0x3] ss:$0 sm:$0xff]  ;;  %s13305_s3 = sld [smem:[#allocation33_spill]] }
 0xe50   : > { %5800 = vmax.xlane.f32.xlu0 %v5799_v14 }
 0xe51   : > { %v5802_v28 = vsel %vm1314_vm2, %v12148_v11, -inf }
 0xe52   : > { %5803 = vmax.xlane.f32.xlu1 %v5802_v28 }
 0xe54   : > { %v5914_v10 = vpop.f32.mrb[136].mxu0 }
 0xe55   : > { %v12154_v50 = vadd.f32 %v10228_v36, %v5914_v10  ;;  %v9301_v17 = vpop.f32.mrb[137].mxu0 }
 0xe56   : > { %v5917_v57 = vpop.f32.mrb[138].mxu0 }
 0xe57   : > { %v12156_v52 = vadd.f32 %v10228_v36, %v5917_v57  ;;  %v9302_v62 = vpop.f32.mrb[139].mxu0  ;;  %v5921_v4 = vsel %vm1314_vm2, %v12154_v50, -inf }
 0xe58   : > { %5922 = vmax.xlane.f32.xlu0 %v5921_v4 }
 0xe59   : > { %v5924_v33 = vsel %vm1314_vm2, %v12156_v52, -inf }
 0xe5a   : > { %5925 = vmax.xlane.f32.xlu1 %v5924_v33 }
 0xe5c   : > { %v6035_v43 = vpop.f32.mrb[140].mxu0 }
 0xe5d   : > { %v12162_v55 = vadd.f32 %v10228_v36, %v6035_v43  ;;  %v9313_v3 = vpop.f32.mrb[141].mxu0 }
 0xe5e   : > { %v6038_v19 = vpop.f32.mrb[142].mxu0 }
 0xe5f   : > { %v12164_v30 = vadd.f32 %v10228_v36, %v6038_v19  ;;  %v9314_v5 = vpop.f32.mrb[143].mxu0  ;;  %v6042_v47 = vsel %vm1314_vm2, %v12162_v55, -inf }
 0xe60   : > { %6043 = vmax.xlane.f32.xlu0 %v6042_v47 }
 0xe61   : > { %v6045_v15 = vsel %vm1314_vm2, %v12164_v30, -inf }
 0xe62   : > { %6046 = vmax.xlane.f32.xlu1 %v6045_v15 }
 0xe63   : > { %v4773_v42 = vpop.xlane.xlu0 %4772 }
 0xe64   : > { %v6186_v27 = vpop.f32.mrb[144].mxu0  ;;  %v4777_v3 = vsub.f32 %v12051_v12, %v4773_v42 }
 0xe65   : > { %v12171_v1 = vadd.f32 %v10229_v6, %v6186_v27  ;;  %v9325_v14 = vpop.f32.mrb[145].mxu0 }
 0xe66   : > { %v6189_v28 = vpop.f32.mrb[146].mxu0 }
 0xe67   : > { %v12173_v10 = vadd.f32 %v10229_v6, %v6189_v28  ;;  %v9326_v36 = vpop.f32.mrb[147].mxu0  ;;  %v6193_v17 = vsel %vm1314_vm2, %v12171_v1, -inf  ;;  %v4776_v57 = vpop.xlane.xlu0 %4775 }
 0xe68   : > { %6194 = vmax.xlane.f32.xlu0 %v6193_v17  ;;  %v4778_v14 = vsub.f32 %v12054_v2, %v4776_v57  ;;  %v4779_v17 = vmul.f32 1.442695, %v4777_v3 }
 0xe69   : > { %v6196_v62 = vsel %vm1314_vm2, %v12173_v10, -inf }
 0xe6a   : > { %6197 = vmax.xlane.f32.xlu1 %v6196_v62  ;;  %v4781_v42 = vmul.f32 1.442695, %v4778_v14  ;;  %10026 = vpow2.f32 %v4779_v17 }
 0xe6b   : > { %v4895_v5 = vpop.xlane.xlu0 %4894 }
 0xe6c   : > { %v6306_v4 = vpop.f32.mrb[148].mxu0  ;;  %v4899_v62 = vsub.f32 %v12063_v18, %v4895_v5  ;;  %10028 = vpow2.f32 %v4781_v42 }
 0xe6d   : > { %v12179_v33 = vadd.f32 %v10229_v6, %v6306_v4  ;;  %v9337_v43 = vpop.f32.mrb[149].mxu0  ;;  %v4898_v28 = vpop.xlane.xlu1 %4897 }
 0xe6e   : > { %v6309_v19 = vpop.f32.mrb[150].mxu0  ;;  %v4900_v4 = vsub.f32 %v12066_v63, %v4898_v28  ;;  %v4901_v2 = vmul.f32 1.442695, %v4899_v62 }
 0xe6f   : > { %v12182_v47 = vadd.f32 %v10229_v6, %v6309_v19  ;;  %v9338_v15 = vpop.f32.mrb[151].mxu0  ;;  %v6313_v27 = vsel %vm1314_vm2, %v12179_v33, -inf }
 0xe70   : > { %6314 = vmax.xlane.f32.xlu0 %v6313_v27  ;;  %v4903_v5 = vmul.f32 1.442695, %v4900_v4  ;;  %10030 = vpow2.f32 %v4901_v2 }
 0xe71   : > { %v6316_v36 = vsel %vm1314_vm2, %v12182_v47, -inf }
 0xe72   : > { %6317 = vmax.xlane.f32.xlu1 %v6316_v36  ;;  %10032 = vpow2.f32 %v4903_v5 }
 0xe73   : > { %v5016_v12 = vpop.xlane.xlu0 %5015 }
 0xe74   : > { %v6428_v43 = vpop.f32.mrb[152].mxu0  ;;  %v5020_v57 = vsub.f32 %v12075_v41, %v5016_v12 }
 0xe75   : > { %v12191_v19 = vadd.f32 %v10229_v6, %v6428_v43  ;;  %v5019_v15 = vpop.xlane.xlu1 %5018  ;;  %v9349_v9 = vpop.f32.mrb[153].mxu0 }
 0xe76   : > { %v6431_v27 = vpop.f32.mrb[154].mxu0  ;;  %v5021_v63 = vsub.f32 %v12078_v38, %v5019_v15  ;;  %v5022_v9 = vmul.f32 1.442695, %v5020_v57 }
 0xe77   : > { %v12194_v25 = vadd.f32 %v10229_v6, %v6431_v27  ;;  %v9350_v3 = vpop.f32.mrb[155].mxu0  ;;  %v6435_v18 = vsel %vm1314_vm2, %v12191_v19, -inf  ;;  %v12209_v27 = vpop.eup %10026 }
 0xe78   : > { %6436 = vmax.xlane.f32.xlu0 %v6435_v18  ;;  %v5024_v41 = vmul.f32 1.442695, %v5021_v63  ;;  %10034 = vpow2.f32 %v5022_v9  ;;  %v12213_v18 = vpop.eup %10028 }
 0xe79   : > { %v6438_v14 = vsel %vm1314_vm2, %v12194_v25, -inf }
 0xe7a   : > { %6439 = vmax.xlane.f32.xlu1 %v6438_v14  ;;  %10036 = vpow2.f32 %v5024_v41  ;;  %v12217_v5 = vpop.eup %10030  ;;  %v4786_v14 = vsel %vm1314_vm2, %v12213_v18, 0.0 }
 0xe7b   : > { %v5167_v28 = vpop.xlane.xlu0 %5166  ;;  %v4905_v41 = vsel %vm1314_vm2, %v12217_v5, 0.0 }
 0xe7c   : > { %v5171_v36 = vsub.f32 %v12087_v35, %v5167_v28  ;;  %v6549_v17 = vpop.f32.mrb[156].mxu0  ;;  %v12222_v9 = vpop.eup %10032 }
 0xe7d   : > { %v12202_v62 = vadd.f32 %v10229_v6, %v6549_v17  ;;  %v5170_v12 = vpop.xlane.xlu1 %5169  ;;  %v9361_v42 = vpop.f32.mrb[157].mxu0  ;;  %v4908_v17 = vsel %vm1314_vm2, %v12222_v9, 0.0 }
 0xe7e   : > { %v5173_v4 = vmul.f32 1.442695, %v5171_v36  ;;  %v5172_v38 = vsub.f32 %v12091_v51, %v5170_v12  ;;  %v6552_v43 = vpop.f32.mrb[158].mxu0 }
 0xe7f   : > { %v12205_v15 = vadd.f32 %v10229_v6, %v6552_v43  ;;  %v9362_v2 = vpop.f32.mrb[159].mxu0  ;;  %v6556_v57 = vsel %vm1314_vm2, %v12202_v62, -inf  ;;  %v4783_v6 = vsel %vm1314_vm2, %v12209_v27, 0.0 }
 0xe80   : > { %v5175_v35 = vmul.f32 1.442695, %v5172_v38  ;;  %6557 = vmax.xlane.f32.xlu0 %v6556_v57  ;;  %10038 = vpow2.f32 %v5173_v4 }
 0xe81   : > { %v6559_v3 = vsel %vm1314_vm2, %v12205_v15, -inf }
 0xe82   : > { %6560 = vmax.xlane.f32.xlu1 %v6559_v3  ;;  %10040 = vpow2.f32 %v5175_v35  ;;  %v12226_v36 = vpop.eup %10034 }
 0xe83   : > { %v5287_v51 = vpop.xlane.xlu0 %5286 }
 0xe84   : > { %v5291_v63 = vsub.f32 %v12098_v46, %v5287_v51  ;;  %4784 = vadd.xlane.f32.xlu0 %v4783_v6  ;;  %v12230_v12 = vpop.eup %10036  ;;  %v5026_v46 = vsel %vm1314_vm2, %v12226_v36, 0.0  ;;  %v12250_v6 = vpop.permute.xlu1 %5823 }
 0xe85   : > { %v5029_v4 = vsel %vm1314_vm2, %v12230_v12, 0.0 }
 0xe86   : > { %v5293_v28 = vmul.f32 1.442695, %v5291_v63  ;;  %4787 = vadd.xlane.f32.xlu1 %v4786_v14 }
 0xe88   : > { %10042 = vpow2.f32 %v5293_v28  ;;  %4906 = vadd.xlane.f32.xlu0 %v4905_v41 }
 0xe8a   : > { %4909 = vadd.xlane.f32.xlu1 %v4908_v17  ;;  %v12234_v42 = vpop.eup %10038 }
 0xe8b   : > { %v5177_v43 = vsel %vm1314_vm2, %v12234_v42, 0.0  ;;  %v5409_v3 = vpop.xlane.xlu0 %5408 }
 0xe8c   : > { %5027 = vadd.xlane.f32.xlu0 %v5026_v46  ;;  %v12238_v38 = vpop.eup %10040  ;;  %v5413_v63 = vsub.f32 %v12102_v39, %v5409_v3 }
 0xe8d   : > { %v5180_v2 = vsel %vm1314_vm2, %v12238_v38, 0.0 }
 0xe8e   : > { %5030 = vadd.xlane.f32.xlu1 %v5029_v4  ;;  %v5415_v14 = vmul.f32 1.442695, %v5413_v63 }
 0xe8f   : > { %v4665_v51 = vpop.xlane.xlu0 %4664 }
 0xe90   : > { %5178 = vadd.xlane.f32.xlu0 %v5177_v43  ;;  %10044 = vpow2.f32 %v5415_v14 }
 0xe92   : > { %v12244_v57 = vpop.eup %10042  ;;  %5181 = vadd.xlane.f32.xlu1 %v5180_v2 }
 0xe93   : > { %v5297_v35 = vsel %vm1314_vm2, %v12244_v57, 0.0  ;;  %v5530_v28 = vpop.xlane.xlu0 %5529 }
 0xe94   : > { %v5534_v46 = vsub.f32 %v12112_v53, %v5530_v28 }
 0xe96   : > { %5298 = vadd.xlane.f32.xlu1 %v5297_v35  ;;  %v5536_v35 = vmul.f32 1.442695, %v5534_v46 }
 0xe9a   : > { %v12258_v53 = vpop.eup %10044 }
 0xe9b   : > { %v5681_v37 = vpop.xlane.xlu0 %5680 }
 0xe9c   : > { %v5685_v39 = vsub.f32 %v12119_v13, %v5681_v37  ;;  %v5419_v37 = vsel %vm1314_vm2, %v12258_v53, 0.0 }
 0xe9e   : > { %v5687_v14 = vmul.f32 1.442695, %v5685_v39 }
 0xea6   : > { %5944 = vrot.lane.b32.xlu0 %v11986_v26, %s13280_s8 }
 0xeb2   : > { %v5290_v41 = vpop.xlane.xlu1 %5289 }
 0xeb3   : > { %v5292_v17 = vsub.f32 %v12126_v0, %v5290_v41 }
 0xeb5   : > { %v5295_v4 = vmul.f32 1.442695, %v5292_v17 }
 0xeb6   : > { %v5412_v43 = vpop.xlane.xlu1 %5411 }
 0xeb7   : > { %10046 = vpow2.f32 %v5295_v4  ;;  %v5414_v2 = vsub.f32 %v12128_v61, %v5412_v43 }
 0xeb8   : > { %10048 = vrcp.f32 %v4665_v51 }
 0xeb9   : > { %v5417_v29 = vmul.f32 1.442695, %v5414_v2 }
 0xeba   : > { %v4668_v21 = vpop.xlane.xlu1 %4667 }
 0xebb   : > { %10050 = vpow2.f32 %v5417_v29 }
 0xebc   : > { %10052 = vrcp.f32 %v4668_v21 }
 0xebd   : > { %10054 = vpow2.f32 %v5536_v35 }
 0xebe   : > { %v5533_v3 = vpop.xlane.xlu1 %5532 }
 0xebf   : > { %v5535_v0 = vsub.f32 %v12136_v40, %v5533_v3 }
 0xec1   : > { %v12260_v63 = vpop.eup %10046  ;;  %v5538_v28 = vmul.f32 1.442695, %v5535_v0 }
 0xec2   : > { %v5684_v61 = vpop.xlane.xlu1 %5683  ;;  %v5300_v51 = vsel %vm1314_vm2, %v12260_v63, 0.0  ;;  %v10049_v21 = vpop.eup %10048 }
 0xec3   : > { %10056 = vpow2.f32 %v5538_v28  ;;  %v5686_v29 = vsub.f32 %v12140_v56, %v5684_v61  ;;  %5301 = vadd.xlane.f32.xlu1 %v5300_v51  ;;  %v4671_v4 = vmul.f32 %v10049_v21, %v12106_v45 }
 0xec4   : > { %10058 = vpow2.f32 %v5687_v14 }
 0xec5   : > { %v12267_v13 = vpop.eup %10050  ;;  %v5689_v40 = vmul.f32 1.442695, %v5686_v29  ;;  %5420 = vadd.xlane.f32.xlu0 %v5419_v37 }
 0xec6   : > { %v10053_v41 = vpop.eup %10052  ;;  %v5422_v17 = vsel %vm1314_vm2, %v12267_v13, 0.0 }
 0xec7   : > { %v12271_v46 = vpop.eup %10054  ;;  %v4672_v56 = vmul.f32 %v10053_v41, %v12134_v20  ;;  %5423 = vadd.xlane.f32.xlu1 %v5422_v17  ;;  %10060 = vpow2.f32 %v5689_v40 }
 0xec8   : > { %v5540_v2 = vsel %vm1314_vm2, %v12271_v46, 0.0 }
 0xec9   : > { %v4673_v43 = vpack.c.bf16 %v4672_v56, %v4671_v4 }
 0xecb   : > { %9186 = vmatmul.mubr.msk.bf16.vlgmr.msra.gmra.mrb[120].mxu1 %vm1314_vm2, %v4673_v43  ;;  %5541 = vadd.xlane.f32.xlu1 %v5540_v2 }
 0xecc   : > { %9196 = vmatpush3.bf16.msra.mxu1 %v12082_v34  ;;  %9197 = vmatprep.mubr.msk.bf16.mxu1 %vm10296_vm0, %v13276_v8 }
 0xecd   : > { %v12281_v35 = vpop.eup %10056  ;;  %9207 = vmatprep.subr.bf16.mxu1 %v13276_v8 }
 0xece   : > { %v5543_v45 = vsel %vm1314_vm2, %v12281_v35, 0.0  ;;  %v12286_v20 = vpop.eup %10058 }
 0xecf   : > { %5544 = vadd.xlane.f32.xlu1 %v5543_v45  ;;  %v5691_v39 = vsel %vm1314_vm2, %v12286_v20, 0.0 }
 0xed1   : > { %v12290_v3 = vpop.eup %10060 }
 0xed2   : > { %v5694_v34 = vsel %vm1314_vm2, %v12290_v3, 0.0 }
 0xed3   : > { %5692 = vadd.xlane.f32.xlu1 %v5691_v39 }
 0xed7   : > { %5695 = vadd.xlane.f32.xlu1 %v5694_v34 }
 0xedd   : > { %v5801_v0 = vpop.xlane.xlu0 %5800 }
 0xede   : > { %v5805_v14 = vsub.f32 %v12146_v60, %v5801_v0 }
 0xedf   : > { %v5804_v28 = vpop.xlane.xlu1 %5803 }
 0xee0   : > { %v5807_v61 = vmul.f32 1.442695, %v5805_v14  ;;  %v5806_v51 = vsub.f32 %v12148_v11, %v5804_v28 }
 0xee2   : > { %10062 = vpow2.f32 %v5807_v61  ;;  %v5809_v29 = vmul.f32 1.442695, %v5806_v51 }
 0xee4   : > { %10064 = vpow2.f32 %v5809_v29 }
 0xee5   : > { %v5923_v21 = vpop.xlane.xlu0 %5922 }
 0xee6   : > { %v5927_v37 = vsub.f32 %v12154_v50, %v5923_v21 }
 0xee7   : > { %v5926_v40 = vpop.xlane.xlu1 %5925 }
 0xee8   : > { %v5929_v41 = vmul.f32 1.442695, %v5927_v37  ;;  %v5928_v17 = vsub.f32 %v12156_v52, %v5926_v40 }
 0xeea   : > { %10066 = vpow2.f32 %v5929_v41  ;;  %v5931_v4 = vmul.f32 1.442695, %v5928_v17 }
 0xeec   : > { %v12298_v56 = vpop.eup %10062  ;;  %10068 = vpow2.f32 %v5931_v4 }
 0xeed   : > { %v6044_v60 = vpop.xlane.xlu0 %6043  ;;  %v5811_v43 = vsel %vm1314_vm2, %v12298_v56, 0.0 }
 0xeee   : > { %v12302_v11 = vpop.eup %10064  ;;  %v6048_v2 = vsub.f32 %v12162_v55, %v6044_v60  ;;  %5812 = vadd.xlane.f32.xlu1 %v5811_v43 }
 0xeef   : > { %v6047_v45 = vpop.xlane.xlu1 %6046  ;;  %v5814_v50 = vsel %vm1314_vm2, %v12302_v11, 0.0 }
 0xef0   : > { %v6050_v39 = vmul.f32 1.442695, %v6048_v2  ;;  %v6049_v52 = vsub.f32 %v12164_v30, %v6047_v45  ;;  %5815 = vadd.xlane.f32.xlu0 %v5814_v50 }
 0xef2   : > { %10070 = vpow2.f32 %v6050_v39  ;;  %v6052_v34 = vmul.f32 1.442695, %v6049_v52 }
 0xef4   : > { %v12308_v0 = vpop.eup %10066  ;;  %10072 = vpow2.f32 %v6052_v34 }
 0xef5   : > { %v6195_v14 = vpop.xlane.xlu0 %6194  ;;  %v5933_v28 = vsel %vm1314_vm2, %v12308_v0, 0.0 }
 0xef6   : > { %v12312_v61 = vpop.eup %10068  ;;  %v6199_v55 = vsub.f32 %v12171_v1, %v6195_v14  ;;  %5934 = vadd.xlane.f32.xlu1 %v5933_v28 }
 0xef7   : > { %v6198_v51 = vpop.xlane.xlu1 %6197  ;;  %v5936_v29 = vsel %vm1314_vm2, %v12312_v61, 0.0 }
 0xef8   : > { %v6201_v30 = vmul.f32 1.442695, %v6199_v55  ;;  %v6200_v21 = vsub.f32 %v12173_v10, %v6198_v51  ;;  %5937 = vadd.xlane.f32.xlu0 %v5936_v29 }
 0xefa   : > { %10074 = vpow2.f32 %v6201_v30  ;;  %v6203_v37 = vmul.f32 1.442695, %v6200_v21 }
 0xefc   : > { %v12318_v40 = vpop.eup %10070  ;;  %10076 = vpow2.f32 %v6203_v37 }
 0xefd   : > { %v6315_v41 = vpop.xlane.xlu0 %6314  ;;  %v6054_v17 = vsel %vm1314_vm2, %v12318_v40, 0.0 }
 0xefe   : > { %v12322_v4 = vpop.eup %10072  ;;  %v6319_v1 = vsub.f32 %v12179_v33, %v6315_v41  ;;  %6055 = vadd.xlane.f32.xlu1 %v6054_v17 }
 0xeff   : > { %v6318_v60 = vpop.xlane.xlu1 %6317  ;;  %v6057_v43 = vsel %vm1314_vm2, %v12322_v4, 0.0 }
 0xf00   : > { %v6321_v10 = vmul.f32 1.442695, %v6319_v1  ;;  %v6320_v2 = vsub.f32 %v12182_v47, %v6318_v60  ;;  %6058 = vadd.xlane.f32.xlu0 %v6057_v43 }
 0xf02   : > { %10078 = vpow2.f32 %v6321_v10  ;;  %v6323_v45 = vmul.f32 1.442695, %v6320_v2 }
 0xf04   : > { %v12328_v50 = vpop.eup %10074  ;;  %10080 = vpow2.f32 %v6323_v45 }
 0xf05   : > { %v6437_v39 = vpop.xlane.xlu0 %6436  ;;  %v6205_v52 = vsel %vm1314_vm2, %v12328_v50, 0.0 }
 0xf06   : > { %v12332_v34 = vpop.eup %10076  ;;  %v6441_v33 = vsub.f32 %v12191_v19, %v6437_v39  ;;  %6206 = vadd.xlane.f32.xlu1 %v6205_v52 }
 0xf07   : > { %v6440_v14 = vpop.xlane.xlu1 %6439  ;;  %v6208_v47 = vsel %vm1314_vm2, %v12332_v34, 0.0 }
 0xf08   : > { %v6443_v28 = vmul.f32 1.442695, %v6441_v33  ;;  %v6442_v55 = vsub.f32 %v12194_v25, %v6440_v14 }
 0xf0a   : > { %10082 = vpow2.f32 %v6443_v28  ;;  %v6445_v51 = vmul.f32 1.442695, %v6442_v55  ;;  %6209 = vadd.xlane.f32.xlu1 %v6208_v47 }
 0xf0c   : > { %v12338_v29 = vpop.eup %10078  ;;  %10084 = vpow2.f32 %v6445_v51 }
 0xf0d   : > { %v12340_v30 = vpop.xlane.xlu0 %6557  ;;  %v6325_v21 = vsel %vm1314_vm2, %v12338_v29, 0.0 }
 0xf0e   : > { %v12344_v19 = vpop.eup %10080  ;;  %6326 = vadd.xlane.f32.xlu1 %v6325_v21 }
 0xf0f   : > { %v12346_v37 = vpop.xlane.xlu1 %6560  ;;  %v6328_v25 = vsel %vm1314_vm2, %v12344_v19, 0.0 }
 0xf10   : > { %6329 = vadd.xlane.f32.xlu0 %v6328_v25 }
 0xf11   : > { %v4785_v41 = vpop.xlane.xlu0 %4784 }
 0xf12   : > { %10086 = vrcp.f32 %v4785_v41 }
 0xf13   : > { %v4788_v17 = vpop.xlane.xlu1 %4787 }
 0xf14   : > { %v12350_v1 = vpop.eup %10082  ;;  %10088 = vrcp.f32 %v4788_v17 }
 0xf15   : > { %v6447_v60 = vsel %vm1314_vm2, %v12350_v1, 0.0  ;;  %v4907_v45 = vpop.xlane.xlu0 %4906 }
 0xf16   : > { %v12354_v43 = vpop.eup %10084  ;;  %6448 = vadd.xlane.f32.xlu0 %v6447_v60 }
 0xf17   : > { %v4910_v10 = vpop.xlane.xlu1 %4909  ;;  %v6450_v2 = vsel %vm1314_vm2, %v12354_v43, 0.0 }
 0xf18   : > { %6451 = vadd.xlane.f32.xlu1 %v6450_v2  ;;  %10090 = vrcp.f32 %v4910_v10 }
 0xf19   : > { %10092 = vrcp.f32 %v4907_v45  ;;  %v5028_v55 = vpop.xlane.xlu0 %5027 }
 0xf1b   : > { %v5031_v52 = vpop.xlane.xlu1 %5030 }
 0xf1c   : > { %v10087_v39 = vpop.eup %10086  ;;  %10094 = vrcp.f32 %v5031_v52 }
 0xf1d   : > { %v4791_v14 = vmul.f32 %v10087_v39, %v12209_v27  ;;  %10096 = vrcp.f32 %v5028_v55  ;;  %v6563_v39 = vsub.f32 %v12205_v15, %v12346_v37 }
 0xf1e   : > { %v10089_v33 = vpop.eup %10088 }
 0xf1f   : > { %v4792_v28 = vmul.f32 %v10089_v33, %v12213_v18  ;;  %v5182_v41 = vpop.xlane.xlu1 %5181  ;;  %v5179_v18 = vpop.xlane.xlu0 %5178 }
 0xf20   : > { %10098 = vrcp.f32 %v5182_v41 }
 0xf21   : > { %v4793_v47 = vpack.c.bf16 %v4792_v28, %v4791_v14  ;;  %10100 = vrcp.f32 %v5179_v18 }
 0xf22   : > { %v10091_v51 = vpop.eup %10090 }
 0xf23   : > { %9198 = vmatmul.mubr.msk.bf16.vlgmr.msra.gmra.mrb[124].mxu1 %vm1314_vm2, %v4793_v47  ;;  %v10093_v21 = vpop.eup %10092  ;;  %v4914_v25 = vmul.f32 %v10091_v51, %v12222_v9 }
 0xf24   : > { %9208 = vmatpush3.bf16.msra.mxu1 %v12123_v32  ;;  %9209 = vmatprep.mubr.msk.bf16.mxu1 %vm10296_vm0, %v13276_v8  ;;  %v4913_v27 = vmul.f32 %v10093_v21, %v12217_v5 }
 0xf25   : > { %9219 = vmatprep.subr.bf16.mxu1 %v13276_v8 }
 0xf26   : > { %v4915_v17 = vpack.c.bf16 %v4914_v25, %v4913_v27  ;;  %v10095_v60 = vpop.eup %10094 }
 0xf27   : > { %v10097_v32 = vpop.eup %10096  ;;  %v5035_v5 = vmul.f32 %v10095_v60, %v12230_v12 }
 0xf28   : > { %v5034_v9 = vmul.f32 %v10097_v32, %v12226_v36  ;;  %v6562_v36 = vsub.f32 %v12202_v62, %v12340_v30 }
 0xf29   : > { %6065 = vrot.lane.b32.xlu1 %v11986_v26, %s13279_s30 }
 0xf2a   : > { %v5036_v10 = vpack.c.bf16 %v5035_v5, %v5034_v9  ;;  %v10099_v2 = vpop.eup %10098  ;;  %v6564_v33 = vmul.f32 1.442695, %v6562_v36 }
 0xf2b   : > { %9210 = vmatmul.mubr.msk.bf16.vlgmr.msra.gmra.mrb[128].mxu1 %vm1314_vm2, %v4915_v17  ;;  %v10101_v45 = vpop.eup %10100 }
 0xf2c   : > { %6337 = vrot.lane.b32.xlu0 %v11981_v59, %s13281_s5  ;;  %9220 = vmatpush3.bf16.msra.mxu1 %v12089_v31  ;;  %v5186_v31 = vmul.f32 %v10099_v2, %v12238_v38  ;;  %v5185_v12 = vmul.f32 %v10101_v45, %v12234_v42  ;;  %10102 = vpow2.f32 %v6564_v33  ;;  %v5299_v38 = vpop.xlane.xlu1 %5298 }
 0xf2d   : > { %9221 = vmatprep.mubr.msk.bf16.mxu1 %vm10296_vm0, %v13276_v8  ;;  %9231 = vmatprep.subr.bf16.mxu1 %v13276_v8 }
 0xf2e   : > { %v5187_v52 = vpack.c.bf16 %v5186_v31, %v5185_v12 }
 0xf30   : > { %6458 = vrot.lane.b32.xlu0 %v11981_v59, %s13280_s8 }
 0xf33   : > { %9222 = vmatmul.mubr.msk.bf16.vlgmr.msra.gmra.mrb[132].mxu1 %vm1314_vm2, %v5036_v10 }
 0xf34   : > { %9232 = vmatpush3.bf16.msra.mxu1 %v11965_v48  ;;  %9233 = vmatprep.mubr.msk.bf16.mxu1 %vm10296_vm0, %v13276_v8  ;;  %v6566_v48 = vmul.f32 1.442695, %v6563_v39 }
 0xf35   : > { %9243 = vmatprep.subr.bf16.mxu1 %v13276_v8 }
 0xf36   : > { %10104 = vpow2.f32 %v6566_v48  ;;  %v12396_v62 = vpop.eup %10102 }
 0xf37   : > { %v6568_v15 = vsel %vm1314_vm2, %v12396_v62, 0.0  ;;  %10106 = vrcp.f32 %v5299_v38 }
 0xf3b   : > { %9234 = vmatmul.mubr.msk.bf16.vlgmr.msra.gmra.mrb[136].mxu1 %vm1314_vm2, %v5187_v52 }
 0xf3c   : > { %9244 = vmatpush3.bf16.msra.mxu1 %v12060_v58  ;;  %9245 = vmatprep.mubr.msk.bf16.mxu1 %vm10296_vm0, %v13276_v8  ;;  %v12404_v58 = vpop.permute.xlu0 %5944 }
 0xf3d   : > { %9255 = vmatprep.subr.bf16.mxu1 %v13276_v8 }
 0xf40   : > { %v12398_v42 = vpop.eup %10104 }
 0xf41   : > { %v6571_v30 = vsel %vm1314_vm2, %v12398_v42, 0.0  ;;  %v10107_v47 = vpop.eup %10106 }
 0xf42   : > { %v5305_v21 = vmul.f32 %v10107_v47, %v12244_v57 }
 0xf4d   : > { %6569 = vadd.xlane.f32.xlu1 %v6568_v15 }
 0xf4f   : > { %6572 = vadd.xlane.f32.xlu0 %v6571_v30 }
 0xf50   : > { %v5302_v37 = vpop.xlane.xlu1 %5301 }
 0xf51   : > { %10108 = vrcp.f32 %v5302_v37 }
 0xf52   : > { %v5421_v14 = vpop.xlane.xlu0 %5420 }
 0xf54   : > { %v5424_v28 = vpop.xlane.xlu1 %5423 }
 0xf55   : > { %10110 = vrcp.f32 %v5424_v28 }
 0xf56   : > { %10112 = vrcp.f32 %v5421_v14 }
 0xf58   : > { %v5542_v55 = vpop.xlane.xlu1 %5541 }
 0xf5b   : > { %v10109_v51 = vpop.eup %10108 }
 0xf5c   : > { %v5306_v25 = vmul.f32 %v10109_v51, %v12260_v63  ;;  %v5545_v41 = vpop.xlane.xlu1 %5544 }
 0xf5d   : > { %10114 = vrcp.f32 %v5545_v41 }
 0xf5e   : > { %v5307_v27 = vpack.c.bf16 %v5306_v25, %v5305_v21  ;;  %10116 = vrcp.f32 %v5542_v55 }
 0xf5f   : > { %v10111_v18 = vpop.eup %10110 }
 0xf60   : > { %v5693_v17 = vpop.xlane.xlu1 %5692  ;;  %9246 = vmatmul.mubr.msk.bf16.vlgmr.msra.gmra.mrb[140].mxu1 %vm1314_vm2, %v5307_v27  ;;  %v10113_v60 = vpop.eup %10112  ;;  %v5428_v32 = vmul.f32 %v10111_v18, %v12267_v13 }
 0xf61   : > { %9256 = vmatpush3.bf16.msra.mxu1 %v12116_v23  ;;  %9257 = vmatprep.mubr.msk.bf16.mxu1 %vm10296_vm0, %v13276_v8  ;;  %v5427_v57 = vmul.f32 %v10113_v60, %v12258_v53 }
 0xf62   : > { %9267 = vmatprep.subr.bf16.mxu1 %v13276_v8 }
 0xf63   : > { %v5429_v5 = vpack.c.bf16 %v5428_v32, %v5427_v57 }
 0xf64   : > { %v5696_v63 = vpop.xlane.xlu1 %5695 }
 0xf65   : > { %10118 = vrcp.f32 %v5696_v63  ;;  %6579 = vrot.lane.b32.xlu0 %v11981_v59, %s13279_s30 }
 0xf66   : > { %10120 = vrcp.f32 %v5693_v17 }
 0xf67   : > { %v10115_v9 = vpop.eup %10114 }
 0xf68   : > { %9258 = vmatmul.mubr.msk.bf16.vlgmr.msra.gmra.mrb[144].mxu1 %vm1314_vm2, %v5429_v5  ;;  %v10117_v23 = vpop.eup %10116  ;;  %v5549_v13 = vmul.f32 %v10115_v9, %v12281_v35 }
 0xf69   : > { %9268 = vmatpush3.bf16.msra.mxu1 %v12072_v16  ;;  %9269 = vmatprep.mubr.msk.bf16.mxu1 %vm10296_vm0, %v13276_v8  ;;  %v5548_v53 = vmul.f32 %v10117_v23, %v12271_v46 }
 0xf6a   : > { %9279 = vmatprep.subr.bf16.mxu1 %v13276_v8 }
 0xf6b   : > { %v5550_v10 = vpack.c.bf16 %v5549_v13, %v5548_v53 }
 0xf6f   : > { %v10119_v2 = vpop.eup %10118 }
 0xf70   : > { %9270 = vmatmul.mubr.msk.bf16.vlgmr.msra.gmra.mrb[148].mxu1 %vm1314_vm2, %v5550_v10  ;;  %v10121_v45 = vpop.eup %10120  ;;  %v5700_v16 = vmul.f32 %v10119_v2, %v12290_v3 }
 0xf71   : > { %9280 = vmatpush3.bf16.msra.mxu1 %v11986_v26  ;;  %9281 = vmatprep.mubr.msk.bf16.mxu1 %vm10296_vm0, %v13276_v8  ;;  %v5699_v35 = vmul.f32 %v10121_v45, %v12286_v20 }
 0xf72   : > { %9291 = vmatprep.subr.bf16.mxu1 %v13276_v8 }
 0xf73   : > { %v5701_v31 = vpack.c.bf16 %v5700_v16, %v5699_v35 }
 0xf78   : > { %9282 = vmatmul.mubr.msk.bf16.vlgmr.msra.gmra.mrb[152].mxu1 %vm1314_vm2, %v5701_v31 }
 0xf79   : > { %9292 = vmatpush3.bf16.msra.mxu1 %v12250_v6  ;;  %9293 = vmatprep.mubr.msk.bf16.mxu1 %vm10296_vm0, %v13276_v8 }
 0xf7a   : > { %9303 = vmatprep.subr.bf16.mxu1 %v13276_v8 }
 0xf7b   : > { %v5813_v26 = vpop.xlane.xlu1 %5812 }
 0xf7c   : > { %10122 = vrcp.f32 %v5813_v26 }
 0xf7d   : > { %v5816_v46 = vpop.xlane.xlu0 %5815 }
 0xf7e   : > { %10124 = vrcp.f32 %v5816_v46 }
 0xf83   : > { %v5935_v36 = vpop.xlane.xlu1 %5934 }
 0xf84   : > { %10126 = vrcp.f32 %v5935_v36 }
 0xf85   : > { %v5938_v3 = vpop.xlane.xlu0 %5937 }
 0xf86   : > { %v10123_v12 = vpop.eup %10122  ;;  %10128 = vrcp.f32 %v5938_v3 }
 0xf87   : > { %v5819_v39 = vmul.f32 %v10123_v12, %v12298_v56 }
 0xf88   : > { %v10125_v20 = vpop.eup %10124 }
 0xf89   : > { %v5820_v52 = vmul.f32 %v10125_v20, %v12302_v11 }
 0xf8b   : > { %v5821_v6 = vpack.c.bf16 %v5820_v52, %v5819_v39  ;;  %v6056_v30 = vpop.xlane.xlu1 %6055 }
 0xf8d   : > { %9294 = vmatmul.mubr.msk.bf16.vlgmr.msra.gmra.mrb[156].mxu1 %vm1314_vm2, %v5821_v6  ;;  %v6059_v11 = vpop.xlane.xlu0 %6058 }
 0xf8e   : > { %v10127_v33 = vpop.eup %10126  ;;  %9304 = vmatpush3.bf16.msra.mxu1 %v12404_v58  ;;  %9305 = vmatprep.mubr.msk.bf16.mxu1 %vm10296_vm0, %v13276_v8  ;;  %10130 = vrcp.f32 %v6059_v11 }
 0xf8f   : > { %9315 = vmatprep.subr.bf16.mxu1 %v13276_v8  ;;  %v5941_v38 = vmul.f32 %v10127_v33, %v12308_v0  ;;  %10132 = vrcp.f32 %v6056_v30 }
 0xf90   : > { %v10129_v48 = vpop.eup %10128 }
 0xf91   : > { %v5942_v15 = vmul.f32 %v10129_v48, %v12312_v61 }
 0xf93   : > { %v5943_v56 = vpack.c.bf16 %v5942_v15, %v5941_v38  ;;  %v6207_v37 = vpop.xlane.xlu1 %6206 }
 0xf95   : > { %9306 = vmatmul.mubr.msk.bf16.vlgmr.msra.gmra.mrb[160].mxu1 %vm1314_vm2, %v5943_v56 }
 0xf96   : > { %9317 = vmatprep.mubr.msk.bf16.mxu1 %vm10296_vm0, %v13276_v8 }
 0xf97   : > { %v6210_v58 = vpop.xlane.xlu1 %6209 }
 0xf98   : > { %10134 = vrcp.f32 %v6210_v58  ;;  %v10131_v61 = vpop.eup %10130 }
 0xf99   : > { %10136 = vrcp.f32 %v6207_v37  ;;  %v10133_v21 = vpop.eup %10132  ;;  %v6063_v25 = vmul.f32 %v10131_v61, %v12322_v4  ;;  %v9712_v61 = vld [vmem:[%s13278_s9 + $0x50] sm:$0xff]  }
 0xf9a   : > { %v6062_v27 = vmul.f32 %v10133_v21, %v12318_v40  ;;  %v9714_v21 = vld [vmem:[%s13278_s9 + $0x60] sm:$0xff]  }
 0xf9b   : > { %v6327_v0 = vpop.xlane.xlu1 %6326 }
 0xf9c   : > { %v6064_v17 = vpack.c.bf16 %v6063_v25, %v6062_v27  ;;  %v9715_v27 = vld [vmem:[%s13278_s9 + $0x68] sm:$0xff]  }
 0xf9d   : > { %v6330_v41 = vpop.xlane.xlu0 %6329 }
 0xf9e   : > { %v12448_v14 = vpop.f32.mrb[120].mxu1  ;;  %10138 = vrcp.f32 %v6330_v41 }
 0xf9f   : > { %v9187_v28 = vpop.f32.mrb[121].mxu1  ;;  %10140 = vrcp.f32 %v6327_v0  ;;  %v9710_v0 = vld [vmem:[%s13278_s9 + $0x40] sm:$0xff]  }
 0xfa0   : > { %v12450_v55 = vpop.f32.mrb[122].mxu1  ;;  %9369 = vmatprep.subr.bf16.mxu0 %v9710_v0 }
 0xfa1   : > { %v9188_v47 = vpop.f32.mrb[123].mxu1  ;;  %9370 = vmatpush3.bf16.msra.mxu0 %v9710_v0 }
 0xfa2   : > { %v10135_v60 = vpop.eup %10134  ;;  %v9711_v47 = vld [vmem:[%s13278_s9 + $0x48] sm:$0xff]  }
 0xfa3   : > { %v10137_v32 = vpop.eup %10136  ;;  %v6214_v4 = vmul.f32 %v10135_v60, %v12332_v34  ;;  %v6449_v57 = vpop.xlane.xlu0 %6448  ;;  %9371 = vmatprep.subr.bf16.mxu0 %v9711_v47 }
 0xfa4   : > { %v6213_v40 = vmul.f32 %v10137_v32, %v12328_v50 }
 0xfa5   : > { %v6452_v51 = vpop.xlane.xlu1 %6451  ;;  %9372 = vmatpush3.bf16.msra.mxu0 %v9711_v47 }
 0xfa6   : > { %10142 = vrcp.f32 %v6452_v51  ;;  %v6215_v63 = vpack.c.bf16 %v6214_v4, %v6213_v40  ;;  %9373 = vmatprep.subr.bf16.mxu0 %v9712_v61  ;;  %v9713_v51 = vld [vmem:[%s13278_s9 + $0x58] sm:$0xff]  }
 0xfa7   : > { %10144 = vrcp.f32 %v6449_v57  ;;  %v6338_v9 = vpop.permute.xlu0 %6337  ;;  %v9717_v40 = vld [vmem:[%s13278_s9 + $0x78] sm:$0xff]  }
 0xfa8   : > { %v10139_v5 = vpop.eup %10138 }
 0xfa9   : > { %v6066_v18 = vpop.permute.xlu1 %6065  ;;  %v10141_v23 = vpop.eup %10140  ;;  %9374 = vmatpush3.bf16.msra.mxu0 %v9712_v61 }
 0xfaa   : > { %9316 = vmatpush3.bf16.msra.mxu1 %v6066_v18  ;;  %v6333_v34 = vmul.f32 %v10141_v23, %v12338_v29  ;;  %9375 = vmatprep.subr.bf16.mxu0 %v9713_v51 }
 0xfab   : > { %9327 = vmatprep.subr.bf16.mxu1 %v13276_v8  ;;  %v6459_v53 = vpop.permute.xlu0 %6458 }
 0xfad   : > { %9318 = vmatmul.mubr.msk.bf16.vlgmr.msra.gmra.mrb[164].mxu1 %vm1314_vm2, %v6064_v17  ;;  %9376 = vmatpush3.bf16.msra.mxu0 %v9713_v51  ;;  %v9716_v17 = vld [vmem:[%s13278_s9 + $0x70] sm:$0xff]  }
 0xfae   : > { %9328 = vmatpush3.bf16.msra.mxu1 %v11981_v59  ;;  %9329 = vmatprep.mubr.msk.bf16.mxu1 %vm10296_vm0, %v13276_v8  ;;  %v6334_v59 = vmul.f32 %v10139_v5, %v12344_v19 }
 0xfaf   : > { %9339 = vmatprep.subr.bf16.mxu1 %v13276_v8  ;;  %9377 = vmatprep.subr.bf16.mxu0 %v9714_v21 }
 0xfb0   : > { %v6335_v13 = vpack.c.bf16 %v6334_v59, %v6333_v34  ;;  %v10143_v50 = vpop.eup %10142 }
 0xfb1   : > { %v10145_v10 = vpop.eup %10144  ;;  %v6456_v2 = vmul.f32 %v10143_v50, %v12354_v43  ;;  %9378 = vmatpush3.bf16.msra.mxu0 %v9714_v21 }
 0xfb2   : > { %v6455_v19 = vmul.f32 %v10145_v10, %v12350_v1  ;;  %9379 = vmatprep.subr.bf16.mxu0 %v9715_v27 }
 0xfb4   : > { %v6457_v45 = vpack.c.bf16 %v6456_v2, %v6455_v19 }
 0xfb5   : > { %9330 = vmatmul.mubr.msk.bf16.vlgmr.msra.gmra.mrb[168].mxu1 %vm1314_vm2, %v6215_v63  ;;  %9380 = vmatpush3.bf16.msra.mxu0 %v9715_v27 }
 0xfb6   : > { %9340 = vmatpush3.bf16.msra.mxu1 %v6338_v9  ;;  %9341 = vmatprep.mubr.msk.bf16.mxu1 %vm10296_vm0, %v13276_v8 }
 0xfb7   : > { %9351 = vmatprep.subr.bf16.mxu1 %v13276_v8  ;;  %9381 = vmatprep.subr.bf16.mxu0 %v9716_v17 }
 0xfb9   : > { %9382 = vmatpush3.bf16.msra.mxu0 %v9716_v17 }
 0xfba   : > { %9383 = vmatprep.subr.bf16.mxu0 %v9717_v40 }
 0xfbd   : > { %9342 = vmatmul.mubr.msk.bf16.vlgmr.msra.gmra.mrb[172].mxu1 %vm1314_vm2, %v6335_v13  ;;  %9384 = vmatpush3.bf16.msra.mxu0 %v9717_v40 }
 0xfbe   : > { %9352 = vmatpush3.bf16.msra.mxu1 %v6459_v53  ;;  %9353 = vmatprep.mubr.msk.bf16.mxu1 %vm10296_vm0, %v13276_v8 }
 0xfbf   : > { %9363 = vmatprep.subr.bf16.mxu1 %v13276_v8 }
 0xfc5   : > { %9354 = vmatmul.mubr.msk.bf16.vlgmr.msra.gmra.mrb[176].mxu1 %vm1314_vm2, %v6457_v45 }
 0xfc6   : > { %9365 = vmatprep.mubr.msk.bf16.mxu1 %vm10296_vm0, %v13276_v8 }
 0xfda   : > { %v6570_v29 = vpop.xlane.xlu1 %6569 }
 0xfdb   : > { %10146 = vrcp.f32 %v6570_v29 }
 0xfdc   : > { %v6573_v16 = vpop.xlane.xlu0 %6572 }
 0xfdd   : > { %10148 = vrcp.f32 %v6573_v16 }
 0xfe0   : > { %v6580_v35 = vpop.permute.xlu0 %6579 }
 0xfe1   : > { %9364 = vmatpush3.bf16.msra.mxu1 %v6580_v35 }
 0xfe5   : > { %v10147_v31 = vpop.eup %10146 }
 0xfe6   : > { %v6576_v43 = vmul.f32 %v10147_v31, %v12396_v62 }
 0xfe7   : > { %v10149_v26 = vpop.eup %10148 }
 0xfe8   : > { %v6577_v46 = vmul.f32 %v10149_v26, %v12398_v42 }
 0xfea   : > { %v6578_v36 = vpack.c.bf16 %v6577_v46, %v6576_v43 }
 0xfec   : > { %9366 = vmatmul.mubr.msk.bf16.vlgmr.msra.gmra.mrb[180].mxu1 %vm1314_vm2, %v6578_v36 }
 0xfed   : > { %7063 = vmatprep.mubr.bf16.mxu1 %v13277_v22 }
 0xff6   : > { %v4835_v1 = vpop.f32.mrb[124].mxu1 }
 0xff7   : > { %v9199_v3 = vpop.f32.mrb[125].mxu1 }
 0xff8   : > { %v4838_v12 = vpop.f32.mrb[126].mxu1 }
 0xff9   : > { %v9538_v20 = vpack.i.bf16 %v4838_v12, %v4835_v1  ;;  %v9200_v39 = vpop.f32.mrb[127].mxu1 }
 0xffb   : > { %9539 = vrot.lane.b32.xlu1 %v9538_v20, %s13279_s30 }
 0xffe   : > { %v4956_v52 = vpop.f32.mrb[128].mxu1 }
 0xfff   : > { %v9211_v6 = vpop.f32.mrb[129].mxu1 }
0x1000   : > { %v4959_v33 = vpop.f32.mrb[130].mxu1 }
0x1001   : > { %v9543_v48 = vpack.i.bf16 %v4959_v33, %v4956_v52  ;;  %v9212_v38 = vpop.f32.mrb[131].mxu1 }
0x1003   : > { %9544 = vrot.lane.b32.xlu0 %v9543_v48, %s13280_s8 }
0x1006   : > { %v5077_v62 = vpop.f32.mrb[132].mxu1 }
0x1007   : > { %v9223_v42 = vpop.f32.mrb[133].mxu1 }
0x1008   : > { %v5080_v15 = vpop.f32.mrb[134].mxu1 }
0x1009   : > { %v9548_v30 = vpack.i.bf16 %v5080_v15, %v5077_v62  ;;  %v9224_v56 = vpop.f32.mrb[135].mxu1 }
0x100b   : > { %9549 = vrot.lane.b32.xlu0 %v9548_v30, %s13281_s5 }
0x100e   : > { %v12484_v37 = vpop.f32.mrb[136].mxu1 }
0x100f   : > { %v9235_v11 = vpop.f32.mrb[137].mxu1 }
0x1010   : > { %v12486_v58 = vpop.f32.mrb[138].mxu1 }
0x1011   : > { %v9236_v28 = vpop.f32.mrb[139].mxu1 }
0x1033   : > { %v5349_v25 = vpop.f32.mrb[140].mxu1 }
0x1034   : > { %v9247_v41 = vpop.f32.mrb[141].mxu1 }
0x1035   : > { %v5352_v18 = vpop.f32.mrb[142].mxu1 }
0x1036   : > { %v9553_v60 = vpack.i.bf16 %v5352_v18, %v5349_v25  ;;  %v9248_v32 = vpop.f32.mrb[143].mxu1 }
0x1038   : > { %9554 = vrot.lane.b32.xlu0 %v9553_v60, %s13279_s30 }
0x103b   : > { %v5470_v4 = vpop.f32.mrb[144].mxu1 }
0x103c   : > { %v9259_v57 = vpop.f32.mrb[145].mxu1 }
0x103d   : > { %v5473_v63 = vpop.f32.mrb[146].mxu1 }
0x103e   : > { %v9558_v5 = vpack.i.bf16 %v5473_v63, %v5470_v4  ;;  %v9260_v9 = vpop.f32.mrb[147].mxu1 }
0x1040   : > { %9559 = vrot.lane.b32.xlu0 %v9558_v5, %s13280_s8 }
0x1043   : > { %v5591_v23 = vpop.f32.mrb[148].mxu1 }
0x1044   : > { %v9271_v59 = vpop.f32.mrb[149].mxu1 }
0x1045   : > { %v5594_v34 = vpop.f32.mrb[150].mxu1 }
0x1046   : > { %v9563_v13 = vpack.i.bf16 %v5594_v34, %v5591_v23  ;;  %v9272_v50 = vpop.f32.mrb[151].mxu1 }
0x1048   : > { %9564 = vrot.lane.b32.xlu1 %v9563_v13, %s13281_s5 }
0x104b   : > { %v12515_v53 = vpop.f32.mrb[152].mxu1 }
0x104c   : > { %v9283_v10 = vpop.f32.mrb[153].mxu1 }
0x104d   : > { %v12517_v2 = vpop.f32.mrb[154].mxu1 }
0x104e   : > { %v9284_v19 = vpop.f32.mrb[155].mxu1 }
0x1060   : > { %v5863_v45 = vpop.f32.mrb[156].mxu1 }
0x1061   : > { %v9295_v29 = vpop.f32.mrb[157].mxu1 }
0x1062   : > { %v5866_v16 = vpop.f32.mrb[158].mxu1 }
0x1063   : > { %v9568_v35 = vpack.i.bf16 %v5866_v16, %v5863_v45  ;;  %v9296_v31 = vpop.f32.mrb[159].mxu1 }
0x1065   : > { %9569 = vrot.lane.b32.xlu0 %v9568_v35, %s13279_s30 }
0x1068   : > { %v5984_v26 = vpop.f32.mrb[160].mxu1 }
0x1069   : > { %v9307_v43 = vpop.f32.mrb[161].mxu1 }
0x106a   : > { %v5987_v46 = vpop.f32.mrb[162].mxu1 }
0x106b   : > { %v9573_v36 = vpack.i.bf16 %v5987_v46, %v5984_v26  ;;  %v9308_v1 = vpop.f32.mrb[163].mxu1 }
0x106d   : > { %9574 = vrot.lane.b32.xlu1 %v9573_v36, %s13280_s8  ;;  %v9540_v3 = vpop.permute.xlu1 %9539 }
0x106e   : > { %v9542_v20 = vunpack.i.h.bf16 %v9540_v3  ;;  %v9541_v39 = vunpack.i.l.bf16 %v9540_v3 }
0x1070   : > { %v5109_v48 = vsel %vm1266_vm1, %v12450_v55, %v9542_v20  ;;  %v5108_v38 = vsel %vm1266_vm1, %v12448_v14, %v9541_v39 }
0x1075   : > { %v9545_v12 = vpop.permute.xlu0 %9544 }
0x1076   : > { %v9547_v52 = vunpack.i.h.bf16 %v9545_v12  ;;  %v9546_v6 = vunpack.i.l.bf16 %v9545_v12 }
0x1078   : > { %v5111_v15 = vsel %vm1774_vm3, %v5109_v48, %v9547_v52  ;;  %v5110_v30 = vsel %vm1774_vm3, %v5108_v38, %v9546_v6 }
0x107d   : > { %v9550_v33 = vpop.permute.xlu0 %9549 }
0x107e   : > { %v9552_v62 = vunpack.i.h.bf16 %v9550_v33  ;;  %v9551_v42 = vunpack.i.l.bf16 %v9550_v33 }
0x1080   : > { %v6105_v56 = vpop.f32.mrb[164].mxu1  ;;  %v5112_v28 = vsel %vm1777_vm4, %v5110_v30, %v9551_v42  ;;  %v5113_v0 = vsel %vm1777_vm4, %v5111_v15, %v9552_v62 }
0x1081   : > { %v9319_v11 = vpop.f32.mrb[165].mxu1  ;;  %v5114_v61 = vpack.c.bf16 %v5113_v0, %v5112_v28 }
0x1082   : > { %v6108_v47 = vpop.f32.mrb[166].mxu1 }
0x1083   : > { %v9578_v51 = vpack.i.bf16 %v6108_v47, %v6105_v56  ;;  %v9320_v21 = vpop.f32.mrb[167].mxu1  ;;  %9385 = vmatprep.mubr.bf16.mxu0 %v5114_v61 }
0x1085   : > { %9579 = vrot.lane.b32.xlu1 %v9578_v51, %s13281_s5 }
0x1088   : > { %v12530_v14 = vpop.f32.mrb[168].mxu1 }
0x1089   : > { %v9331_v55 = vpop.f32.mrb[169].mxu1 }
0x108a   : > { %v6256_v25 = vpop.f32.mrb[170].mxu1 }
0x108b   : > { %v9332_v41 = vpop.f32.mrb[171].mxu1 }
0x1090   : > { %v6377_v27 = vpop.f32.mrb[172].mxu1 }
0x1091   : > { %v9343_v18 = vpop.f32.mrb[173].mxu1 }
0x1092   : > { %v6380_v17 = vpop.f32.mrb[174].mxu1 }
0x1093   : > { %v9583_v60 = vpack.i.bf16 %v6380_v17, %v6377_v27  ;;  %v9344_v32 = vpop.f32.mrb[175].mxu1 }
0x1095   : > { %9584 = vrot.lane.b32.xlu0 %v9583_v60, %s13279_s30 }
0x1098   : > { %v6498_v4 = vpop.f32.mrb[176].mxu1 }
0x1099   : > { %v9355_v57 = vpop.f32.mrb[177].mxu1 }
0x109a   : > { %v6501_v40 = vpop.f32.mrb[178].mxu1 }
0x109b   : > { %v9588_v63 = vpack.i.bf16 %v6501_v40, %v6498_v4  ;;  %v9356_v5 = vpop.f32.mrb[179].mxu1 }
0x109d   : > { %9589 = vrot.lane.b32.xlu0 %v9588_v63, %s13280_s8  ;;  %v8466_v63 = vld [vmem:[%s13282_s26 + $0x1] ss:$0 sm:$0xff]  ;;  %s13301_s8 = sld [smem:[#allocation31_spill]] }
0x10aa   : > { %v9555_v9 = vpop.permute.xlu0 %9554 }
0x10ab   : > { %v9557_v59 = vunpack.i.h.bf16 %v9555_v9  ;;  %v9556_v34 = vunpack.i.l.bf16 %v9555_v9 }
0x10ad   : > { %v5623_v19 = vsel %vm1266_vm1, %v12486_v58, %v9557_v59  ;;  %v5622_v45 = vsel %vm1266_vm1, %v12484_v37, %v9556_v34 }
0x10b2   : > { %v9560_v23 = vpop.permute.xlu0 %9559 }
0x10b3   : > { %v9562_v13 = vunpack.i.h.bf16 %v9560_v23  ;;  %v9561_v50 = vunpack.i.l.bf16 %v9560_v23 }
0x10b5   : > { %v5624_v35 = vsel %vm1774_vm3, %v5622_v45, %v9561_v50  ;;  %v5625_v31 = vsel %vm1774_vm3, %v5623_v19, %v9562_v13 }
0x10ba   : > { %v9565_v10 = vpop.permute.xlu1 %9564 }
0x10bb   : > { %v9567_v29 = vunpack.i.h.bf16 %v9565_v10  ;;  %v9566_v16 = vunpack.i.l.bf16 %v9565_v10 }
0x10bd   : > { %v5626_v26 = vsel %vm1777_vm4, %v5624_v35, %v9566_v16  ;;  %v5627_v43 = vsel %vm1777_vm4, %v5625_v31, %v9567_v29 }
0x10be   : > { %v5628_v46 = vpack.c.bf16 %v5627_v43, %v5626_v26 }
0x10bf   : > { %v6619_v36 = vpop.f32.mrb[180].mxu1 }
0x10c0   : > { %v9367_v1 = vpop.f32.mrb[181].mxu1  ;;  %9386 = vmatmul.mubr.bf16.vlgmr.msra.gmra.mrb[160].mxu0 %v5628_v46 }
0x10c1   : > { %v6622_v3 = vpop.f32.mrb[182].mxu1 }
0x10c2   : > { %v9593_v12 = vpack.i.bf16 %v6622_v3, %v6619_v36  ;;  %v9368_v58 = vpop.f32.mrb[183].mxu1  ;;  %v13294_v36 = vld [vmem:[#allocation18_spill] sm:$0xff] }
0x10c4   : > { %9594 = vrot.lane.b32.xlu1 %v9593_v12, %s13281_s5  ;;  %s13302_s5 = sld [smem:[#allocation7_spill]] }
0x10d7   : > { %v9570_v37 = vpop.permute.xlu0 %9569 }
0x10d8   : > { %v9572_v39 = vunpack.i.h.bf16 %v9570_v37  ;;  %v9571_v52 = vunpack.i.l.bf16 %v9570_v37 }
0x10da   : > { %v6137_v38 = vsel %vm1266_vm1, %v12517_v2, %v9572_v39  ;;  %v6136_v62 = vsel %vm1266_vm1, %v12515_v53, %v9571_v52 }
0x10df   : > { %v9575_v20 = vpop.permute.xlu1 %9574 }
0x10e0   : > { %v9577_v6 = vunpack.i.h.bf16 %v9575_v20  ;;  %v9576_v33 = vunpack.i.l.bf16 %v9575_v20 }
0x10e2   : > { %v6138_v30 = vsel %vm1774_vm3, %v6136_v62, %v9576_v33  ;;  %v6139_v56 = vsel %vm1774_vm3, %v6137_v38, %v9577_v6 }
0x10f7   : > { %v9580_v48 = vpop.permute.xlu1 %9579 }
0x10f8   : > { %v9582_v42 = vunpack.i.h.bf16 %v9580_v48  ;;  %v9581_v15 = vunpack.i.l.bf16 %v9580_v48 }
0x10fa   : > { %v6140_v11 = vsel %vm1777_vm4, %v6138_v30, %v9581_v15  ;;  %v6141_v28 = vsel %vm1777_vm4, %v6139_v56, %v9582_v42  ;;  %v9718_v56 = vld [vmem:[%s13284_s27 + $0x80] ss:$8 sps:$4 sm:$0xff]  }
0x10fb   : > { %v6142_v0 = vpack.c.bf16 %v6141_v28, %v6140_v11  ;;  %v9720_v11 = vld [vmem:[%s13284_s27 + $0x84] ss:$8 sps:$4 sm:$0xff]   ;;  %v9723_v28 = vld [vmem:[%s13284_s27 + $0x94] ss:$8 sps:$4 sm:$0xff]  }
0x10fc   : > { %7031 = vmatprep.subr.bf16.mxu1 %v9720_v11 }
0x10fd   : > { %9389 = vmatprep.mubr.bf16.mxu0 %v6142_v0  ;;  %7032 = vmatpush1.bf16.msra.mxu1 %v9718_v56 }
0x10fe   : > { %7033 = vmatprep.subr.bf16.mxu1 %v9723_v28 }
0x1107   : > { %v9585_v47 = vpop.permute.xlu0 %9584 }
0x1108   : > { %v9587_v51 = vunpack.i.h.bf16 %v9585_v47  ;;  %v9586_v21 = vunpack.i.l.bf16 %v9585_v47  ;;  %v9721_v47 = vld [vmem:[%s13284_s27 + $0x90] ss:$8 sps:$4 sm:$0xff]  }
0x1109   : > { %7034 = vmatpush1.bf16.msra.mxu1 %v9721_v47 }
0x110a   : > { %v6651_v53 = vsel %vm1266_vm1, %v6256_v25, %v9587_v51  ;;  %v6650_v27 = vsel %vm1266_vm1, %v12530_v14, %v9586_v21  ;;  %v9726_v51 = vld [vmem:[%s13284_s27 + $0xa4] ss:$8 sps:$4 sm:$0xff]   ;;  %v9724_v21 = vld [vmem:[%s13284_s27 + $0xa0] ss:$8 sps:$4 sm:$0xff]  }
0x110b   : > { %7035 = vmatprep.subr.bf16.mxu1 %v9726_v51 }
0x110d   : > { %7036 = vmatpush1.bf16.msra.mxu1 %v9724_v21 }
0x110f   : > { %v9590_v61 = vpop.permute.xlu0 %9589 }
0x1110   : > { %v9592_v2 = vunpack.i.h.bf16 %v9590_v61  ;;  %v9591_v55 = vunpack.i.l.bf16 %v9590_v61 }
0x1112   : > { %v6652_v60 = vsel %vm1774_vm3, %v6650_v27, %v9591_v55  ;;  %v6653_v32 = vsel %vm1774_vm3, %v6651_v53, %v9592_v2  ;;  %v9729_v2 = vld [vmem:[%s13284_s27 + $0xb4] ss:$8 sps:$4 sm:$0xff]   ;;  %v9727_v55 = vld [vmem:[%s13284_s27 + $0xb0] ss:$8 sps:$4 sm:$0xff]   ;;  %v9730_v53 = vld [vmem:[%s13284_s27 + $0xc0] ss:$8 sps:$4 sm:$0xff]  }
0x1113   : > { %7037 = vmatprep.subr.bf16.mxu1 %v9729_v2  ;;  %v9735_v27 = vld [vmem:[%s13284_s27 + $0xd4] ss:$8 sps:$4 sm:$0xff]  }
0x1114   : > { %7038 = vmatpush1.bf16.msra.mxu1 %v9727_v55  ;;  %v9744_v55 = vld [vmem:[%s13182_s10 + $0xc8] sm:$0xff]  }
0x1136   : > { %v9595_v41 = vpop.permute.xlu1 %9594 }
0x1137   : > { %v9597_v18 = vunpack.i.h.bf16 %v9595_v41  ;;  %v9596_v17 = vunpack.i.l.bf16 %v9595_v41  ;;  %v9732_v41 = vld [vmem:[%s13284_s27 + $0xc4] ss:$8 sps:$4 sm:$0xff]  }
0x1138   : > { %7039 = vmatprep.subr.bf16.mxu1 %v9732_v41  ;;  %v9745_v41 = vld [vmem:[%s13182_s10 + $0x88] sm:$0xff]  }
0x1139   : > { %v6654_v4 = vsel %vm1777_vm4, %v6652_v60, %v9596_v17  ;;  %v6655_v57 = vsel %vm1777_vm4, %v6653_v32, %v9597_v18  ;;  %7040 = vmatpush1.bf16.msra.mxu1 %v9730_v53  ;;  %v9733_v18 = vld [vmem:[%s13284_s27 + $0xd0] ss:$8 sps:$4 sm:$0xff]   ;;  %v9736_v17 = vld [vmem:[%s13284_s27 + $0xe0] ss:$8 sps:$4 sm:$0xff]   ;;  %v9738_v60 = vld [vmem:[%s13284_s27 + $0xe4] ss:$8 sps:$4 sm:$0xff]  }
0x113a   : > { %v6656_v40 = vpack.c.bf16 %v6655_v57, %v6654_v4  ;;  %7041 = vmatprep.subr.bf16.mxu1 %v9735_v27  ;;  %v9741_v32 = vld [vmem:[%s13284_s27 + $0xf4] ss:$8 sps:$4 sm:$0xff]   ;;  %v9739_v4 = vld [vmem:[%s13284_s27 + $0xf0] ss:$8 sps:$4 sm:$0xff]  }
0x113b   : > { %v9746_v53 = vld [vmem:[%s13182_s10 + $0xd0] sm:$0xff]  }
0x113c   : > { %9390 = vmatmul.mubr.bf16.gmra.mrb[164].mxu0 %v6656_v40  ;;  %v9747_v27 = vld [vmem:[%s13182_s10 + $0x90] sm:$0xff]  }
0x113d   : > { %7042 = vmatpush1.bf16.msra.mxu1 %v9733_v18 }
0x113e   : > { %7043 = vmatprep.subr.bf16.mxu1 %v9738_v60  ;;  %v9748_v60 = vld [vmem:[%s13182_s10 + $0xd8] sm:$0xff]  }
0x1141   : > { %7044 = vmatpush1.bf16.msra.mxu1 %v9736_v17 }
0x1142   : > { %7045 = vmatprep.subr.bf16.mxu1 %v9741_v32 }
0x1145   : > { %7046 = vmatpush1.bf16.msra.mxu1 %v9739_v4  ;;  %v9749_v4 = vld [vmem:[%s13182_s10 + $0x98] sm:$0xff]  }
0x1146   : > { %9393 = vmatprep.subr.bf16.mxu1 %v13276_v8 }
0x1193   : > { %v9387_v25 = vpop.f32.mrb[160].mxu0 }
0x1194   : > { %v6764_v5 = vpop.f32.mrb[161].mxu0  ;;  %v6773_v59 = vadd.f32 %v9387_v25, %v8466_v63 }
0x1195   : > { %v6765_v9 = vadd.f32 %v8466_v63, %v6764_v5  ;;  %v9388_v14 = vpop.f32.mrb[162].mxu0 }
0x1196   : > { %v6767_v23 = vpop.f32.mrb[163].mxu0  ;;  %v6797_v10 = vadd.f32 %v6773_v59, %v11806_v49  ;;  %v6776_v19 = vadd.f32 %v9388_v14, %v8466_v63  ;;  %v13295_v49 = vld [vmem:[#allocation19_spill] sm:$0xff] }
0x1197   : > { %v6795_v34 = vadd.f32 %v6765_v9, %v11787_v44  ;;  %v6768_v13 = vadd.f32 %v8466_v63, %v6767_v23 }
0x1198   : > { %v6798_v45 = vadd.f32 %v6776_v19, %v11809_v54  ;;  %v13296_v54 = vld [vmem:[#allocation20_spill] sm:$0xff] }
0x1199   : > { %v6796_v50 = vadd.f32 %v6768_v13, %v11790_v24  ;;  %6805 = vadd.xlane.f32.xlu0 %v6795_v34 }
0x119b   : > { %6807 = vadd.xlane.f32.xlu1 %v6796_v50 }
0x119d   : > { %6809 = vadd.xlane.f32.xlu0 %v6797_v10 }
0x11a1   : > { %6811 = vadd.xlane.f32.xlu0 %v6798_v45 }
0x120f   : > { %v9391_v29 = vpop.f32.mrb[164].mxu0 }
0x1210   : > { %v6780_v16 = vpop.f32.mrb[165].mxu0  ;;  %v6789_v43 = vadd.f32 %v9391_v29, %v8466_v63 }
0x1211   : > { %v6781_v35 = vadd.f32 %v8466_v63, %v6780_v16  ;;  %v9392_v31 = vpop.f32.mrb[166].mxu0 }
0x1212   : > { %v6783_v26 = vpop.f32.mrb[167].mxu0  ;;  %v6792_v24 = vadd.f32 %v9392_v31, %v8466_v63  ;;  %v12573_v3 = vadd.f32 %v6789_v43, %v13295_v49 }
0x1213   : > { %v12566_v44 = vadd.f32 %v6781_v35, %v11841_v7  ;;  %v6784_v46 = vadd.f32 %v8466_v63, %v6783_v26 }
0x1214   : > { %v12577_v12 = vadd.f32 %v6792_v24, %v13296_v54  ;;  %v8475_v54 = vld [vmem:[%s13285_s21 + $0x2] sm:$0x3] }
0x1215   : > { %v12569_v1 = vadd.f32 %v6784_v46, %v13294_v36  ;;  %6813 = vadd.xlane.f32.xlu0 %v12566_v44 }
0x1217   : > { %6815 = vadd.xlane.f32.xlu1 %v12569_v1 }
0x1219   : > { %6817 = vadd.xlane.f32.xlu0 %v12573_v3 }
0x121b   : > { %6819 = vadd.xlane.f32.xlu1 %v12577_v12 }
0x1226   : > { %v6806_v7 = vpop.xlane.xlu0 %6805 }
0x1227   : > { %v6821_v58 = vmul.f32 0.0078125, %v6806_v7 }
0x1228   : > { %v6808_v37 = vpop.xlane.xlu1 %6807 }
0x1229   : > { %v12581_v20 = vsub.f32 %v6795_v34, %v6821_v58  ;;  %v6822_v39 = vmul.f32 0.0078125, %v6808_v37 }
0x122a   : > { %v6810_v52 = vpop.xlane.xlu0 %6809 }
0x122b   : > { %v12583_v6 = vsub.f32 %v6796_v50, %v6822_v39  ;;  %v6823_v33 = vmul.f32 0.0078125, %v6810_v52  ;;  %v6837_v48 = vmul.f32 %v12581_v20, %v12581_v20 }
0x122d   : > { %v12587_v38 = vsub.f32 %v6797_v10, %v6823_v33  ;;  %6845 = vadd.xlane.f32.xlu0 %v6837_v48  ;;  %v6838_v62 = vmul.f32 %v12583_v6, %v12583_v6  ;;  %v13298_v48 = vld [vmem:[#allocation17_spill] sm:$0xff] }
0x122e   : > { %v6812_v42 = vpop.xlane.xlu0 %6811 }
0x122f   : > { %v6824_v15 = vmul.f32 0.0078125, %v6812_v42  ;;  %6847 = vadd.xlane.f32.xlu1 %v6838_v62  ;;  %v6839_v30 = vmul.f32 %v12587_v38, %v12587_v38  ;;  %v12676_v62 = vrot.slane %v8475_v54, %v13298_v48 }
0x1231   : > { %v12602_v0 = vsub.f32 %v6798_v45, %v6824_v15  ;;  %6849 = vadd.xlane.f32.xlu0 %v6839_v30 }
0x1233   : > { %v6840_v61 = vmul.f32 %v12602_v0, %v12602_v0 }
0x1235   : > { %6851 = vadd.xlane.f32.xlu1 %v6840_v61 }
0x12a2   : > { %v6814_v57 = vpop.xlane.xlu0 %6813 }
0x12a3   : > { %v6825_v40 = vmul.f32 0.0078125, %v6814_v57 }
0x12a4   : > { %v6816_v63 = vpop.xlane.xlu1 %6815 }
0x12a5   : > { %v12647_v25 = vsub.f32 %v12566_v44, %v6825_v40  ;;  %v6826_v5 = vmul.f32 0.0078125, %v6816_v63 }
0x12a6   : > { %v6818_v9 = vpop.xlane.xlu0 %6817 }
0x12a7   : > { %v12650_v14 = vsub.f32 %v12569_v1, %v6826_v5  ;;  %v6827_v23 = vmul.f32 0.0078125, %v6818_v9  ;;  %v6841_v59 = vmul.f32 %v12647_v25, %v12647_v25 }
0x12a8   : > { %v6820_v34 = vpop.xlane.xlu1 %6819 }
0x12a9   : > { %v12655_v13 = vsub.f32 %v12573_v3, %v6827_v23  ;;  %v6828_v50 = vmul.f32 0.0078125, %v6820_v34  ;;  %6853 = vadd.xlane.f32.xlu0 %v6841_v59  ;;  %v6842_v10 = vmul.f32 %v12650_v14, %v12650_v14  ;;  %v9750_v23 = vld [vmem:[%s13182_s10 + $0xe0] sm:$0xff]  }
0x12aa   : > { %v9751_v34 = vld [vmem:[%s13182_s10 + $0xa0] sm:$0xff]  }
0x12ab   : > { %v12660_v19 = vsub.f32 %v12577_v12, %v6828_v50  ;;  %6855 = vadd.xlane.f32.xlu1 %v6842_v10  ;;  %v6843_v45 = vmul.f32 %v12655_v13, %v12655_v13  ;;  %v13297_v12 = vld [vmem:[#allocation16_spill] sm:$0xff] }
0x12ac   : > { %v12670_v7 = vrot.slane %v8475_v54, %v13297_v12 }
0x12ad   : > { %6857 = vadd.xlane.f32.xlu0 %v6843_v45  ;;  %v6844_v29 = vmul.f32 %v12660_v19, %v12660_v19 }
0x12af   : > { %6859 = vadd.xlane.f32.xlu1 %v6844_v29  ;;  %v9752_v29 = vld [vmem:[%s13182_s10 + $0xe8] sm:$0xff]  }
0x12ba   : > { %v6846_v16 = vpop.xlane.xlu0 %6845 }
0x12bb   : > { %v6861_v35 = vmul.f32 0.0078125, %v6846_v16  ;;  %v9753_v16 = vld [vmem:[%s13182_s10 + $0xa8] sm:$0xff]  }
0x12bc   : > { %v6848_v31 = vpop.xlane.xlu1 %6847 }
0x12bd   : > { %v6869_v26 = vadd.f32 1e-05, %v6861_v35  ;;  %v6862_v43 = vmul.f32 0.0078125, %v6848_v31  ;;  %v9754_v35 = vld [vmem:[%s13182_s10 + $0xf0] sm:$0xff]  }
0x12be   : > { %v6850_v44 = vpop.xlane.xlu0 %6849  ;;  %v9755_v31 = vld [vmem:[%s13182_s10 + $0xb0] sm:$0xff]  }
0x12bf   : > { %10150 = vrsqrt.f32 %v6869_v26  ;;  %v6870_v46 = vadd.f32 1e-05, %v6862_v43  ;;  %v6863_v24 = vmul.f32 0.0078125, %v6850_v44 }
0x12c1   : > { %10152 = vrsqrt.f32 %v6870_v46  ;;  %v6871_v36 = vadd.f32 1e-05, %v6863_v24  ;;  %v9756_v46 = vld [vmem:[%s13182_s10 + $0xf8] sm:$0xff]  }
0x12c2   : > { %v6852_v1 = vpop.xlane.xlu1 %6851  ;;  %v9757_v24 = vld [vmem:[%s13182_s10 + $0xb8] sm:$0xff]  }
0x12c3   : > { %10154 = vrsqrt.f32 %v6871_v36  ;;  %v6864_v49 = vmul.f32 0.0078125, %v6852_v1 }
0x12c5   : > { %v6872_v3 = vadd.f32 1e-05, %v6864_v49 }
0x12c7   : > { %10156 = vrsqrt.f32 %v6872_v3 }
0x12c9   : > { %v10151_v58 = vpop.eup %10150 }
0x12ca   : > { %v6885_v37 = vmul.f32 %v10151_v58, %v12581_v20 }
0x12cb   : > { %v10153_v39 = vpop.eup %10152 }
0x12cc   : > { %v6886_v52 = vmul.f32 %v10153_v39, %v12583_v6  ;;  %v6897_v33 = vmul.f32 %v12670_v7, %v6885_v37 }
0x12cd   : > { %v10155_v42 = vpop.eup %10154 }
0x12ce   : > { %v6898_v15 = vmul.f32 %v12670_v7, %v6886_v52  ;;  %v12680_v30 = vadd.f32 %v12676_v62, %v6897_v33  ;;  %v6887_v11 = vmul.f32 %v10155_v42, %v12587_v38  ;;  %v9742_v38 = vld [vmem:[%s13182_s10 + $0xc0] sm:$0xff]  }
0x12cf   : > { %8833 = vmatprep.subr.bf16.mxu0 %v9742_v38 }
0x12d0   : > { %v6910_v56 = vadd.f32 %v12676_v62, %v6898_v15  ;;  %v6899_v47 = vmul.f32 %v12670_v7, %v6887_v11 }
0x12d1   : > { %v10157_v28 = vpop.eup %10156 }
0x12d2   : > { %v6917_v20 = vpack.c.bf16 %v6910_v56, %v12680_v30  ;;  %v6888_v6 = vmul.f32 %v10157_v28, %v12602_v0  ;;  %v12691_v21 = vadd.f32 %v12676_v62, %v6899_v47  ;;  %v9743_v0 = vld [vmem:[%s13182_s10 + $0x80] sm:$0xff]  }
0x12d3   : > { %8834 = vmatpush3.bf16.msra.mxu0 %v9743_v0 }
0x12d4   : > { %7064 = vmatmul.mubr.bf16.vlgmr.msra.gmra.mrb[184].mxu1 %v6917_v20  ;;  %v6900_v61 = vmul.f32 %v12670_v7, %v6888_v6  ;;  %8835 = vmatprep.subr.bf16.mxu0 %v9744_v55 }
0x12d5   : > { %7073 = vmatprep.mubr.bf16.mxu1 %v13277_v22 }
0x12d6   : > { %v6912_v51 = vadd.f32 %v12676_v62, %v6900_v61 }
0x12d7   : > { %8836 = vmatpush3.bf16.msra.mxu0 %v9745_v41 }
0x12d8   : > { %v6918_v2 = vpack.c.bf16 %v6912_v51, %v12691_v21  ;;  %8837 = vmatprep.subr.bf16.mxu0 %v9746_v53 }
0x12db   : > { %8838 = vmatpush3.bf16.msra.mxu0 %v9747_v27 }
0x12dc   : > { %7074 = vmatmul.mubr.bf16.gmra.mrb[188].mxu1 %v6918_v2  ;;  %8839 = vmatprep.subr.bf16.mxu0 %v9748_v60 }
0x12dd   : > { %7083 = vmatprep.mubr.bf16.mxu1 %v13277_v22 }
0x12df   : > { %8840 = vmatpush3.bf16.msra.mxu0 %v9749_v4 }
0x12e0   : > { %8841 = vmatprep.subr.bf16.mxu0 %v9750_v23 }
0x12e3   : > { %8842 = vmatpush3.bf16.msra.mxu0 %v9751_v34 }
0x12e4   : > { %8843 = vmatprep.subr.bf16.mxu0 %v9752_v29 }
0x12e7   : > { %8844 = vmatpush3.bf16.msra.mxu0 %v9753_v16 }
0x12e8   : > { %8845 = vmatprep.subr.bf16.mxu0 %v9754_v35 }
0x12eb   : > { %8846 = vmatpush3.bf16.msra.mxu0 %v9755_v31 }
0x12ec   : > { %8847 = vmatprep.subr.bf16.mxu0 %v9756_v46 }
0x12ef   : > { %8848 = vmatpush3.bf16.msra.mxu0 %v9757_v24 }
0x1336   : > { %v6854_v18 = vpop.xlane.xlu0 %6853 }
0x1337   : > { %v6865_v17 = vmul.f32 0.0078125, %v6854_v18 }
0x1338   : > { %v6856_v32 = vpop.xlane.xlu1 %6855 }
0x1339   : > { %v6873_v57 = vadd.f32 1e-05, %v6865_v17  ;;  %v6866_v40 = vmul.f32 0.0078125, %v6856_v32 }
0x133a   : > { %v6858_v63 = vpop.xlane.xlu0 %6857 }
0x133b   : > { %10158 = vrsqrt.f32 %v6873_v57  ;;  %v6874_v5 = vadd.f32 1e-05, %v6866_v40  ;;  %v6867_v9 = vmul.f32 0.0078125, %v6858_v63 }
0x133c   : > { %v6860_v59 = vpop.xlane.xlu1 %6859 }
0x133d   : > { %10160 = vrsqrt.f32 %v6874_v5  ;;  %v6875_v50 = vadd.f32 1e-05, %v6867_v9  ;;  %v6868_v10 = vmul.f32 0.0078125, %v6860_v59 }
0x133f   : > { %10162 = vrsqrt.f32 %v6875_v50  ;;  %v6876_v45 = vadd.f32 1e-05, %v6868_v10 }
0x1341   : > { %10164 = vrsqrt.f32 %v6876_v45 }
0x1345   : > { %v10159_v26 = vpop.eup %10158 }
0x1346   : > { %v6889_v43 = vmul.f32 %v10159_v26, %v12647_v25 }
0x1347   : > { %v10161_v44 = vpop.eup %10160 }
0x1348   : > { %v6890_v36 = vmul.f32 %v10161_v44, %v12650_v14  ;;  %v6901_v1 = vmul.f32 %v12670_v7, %v6889_v43 }
0x1349   : > { %v10163_v49 = vpop.eup %10162 }
0x134a   : > { %v6902_v3 = vmul.f32 %v12670_v7, %v6890_v36  ;;  %v12748_v54 = vadd.f32 %v12676_v62, %v6901_v1  ;;  %v6891_v37 = vmul.f32 %v10163_v49, %v12655_v13  ;;  %v8492_v13 = vld [vmem:[%s13288_s24 + $0x2] sm:$0x3] }
0x134b   : > { %v10165_v25 = vpop.eup %10164 }
0x134c   : > { %v6914_v58 = vadd.f32 %v12676_v62, %v6902_v3  ;;  %v6892_v39 = vmul.f32 %v10165_v25, %v12660_v19  ;;  %v6903_v33 = vmul.f32 %v12670_v7, %v6891_v37  ;;  %v12768_v19 = vrot.slane %v8492_v13, %v13297_v12 }
0x134e   : > { %v6919_v52 = vpack.c.bf16 %v6914_v58, %v12748_v54  ;;  %v6904_v14 = vmul.f32 %v12670_v7, %v6892_v39  ;;  %v12759_v15 = vadd.f32 %v12676_v62, %v6903_v33  ;;  %v12771_v7 = vrot.slane %v8492_v13, %v13298_v48 }
0x1350   : > { %7084 = vmatmul.mubr.bf16.gmra.mrb[192].mxu1 %v6919_v52  ;;  %v6916_v42 = vadd.f32 %v12676_v62, %v6904_v14 }
0x1351   : > { %7093 = vmatprep.mubr.bf16.mxu1 %v13277_v22 }
0x1352   : > { %v6920_v56 = vpack.c.bf16 %v6916_v42, %v12759_v15 }
0x1358   : > { %7094 = vmatmul.mubr.bf16.gmra.mrb[196].mxu1 %v6920_v56 }
0x1359   : > { %9409 = vmatprep.mubr.msk.bf16.mxu1 %vm10296_vm0, %v13276_v8 }
0x13a7   : > { %v7065_v11 = vpop.f32.mrb[184].mxu1 }
0x13a8   : > { %v12774_v62 = vadd.f32 %v7065_v11, %v12768_v19  ;;  %v7067_v28 = vpop.f32.mrb[185].mxu1 }
0x13a9   : > { %v12777_v20 = vadd.f32 %v7067_v28, %v12771_v7  ;;  %v7069_v6 = vpop.f32.mrb[186].mxu1 }
0x13aa   : > { %v7104_v47 = vmul.f32 %v12774_v62, %v12774_v62  ;;  %v12782_v61 = vadd.f32 %v7069_v6, %v12768_v19  ;;  %v7071_v51 = vpop.f32.mrb[187].mxu1 }
0x13ab   : > { %v7105_v2 = vmul.f32 %v12777_v20, %v12777_v20  ;;  %v12787_v38 = vadd.f32 %v7071_v51, %v12771_v7 }
0x13ac   : > { %v7120_v0 = vmul.f32 %v7104_v47, %v12774_v62  ;;  %v7106_v55 = vmul.f32 %v12782_v61, %v12782_v61 }
0x13ad   : > { %v7121_v41 = vmul.f32 %v7105_v2, %v12777_v20  ;;  %v7107_v53 = vmul.f32 %v12787_v38, %v12787_v38 }
0x13ae   : > { %v7136_v27 = vmul.f32 0.044715, %v7120_v0  ;;  %v7122_v18 = vmul.f32 %v7106_v55, %v12782_v61 }
0x13af   : > { %v7137_v17 = vmul.f32 0.044715, %v7121_v41  ;;  %v7123_v60 = vmul.f32 %v7107_v53, %v12787_v38  ;;  %v7075_v32 = vpop.f32.mrb[188].mxu1 }
0x13b0   : > { %v7152_v4 = vadd.f32 %v7136_v27, %v12774_v62  ;;  %v7138_v57 = vmul.f32 0.044715, %v7122_v18  ;;  %v12799_v40 = vadd.f32 %v7075_v32, %v12768_v19  ;;  %v7077_v63 = vpop.f32.mrb[189].mxu1 }
0x13b1   : > { %v7153_v5 = vadd.f32 %v7137_v17, %v12777_v20  ;;  %v7139_v9 = vmul.f32 0.044715, %v7123_v60  ;;  %v12803_v23 = vadd.f32 %v7077_v63, %v12771_v7  ;;  %v7079_v59 = vpop.f32.mrb[190].mxu1 }
0x13b2   : > { %v7168_v34 = vmul.f32 0.7978846, %v7152_v4  ;;  %v7154_v50 = vadd.f32 %v7138_v57, %v12782_v61  ;;  %v7108_v10 = vmul.f32 %v12799_v40, %v12799_v40  ;;  %v12809_v45 = vadd.f32 %v7079_v59, %v12768_v19  ;;  %v7081_v29 = vpop.f32.mrb[191].mxu1 }
0x13b3   : > { %v7169_v16 = vmul.f32 0.7978846, %v7153_v5  ;;  %v7155_v35 = vadd.f32 %v7139_v9, %v12787_v38  ;;  %v7109_v31 = vmul.f32 %v12803_v23, %v12803_v23  ;;  %v12815_v26 = vadd.f32 %v7081_v29, %v12771_v7 }
0x13b4   : > { %10166 = vtanh.f32 %v7168_v34  ;;  %v7170_v43 = vmul.f32 0.7978846, %v7154_v50  ;;  %v7124_v44 = vmul.f32 %v7108_v10, %v12799_v40  ;;  %v7110_v46 = vmul.f32 %v12809_v45, %v12809_v45 }
0x13b5   : > { %10168 = vtanh.f32 %v7169_v16  ;;  %v7171_v24 = vmul.f32 0.7978846, %v7155_v35  ;;  %v7125_v36 = vmul.f32 %v7109_v31, %v12803_v23  ;;  %v7111_v1 = vmul.f32 %v12815_v26, %v12815_v26 }
0x13b6   : > { %10170 = vtanh.f32 %v7170_v43  ;;  %v7140_v49 = vmul.f32 0.044715, %v7124_v44  ;;  %v7126_v3 = vmul.f32 %v7110_v46, %v12809_v45 }
0x13b7   : > { %10172 = vtanh.f32 %v7171_v24  ;;  %v7141_v25 = vmul.f32 0.044715, %v7125_v36  ;;  %v7127_v58 = vmul.f32 %v7111_v1, %v12815_v26 }
0x13b8   : > { %v7156_v37 = vadd.f32 %v7140_v49, %v12799_v40  ;;  %v7142_v39 = vmul.f32 0.044715, %v7126_v3 }
0x13b9   : > { %v7157_v52 = vadd.f32 %v7141_v25, %v12803_v23  ;;  %v7143_v14 = vmul.f32 0.044715, %v7127_v58 }
0x13ba   : > { %v7172_v33 = vmul.f32 0.7978846, %v7156_v37  ;;  %v7158_v42 = vadd.f32 %v7142_v39, %v12809_v45 }
0x13bb   : > { %v7173_v56 = vmul.f32 0.7978846, %v7157_v52  ;;  %v7159_v13 = vadd.f32 %v7143_v14, %v12815_v26 }
0x13bc   : > { %10174 = vtanh.f32 %v7172_v33  ;;  %v7174_v11 = vmul.f32 0.7978846, %v7158_v42 }
0x13bd   : > { %10176 = vtanh.f32 %v7173_v56  ;;  %v7175_v28 = vmul.f32 0.7978846, %v7159_v13 }
0x13be   : > { %v10167_v6 = vpop.eup %10166  ;;  %10178 = vtanh.f32 %v7174_v11 }
0x13bf   : > { %v10169_v47 = vpop.eup %10168  ;;  %v7200_v51 = vadd.f32 1.0, %v10167_v6  ;;  %10180 = vtanh.f32 %v7175_v28 }
0x13c0   : > { %v10171_v2 = vpop.eup %10170  ;;  %v7201_v0 = vadd.f32 1.0, %v10169_v47 }
0x13c1   : > { %v10173_v55 = vpop.eup %10172  ;;  %v7216_v41 = vmul.f32 0.5, %v7200_v51  ;;  %v7202_v53 = vadd.f32 1.0, %v10171_v2 }
0x13c2   : > { %v7203_v27 = vadd.f32 1.0, %v10173_v55  ;;  %v7217_v18 = vmul.f32 0.5, %v7201_v0 }
0x13c3   : > { %v7218_v17 = vmul.f32 0.5, %v7202_v53  ;;  %v7232_v32 = vmul.f32 %v7216_v41, %v12774_v62 }
0x13c4   : > { %v7219_v60 = vmul.f32 0.5, %v7203_v27  ;;  %v7233_v63 = vmul.f32 %v7217_v18, %v12777_v20 }
0x13c5   : > { %v7234_v4 = vmul.f32 %v7218_v17, %v12782_v61 }
0x13c6   : > { %v10175_v57 = vpop.eup %10174  ;;  %v7235_v5 = vmul.f32 %v7219_v60, %v12787_v38 }
0x13c7   : > { %v10177_v9 = vpop.eup %10176  ;;  %v7248_v59 = vpack.c.bf16 %v7234_v4, %v7232_v32  ;;  %v7204_v34 = vadd.f32 1.0, %v10175_v57 }
0x13c8   : > { %v10179_v50 = vpop.eup %10178  ;;  %v7249_v10 = vpack.c.bf16 %v7235_v5, %v7233_v63  ;;  %v7205_v29 = vadd.f32 1.0, %v10177_v9 }
0x13c9   : > { %v10181_v16 = vpop.eup %10180  ;;  %v7206_v35 = vadd.f32 1.0, %v10179_v50  ;;  %v7220_v31 = vmul.f32 0.5, %v7204_v34 }
0x13ca   : > { %7425 = vmatprep.mubr.bf16.mxu0 %v7249_v10  ;;  %v7207_v43 = vadd.f32 1.0, %v10181_v16  ;;  %v7221_v44 = vmul.f32 0.5, %v7205_v29 }
0x13cb   : > { %7426 = vmatmul.mubr.bf16.vlgmr.msra.gmra.mrb[168].mxu0 %v7248_v59  ;;  %v7222_v62 = vmul.f32 0.5, %v7206_v35  ;;  %v7236_v46 = vmul.f32 %v7220_v31, %v12799_v40 }
0x13cc   : > { %v7223_v61 = vmul.f32 0.5, %v7207_v43  ;;  %v7237_v38 = vmul.f32 %v7221_v44, %v12803_v23 }
0x13cd   : > { %v7238_v20 = vmul.f32 %v7222_v62, %v12809_v45 }
0x13ce   : > { %v7239_v24 = vmul.f32 %v7223_v61, %v12815_v26 }
0x13cf   : > { %v7250_v36 = vpack.c.bf16 %v7238_v20, %v7236_v46 }
0x13d0   : > { %v7251_v1 = vpack.c.bf16 %v7239_v24, %v7237_v38 }
0x13d2   : > { %7432 = vmatprep.mubr.bf16.mxu0 %v7251_v1 }
0x13d3   : > { %7433 = vmatmul.mubr.bf16.gmra.mrb[172].mxu0 %v7250_v36 }
0x1423   : > { %v7085_v49 = vpop.f32.mrb[192].mxu1 }
0x1424   : > { %v12838_v3 = vadd.f32 %v7085_v49, %v12768_v19  ;;  %v7087_v25 = vpop.f32.mrb[193].mxu1 }
0x1425   : > { %v12841_v58 = vadd.f32 %v7087_v25, %v12771_v7  ;;  %v7089_v37 = vpop.f32.mrb[194].mxu1 }
0x1426   : > { %v7112_v40 = vmul.f32 %v12838_v3, %v12838_v3  ;;  %v12846_v23 = vadd.f32 %v7089_v37, %v12768_v19  ;;  %v7091_v45 = vpop.f32.mrb[195].mxu1 }
0x1427   : > { %v7113_v26 = vmul.f32 %v12841_v58, %v12841_v58  ;;  %v12851_v39 = vadd.f32 %v7091_v45, %v12771_v7 }
0x1428   : > { %v7128_v52 = vmul.f32 %v7112_v40, %v12838_v3  ;;  %v7114_v14 = vmul.f32 %v12846_v23, %v12846_v23 }
0x1429   : > { %v7129_v33 = vmul.f32 %v7113_v26, %v12841_v58  ;;  %v7115_v42 = vmul.f32 %v12851_v39, %v12851_v39 }
0x142a   : > { %v7144_v56 = vmul.f32 0.044715, %v7128_v52  ;;  %v7130_v13 = vmul.f32 %v7114_v14, %v12846_v23 }
0x142b   : > { %v7145_v11 = vmul.f32 0.044715, %v7129_v33  ;;  %v7131_v28 = vmul.f32 %v7115_v42, %v12851_v39  ;;  %v7095_v6 = vpop.f32.mrb[196].mxu1 }
0x142c   : > { %v7160_v47 = vadd.f32 %v7144_v56, %v12838_v3  ;;  %v7146_v51 = vmul.f32 0.044715, %v7130_v13  ;;  %v12863_v2 = vadd.f32 %v7095_v6, %v12768_v19  ;;  %v7097_v0 = vpop.f32.mrb[197].mxu1 }
0x142d   : > { %v7161_v55 = vadd.f32 %v7145_v11, %v12841_v58  ;;  %v7147_v41 = vmul.f32 0.044715, %v7131_v28  ;;  %v12867_v53 = vadd.f32 %v7097_v0, %v12771_v7  ;;  %v7099_v27 = vpop.f32.mrb[198].mxu1 }
0x142e   : > { %v7176_v18 = vmul.f32 0.7978846, %v7160_v47  ;;  %v7162_v17 = vadd.f32 %v7146_v51, %v12846_v23  ;;  %v7116_v60 = vmul.f32 %v12863_v2, %v12863_v2  ;;  %v12873_v32 = vadd.f32 %v7099_v27, %v12768_v19  ;;  %v7101_v4 = vpop.f32.mrb[199].mxu1 }
0x142f   : > { %v7177_v57 = vmul.f32 0.7978846, %v7161_v55  ;;  %v7163_v63 = vadd.f32 %v7147_v41, %v12851_v39  ;;  %v7117_v5 = vmul.f32 %v12867_v53, %v12867_v53  ;;  %v12879_v9 = vadd.f32 %v7101_v4, %v12771_v7 }
0x1430   : > { %10182 = vtanh.f32 %v7176_v18  ;;  %v7178_v59 = vmul.f32 0.7978846, %v7162_v17  ;;  %v7132_v34 = vmul.f32 %v7116_v60, %v12863_v2  ;;  %v7118_v50 = vmul.f32 %v12873_v32, %v12873_v32 }
0x1431   : > { %10184 = vtanh.f32 %v7177_v57  ;;  %v7179_v19 = vmul.f32 0.7978846, %v7163_v63  ;;  %v7133_v10 = vmul.f32 %v7117_v5, %v12867_v53  ;;  %v7119_v29 = vmul.f32 %v12879_v9, %v12879_v9 }
0x1432   : > { %10186 = vtanh.f32 %v7178_v59  ;;  %v7148_v16 = vmul.f32 0.044715, %v7132_v34  ;;  %v7134_v35 = vmul.f32 %v7118_v50, %v12873_v32 }
0x1433   : > { %10188 = vtanh.f32 %v7179_v19  ;;  %v7149_v7 = vmul.f32 0.044715, %v7133_v10  ;;  %v7135_v31 = vmul.f32 %v7119_v29, %v12879_v9 }
0x1434   : > { %v7164_v43 = vadd.f32 %v7148_v16, %v12863_v2  ;;  %v7150_v44 = vmul.f32 0.044715, %v7134_v35 }
0x1435   : > { %v7165_v62 = vadd.f32 %v7149_v7, %v12867_v53  ;;  %v7151_v61 = vmul.f32 0.044715, %v7135_v31 }
0x1436   : > { %v7180_v46 = vmul.f32 0.7978846, %v7164_v43  ;;  %v7166_v20 = vadd.f32 %v7150_v44, %v12873_v32 }
0x1437   : > { %v7181_v38 = vmul.f32 0.7978846, %v7165_v62  ;;  %v7167_v24 = vadd.f32 %v7151_v61, %v12879_v9 }
0x1438   : > { %10190 = vtanh.f32 %v7180_v46  ;;  %v7182_v36 = vmul.f32 0.7978846, %v7166_v20 }
0x1439   : > { %10192 = vtanh.f32 %v7181_v38  ;;  %v7183_v1 = vmul.f32 0.7978846, %v7167_v24 }
0x143a   : > { %v10183_v49 = vpop.eup %10182  ;;  %10194 = vtanh.f32 %v7182_v36 }
0x143b   : > { %v10185_v25 = vpop.eup %10184  ;;  %10196 = vtanh.f32 %v7183_v1  ;;  %v7208_v37 = vadd.f32 1.0, %v10183_v49 }
0x143c   : > { %v10187_v40 = vpop.eup %10186  ;;  %v7209_v45 = vadd.f32 1.0, %v10185_v25 }
0x143d   : > { %v10189_v26 = vpop.eup %10188  ;;  %v7210_v52 = vadd.f32 1.0, %v10187_v40  ;;  %v7224_v14 = vmul.f32 0.5, %v7208_v37 }
0x143e   : > { %v7211_v33 = vadd.f32 1.0, %v10189_v26  ;;  %v7225_v42 = vmul.f32 0.5, %v7209_v45 }
0x143f   : > { %v7226_v56 = vmul.f32 0.5, %v7210_v52  ;;  %v7240_v11 = vmul.f32 %v7224_v14, %v12838_v3 }
0x1440   : > { %v7227_v13 = vmul.f32 0.5, %v7211_v33  ;;  %v7241_v47 = vmul.f32 %v7225_v42, %v12841_v58 }
0x1441   : > { %v7242_v28 = vmul.f32 %v7226_v56, %v12846_v23 }
0x1442   : > { %v10191_v6 = vpop.eup %10190  ;;  %v7243_v51 = vmul.f32 %v7227_v13, %v12851_v39 }
0x1443   : > { %v10193_v0 = vpop.eup %10192  ;;  %v7252_v55 = vpack.c.bf16 %v7242_v28, %v7240_v11  ;;  %v7212_v41 = vadd.f32 1.0, %v10191_v6 }
0x1444   : > { %v10195_v27 = vpop.eup %10194  ;;  %v7253_v18 = vpack.c.bf16 %v7243_v51, %v7241_v47  ;;  %v7213_v17 = vadd.f32 1.0, %v10193_v0 }
0x1445   : > { %v10197_v60 = vpop.eup %10196  ;;  %v7214_v4 = vadd.f32 1.0, %v10195_v27  ;;  %v7228_v57 = vmul.f32 0.5, %v7212_v41  ;;  %v9758_v27 = vld [vmem:[%s13185_s13] sm:$0xff]  }
0x1446   : > { %7439 = vmatprep.mubr.bf16.mxu0 %v7253_v18  ;;  %v7215_v63 = vadd.f32 1.0, %v10197_v60  ;;  %v7229_v5 = vmul.f32 0.5, %v7213_v17  ;;  %9394 = vmatpush3.bf16.msra.mxu1 %v9758_v27  ;;  %v9759_v18 = vld [vmem:[%s13185_s13 + $0x8] sm:$0xff]   ;;  %v9760_v17 = vld [vmem:[%s13185_s13 + $0x10] sm:$0xff]   ;;  %v9761_v60 = vld [vmem:[%s13185_s13 + $0x18] sm:$0xff]  }
0x1447   : > { %7440 = vmatmul.mubr.bf16.gmra.mrb[176].mxu0 %v7252_v55  ;;  %v7230_v3 = vmul.f32 0.5, %v7214_v4  ;;  %v7244_v59 = vmul.f32 %v7228_v57, %v12863_v2  ;;  %9395 = vmatprep.subr.bf16.mxu1 %v13276_v8  ;;  %v9762_v4 = vld [vmem:[%s13185_s13 + $0x20] sm:$0xff]   ;;  %v9763_v57 = vld [vmem:[%s13185_s13 + $0x28] sm:$0xff]   ;;  %v9787_v27 = vld [vmem:[%s13187_s15 + $0x70] ss:$8 sps:$4 sm:$0xff]  }
0x1448   : > { %v7231_v23 = vmul.f32 0.5, %v7215_v63  ;;  %v7245_v39 = vmul.f32 %v7229_v5, %v12867_v53  ;;  %v8542_v53 = vld [vmem:[%s13183_s11 + $0x1] ss:$0 sm:$0xff]  ;;  %v9764_v63 = vld [vmem:[%s13185_s13 + $0x30] sm:$0xff]   ;;  %v9765_v5 = vld [vmem:[%s13185_s13 + $0x38] sm:$0xff]  }
0x1449   : > { %v7246_v58 = vmul.f32 %v7230_v3, %v12873_v32  ;;  %v9766_v3 = vld [vmem:[%s13187_s15] ss:$8 sps:$4 sm:$0xff]  }
0x144a   : > { %v7247_v34 = vmul.f32 %v7231_v23, %v12879_v9  ;;  %9396 = vmatpush3.bf16.msra.mxu1 %v9759_v18  ;;  %v9768_v23 = vld [vmem:[%s13187_s15 + $0x4] ss:$8 sps:$4 sm:$0xff]   ;;  %v8560_v18 = vld [vmem:[%s13186_s14] ss:$0 sm:$0xff] }
0x144b   : > { %v7254_v50 = vpack.c.bf16 %v7246_v58, %v7244_v59  ;;  %9397 = vmatprep.subr.bf16.mxu1 %v13276_v8  ;;  %v9771_v59 = vld [vmem:[%s13187_s15 + $0x14] ss:$8 sps:$4 sm:$0xff]   ;;  %7757 = vmatprep.subr.bf16.mxu0 %v9768_v23  ;;  %v9769_v58 = vld [vmem:[%s13187_s15 + $0x10] ss:$8 sps:$4 sm:$0xff]   ;;  %v9790_v23 = vld [vmem:[%s13191_s19 + $0x40] sm:$0xff]  }
0x144c   : > { %v7255_v19 = vpack.c.bf16 %v7247_v34, %v7245_v39  ;;  %7758 = vmatpush1.bf16.msra.mxu0 %v9766_v3  ;;  %v9774_v39 = vld [vmem:[%s13187_s15 + $0x24] ss:$8 sps:$4 sm:$0xff]   ;;  %v9772_v34 = vld [vmem:[%s13187_s15 + $0x20] ss:$8 sps:$4 sm:$0xff]  }
0x144d   : > { %7759 = vmatprep.subr.bf16.mxu0 %v9771_v59  ;;  %v9791_v59 = vld [vmem:[%s13191_s19] sm:$0xff]  }
0x144e   : > { %7446 = vmatprep.mubr.bf16.mxu0 %v7255_v19  ;;  %9398 = vmatpush3.bf16.msra.mxu1 %v9760_v17  ;;  %v9775_v19 = vld [vmem:[%s13187_s15 + $0x30] ss:$8 sps:$4 sm:$0xff]  }
0x144f   : > { %7447 = vmatmul.mubr.bf16.gmra.mrb[180].mxu0 %v7254_v50  ;;  %9399 = vmatprep.subr.bf16.mxu1 %v13276_v8  ;;  %v9777_v50 = vld [vmem:[%s13187_s15 + $0x34] ss:$8 sps:$4 sm:$0xff]  }
0x1450   : > { %7789 = vmatprep.mubr.bf16.mxu0 %v13277_v22  ;;  %7760 = vmatpush1.bf16.msra.mxu0 %v9769_v58  ;;  %v9792_v58 = vld [vmem:[%s13191_s19 + $0x48] sm:$0xff]  }
0x1451   : > { %7761 = vmatprep.subr.bf16.mxu0 %v9774_v39  ;;  %v9793_v39 = vld [vmem:[%s13191_s19 + $0x8] sm:$0xff]  }
0x1452   : > { %9400 = vmatpush3.bf16.msra.mxu1 %v9761_v60 }
0x1453   : > { %9401 = vmatprep.subr.bf16.mxu1 %v13276_v8 }
0x1454   : > { %7762 = vmatpush1.bf16.msra.mxu0 %v9772_v34  ;;  %v9794_v34 = vld [vmem:[%s13191_s19 + $0x50] sm:$0xff]  }
0x1455   : > { %7763 = vmatprep.subr.bf16.mxu0 %v9777_v50  ;;  %v9795_v50 = vld [vmem:[%s13191_s19 + $0x10] sm:$0xff]  }
0x1456   : > { %9402 = vmatpush3.bf16.msra.mxu1 %v9762_v4 }
0x1457   : > { %9403 = vmatprep.subr.bf16.mxu1 %v13276_v8 }
0x1458   : > { %7764 = vmatpush1.bf16.msra.mxu0 %v9775_v19  ;;  %v9796_v19 = vld [vmem:[%s13191_s19 + $0x58] sm:$0xff]  }
0x145a   : > { %9404 = vmatpush3.bf16.msra.mxu1 %v9763_v57 }
0x145b   : > { %9405 = vmatprep.subr.bf16.mxu1 %v13276_v8 }
0x145e   : > { %9406 = vmatpush3.bf16.msra.mxu1 %v9764_v63 }
0x145f   : > { %9407 = vmatprep.subr.bf16.mxu1 %v13276_v8 }
0x1462   : > { %9408 = vmatpush3.bf16.msra.mxu1 %v9765_v5 }
0x1463   : > { %8882 = vmatprep.subr.bf16.mxu1 %v9790_v23  ;;  %v9810_v23 = vld [vmem:[%s13300_s7 + $0x20] sm:$0xff]  }
0x149e   : > { %v8849_v10 = vpop.f32.mrb[168].mxu0 }
0x149f   : > { %v8850_v29 = vpop.f32.mrb[169].mxu0 }
0x14a0   : > { %v8851_v16 = vadd.f32 %v8850_v29, %v8849_v10  ;;  %v8852_v35 = vpop.f32.mrb[170].mxu0 }
0x14a1   : > { %v8853_v7 = vpop.f32.mrb[171].mxu0 }
0x14a2   : > { %v7428_v62 = vadd.f32 %v8851_v16, %v8542_v53 }
0x14a4   : > { %v7454_v22 = vadd.f32 %v7428_v62, %v12680_v30 }
0x14a6   : > { %v8855_v31 = vpop.f32.mrb[172].mxu0 }
0x14a7   : > { %v8856_v43 = vpop.f32.mrb[173].mxu0 }
0x14a8   : > { %v8857_v2 = vadd.f32 %v8856_v43, %v8855_v31  ;;  %v8858_v44 = vpop.f32.mrb[174].mxu0 }
0x14a9   : > { %v8859_v32 = vpop.f32.mrb[175].mxu0 }
0x14aa   : > { %v7435_v9 = vadd.f32 %v8857_v2, %v8542_v53 }
0x14ac   : > { %v7455_v61 = vadd.f32 %v7435_v9, %v12691_v21 }
0x14ae   : > { %7462 = vadd.xlane.f32.xlu0 %v7455_v61 }
0x14b2   : > { %7460 = vadd.xlane.f32.xlu0 %v7454_v22 }
0x151a   : > { %v8861_v46 = vpop.f32.mrb[176].mxu0 }
0x151b   : > { %v8862_v20 = vpop.f32.mrb[177].mxu0 }
0x151c   : > { %v8863_v38 = vadd.f32 %v8862_v20, %v8861_v46  ;;  %v8864_v24 = vpop.f32.mrb[178].mxu0 }
0x151d   : > { %v8865_v36 = vpop.f32.mrb[179].mxu0 }
0x151e   : > { %v7442_v1 = vadd.f32 %v8863_v38, %v8542_v53 }
0x1520   : > { %v7456_v49 = vadd.f32 %v7442_v1, %v12748_v54 }
0x1522   : > { %7464 = vadd.xlane.f32.xlu1 %v7456_v49  ;;  %v8867_v25 = vpop.f32.mrb[180].mxu0 }
0x1523   : > { %v8868_v37 = vpop.f32.mrb[181].mxu0 }
0x1524   : > { %v8869_v40 = vadd.f32 %v8868_v37, %v8867_v25  ;;  %v8870_v45 = vpop.f32.mrb[182].mxu0 }
0x1525   : > { %v8871_v26 = vpop.f32.mrb[183].mxu0 }
0x1526   : > { %v7449_v52 = vadd.f32 %v8869_v40, %v8542_v53 }
0x1528   : > { %v7457_v21 = vadd.f32 %v7449_v52, %v12759_v15 }
0x152a   : > { %7466 = vadd.xlane.f32.xlu1 %v7457_v21 }
0x153b   : > { %v7463_v30 = vpop.xlane.xlu0 %7462 }
0x153c   : > { %v7469_v14 = vmul.f32 0.0078125, %v7463_v30 }
0x153e   : > { %v12909_v33 = vsub.f32 %v7455_v61, %v7469_v14  ;;  %v8559_v61 = vld [vmem:[%s13184_s12 + $0x2] sm:$0x3] }
0x153f   : > { %v7461_v42 = vpop.xlane.xlu0 %7460  ;;  %v7507_v20 = vrot.slane %v8559_v61, %v13297_v12 }
0x1540   : > { %v7468_v56 = vmul.f32 0.0078125, %v7461_v42  ;;  %v7477_v13 = vmul.f32 %v12909_v33, %v12909_v33 }
0x1542   : > { %v12913_v54 = vsub.f32 %v7454_v22, %v7468_v56  ;;  %7482 = vadd.xlane.f32.xlu0 %v7477_v13 }
0x1544   : > { %v7476_v11 = vmul.f32 %v12913_v54, %v12913_v54 }
0x1546   : > { %7480 = vadd.xlane.f32.xlu0 %v7476_v11 }
0x15af   : > { %v7465_v28 = vpop.xlane.xlu1 %7464 }
0x15b0   : > { %v7470_v6 = vmul.f32 0.0078125, %v7465_v28 }
0x15b2   : > { %v12917_v15 = vsub.f32 %v7456_v49, %v7470_v6  ;;  %v7515_v49 = vrot.slane %v8559_v61, %v13298_v48  ;;  %v9780_v6 = vld [vmem:[%s13187_s15 + $0x44] ss:$8 sps:$4 sm:$0xff]  }
0x15b3   : > { %7765 = vmatprep.subr.bf16.mxu0 %v9780_v6 }
0x15b4   : > { %v7478_v47 = vmul.f32 %v12917_v15, %v12917_v15 }
0x15b6   : > { %7484 = vadd.xlane.f32.xlu1 %v7478_v47  ;;  %v9783_v47 = vld [vmem:[%s13187_s15 + $0x54] ss:$8 sps:$4 sm:$0xff]  }
0x15b7   : > { %v7467_v51 = vpop.xlane.xlu1 %7466 }
0x15b8   : > { %v7471_v0 = vmul.f32 0.0078125, %v7467_v51  ;;  %v9781_v51 = vld [vmem:[%s13187_s15 + $0x50] ss:$8 sps:$4 sm:$0xff]  }
0x15ba   : > { %v12921_v55 = vsub.f32 %v7457_v21, %v7471_v0  ;;  %v9786_v0 = vld [vmem:[%s13187_s15 + $0x64] ss:$8 sps:$4 sm:$0xff]  }
0x15bc   : > { %v7479_v41 = vmul.f32 %v12921_v55, %v12921_v55 }
0x15be   : > { %7486 = vadd.xlane.f32.xlu1 %v7479_v41  ;;  %v9789_v41 = vld [vmem:[%s13187_s15 + $0x74] ss:$8 sps:$4 sm:$0xff]  }
0x15cf   : > { %v7483_v10 = vpop.xlane.xlu0 %7482 }
0x15d0   : > { %v7489_v16 = vmul.f32 0.0078125, %v7483_v10  ;;  %v9797_v10 = vld [vmem:[%s13191_s19 + $0x18] sm:$0xff]  }
0x15d2   : > { %v7493_v7 = vadd.f32 1e-05, %v7489_v16  ;;  %v9799_v16 = vld [vmem:[%s13191_s19 + $0x20] sm:$0xff]  }
0x15d3   : > { %v7481_v29 = vpop.xlane.xlu0 %7480 }
0x15d4   : > { %v7488_v35 = vmul.f32 0.0078125, %v7481_v29  ;;  %10198 = vrsqrt.f32 %v7493_v7  ;;  %v9798_v29 = vld [vmem:[%s13191_s19 + $0x60] sm:$0xff]   ;;  %v9801_v7 = vld [vmem:[%s13191_s19 + $0x28] sm:$0xff]  }
0x15d6   : > { %v7492_v31 = vadd.f32 1e-05, %v7488_v35  ;;  %v9800_v35 = vld [vmem:[%s13191_s19 + $0x68] sm:$0xff]  }
0x15d8   : > { %10200 = vrsqrt.f32 %v7492_v31  ;;  %v9802_v31 = vld [vmem:[%s13191_s19 + $0x70] sm:$0xff]  }
0x15de   : > { %v10199_v62 = vpop.eup %10198 }
0x15df   : > { %v7501_v38 = vmul.f32 %v10199_v62, %v12909_v33 }
0x15e1   : > { %v7509_v25 = vmul.f32 %v7507_v20, %v7501_v38 }
0x15e2   : > { %v10201_v22 = vpop.eup %10200 }
0x15e3   : > { %v7500_v36 = vmul.f32 %v10201_v22, %v12913_v54  ;;  %v7517_v26 = vadd.f32 %v7515_v49, %v7509_v25 }
0x15e5   : > { %v7508_v37 = vmul.f32 %v7507_v20, %v7500_v36  ;;  %v7521_v42 = vrot.slane %v7517_v26, 7 }
0x15e7   : > { %v7516_v21 = vadd.f32 %v7515_v49, %v7508_v37 }
0x15e9   : > { %v7530_v13 = vsel %vm7529_vm5, %v7516_v21, %v7521_v42 }
0x1643   : > { %v7485_v43 = vpop.xlane.xlu1 %7484 }
0x1644   : > { %v7490_v2 = vmul.f32 0.0078125, %v7485_v43  ;;  %v9803_v43 = vld [vmem:[%s13191_s19 + $0x30] sm:$0xff]  }
0x1646   : > { %v7494_v44 = vadd.f32 1e-05, %v7490_v2  ;;  %v9804_v2 = vld [vmem:[%s13191_s19 + $0x78] sm:$0xff]  }
0x1648   : > { %10202 = vrsqrt.f32 %v7494_v44  ;;  %v9805_v44 = vld [vmem:[%s13191_s19 + $0x38] sm:$0xff]  }
0x164b   : > { %v7487_v53 = vpop.xlane.xlu1 %7486 }
0x164c   : > { %v7491_v32 = vmul.f32 0.0078125, %v7487_v53  ;;  %v7665_v53 = vld [vmem:[%s13188_s16] sm:$0x3] }
0x164e   : > { %v7495_v9 = vadd.f32 1e-05, %v7491_v32  ;;  %v7670_v32 = vrot.slane %v7665_v53, %v13297_v12 }
0x1650   : > { %10204 = vrsqrt.f32 %v7495_v9  ;;  %v7674_v9 = vrot.slane %v7665_v53, %v13298_v48 }
0x1652   : > { %v10203_v46 = vpop.eup %10202 }
0x1653   : > { %v7502_v24 = vmul.f32 %v10203_v46, %v12917_v15  ;;  %v9778_v15 = vld [vmem:[%s13187_s15 + $0x40] ss:$8 sps:$4 sm:$0xff]  }
0x1654   : > { %7766 = vmatpush1.bf16.msra.mxu0 %v9778_v15 }
0x1655   : > { %v7510_v1 = vmul.f32 %v7507_v20, %v7502_v24  ;;  %7767 = vmatprep.subr.bf16.mxu0 %v9783_v47 }
0x1657   : > { %v7518_v45 = vadd.f32 %v7515_v49, %v7510_v1 }
0x1658   : > { %7768 = vmatpush1.bf16.msra.mxu0 %v9781_v51 }
0x1659   : > { %v7524_v14 = vrot.slane %v7518_v45, 6  ;;  %7769 = vmatprep.subr.bf16.mxu0 %v9786_v0 }
0x165a   : > { %v10205_v40 = vpop.eup %10204 }
0x165b   : > { %v7503_v52 = vmul.f32 %v10205_v40, %v12921_v55  ;;  %v7532_v54 = vsel %vm7531_vm6, %v7530_v13, %v7524_v14  ;;  %v9784_v55 = vld [vmem:[%s13187_s15 + $0x60] ss:$8 sps:$4 sm:$0xff]  }
0x165c   : > { %7770 = vmatpush1.bf16.msra.mxu0 %v9784_v55 }
0x165d   : > { %v7511_v30 = vmul.f32 %v7507_v20, %v7503_v52  ;;  %7771 = vmatprep.subr.bf16.mxu0 %v9789_v41 }
0x165f   : > { %v7519_v33 = vadd.f32 %v7515_v49, %v7511_v30 }
0x1660   : > { %7772 = vmatpush1.bf16.msra.mxu0 %v9787_v27 }
0x1661   : > { %v7527_v56 = vrot.slane %v7519_v33, 5  ;;  %9413 = vmatprep.subr.bf16.mxu0 %v13276_v8 }
0x1663   : > { %v7534_v11 = vsel %vm7533_vm7, %v7532_v54, %v7527_v56 }
0x1664   : > { %v7535_v28 = vpack.c.bf16 %v7534_v11, %v7534_v11  ;;  %v7820_v11 = vld [vmem:[%s13189_s17] sm:$0x3] }
0x1665   : > { %v7825_v6 = vrot.slane %v7820_v11, %v13297_v12  ;;  %v7829_v47 = vrot.slane %v7820_v11, %v13298_v48 }
0x1666   : > { %9410 = vmatmul.mubr.bf16.vlgmr.msra.gmra.mrb[200].mxu1 %v7535_v28  ;;  %v7834_v28 = vld [vmem:[%s13190_s18] sm:$0x3] }
0x1667   : > { %8883 = vmatpush3.bf16.msra.mxu1 %v9791_v59  ;;  %v7839_v55 = vrot.slane %v7834_v28, %v13297_v12  ;;  %v7843_v27 = vrot.slane %v7834_v28, %v13298_v48  ;;  %v9807_v12 = vld [vmem:[%s13300_s7 + $0x8] sm:$0xff]   ;;  %v9808_v48 = vld [vmem:[%s13300_s7 + $0x10] sm:$0xff]  }
0x1668   : > { %8884 = vmatprep.subr.bf16.mxu1 %v9792_v58  ;;  %v9811_v59 = vld [vmem:[%s13300_s7 + $0x28] sm:$0xff]   ;;  %v9812_v58 = vld [vmem:[%s13300_s7 + $0x30] sm:$0xff]  }
0x166b   : > { %8885 = vmatpush3.bf16.msra.mxu1 %v9793_v39  ;;  %v9813_v39 = vld [vmem:[%s13300_s7 + $0x38] sm:$0xff]  }
0x166c   : > { %8886 = vmatprep.subr.bf16.mxu1 %v9794_v34 }
0x166f   : > { %8887 = vmatpush3.bf16.msra.mxu1 %v9795_v50  ;;  %v8585_v50 = vld [vmem:[%s13301_s8] ss:$0 sm:$0xff]  ;;  %s13306_s8 = sld [smem:[#allocation35_spill]] }
0x1670   : > { %8888 = vmatprep.subr.bf16.mxu1 %v9796_v19 }
0x1673   : > { %8889 = vmatpush3.bf16.msra.mxu1 %v9797_v10 }
0x1674   : > { %8890 = vmatprep.subr.bf16.mxu1 %v9798_v29 }
0x1677   : > { %8891 = vmatpush3.bf16.msra.mxu1 %v9799_v16 }
0x1678   : > { %8892 = vmatprep.subr.bf16.mxu1 %v9800_v35 }
0x167b   : > { %8893 = vmatpush3.bf16.msra.mxu1 %v9801_v7 }
0x167c   : > { %8894 = vmatprep.subr.bf16.mxu1 %v9802_v31 }
0x167f   : > { %8895 = vmatpush3.bf16.msra.mxu1 %v9803_v43 }
0x1680   : > { %8896 = vmatprep.subr.bf16.mxu1 %v9804_v2 }
0x1683   : > { %8897 = vmatpush3.bf16.msra.mxu1 %v9805_v44 }
0x1739   : > { %v7641_v17 = vpop.f32.mrb[200].mxu1 }
0x173a   : > { %v7642_v60 = vadd.f32 %v8560_v18, %v7641_v17  ;;  %v9411_v4 = vpop.f32.mrb[201].mxu1 }
0x173b   : > { %v7644_v57 = vpop.f32.mrb[202].mxu1 }
0x173c   : > { %10206 = vtanh.f32 %v7642_v60  ;;  %v9412_v63 = vpop.f32.mrb[203].mxu1 }
0x1746   : > { %v10207_v5 = vpop.eup %10206 }
0x1747   : > { %v7648_v3 = vpack.c.bf16 %v10207_v5, %v10207_v5  ;;  %v9806_v5 = vld [vmem:[%s13299_s29] sm:$0xff]   ;;  %s770_s29 = sand.u32 1, %s13302_s5  }
0x1748   : > { %s8251_s2 = sshll.u32 %s770_s29, 2  ;;  %s8166_s5 = scalar_lea.sflag [#allocation4], %s770_s29 }
0x1749   : > { %7790 = vmatmul.mubr.bf16.vlgmr.msra.gmra.mrb[184].mxu0 %v7648_v3  ;;  %v9809_v3 = vld [vmem:[%s13300_s7 + $0x18] sm:$0xff]   ;;  %s772_s7 = scalar_lea.vmem [#allocation3], %s8251_s2  ;;  %s10300_s2 = smov [#allocation3]  }
0x174a   : > { %9429 = vmatprep.mubr.msk.bf16.mxu0 %vm10296_vm0, %v13276_v8  ;;  %9414 = vmatpush3.bf16.msra.mxu0 %v9806_v5  ;;  %s8179_s25 = sshll.u32 %s772_s7, 4  ;;  %s10234_s22 = sshll.u32 %s10300_s2, 4  ;;  %s13132_s25 = int_to_ptr.vmem [resolvable:$true] %s8179_s25  ;;  %s10235_s22 = int_to_ptr.vmem [resolvable:$false] %s10234_s22 }
0x174b   : > { %9415 = vmatprep.subr.bf16.mxu0 %v13276_v8  ;;  %s10230_s23 = scalar_lea.vmem %s13132_s25, 64  ;;  %s10236_s30 = scalar_lea.vmem %s10235_s22, 128 }
0x174c   : > { %p10231_p12 = scmp.ne.s32.totalorder %s13132_s25, %s10230_s23  ;;  %p10237_p1 = scmp.lt.s32.totalorder %s13132_s25, %s10235_s22 }
0x174d   : > { %p10238_p2 = scmp.lt.s32.totalorder %s10236_s30, %s10230_s23 }
0x174e   : > { %9416 = vmatpush3.bf16.msra.mxu0 %v9807_v12  ;;  %p10232_p13 = pnand %p10231_p12, %p10469_p5 }
0x174f   : > { %9417 = vmatprep.subr.bf16.mxu0 %v13276_v8  ;;  %p10239_p3 = por %p10238_p2, %p10237_p1 }
0x1750   : > { %p10233_p0 = pneg %p10232_p13 }
0x1752   : > { %9418 = vmatpush3.bf16.msra.mxu0 %v9808_v48  ;;  %p10240_p4 = pnand %p10239_p3, %p10233_p0 }
0x1753   : > { %9419 = vmatprep.subr.bf16.mxu0 %v13276_v8 }
0x1756   : > { %9420 = vmatpush3.bf16.msra.mxu0 %v9809_v3 }
0x1757   : > { %9421 = vmatprep.subr.bf16.mxu0 %v13276_v8 }
0x175a   : > { %9422 = vmatpush3.bf16.msra.mxu0 %v9810_v23 }
0x175b   : > { %9423 = vmatprep.subr.bf16.mxu0 %v13276_v8 }
0x175e   : > { %9424 = vmatpush3.bf16.msra.mxu0 %v9811_v59 }
0x175f   : > { %9425 = vmatprep.subr.bf16.mxu0 %v13276_v8 }
0x1762   : > { %9426 = vmatpush3.bf16.msra.mxu0 %v9812_v58 }
0x1763   : > { %9427 = vmatprep.subr.bf16.mxu0 %v13276_v8 }
0x1766   : > { %9428 = vmatpush3.bf16.msra.mxu0 %v9813_v39 }
0x181c   : > { %v7791_v62 = vpop.f32.mrb[184].mxu0 }
0x181d   : > { %v7792_v61 = vadd.f32 %v7791_v62, %v7670_v32  ;;  %v7793_v22 = vpop.f32.mrb[185].mxu0 }
0x181e   : > { %v7794_v46 = vadd.f32 %v7793_v22, %v7674_v9  ;;  %v7795_v20 = vpop.f32.mrb[186].mxu0 }
0x181f   : > { %v7800_v38 = vand.u32 2147483647, %v7792_v61  ;;  %v7796_v24 = vpop.f32.mrb[187].mxu0  ;;  %v7798_v14 = vmax.f32 %v7792_v61, 0.0 }
0x1820   : > { %v7801_v36 = vand.u32 2147483647, %v7794_v46  ;;  %v7799_v33 = vmax.f32 %v7794_v46, 0.0 }
0x1821   : > { %v7802_v1 = vsub.f32 0.0, %v7800_v38 }
0x1822   : > { %v7803_v49 = vsub.f32 0.0, %v7801_v36  ;;  %v8604_v36 = vld [vmem:[%s13306_s8] ss:$0 sm:$0xff] }
0x1823   : > { %v7804_v25 = vmul.f32 1.442695, %v7802_v1 }
0x1824   : > { %v7806_v37 = vmul.f32 1.442695, %v7803_v49 }
0x1825   : > { %10208 = vpow2.f32 %v7804_v25 }
0x1826   : > { %10210 = vpow2.f32 %v7806_v37 }
0x182f   : > { %v10209_v40 = vpop.eup %10208 }
0x1830   : > { %v10211_v45 = vpop.eup %10210  ;;  %v7808_v26 = vadd.f32 1.0, %v10209_v40 }
0x1831   : > { %v7809_v52 = vadd.f32 1.0, %v10211_v45 }
0x1832   : > { %10212 = vlog2.f32 %v7808_v26 }
0x1833   : > { %10214 = vlog2.f32 %v7809_v52 }
0x183c   : > { %v10213_v21 = vpop.eup %10212 }
0x183d   : > { %v10215_v30 = vpop.eup %10214  ;;  %v7811_v42 = vmul.f32 0.6931472, %v10213_v21 }
0x183e   : > { %v7813_v56 = vmul.f32 0.6931472, %v10215_v30 }
0x183f   : > { %v7814_v13 = vadd.f32 %v7811_v42, %v7798_v14 }
0x1840   : > { %v7815_v54 = vadd.f32 %v7813_v56, %v7799_v33 }
0x1841   : > { %10216 = vtanh.f32 %v7814_v13 }
0x1842   : > { %10218 = vtanh.f32 %v7815_v54 }
0x184b   : > { %v10217_v15 = vpop.eup %10216 }
0x184c   : > { %v10219_v51 = vpop.eup %10218  ;;  %v7818_v0 = vmul.f32 %v10217_v15, %v7792_v61  ;;  %v8602_v61 = vld [vmem:[%s13304_s4] ss:$0 sm:$0xff] }
0x184d   : > { %v7819_v41 = vmul.f32 %v10219_v51, %v7794_v46  ;;  %v8603_v46 = vld [vmem:[%s13305_s3] ss:$0 sm:$0xff]  ;;  %s13130_s3 = scalar_lea.hbm %s13308_s6, %s8614_s1 }
0x184e   : > { %v7832_v18 = vmul.f32 %v7825_v6, %v7818_v0 }
0x184f   : > { %v7833_v17 = vmul.f32 %v7829_v47, %v7819_v41 }
0x1850   : > { %v7846_v60 = vadd.f32 %v7839_v55, %v7832_v18 }
0x1851   : > { %v7847_v4 = vadd.f32 %v7843_v27, %v7833_v17 }
0x1852   : > { %v7848_v63 = vpack.c.bf16 %v7846_v60, %v7846_v60 }
0x1853   : > { %v7849_v57 = vpack.c.bf16 %v7847_v4, %v7847_v4 }
0x1855   : > { %8017 = vmatprep.mubr.bf16.mxu1 %v7849_v57 }
0x1856   : > { %8018 = vmatmul.mubr.bf16.vlgmr.msra.gmra.mrb[204].mxu1 %v7848_v63 }
0x1929   : > { %v8898_v34 = vpop.f32.mrb[204].mxu1 }
0x192a   : > { %v8899_v19 = vpop.f32.mrb[205].mxu1 }
0x192b   : > { %v8900_v10 = vadd.f32 %v8899_v19, %v8898_v34  ;;  %v8901_v29 = vpop.f32.mrb[206].mxu1 }
0x192c   : > { %v8902_v16 = vpop.f32.mrb[207].mxu1 }
0x192d   : > { %v8020_v35 = vadd.f32 %v8900_v10, %v8585_v50 }
0x192f   : > { %v8026_v7 = vand.u32 2147483647, %v8020_v35  ;;  %v8025_v53 = vmax.f32 %v8020_v35, 0.0 }
0x1931   : > { %v8027_v31 = vsub.f32 0.0, %v8026_v7 }
0x1933   : > { %v8028_v43 = vmul.f32 1.442695, %v8027_v31 }
0x1935   : > { %10220 = vpow2.f32 %v8028_v43 }
0x193f   : > { %v10221_v2 = vpop.eup %10220 }
0x1940   : > { %v8030_v44 = vadd.f32 1.0, %v10221_v2 }
0x1942   : > { %10222 = vlog2.f32 %v8030_v44 }
0x194c   : > { %v10223_v8 = vpop.eup %10222 }
0x194d   : > { %v8032_v32 = vmul.f32 0.6931472, %v10223_v8 }
0x194f   : > { %v8033_v9 = vadd.f32 %v8032_v32, %v8025_v53 }
0x1951   : > { %10224 = vtanh.f32 %v8033_v9 }
0x195b   : > { %v10225_v62 = vpop.eup %10224 }
0x195c   : > { %v8035_v22 = vmul.f32 %v10225_v62, %v8020_v35 }
0x195e   : > { %v8043_v20 = vmul.f32 %v8602_v61, %v8035_v22 }
0x1960   : > { %v8051_v38 = vadd.f32 %v8603_v46, %v8043_v20 }
0x1962   : > { %v8052_v24 = vpack.c.bf16 %v8051_v38, %v8051_v38 }
0x1964   : > { %9430 = vmatmul.mubr.bf16.vlgmr.msra.gmra.mrb[188].mxu0 %v8052_v24 }
0x1a37   : > { %v8158_v1 = vpop.f32.mrb[188].mxu0 }
0x1a38   : > { %v8159_v49 = vadd.f32 %v8604_v36, %v8158_v1  ;;  %v9431_v25 = vpop.f32.mrb[189].mxu0 }
0x1a39   : > { %v8161_v37 = vpop.f32.mrb[190].mxu0 }
0x1a3a   : > { %8164 = vst [vmem:[%s772_s7] sm:$0xf] %v8159_v49  ;;  %v9432_v40 = vpop.f32.mrb[191].mxu0 }
0x1a3b   : > { %10243 = shalt.err (!%p10240_p4)
}
0x1a3c   : > { %s10244_s1 = scalar_lea.hbm %s13130_s3, 64  ;;  %s10248_s8 = scalar_lea.hbm %s13309_s28, 128 }
0x1a3d   : > { %p10245_p7 = scmp.ne.s32.totalorder %s13130_s3, %s10244_s1  ;;  %p10249_p10 = scmp.lt.u32.totalorder %s13130_s3, %s13309_s28 }
0x1a3e   : > { %p10250_p11 = scmp.lt.u32.totalorder %s10248_s8, %s10244_s1  ;;  %p10252_p13 = scmp.lt.u32.totalorder %s10244_s1, %s13130_s3 }
0x1a3f   : > { %p10246_p8 = pnand %p10245_p7, %p10469_p5 }
0x1a40   : > { %p10251_p12 = por %p10250_p11, %p10249_p10 }
0x1a41   : > { %p10247_p9 = pneg %p10246_p8 }
0x1a42   : > { %p10253_p0 = por %p10252_p13, %p10251_p12 }
0x1a44   : > { %p10254_p1 = pnand %p10253_p0, %p10247_p9 }
0x1a46   : > { %10257 = shalt.err (!%p10254_p1)
}
0x1a47   : > { %9433 = dma.vmem_to_hbm [thread:$0]  (%p10469_p5), %s13132_s25, 64, %s13130_s3, %s8166_s5  }
0x1a48 PF: > { %s13310_s6 = sld [smem:[#allocation9_spill]]  ;;  %s13311_s23 = sld [smem:[#allocation6_spill]] }
0x1a4e   : > { %p9439_p2 = scmp.ge.s32.totalorder %s13310_s6, 2  ;;  %s8191_s22 = sand.u32 1, %s13311_s23  }
0x1a4f   : > { %s8192_s30 = scalar_lea.sflag [#allocation4], %s8191_s22 }
0x1a50   : > { %p9436_p3 = pnand %p9439_p2, %p10473_p6 }
0x1a52   : > { %10275 = dma.done.wait (!%p9436_p3), %s8192_s30, 64  }
0x1a53   : > { %10277 = vsyncadd (!%p9436_p3), %s8192_s30, 4294967232  ;;  %s13313_s30 = sld [smem:[#allocation11_spill]]  ;;  %s13314_s29 = sld [smem:[#allocation7_spill]] }
0x1a54   : > { %s13315_s2 = sld [smem:[#allocation8_spill]]  ;;  %s13316_s6 = sld [smem:[#allocation12_spill]] }
0x1a59   : > { %p35_p4 = scmp.ge.s32.totalorder %s13313_s30, 4  }
0x1a5b   :  { %37 = sbr.rel (!%p35_p4) target bundleno = 20 (0x14), region = 171 }
0x1a62   :  { %8197 = vsyncpa [#allocation4], 1 }
0x1a63   :  { %8199 = vsyncpa [#allocation4 + $0x1], 1 }

</bundles_post_ra>
